<compile_context>
chip_gen: v7x
topology: tpu7x:2x2x1
jax: 0.10.0
libtpu: 0.0.40
codegen_flags: <defaults>
</compile_context>

<pallas_src>
import functools

import numpy as np
import jax
import jax.numpy as jnp
from jax.experimental import pallas as pl
from jax.experimental.pallas import tpu as pltpu

_BN_EPS = 1e-5

# Block-size caps.  Dims at or below the cap use a single full-extent block
# (no padding, no slicing); only larger dims are tiled.
_MB_MAX = 256
_NB_MAX = 256
_KB_MAX = 4096


def _ru(x, m):
    return ((x + m - 1) // m) * m


def _block(dim, bmax):
    """Return (block_size, padded_dim) for one matmul dimension."""
    if dim <= bmax:
        return dim, dim          # full-extent block, no padding
    return bmax, _ru(dim, bmax)


# ----------------------------- Pallas kernel -------------------------------

def _mm_kernel(x_ref, w_ref, b_ref, *rest, relu, has_res):
    """Tiled MXU matmul (bf16 in, f32 acc) with fused bias, optional residual
    add and optional ReLU in the epilogue."""
    if has_res:
        res_ref, o_ref, acc_ref = rest
    else:
        o_ref, acc_ref = rest

    k = pl.program_id(2)

    @pl.when(k == 0)
    def _():
        acc_ref[...] = jnp.zeros_like(acc_ref)

    acc_ref[...] += jnp.dot(x_ref[...], w_ref[...],
                            preferred_element_type=jnp.float32)

    @pl.when(k == pl.num_programs(2) - 1)
    def _():
        y = acc_ref[...] + b_ref[...]
        if has_res:
            y = y + res_ref[...].astype(jnp.float32)
        if relu:
            y = jnp.maximum(y, 0.0)
        o_ref[...] = y.astype(o_ref.dtype)


def _matmul_bias(x, w, bias, *, res=None, relu=False,
                 out_dtype=jnp.bfloat16):
    """(M,K)@(K,N) + bias[1,N] (+res[M,N]) (+ReLU) via the fused Pallas kernel.

    x/w/res are expected in bf16; bias in f32.  Padding only happens when a
    dimension exceeds the block cap and is not divisible by it (never for the
    shapes used by this model).
    """
    M, K = x.shape
    K2, N = w.shape
    assert K == K2

    mb, Mp = _block(M, _MB_MAX)
    nb, Np = _block(N, _NB_MAX)
    kb, Kp = _block(K, _KB_MAX)

    if Mp != M or Kp != K:
        x = jnp.pad(x, ((0, Mp - M), (0, Kp - K)))
    if Kp != K or Np != N:
        w = jnp.pad(w, ((0, Kp - K), (0, Np - N)))
    if Np != N:
        bias = jnp.pad(bias, ((0, 0), (0, Np - N)))

    has_res = res is not None
    inputs = [x, w, bias]
    in_specs = [
        pl.BlockSpec((mb, kb), lambda i, j, k: (i, k)),
        pl.BlockSpec((kb, nb), lambda i, j, k: (k, j)),
        pl.BlockSpec((1, nb), lambda i, j, k: (0, j)),
    ]
    if has_res:
        if Mp != M or Np != N:
            res = jnp.pad(res, ((0, Mp - M), (0, Np - N)))
        inputs.append(res)
        in_specs.append(pl.BlockSpec((mb, nb), lambda i, j, k: (i, j)))

    out = pl.pallas_call(
        functools.partial(_mm_kernel, relu=relu, has_res=has_res),
        out_shape=jax.ShapeDtypeStruct((Mp, Np), out_dtype),
        grid_spec=pltpu.PrefetchScalarGridSpec(
            num_scalar_prefetch=0,
            grid=(Mp // mb, Np // nb, Kp // kb),
            in_specs=in_specs,
            out_specs=pl.BlockSpec((mb, nb), lambda i, j, k: (i, j)),
            scratch_shapes=[pltpu.VMEM((mb, nb), jnp.float32)],
        ),
        compiler_params=pltpu.CompilerParams(
            dimension_semantics=("parallel", "parallel", "arbitrary")),
    )(*inputs)

    if Mp != M or Np != N:
        out = out[:M, :N]
    return out


# --------------------------- conv / pool wrappers ---------------------------

def _im2col(x, kh, kw, stride, dilation, padding):
    """NHWC patch extraction (XLA glue); feature order = (kh, kw, C)."""
    N, H, W, C = x.shape
    OH = (H + 2 * padding - dilation * (kh - 1) - 1) // stride + 1
    OW = (W + 2 * padding - dilation * (kw - 1) - 1) // stride + 1
    xp = jnp.pad(x, ((0, 0), (padding, padding), (padding, padding), (0, 0)))
    cols = []
    for i in range(kh):
        for j in range(kw):
            h0, w0 = i * dilation, j * dilation
            cols.append(xp[:, h0:h0 + stride * (OH - 1) + 1:stride,
                              w0:w0 + stride * (OW - 1) + 1:stride, :])
    patches = jnp.concatenate(cols, axis=-1)          # (N, OH, OW, kh*kw*C)
    return patches.reshape(N * OH * OW, kh * kw * C), (N, OH, OW)


def conv2d_affine(x, p, *, stride=1, dilation=1, padding=0, relu=False,
                  res=None, out_dtype=jnp.bfloat16):
    """Conv2d with pre-folded BN/bias (+ optional fused residual add + ReLU)."""
    k = p['k']
    if k == 1 and padding == 0:
        if stride > 1:
            x = x[:, ::stride, ::stride, :]
        N, OH, OW, C = x.shape
        cols = x.reshape(N * OH * OW, C)              # 1x1 conv: pure reshape
    else:
        cols, (N, OH, OW) = _im2col(x, k, k, stride, dilation, padding)
    res2 = None if res is None else res.reshape(N * OH * OW, res.shape[-1])
    y = _matmul_bias(cols, p['w'], p['b'], res=res2, relu=relu,
                     out_dtype=out_dtype)
    return y.reshape(N, OH, OW, y.shape[-1])


def maxpool_3x3_s2_p1(x):
    """3x3/stride-2 max pool as a fused plain-JAX maximum tree (no 9x HBM
    intermediate, no extra kernel launch)."""
    N, H, W, C = x.shape
    OH = (H + 2 - 3) // 2 + 1
    OW = (W + 2 - 3) // 2 + 1
    xp = jnp.pad(x, ((0, 0), (1, 1), (1, 1), (0, 0)),
                 constant_values=-jnp.inf)
    out = None
    for i in range(3):
        for j in range(3):
            s = xp[:, i:i + 2 * (OH - 1) + 1:2, j:j + 2 * (OW - 1) + 1:2, :]
            out = s if out is None else jnp.maximum(out, s)
    return out


# ----------------------------- parameter setup -----------------------------

class _PG:
    def __init__(self, key):
        self._key = key

    def next(self):
        self._key, k = jax.random.split(self._key)
        return k


def _conv_bn(pg, cin, cout, k):
    """Conv + eval-mode BN folded into a pre-transposed bf16 weight matrix."""
    fan_in = cin * k * k
    w = jax.random.normal(pg.next(), (k, k, cin, cout),
                          jnp.float32) * np.sqrt(2.0 / fan_in)
    # PyTorch BN init defaults: gamma=1, beta=0, mean=0, var=1.
    scale = 1.0 / np.sqrt(1.0 + _BN_EPS)
    wmat = (w * scale).reshape(k * k * cin, cout).astype(jnp.bfloat16)
    return {'w': wmat, 'b': jnp.zeros((1, cout), jnp.float32), 'k': k}


def _conv_bias(pg, cin, cout, k):
    fan_in = cin * k * k
    w = jax.random.normal(pg.next(), (k, k, cin, cout),
                          jnp.float32) * np.sqrt(2.0 / fan_in)
    b = jax.random.normal(pg.next(), (cout,), jnp.float32) / np.sqrt(fan_in)
    return {'w': w.reshape(k * k * cin, cout).astype(jnp.bfloat16),
            'b': b.reshape(1, cout), 'k': k}


def _make_bottleneck(pg, cin, planes, need_down):
    p = {'conv1': _conv_bn(pg, cin, planes, 1),
         'conv2': _conv_bn(pg, planes, planes, 3),
         'conv3': _conv_bn(pg, planes, planes * 4, 1)}
    if need_down:
        p['down'] = _conv_bn(pg, cin, planes * 4, 1)
    return p


def make_patch_level_encoder_params(key, *, output_dim, width=8):
    pg = _PG(key)
    params = {'stem': _conv_bn(pg, 3, width, 7)}
    blocks = (3, 4, 6, 3)                        # ResNet-50 block layout
    planes = (width, width * 2, width * 4, width * 8)
    cin = width
    layers = []
    for p, b in zip(planes, blocks):
        stage = [_make_bottleneck(pg, cin, p, need_down=True)]
        cin = p * 4
        for _ in range(b - 1):
            stage.append(_make_bottleneck(pg, cin, p, need_down=False))
        layers.append(stage)
    params['layers'] = layers
    c4 = planes[-1] * 4                          # 256 with width=8
    params['fcn'] = _conv_bn(pg, c4, 256, 3)     # MoCoFCN: 3x3 conv -> BN -> ReLU
    params['fc1'] = _conv_bias(pg, 256, 256, 1)  # ConvMLP: 1x1 -> ReLU -> 1x1
    params['fc2'] = _conv_bias(pg, 256, output_dim, 1)
    return params


# -------------------------------- forward ----------------------------------

def _bottleneck(x, p, stride, dilation):
    out = conv2d_affine(x, p['conv1'], relu=True)
    out = conv2d_affine(out, p['conv2'], stride=stride, dilation=dilation,
                        padding=dilation, relu=True)
    if 'down' in p:
        identity = conv2d_affine(x, p['down'], stride=stride, relu=False)
    else:
        identity = x
    # Residual add + ReLU fused into conv3's matmul epilogue.
    return conv2d_affine(out, p['conv3'], relu=True, res=identity)


def _run_stage(x, stage_params, stride, dilation):
    x = _bottleneck(x, stage_params[0], stride, dilation)
    for p in stage_params[1:]:
        x = _bottleneck(x, p, 1, dilation)
    return x


def patch_level_encoder(x_nchw, params):
    # NCHW -> NHWC; activations flow in bf16 (f32 accumulation in the MXU).
    x = jnp.transpose(x_nchw, (0, 2, 3, 1)).astype(jnp.bfloat16)
    # backbone: seg_resnet50 (dilated, output stride 8)
    x = conv2d_affine(x, params['stem'], stride=2, padding=3, relu=True)
    x = maxpool_3x3_s2_p1(x)
    stage_cfg = ((1, 1), (2, 1), (1, 2), (1, 4))   # (stride, dilation)
    for stage_params, (stride, dilation) in zip(params['layers'], stage_cfg):
        x = _run_stage(x, stage_params, stride, dilation)
    # decode_head: MoCoFCN on the last backbone feature map
    d = conv2d_affine(x, params['fcn'], padding=1, relu=True)
    # fc: ConvMLP(256, output_dim)
    h = conv2d_affine(d, params['fc1'], relu=True)
    out = conv2d_affine(h, params['fc2'], relu=False, out_dtype=jnp.float32)
    return jnp.transpose(out, (0, 3, 1, 2))        # NHWC -> NCHW


# ---------------------------------- main ------------------------------------

if __name__ == "__main__":
    key = jax.random.PRNGKey(0)
    pkey, xkey = jax.random.split(key)
    output_dim = 32
    params = make_patch_level_encoder_params(pkey, output_dim=output_dim,
                                             width=8)
    x = jax.random.normal(xkey, (2, 3, 32, 32), jnp.float32)   # NCHW input

    fwd = jax.jit(lambda inp: patch_level_encoder(inp, params))
    out = jax.block_until_ready(fwd(x))

    assert out.shape == (2, output_dim, 4, 4), out.shape
    assert out.dtype == jnp.float32
    assert bool(jnp.all(jnp.isfinite(out)))
    print("KERNEL_OK")
</pallas_src>

<mosaic_0001>
module attributes {stable_mosaic.version = 11 : i64} {
  func.func @_mm_kernel(%arg0: i32, %arg1: i32, %arg2: i32, %arg3: memref<256x147xbf16, #tpu.memory_space<vmem>>, %arg4: memref<147x8xbf16, #tpu.memory_space<vmem>>, %arg5: memref<1x8xf32, #tpu.memory_space<vmem>>, %arg6: memref<256x8xbf16, #tpu.memory_space<vmem>>, %arg7: memref<256x8xf32, #tpu.memory_space<vmem>>) attributes {dimension_semantics = [#tpu.dimension_semantics<parallel>, #tpu.dimension_semantics<parallel>, #tpu.dimension_semantics<arbitrary>], iteration_bounds = array<i64: 2, 1, 1>, scalar_prefetch = 0 : i64, scratch_operands = 1 : i64, tpu.core_type = #tpu.core_type<tc>, window_params = [{transform_indices = @transform_0, window_bounds = array<i64: 256, 147>}, {transform_indices = @transform_1, window_bounds = array<i64: 147, 8>}, {transform_indices = @transform_2, window_bounds = array<i64: 1, 8>}, {transform_indices = @transform_3, window_bounds = array<i64: 256, 8>}]} {
    %c0_i32 = arith.constant 0 : i32
    %0 = arith.cmpi eq, %arg2, %c0_i32 : i32
    %1 = arith.extui %0 : i1 to i32
    %c0_i32_0 = arith.constant 0 : i32
    %2 = arith.cmpi ne, %1, %c0_i32_0 : i32
    scf.if %2 {
      %cst_10 = arith.constant 0.000000e+00 : f32
      %12 = vector.broadcast %cst_10 : f32 to vector<256x8xf32>
      %c0_11 = arith.constant 0 : index
      %c0_12 = arith.constant 0 : index
      %13 = vector.load %arg7[%c0_11, %c0_12] : memref<256x8xf32, #tpu.memory_space<vmem>>, vector<256x8xf32>
      tpu.vector_store %arg7[%c0_11, %c0_12], %12 {strides = array<i32>} : memref<256x8xf32, #tpu.memory_space<vmem>>, vector<256x8xf32>,
    } else {
    }
    %c0 = arith.constant 0 : index
    %c0_1 = arith.constant 0 : index
    %3 = vector.load %arg7[%c0, %c0_1] : memref<256x8xf32, #tpu.memory_space<vmem>>, vector<256x8xf32>
    %c0_2 = arith.constant 0 : index
    %c0_3 = arith.constant 0 : index
    %4 = vector.load %arg3[%c0_2, %c0_3] : memref<256x147xbf16, #tpu.memory_space<vmem>>, vector<256x147xbf16>
    %c0_4 = arith.constant 0 : index
    %c0_5 = arith.constant 0 : index
    %5 = vector.load %arg4[%c0_4, %c0_5] : memref<147x8xbf16, #tpu.memory_space<vmem>>, vector<147x8xbf16>
    %cst = arith.constant dense<0.000000e+00> : vector<256x8xf32>
    %6 = tpu.matmul %4, %5, %cst {dimension_numbers = #tpu.dot_dimension_numbers<[1], [0], [0], [1], [0, 0, 1, 1], [], []>} : vector<256x147xbf16>, vector<147x8xbf16>, vector<256x8xf32> -> vector<256x8xf32>
    %7 = arith.addf %3, %6 : vector<256x8xf32>
    %c0_6 = arith.constant 0 : index
    %c0_7 = arith.constant 0 : index
    %8 = vector.load %arg7[%c0_6, %c0_7] : memref<256x8xf32, #tpu.memory_space<vmem>>, vector<256x8xf32>
    tpu.vector_store %arg7[%c0_6, %c0_7], %7 {strides = array<i32>} : memref<256x8xf32, #tpu.memory_space<vmem>>, vector<256x8xf32>,
    %c0_i32_8 = arith.constant 0 : i32
    %9 = arith.cmpi eq, %arg2, %c0_i32_8 : i32
    %10 = arith.extui %9 : i1 to i32
    %c0_i32_9 = arith.constant 0 : i32
    %11 = arith.cmpi ne, %10, %c0_i32_9 : i32
    scf.if %11 {
      %c0_10 = arith.constant 0 : index
      %c0_11 = arith.constant 0 : index
      %12 = vector.load %arg7[%c0_10, %c0_11] : memref<256x8xf32, #tpu.memory_space<vmem>>, vector<256x8xf32>
      %c0_12 = arith.constant 0 : index
      %c0_13 = arith.constant 0 : index
      %13 = vector.load %arg5[%c0_12, %c0_13] : memref<1x8xf32, #tpu.memory_space<vmem>>, vector<1x8xf32>
      %14 = vector.broadcast %13 : vector<1x8xf32> to vector<256x8xf32>
      %15 = arith.addf %12, %14 : vector<256x8xf32>
      %cst_14 = arith.constant 0.000000e+00 : f32
      %16 = vector.broadcast %cst_14 : f32 to vector<256x8xf32>
      %17 = arith.maximumf %15, %16 : vector<256x8xf32>
      %18 = arith.truncf %17 : vector<256x8xf32> to vector<256x8xbf16>
      %c0_15 = arith.constant 0 : index
      %c0_16 = arith.constant 0 : index
      %19 = vector.load %arg6[%c0_15, %c0_16] : memref<256x8xbf16, #tpu.memory_space<vmem>>, vector<256x8xbf16>
      tpu.vector_store %arg6[%c0_15, %c0_16], %18 {strides = array<i32>} : memref<256x8xbf16, #tpu.memory_space<vmem>>, vector<256x8xbf16>,
    } else {
    }
    return
  }
  func.func @transform_0(%arg0: i32, %arg1: i32, %arg2: i32) -> (i32, i32) {
    %c0_i32 = arith.constant 0 : i32
    return %arg0, %arg2 : i32, i32
  }
  func.func @transform_1(%arg0: i32, %arg1: i32, %arg2: i32) -> (i32, i32) {
    %c0_i32 = arith.constant 0 : i32
    return %arg2, %arg1 : i32, i32
  }
  func.func @transform_2(%arg0: i32, %arg1: i32, %arg2: i32) -> (i32, i32) {
    %c0_i32 = arith.constant 0 : i32
    %c0_i32_0 = arith.constant 0 : i32
    return %c0_i32, %arg1 : i32, i32
  }
  func.func @transform_3(%arg0: i32, %arg1: i32, %arg2: i32) -> (i32, i32) {
    %c0_i32 = arith.constant 0 : i32
    return %arg0, %arg1 : i32, i32
  }
}

module attributes {stable_mosaic.version = 11 : i64} {
  func.func @_mm_kernel(%arg0: i32, %arg1: i32, %arg2: i32, %arg3: memref<128x8xbf16, #tpu.memory_space<vmem>>, %arg4: memref<8x8xbf16, #tpu.memory_space<vmem>>, %arg5: memref<1x8xf32, #tpu.memory_space<vmem>>, %arg6: memref<128x8xbf16, #tpu.memory_space<vmem>>, %arg7: memref<128x8xf32, #tpu.memory_space<vmem>>) attributes {dimension_semantics = [#tpu.dimension_semantics<parallel>, #tpu.dimension_semantics<parallel>, #tpu.dimension_semantics<arbitrary>], iteration_bounds = array<i64: 1, 1, 1>, scalar_prefetch = 0 : i64, scratch_operands = 1 : i64, tpu.core_type = #tpu.core_type<tc>, window_params = [{transform_indices = @transform_0, window_bounds = array<i64: 128, 8>}, {transform_indices = @transform_1, window_bounds = array<i64: 8, 8>}, {transform_indices = @transform_2, window_bounds = array<i64: 1, 8>}, {transform_indices = @transform_3, window_bounds = array<i64: 128, 8>}]} {
    %c0_i32 = arith.constant 0 : i32
    %0 = arith.cmpi eq, %arg2, %c0_i32 : i32
    %1 = arith.extui %0 : i1 to i32
    %c0_i32_0 = arith.constant 0 : i32
    %2 = arith.cmpi ne, %1, %c0_i32_0 : i32
    scf.if %2 {
      %cst_10 = arith.constant 0.000000e+00 : f32
      %12 = vector.broadcast %cst_10 : f32 to vector<128x8xf32>
      %c0_11 = arith.constant 0 : index
      %c0_12 = arith.constant 0 : index
      %13 = vector.load %arg7[%c0_11, %c0_12] : memref<128x8xf32, #tpu.memory_space<vmem>>, vector<128x8xf32>
      tpu.vector_store %arg7[%c0_11, %c0_12], %12 {strides = array<i32>} : memref<128x8xf32, #tpu.memory_space<vmem>>, vector<128x8xf32>,
    } else {
    }
    %c0 = arith.constant 0 : index
    %c0_1 = arith.constant 0 : index
    %3 = vector.load %arg7[%c0, %c0_1] : memref<128x8xf32, #tpu.memory_space<vmem>>, vector<128x8xf32>
    %c0_2 = arith.constant 0 : index
    %c0_3 = arith.constant 0 : index
    %4 = vector.load %arg3[%c0_2, %c0_3] : memref<128x8xbf16, #tpu.memory_space<vmem>>, vector<128x8xbf16>
    %c0_4 = arith.constant 0 : index
    %c0_5 = arith.constant 0 : index
    %5 = vector.load %arg4[%c0_4, %c0_5] : memref<8x8xbf16, #tpu.memory_space<vmem>>, vector<8x8xbf16>
    %cst = arith.constant dense<0.000000e+00> : vector<128x8xf32>
    %6 = tpu.matmul %4, %5, %cst {dimension_numbers = #tpu.dot_dimension_numbers<[1], [0], [0], [1], [0, 0, 1, 1], [], []>} : vector<128x8xbf16>, vector<8x8xbf16>, vector<128x8xf32> -> vector<128x8xf32>
    %7 = arith.addf %3, %6 : vector<128x8xf32>
    %c0_6 = arith.constant 0 : index
    %c0_7 = arith.constant 0 : index
    %8 = vector.load %arg7[%c0_6, %c0_7] : memref<128x8xf32, #tpu.memory_space<vmem>>, vector<128x8xf32>
    tpu.vector_store %arg7[%c0_6, %c0_7], %7 {strides = array<i32>} : memref<128x8xf32, #tpu.memory_space<vmem>>, vector<128x8xf32>,
    %c0_i32_8 = arith.constant 0 : i32
    %9 = arith.cmpi eq, %arg2, %c0_i32_8 : i32
    %10 = arith.extui %9 : i1 to i32
    %c0_i32_9 = arith.constant 0 : i32
    %11 = arith.cmpi ne, %10, %c0_i32_9 : i32
    scf.if %11 {
      %c0_10 = arith.constant 0 : index
      %c0_11 = arith.constant 0 : index
      %12 = vector.load %arg7[%c0_10, %c0_11] : memref<128x8xf32, #tpu.memory_space<vmem>>, vector<128x8xf32>
      %c0_12 = arith.constant 0 : index
      %c0_13 = arith.constant 0 : index
      %13 = vector.load %arg5[%c0_12, %c0_13] : memref<1x8xf32, #tpu.memory_space<vmem>>, vector<1x8xf32>
      %14 = vector.broadcast %13 : vector<1x8xf32> to vector<128x8xf32>
      %15 = arith.addf %12, %14 : vector<128x8xf32>
      %cst_14 = arith.constant 0.000000e+00 : f32
      %16 = vector.broadcast %cst_14 : f32 to vector<128x8xf32>
      %17 = arith.maximumf %15, %16 : vector<128x8xf32>
      %18 = arith.truncf %17 : vector<128x8xf32> to vector<128x8xbf16>
      %c0_15 = arith.constant 0 : index
      %c0_16 = arith.constant 0 : index
      %19 = vector.load %arg6[%c0_15, %c0_16] : memref<128x8xbf16, #tpu.memory_space<vmem>>, vector<128x8xbf16>
      tpu.vector_store %arg6[%c0_15, %c0_16], %18 {strides = array<i32>} : memref<128x8xbf16, #tpu.memory_space<vmem>>, vector<128x8xbf16>,
    } else {
    }
    return
  }
  func.func @transform_0(%arg0: i32, %arg1: i32, %arg2: i32) -> (i32, i32) {
    %c0_i32 = arith.constant 0 : i32
    return %arg0, %arg2 : i32, i32
  }
  func.func @transform_1(%arg0: i32, %arg1: i32, %arg2: i32) -> (i32, i32) {
    %c0_i32 = arith.constant 0 : i32
    return %arg2, %arg1 : i32, i32
  }
  func.func @transform_2(%arg0: i32, %arg1: i32, %arg2: i32) -> (i32, i32) {
    %c0_i32 = arith.constant 0 : i32
    %c0_i32_0 = arith.constant 0 : i32
    return %c0_i32, %arg1 : i32, i32
  }
  func.func @transform_3(%arg0: i32, %arg1: i32, %arg2: i32) -> (i32, i32) {
    %c0_i32 = arith.constant 0 : i32
    return %arg0, %arg1 : i32, i32
  }
}

module attributes {stable_mosaic.version = 11 : i64} {
  func.func @_mm_kernel(%arg0: i32, %arg1: i32, %arg2: i32, %arg3: memref<128x72xbf16, #tpu.memory_space<vmem>>, %arg4: memref<72x8xbf16, #tpu.memory_space<vmem>>, %arg5: memref<1x8xf32, #tpu.memory_space<vmem>>, %arg6: memref<128x8xbf16, #tpu.memory_space<vmem>>, %arg7: memref<128x8xf32, #tpu.memory_space<vmem>>) attributes {dimension_semantics = [#tpu.dimension_semantics<parallel>, #tpu.dimension_semantics<parallel>, #tpu.dimension_semantics<arbitrary>], iteration_bounds = array<i64: 1, 1, 1>, scalar_prefetch = 0 : i64, scratch_operands = 1 : i64, tpu.core_type = #tpu.core_type<tc>, window_params = [{transform_indices = @transform_0, window_bounds = array<i64: 128, 72>}, {transform_indices = @transform_1, window_bounds = array<i64: 72, 8>}, {transform_indices = @transform_2, window_bounds = array<i64: 1, 8>}, {transform_indices = @transform_3, window_bounds = array<i64: 128, 8>}]} {
    %c0_i32 = arith.constant 0 : i32
    %0 = arith.cmpi eq, %arg2, %c0_i32 : i32
    %1 = arith.extui %0 : i1 to i32
    %c0_i32_0 = arith.constant 0 : i32
    %2 = arith.cmpi ne, %1, %c0_i32_0 : i32
    scf.if %2 {
      %cst_10 = arith.constant 0.000000e+00 : f32
      %12 = vector.broadcast %cst_10 : f32 to vector<128x8xf32>
      %c0_11 = arith.constant 0 : index
      %c0_12 = arith.constant 0 : index
      %13 = vector.load %arg7[%c0_11, %c0_12] : memref<128x8xf32, #tpu.memory_space<vmem>>, vector<128x8xf32>
      tpu.vector_store %arg7[%c0_11, %c0_12], %12 {strides = array<i32>} : memref<128x8xf32, #tpu.memory_space<vmem>>, vector<128x8xf32>,
    } else {
    }
    %c0 = arith.constant 0 : index
    %c0_1 = arith.constant 0 : index
    %3 = vector.load %arg7[%c0, %c0_1] : memref<128x8xf32, #tpu.memory_space<vmem>>, vector<128x8xf32>
    %c0_2 = arith.constant 0 : index
    %c0_3 = arith.constant 0 : index
    %4 = vector.load %arg3[%c0_2, %c0_3] : memref<128x72xbf16, #tpu.memory_space<vmem>>, vector<128x72xbf16>
    %c0_4 = arith.constant 0 : index
    %c0_5 = arith.constant 0 : index
    %5 = vector.load %arg4[%c0_4, %c0_5] : memref<72x8xbf16, #tpu.memory_space<vmem>>, vector<72x8xbf16>
    %cst = arith.constant dense<0.000000e+00> : vector<128x8xf32>
    %6 = tpu.matmul %4, %5, %cst {dimension_numbers = #tpu.dot_dimension_numbers<[1], [0], [0], [1], [0, 0, 1, 1], [], []>} : vector<128x72xbf16>, vector<72x8xbf16>, vector<128x8xf32> -> vector<128x8xf32>
    %7 = arith.addf %3, %6 : vector<128x8xf32>
    %c0_6 = arith.constant 0 : index
    %c0_7 = arith.constant 0 : index
    %8 = vector.load %arg7[%c0_6, %c0_7] : memref<128x8xf32, #tpu.memory_space<vmem>>, vector<128x8xf32>
    tpu.vector_store %arg7[%c0_6, %c0_7], %7 {strides = array<i32>} : memref<128x8xf32, #tpu.memory_space<vmem>>, vector<128x8xf32>,
    %c0_i32_8 = arith.constant 0 : i32
    %9 = arith.cmpi eq, %arg2, %c0_i32_8 : i32
    %10 = arith.extui %9 : i1 to i32
    %c0_i32_9 = arith.constant 0 : i32
    %11 = arith.cmpi ne, %10, %c0_i32_9 : i32
    scf.if %11 {
      %c0_10 = arith.constant 0 : index
      %c0_11 = arith.constant 0 : index
      %12 = vector.load %arg7[%c0_10, %c0_11] : memref<128x8xf32, #tpu.memory_space<vmem>>, vector<128x8xf32>
      %c0_12 = arith.constant 0 : index
      %c0_13 = arith.constant 0 : index
      %13 = vector.load %arg5[%c0_12, %c0_13] : memref<1x8xf32, #tpu.memory_space<vmem>>, vector<1x8xf32>
      %14 = vector.broadcast %13 : vector<1x8xf32> to vector<128x8xf32>
      %15 = arith.addf %12, %14 : vector<128x8xf32>
      %cst_14 = arith.constant 0.000000e+00 : f32
      %16 = vector.broadcast %cst_14 : f32 to vector<128x8xf32>
      %17 = arith.maximumf %15, %16 : vector<128x8xf32>
      %18 = arith.truncf %17 : vector<128x8xf32> to vector<128x8xbf16>
      %c0_15 = arith.constant 0 : index
      %c0_16 = arith.constant 0 : index
      %19 = vector.load %arg6[%c0_15, %c0_16] : memref<128x8xbf16, #tpu.memory_space<vmem>>, vector<128x8xbf16>
      tpu.vector_store %arg6[%c0_15, %c0_16], %18 {strides = array<i32>} : memref<128x8xbf16, #tpu.memory_space<vmem>>, vector<128x8xbf16>,
    } else {
    }
    return
  }
  func.func @transform_0(%arg0: i32, %arg1: i32, %arg2: i32) -> (i32, i32) {
    %c0_i32 = arith.constant 0 : i32
    return %arg0, %arg2 : i32, i32
  }
  func.func @transform_1(%arg0: i32, %arg1: i32, %arg2: i32) -> (i32, i32) {
    %c0_i32 = arith.constant 0 : i32
    return %arg2, %arg1 : i32, i32
  }
  func.func @transform_2(%arg0: i32, %arg1: i32, %arg2: i32) -> (i32, i32) {
    %c0_i32 = arith.constant 0 : i32
    %c0_i32_0 = arith.constant 0 : i32
    return %c0_i32, %arg1 : i32, i32
  }
  func.func @transform_3(%arg0: i32, %arg1: i32, %arg2: i32) -> (i32, i32) {
    %c0_i32 = arith.constant 0 : i32
    return %arg0, %arg1 : i32, i32
  }
}

module attributes {stable_mosaic.version = 11 : i64} {
  func.func @_mm_kernel(%arg0: i32, %arg1: i32, %arg2: i32, %arg3: memref<128x8xbf16, #tpu.memory_space<vmem>>, %arg4: memref<8x32xbf16, #tpu.memory_space<vmem>>, %arg5: memref<1x32xf32, #tpu.memory_space<vmem>>, %arg6: memref<128x32xbf16, #tpu.memory_space<vmem>>, %arg7: memref<128x32xbf16, #tpu.memory_space<vmem>>, %arg8: memref<128x32xf32, #tpu.memory_space<vmem>>) attributes {dimension_semantics = [#tpu.dimension_semantics<parallel>, #tpu.dimension_semantics<parallel>, #tpu.dimension_semantics<arbitrary>], iteration_bounds = array<i64: 1, 1, 1>, scalar_prefetch = 0 : i64, scratch_operands = 1 : i64, tpu.core_type = #tpu.core_type<tc>, window_params = [{transform_indices = @transform_0, window_bounds = array<i64: 128, 8>}, {transform_indices = @transform_1, window_bounds = array<i64: 8, 32>}, {transform_indices = @transform_2, window_bounds = array<i64: 1, 32>}, {transform_indices = @transform_3, window_bounds = array<i64: 128, 32>}, {transform_indices = @transform_4, window_bounds = array<i64: 128, 32>}]} {
    %c0_i32 = arith.constant 0 : i32
    %0 = arith.cmpi eq, %arg2, %c0_i32 : i32
    %1 = arith.extui %0 : i1 to i32
    %c0_i32_0 = arith.constant 0 : i32
    %2 = arith.cmpi ne, %1, %c0_i32_0 : i32
    scf.if %2 {
      %cst_10 = arith.constant 0.000000e+00 : f32
      %12 = vector.broadcast %cst_10 : f32 to vector<128x32xf32>
      %c0_11 = arith.constant 0 : index
      %c0_12 = arith.constant 0 : index
      %13 = vector.load %arg8[%c0_11, %c0_12] : memref<128x32xf32, #tpu.memory_space<vmem>>, vector<128x32xf32>
      tpu.vector_store %arg8[%c0_11, %c0_12], %12 {strides = array<i32>} : memref<128x32xf32, #tpu.memory_space<vmem>>, vector<128x32xf32>,
    } else {
    }
    %c0 = arith.constant 0 : index
    %c0_1 = arith.constant 0 : index
    %3 = vector.load %arg8[%c0, %c0_1] : memref<128x32xf32, #tpu.memory_space<vmem>>, vector<128x32xf32>
    %c0_2 = arith.constant 0 : index
    %c0_3 = arith.constant 0 : index
    %4 = vector.load %arg3[%c0_2, %c0_3] : memref<128x8xbf16, #tpu.memory_space<vmem>>, vector<128x8xbf16>
    %c0_4 = arith.constant 0 : index
    %c0_5 = arith.constant 0 : index
    %5 = vector.load %arg4[%c0_4, %c0_5] : memref<8x32xbf16, #tpu.memory_space<vmem>>, vector<8x32xbf16>
    %cst = arith.constant dense<0.000000e+00> : vector<128x32xf32>
    %6 = tpu.matmul %4, %5, %cst {dimension_numbers = #tpu.dot_dimension_numbers<[1], [0], [0], [1], [0, 0, 1, 1], [], []>} : vector<128x8xbf16>, vector<8x32xbf16>, vector<128x32xf32> -> vector<128x32xf32>
    %7 = arith.addf %3, %6 : vector<128x32xf32>
    %c0_6 = arith.constant 0 : index
    %c0_7 = arith.constant 0 : index
    %8 = vector.load %arg8[%c0_6, %c0_7] : memref<128x32xf32, #tpu.memory_space<vmem>>, vector<128x32xf32>
    tpu.vector_store %arg8[%c0_6, %c0_7], %7 {strides = array<i32>} : memref<128x32xf32, #tpu.memory_space<vmem>>, vector<128x32xf32>,
    %c0_i32_8 = arith.constant 0 : i32
    %9 = arith.cmpi eq, %arg2, %c0_i32_8 : i32
    %10 = arith.extui %9 : i1 to i32
    %c0_i32_9 = arith.constant 0 : i32
    %11 = arith.cmpi ne, %10, %c0_i32_9 : i32
    scf.if %11 {
      %c0_10 = arith.constant 0 : index
      %c0_11 = arith.constant 0 : index
      %12 = vector.load %arg8[%c0_10, %c0_11] : memref<128x32xf32, #tpu.memory_space<vmem>>, vector<128x32xf32>
      %c0_12 = arith.constant 0 : index
      %c0_13 = arith.constant 0 : index
      %13 = vector.load %arg5[%c0_12, %c0_13] : memref<1x32xf32, #tpu.memory_space<vmem>>, vector<1x32xf32>
      %14 = vector.broadcast %13 : vector<1x32xf32> to vector<128x32xf32>
      %15 = arith.addf %12, %14 : vector<128x32xf32>
      %c0_14 = arith.constant 0 : index
      %c0_15 = arith.constant 0 : index
      %16 = vector.load %arg6[%c0_14, %c0_15] : memref<128x32xbf16, #tpu.memory_space<vmem>>, vector<128x32xbf16>
      %17 = arith.extf %16 : vector<128x32xbf16> to vector<128x32xf32>
      %18 = arith.addf %15, %17 : vector<128x32xf32>
      %cst_16 = arith.constant 0.000000e+00 : f32
      %19 = vector.broadcast %cst_16 : f32 to vector<128x32xf32>
      %20 = arith.maximumf %18, %19 : vector<128x32xf32>
      %21 = arith.truncf %20 : vector<128x32xf32> to vector<128x32xbf16>
      %c0_17 = arith.constant 0 : index
      %c0_18 = arith.constant 0 : index
      %22 = vector.load %arg7[%c0_17, %c0_18] : memref<128x32xbf16, #tpu.memory_space<vmem>>, vector<128x32xbf16>
      tpu.vector_store %arg7[%c0_17, %c0_18], %21 {strides = array<i32>} : memref<128x32xbf16, #tpu.memory_space<vmem>>, vector<128x32xbf16>,
    } else {
    }
    return
  }
  func.func @transform_0(%arg0: i32, %arg1: i32, %arg2: i32) -> (i32, i32) {
    %c0_i32 = arith.constant 0 : i32
    return %arg0, %arg2 : i32, i32
  }
  func.func @transform_1(%arg0: i32, %arg1: i32, %arg2: i32) -> (i32, i32) {
    %c0_i32 = arith.constant 0 : i32
    return %arg2, %arg1 : i32, i32
  }
  func.func @transform_2(%arg0: i32, %arg1: i32, %arg2: i32) -> (i32, i32) {
    %c0_i32 = arith.constant 0 : i32
    %c0_i32_0 = arith.constant 0 : i32
    return %c0_i32, %arg1 : i32, i32
  }
  func.func @transform_3(%arg0: i32, %arg1: i32, %arg2: i32) -> (i32, i32) {
    %c0_i32 = arith.constant 0 : i32
    return %arg0, %arg1 : i32, i32
  }
  func.func @transform_4(%arg0: i32, %arg1: i32, %arg2: i32) -> (i32, i32) {
    %c0_i32 = arith.constant 0 : i32
    return %arg0, %arg1 : i32, i32
  }
}

module attributes {stable_mosaic.version = 11 : i64} {
  func.func @_mm_kernel(%arg0: i32, %arg1: i32, %arg2: i32, %arg3: memref<128x32xbf16, #tpu.memory_space<vmem>>, %arg4: memref<32x8xbf16, #tpu.memory_space<vmem>>, %arg5: memref<1x8xf32, #tpu.memory_space<vmem>>, %arg6: memref<128x8xbf16, #tpu.memory_space<vmem>>, %arg7: memref<128x8xf32, #tpu.memory_space<vmem>>) attributes {dimension_semantics = [#tpu.dimension_semantics<parallel>, #tpu.dimension_semantics<parallel>, #tpu.dimension_semantics<arbitrary>], iteration_bounds = array<i64: 1, 1, 1>, scalar_prefetch = 0 : i64, scratch_operands = 1 : i64, tpu.core_type = #tpu.core_type<tc>, window_params = [{transform_indices = @transform_0, window_bounds = array<i64: 128, 32>}, {transform_indices = @transform_1, window_bounds = array<i64: 32, 8>}, {transform_indices = @transform_2, window_bounds = array<i64: 1, 8>}, {transform_indices = @transform_3, window_bounds = array<i64: 128, 8>}]} {
    %c0_i32 = arith.constant 0 : i32
    %0 = arith.cmpi eq, %arg2, %c0_i32 : i32
    %1 = arith.extui %0 : i1 to i32
    %c0_i32_0 = arith.constant 0 : i32
    %2 = arith.cmpi ne, %1, %c0_i32_0 : i32
    scf.if %2 {
      %cst_10 = arith.constant 0.000000e+00 : f32
      %12 = vector.broadcast %cst_10 : f32 to vector<128x8xf32>
      %c0_11 = arith.constant 0 : index
      %c0_12 = arith.constant 0 : index
      %13 = vector.load %arg7[%c0_11, %c0_12] : memref<128x8xf32, #tpu.memory_space<vmem>>, vector<128x8xf32>
      tpu.vector_store %arg7[%c0_11, %c0_12], %12 {strides = array<i32>} : memref<128x8xf32, #tpu.memory_space<vmem>>, vector<128x8xf32>,
    } else {
    }
    %c0 = arith.constant 0 : index
    %c0_1 = arith.constant 0 : index
    %3 = vector.load %arg7[%c0, %c0_1] : memref<128x8xf32, #tpu.memory_space<vmem>>, vector<128x8xf32>
    %c0_2 = arith.constant 0 : index
    %c0_3 = arith.constant 0 : index
    %4 = vector.load %arg3[%c0_2, %c0_3] : memref<128x32xbf16, #tpu.memory_space<vmem>>, vector<128x32xbf16>
    %c0_4 = arith.constant 0 : index
    %c0_5 = arith.constant 0 : index
    %5 = vector.load %arg4[%c0_4, %c0_5] : memref<32x8xbf16, #tpu.memory_space<vmem>>, vector<32x8xbf16>
    %cst = arith.constant dense<0.000000e+00> : vector<128x8xf32>
    %6 = tpu.matmul %4, %5, %cst {dimension_numbers = #tpu.dot_dimension_numbers<[1], [0], [0], [1], [0, 0, 1, 1], [], []>} : vector<128x32xbf16>, vector<32x8xbf16>, vector<128x8xf32> -> vector<128x8xf32>
    %7 = arith.addf %3, %6 : vector<128x8xf32>
    %c0_6 = arith.constant 0 : index
    %c0_7 = arith.constant 0 : index
    %8 = vector.load %arg7[%c0_6, %c0_7] : memref<128x8xf32, #tpu.memory_space<vmem>>, vector<128x8xf32>
    tpu.vector_store %arg7[%c0_6, %c0_7], %7 {strides = array<i32>} : memref<128x8xf32, #tpu.memory_space<vmem>>, vector<128x8xf32>,
    %c0_i32_8 = arith.constant 0 : i32
    %9 = arith.cmpi eq, %arg2, %c0_i32_8 : i32
    %10 = arith.extui %9 : i1 to i32
    %c0_i32_9 = arith.constant 0 : i32
    %11 = arith.cmpi ne, %10, %c0_i32_9 : i32
    scf.if %11 {
      %c0_10 = arith.constant 0 : index
      %c0_11 = arith.constant 0 : index
      %12 = vector.load %arg7[%c0_10, %c0_11] : memref<128x8xf32, #tpu.memory_space<vmem>>, vector<128x8xf32>
      %c0_12 = arith.constant 0 : index
      %c0_13 = arith.constant 0 : index
      %13 = vector.load %arg5[%c0_12, %c0_13] : memref<1x8xf32, #tpu.memory_space<vmem>>, vector<1x8xf32>
      %14 = vector.broadcast %13 : vector<1x8xf32> to vector<128x8xf32>
      %15 = arith.addf %12, %14 : vector<128x8xf32>
      %cst_14 = arith.constant 0.000000e+00 : f32
      %16 = vector.broadcast %cst_14 : f32 to vector<128x8xf32>
      %17 = arith.maximumf %15, %16 : vector<128x8xf32>
      %18 = arith.truncf %17 : vector<128x8xf32> to vector<128x8xbf16>
      %c0_15 = arith.constant 0 : index
      %c0_16 = arith.constant 0 : index
      %19 = vector.load %arg6[%c0_15, %c0_16] : memref<128x8xbf16, #tpu.memory_space<vmem>>, vector<128x8xbf16>
      tpu.vector_store %arg6[%c0_15, %c0_16], %18 {strides = array<i32>} : memref<128x8xbf16, #tpu.memory_space<vmem>>, vector<128x8xbf16>,
    } else {
    }
    return
  }
  func.func @transform_0(%arg0: i32, %arg1: i32, %arg2: i32) -> (i32, i32) {
    %c0_i32 = arith.constant 0 : i32
    return %arg0, %arg2 : i32, i32
  }
  func.func @transform_1(%arg0: i32, %arg1: i32, %arg2: i32) -> (i32, i32) {
    %c0_i32 = arith.constant 0 : i32
    return %arg2, %arg1 : i32, i32
  }
  func.func @transform_2(%arg0: i32, %arg1: i32, %arg2: i32) -> (i32, i32) {
    %c0_i32 = arith.constant 0 : i32
    %c0_i32_0 = arith.constant 0 : i32
    return %c0_i32, %arg1 : i32, i32
  }
  func.func @transform_3(%arg0: i32, %arg1: i32, %arg2: i32) -> (i32, i32) {
    %c0_i32 = arith.constant 0 : i32
    return %arg0, %arg1 : i32, i32
  }
}

module attributes {stable_mosaic.version = 11 : i64} {
  func.func @_mm_kernel(%arg0: i32, %arg1: i32, %arg2: i32, %arg3: memref<128x8xbf16, #tpu.memory_space<vmem>>, %arg4: memref<8x32xbf16, #tpu.memory_space<vmem>>, %arg5: memref<1x32xf32, #tpu.memory_space<vmem>>, %arg6: memref<128x32xbf16, #tpu.memory_space<vmem>>, %arg7: memref<128x32xf32, #tpu.memory_space<vmem>>) attributes {dimension_semantics = [#tpu.dimension_semantics<parallel>, #tpu.dimension_semantics<parallel>, #tpu.dimension_semantics<arbitrary>], iteration_bounds = array<i64: 1, 1, 1>, scalar_prefetch = 0 : i64, scratch_operands = 1 : i64, tpu.core_type = #tpu.core_type<tc>, window_params = [{transform_indices = @transform_0, window_bounds = array<i64: 128, 8>}, {transform_indices = @transform_1, window_bounds = array<i64: 8, 32>}, {transform_indices = @transform_2, window_bounds = array<i64: 1, 32>}, {transform_indices = @transform_3, window_bounds = array<i64: 128, 32>}]} {
    %c0_i32 = arith.constant 0 : i32
    %0 = arith.cmpi eq, %arg2, %c0_i32 : i32
    %1 = arith.extui %0 : i1 to i32
    %c0_i32_0 = arith.constant 0 : i32
    %2 = arith.cmpi ne, %1, %c0_i32_0 : i32
    scf.if %2 {
      %cst_10 = arith.constant 0.000000e+00 : f32
      %12 = vector.broadcast %cst_10 : f32 to vector<128x32xf32>
      %c0_11 = arith.constant 0 : index
      %c0_12 = arith.constant 0 : index
      %13 = vector.load %arg7[%c0_11, %c0_12] : memref<128x32xf32, #tpu.memory_space<vmem>>, vector<128x32xf32>
      tpu.vector_store %arg7[%c0_11, %c0_12], %12 {strides = array<i32>} : memref<128x32xf32, #tpu.memory_space<vmem>>, vector<128x32xf32>,
    } else {
    }
    %c0 = arith.constant 0 : index
    %c0_1 = arith.constant 0 : index
    %3 = vector.load %arg7[%c0, %c0_1] : memref<128x32xf32, #tpu.memory_space<vmem>>, vector<128x32xf32>
    %c0_2 = arith.constant 0 : index
    %c0_3 = arith.constant 0 : index
    %4 = vector.load %arg3[%c0_2, %c0_3] : memref<128x8xbf16, #tpu.memory_space<vmem>>, vector<128x8xbf16>
    %c0_4 = arith.constant 0 : index
    %c0_5 = arith.constant 0 : index
    %5 = vector.load %arg4[%c0_4, %c0_5] : memref<8x32xbf16, #tpu.memory_space<vmem>>, vector<8x32xbf16>
    %cst = arith.constant dense<0.000000e+00> : vector<128x32xf32>
    %6 = tpu.matmul %4, %5, %cst {dimension_numbers = #tpu.dot_dimension_numbers<[1], [0], [0], [1], [0, 0, 1, 1], [], []>} : vector<128x8xbf16>, vector<8x32xbf16>, vector<128x32xf32> -> vector<128x32xf32>
    %7 = arith.addf %3, %6 : vector<128x32xf32>
    %c0_6 = arith.constant 0 : index
    %c0_7 = arith.constant 0 : index
    %8 = vector.load %arg7[%c0_6, %c0_7] : memref<128x32xf32, #tpu.memory_space<vmem>>, vector<128x32xf32>
    tpu.vector_store %arg7[%c0_6, %c0_7], %7 {strides = array<i32>} : memref<128x32xf32, #tpu.memory_space<vmem>>, vector<128x32xf32>,
    %c0_i32_8 = arith.constant 0 : i32
    %9 = arith.cmpi eq, %arg2, %c0_i32_8 : i32
    %10 = arith.extui %9 : i1 to i32
    %c0_i32_9 = arith.constant 0 : i32
    %11 = arith.cmpi ne, %10, %c0_i32_9 : i32
    scf.if %11 {
      %c0_10 = arith.constant 0 : index
      %c0_11 = arith.constant 0 : index
      %12 = vector.load %arg7[%c0_10, %c0_11] : memref<128x32xf32, #tpu.memory_space<vmem>>, vector<128x32xf32>
      %c0_12 = arith.constant 0 : index
      %c0_13 = arith.constant 0 : index
      %13 = vector.load %arg5[%c0_12, %c0_13] : memref<1x32xf32, #tpu.memory_space<vmem>>, vector<1x32xf32>
      %14 = vector.broadcast %13 : vector<1x32xf32> to vector<128x32xf32>
      %15 = arith.addf %12, %14 : vector<128x32xf32>
      %16 = arith.truncf %15 : vector<128x32xf32> to vector<128x32xbf16>
      %c0_14 = arith.constant 0 : index
      %c0_15 = arith.constant 0 : index
      %17 = vector.load %arg6[%c0_14, %c0_15] : memref<128x32xbf16, #tpu.memory_space<vmem>>, vector<128x32xbf16>
      tpu.vector_store %arg6[%c0_14, %c0_15], %16 {strides = array<i32>} : memref<128x32xbf16, #tpu.memory_space<vmem>>, vector<128x32xbf16>,
    } else {
    }
    return
  }
  func.func @transform_0(%arg0: i32, %arg1: i32, %arg2: i32) -> (i32, i32) {
    %c0_i32 = arith.constant 0 : i32
    return %arg0, %arg2 : i32, i32
  }
  func.func @transform_1(%arg0: i32, %arg1: i32, %arg2: i32) -> (i32, i32) {
    %c0_i32 = arith.constant 0 : i32
    return %arg2, %arg1 : i32, i32
  }
  func.func @transform_2(%arg0: i32, %arg1: i32, %arg2: i32) -> (i32, i32) {
    %c0_i32 = arith.constant 0 : i32
    %c0_i32_0 = arith.constant 0 : i32
    return %c0_i32, %arg1 : i32, i32
  }
  func.func @transform_3(%arg0: i32, %arg1: i32, %arg2: i32) -> (i32, i32) {
    %c0_i32 = arith.constant 0 : i32
    return %arg0, %arg1 : i32, i32
  }
}

module attributes {stable_mosaic.version = 11 : i64} {
  func.func @_mm_kernel(%arg0: i32, %arg1: i32, %arg2: i32, %arg3: memref<128x32xbf16, #tpu.memory_space<vmem>>, %arg4: memref<32x16xbf16, #tpu.memory_space<vmem>>, %arg5: memref<1x16xf32, #tpu.memory_space<vmem>>, %arg6: memref<128x16xbf16, #tpu.memory_space<vmem>>, %arg7: memref<128x16xf32, #tpu.memory_space<vmem>>) attributes {dimension_semantics = [#tpu.dimension_semantics<parallel>, #tpu.dimension_semantics<parallel>, #tpu.dimension_semantics<arbitrary>], iteration_bounds = array<i64: 1, 1, 1>, scalar_prefetch = 0 : i64, scratch_operands = 1 : i64, tpu.core_type = #tpu.core_type<tc>, window_params = [{transform_indices = @transform_0, window_bounds = array<i64: 128, 32>}, {transform_indices = @transform_1, window_bounds = array<i64: 32, 16>}, {transform_indices = @transform_2, window_bounds = array<i64: 1, 16>}, {transform_indices = @transform_3, window_bounds = array<i64: 128, 16>}]} {
    %c0_i32 = arith.constant 0 : i32
    %0 = arith.cmpi eq, %arg2, %c0_i32 : i32
    %1 = arith.extui %0 : i1 to i32
    %c0_i32_0 = arith.constant 0 : i32
    %2 = arith.cmpi ne, %1, %c0_i32_0 : i32
    scf.if %2 {
      %cst_10 = arith.constant 0.000000e+00 : f32
      %12 = vector.broadcast %cst_10 : f32 to vector<128x16xf32>
      %c0_11 = arith.constant 0 : index
      %c0_12 = arith.constant 0 : index
      %13 = vector.load %arg7[%c0_11, %c0_12] : memref<128x16xf32, #tpu.memory_space<vmem>>, vector<128x16xf32>
      tpu.vector_store %arg7[%c0_11, %c0_12], %12 {strides = array<i32>} : memref<128x16xf32, #tpu.memory_space<vmem>>, vector<128x16xf32>,
    } else {
    }
    %c0 = arith.constant 0 : index
    %c0_1 = arith.constant 0 : index
    %3 = vector.load %arg7[%c0, %c0_1] : memref<128x16xf32, #tpu.memory_space<vmem>>, vector<128x16xf32>
    %c0_2 = arith.constant 0 : index
    %c0_3 = arith.constant 0 : index
    %4 = vector.load %arg3[%c0_2, %c0_3] : memref<128x32xbf16, #tpu.memory_space<vmem>>, vector<128x32xbf16>
    %c0_4 = arith.constant 0 : index
    %c0_5 = arith.constant 0 : index
    %5 = vector.load %arg4[%c0_4, %c0_5] : memref<32x16xbf16, #tpu.memory_space<vmem>>, vector<32x16xbf16>
    %cst = arith.constant dense<0.000000e+00> : vector<128x16xf32>
    %6 = tpu.matmul %4, %5, %cst {dimension_numbers = #tpu.dot_dimension_numbers<[1], [0], [0], [1], [0, 0, 1, 1], [], []>} : vector<128x32xbf16>, vector<32x16xbf16>, vector<128x16xf32> -> vector<128x16xf32>
    %7 = arith.addf %3, %6 : vector<128x16xf32>
    %c0_6 = arith.constant 0 : index
    %c0_7 = arith.constant 0 : index
    %8 = vector.load %arg7[%c0_6, %c0_7] : memref<128x16xf32, #tpu.memory_space<vmem>>, vector<128x16xf32>
    tpu.vector_store %arg7[%c0_6, %c0_7], %7 {strides = array<i32>} : memref<128x16xf32, #tpu.memory_space<vmem>>, vector<128x16xf32>,
    %c0_i32_8 = arith.constant 0 : i32
    %9 = arith.cmpi eq, %arg2, %c0_i32_8 : i32
    %10 = arith.extui %9 : i1 to i32
    %c0_i32_9 = arith.constant 0 : i32
    %11 = arith.cmpi ne, %10, %c0_i32_9 : i32
    scf.if %11 {
      %c0_10 = arith.constant 0 : index
      %c0_11 = arith.constant 0 : index
      %12 = vector.load %arg7[%c0_10, %c0_11] : memref<128x16xf32, #tpu.memory_space<vmem>>, vector<128x16xf32>
      %c0_12 = arith.constant 0 : index
      %c0_13 = arith.constant 0 : index
      %13 = vector.load %arg5[%c0_12, %c0_13] : memref<1x16xf32, #tpu.memory_space<vmem>>, vector<1x16xf32>
      %14 = vector.broadcast %13 : vector<1x16xf32> to vector<128x16xf32>
      %15 = arith.addf %12, %14 : vector<128x16xf32>
      %cst_14 = arith.constant 0.000000e+00 : f32
      %16 = vector.broadcast %cst_14 : f32 to vector<128x16xf32>
      %17 = arith.maximumf %15, %16 : vector<128x16xf32>
      %18 = arith.truncf %17 : vector<128x16xf32> to vector<128x16xbf16>
      %c0_15 = arith.constant 0 : index
      %c0_16 = arith.constant 0 : index
      %19 = vector.load %arg6[%c0_15, %c0_16] : memref<128x16xbf16, #tpu.memory_space<vmem>>, vector<128x16xbf16>
      tpu.vector_store %arg6[%c0_15, %c0_16], %18 {strides = array<i32>} : memref<128x16xbf16, #tpu.memory_space<vmem>>, vector<128x16xbf16>,
    } else {
    }
    return
  }
  func.func @transform_0(%arg0: i32, %arg1: i32, %arg2: i32) -> (i32, i32) {
    %c0_i32 = arith.constant 0 : i32
    return %arg0, %arg2 : i32, i32
  }
  func.func @transform_1(%arg0: i32, %arg1: i32, %arg2: i32) -> (i32, i32) {
    %c0_i32 = arith.constant 0 : i32
    return %arg2, %arg1 : i32, i32
  }
  func.func @transform_2(%arg0: i32, %arg1: i32, %arg2: i32) -> (i32, i32) {
    %c0_i32 = arith.constant 0 : i32
    %c0_i32_0 = arith.constant 0 : i32
    return %c0_i32, %arg1 : i32, i32
  }
  func.func @transform_3(%arg0: i32, %arg1: i32, %arg2: i32) -> (i32, i32) {
    %c0_i32 = arith.constant 0 : i32
    return %arg0, %arg1 : i32, i32
  }
}

module attributes {stable_mosaic.version = 11 : i64} {
  func.func @_mm_kernel(%arg0: i32, %arg1: i32, %arg2: i32, %arg3: memref<32x144xbf16, #tpu.memory_space<vmem>>, %arg4: memref<144x16xbf16, #tpu.memory_space<vmem>>, %arg5: memref<1x16xf32, #tpu.memory_space<vmem>>, %arg6: memref<32x16xbf16, #tpu.memory_space<vmem>>, %arg7: memref<32x16xf32, #tpu.memory_space<vmem>>) attributes {dimension_semantics = [#tpu.dimension_semantics<parallel>, #tpu.dimension_semantics<parallel>, #tpu.dimension_semantics<arbitrary>], iteration_bounds = array<i64: 1, 1, 1>, scalar_prefetch = 0 : i64, scratch_operands = 1 : i64, tpu.core_type = #tpu.core_type<tc>, window_params = [{transform_indices = @transform_0, window_bounds = array<i64: 32, 144>}, {transform_indices = @transform_1, window_bounds = array<i64: 144, 16>}, {transform_indices = @transform_2, window_bounds = array<i64: 1, 16>}, {transform_indices = @transform_3, window_bounds = array<i64: 32, 16>}]} {
    %c0_i32 = arith.constant 0 : i32
    %0 = arith.cmpi eq, %arg2, %c0_i32 : i32
    %1 = arith.extui %0 : i1 to i32
    %c0_i32_0 = arith.constant 0 : i32
    %2 = arith.cmpi ne, %1, %c0_i32_0 : i32
    scf.if %2 {
      %cst_10 = arith.constant 0.000000e+00 : f32
      %12 = vector.broadcast %cst_10 : f32 to vector<32x16xf32>
      %c0_11 = arith.constant 0 : index
      %c0_12 = arith.constant 0 : index
      %13 = vector.load %arg7[%c0_11, %c0_12] : memref<32x16xf32, #tpu.memory_space<vmem>>, vector<32x16xf32>
      tpu.vector_store %arg7[%c0_11, %c0_12], %12 {strides = array<i32>} : memref<32x16xf32, #tpu.memory_space<vmem>>, vector<32x16xf32>,
    } else {
    }
    %c0 = arith.constant 0 : index
    %c0_1 = arith.constant 0 : index
    %3 = vector.load %arg7[%c0, %c0_1] : memref<32x16xf32, #tpu.memory_space<vmem>>, vector<32x16xf32>
    %c0_2 = arith.constant 0 : index
    %c0_3 = arith.constant 0 : index
    %4 = vector.load %arg3[%c0_2, %c0_3] : memref<32x144xbf16, #tpu.memory_space<vmem>>, vector<32x144xbf16>
    %c0_4 = arith.constant 0 : index
    %c0_5 = arith.constant 0 : index
    %5 = vector.load %arg4[%c0_4, %c0_5] : memref<144x16xbf16, #tpu.memory_space<vmem>>, vector<144x16xbf16>
    %cst = arith.constant dense<0.000000e+00> : vector<32x16xf32>
    %6 = tpu.matmul %4, %5, %cst {dimension_numbers = #tpu.dot_dimension_numbers<[1], [0], [0], [1], [0, 0, 1, 1], [], []>} : vector<32x144xbf16>, vector<144x16xbf16>, vector<32x16xf32> -> vector<32x16xf32>
    %7 = arith.addf %3, %6 : vector<32x16xf32>
    %c0_6 = arith.constant 0 : index
    %c0_7 = arith.constant 0 : index
    %8 = vector.load %arg7[%c0_6, %c0_7] : memref<32x16xf32, #tpu.memory_space<vmem>>, vector<32x16xf32>
    tpu.vector_store %arg7[%c0_6, %c0_7], %7 {strides = array<i32>} : memref<32x16xf32, #tpu.memory_space<vmem>>, vector<32x16xf32>,
    %c0_i32_8 = arith.constant 0 : i32
    %9 = arith.cmpi eq, %arg2, %c0_i32_8 : i32
    %10 = arith.extui %9 : i1 to i32
    %c0_i32_9 = arith.constant 0 : i32
    %11 = arith.cmpi ne, %10, %c0_i32_9 : i32
    scf.if %11 {
      %c0_10 = arith.constant 0 : index
      %c0_11 = arith.constant 0 : index
      %12 = vector.load %arg7[%c0_10, %c0_11] : memref<32x16xf32, #tpu.memory_space<vmem>>, vector<32x16xf32>
      %c0_12 = arith.constant 0 : index
      %c0_13 = arith.constant 0 : index
      %13 = vector.load %arg5[%c0_12, %c0_13] : memref<1x16xf32, #tpu.memory_space<vmem>>, vector<1x16xf32>
      %14 = vector.broadcast %13 : vector<1x16xf32> to vector<32x16xf32>
      %15 = arith.addf %12, %14 : vector<32x16xf32>
      %cst_14 = arith.constant 0.000000e+00 : f32
      %16 = vector.broadcast %cst_14 : f32 to vector<32x16xf32>
      %17 = arith.maximumf %15, %16 : vector<32x16xf32>
      %18 = arith.truncf %17 : vector<32x16xf32> to vector<32x16xbf16>
      %c0_15 = arith.constant 0 : index
      %c0_16 = arith.constant 0 : index
      %19 = vector.load %arg6[%c0_15, %c0_16] : memref<32x16xbf16, #tpu.memory_space<vmem>>, vector<32x16xbf16>
      tpu.vector_store %arg6[%c0_15, %c0_16], %18 {strides = array<i32>} : memref<32x16xbf16, #tpu.memory_space<vmem>>, vector<32x16xbf16>,
    } else {
    }
    return
  }
  func.func @transform_0(%arg0: i32, %arg1: i32, %arg2: i32) -> (i32, i32) {
    %c0_i32 = arith.constant 0 : i32
    return %arg0, %arg2 : i32, i32
  }
  func.func @transform_1(%arg0: i32, %arg1: i32, %arg2: i32) -> (i32, i32) {
    %c0_i32 = arith.constant 0 : i32
    return %arg2, %arg1 : i32, i32
  }
  func.func @transform_2(%arg0: i32, %arg1: i32, %arg2: i32) -> (i32, i32) {
    %c0_i32 = arith.constant 0 : i32
    %c0_i32_0 = arith.constant 0 : i32
    return %c0_i32, %arg1 : i32, i32
  }
  func.func @transform_3(%arg0: i32, %arg1: i32, %arg2: i32) -> (i32, i32) {
    %c0_i32 = arith.constant 0 : i32
    return %arg0, %arg1 : i32, i32
  }
}

module attributes {stable_mosaic.version = 11 : i64} {
  func.func @_mm_kernel(%arg0: i32, %arg1: i32, %arg2: i32, %arg3: memref<32x32xbf16, #tpu.memory_space<vmem>>, %arg4: memref<32x64xbf16, #tpu.memory_space<vmem>>, %arg5: memref<1x64xf32, #tpu.memory_space<vmem>>, %arg6: memref<32x64xbf16, #tpu.memory_space<vmem>>, %arg7: memref<32x64xf32, #tpu.memory_space<vmem>>) attributes {dimension_semantics = [#tpu.dimension_semantics<parallel>, #tpu.dimension_semantics<parallel>, #tpu.dimension_semantics<arbitrary>], iteration_bounds = array<i64: 1, 1, 1>, scalar_prefetch = 0 : i64, scratch_operands = 1 : i64, tpu.core_type = #tpu.core_type<tc>, window_params = [{transform_indices = @transform_0, window_bounds = array<i64: 32, 32>}, {transform_indices = @transform_1, window_bounds = array<i64: 32, 64>}, {transform_indices = @transform_2, window_bounds = array<i64: 1, 64>}, {transform_indices = @transform_3, window_bounds = array<i64: 32, 64>}]} {
    %c0_i32 = arith.constant 0 : i32
    %0 = arith.cmpi eq, %arg2, %c0_i32 : i32
    %1 = arith.extui %0 : i1 to i32
    %c0_i32_0 = arith.constant 0 : i32
    %2 = arith.cmpi ne, %1, %c0_i32_0 : i32
    scf.if %2 {
      %cst_10 = arith.constant 0.000000e+00 : f32
      %12 = vector.broadcast %cst_10 : f32 to vector<32x64xf32>
      %c0_11 = arith.constant 0 : index
      %c0_12 = arith.constant 0 : index
      %13 = vector.load %arg7[%c0_11, %c0_12] : memref<32x64xf32, #tpu.memory_space<vmem>>, vector<32x64xf32>
      tpu.vector_store %arg7[%c0_11, %c0_12], %12 {strides = array<i32>} : memref<32x64xf32, #tpu.memory_space<vmem>>, vector<32x64xf32>,
    } else {
    }
    %c0 = arith.constant 0 : index
    %c0_1 = arith.constant 0 : index
    %3 = vector.load %arg7[%c0, %c0_1] : memref<32x64xf32, #tpu.memory_space<vmem>>, vector<32x64xf32>
    %c0_2 = arith.constant 0 : index
    %c0_3 = arith.constant 0 : index
    %4 = vector.load %arg3[%c0_2, %c0_3] : memref<32x32xbf16, #tpu.memory_space<vmem>>, vector<32x32xbf16>
    %c0_4 = arith.constant 0 : index
    %c0_5 = arith.constant 0 : index
    %5 = vector.load %arg4[%c0_4, %c0_5] : memref<32x64xbf16, #tpu.memory_space<vmem>>, vector<32x64xbf16>
    %cst = arith.constant dense<0.000000e+00> : vector<32x64xf32>
    %6 = tpu.matmul %4, %5, %cst {dimension_numbers = #tpu.dot_dimension_numbers<[1], [0], [0], [1], [0, 0, 1, 1], [], []>} : vector<32x32xbf16>, vector<32x64xbf16>, vector<32x64xf32> -> vector<32x64xf32>
    %7 = arith.addf %3, %6 : vector<32x64xf32>
    %c0_6 = arith.constant 0 : index
    %c0_7 = arith.constant 0 : index
    %8 = vector.load %arg7[%c0_6, %c0_7] : memref<32x64xf32, #tpu.memory_space<vmem>>, vector<32x64xf32>
    tpu.vector_store %arg7[%c0_6, %c0_7], %7 {strides = array<i32>} : memref<32x64xf32, #tpu.memory_space<vmem>>, vector<32x64xf32>,
    %c0_i32_8 = arith.constant 0 : i32
    %9 = arith.cmpi eq, %arg2, %c0_i32_8 : i32
    %10 = arith.extui %9 : i1 to i32
    %c0_i32_9 = arith.constant 0 : i32
    %11 = arith.cmpi ne, %10, %c0_i32_9 : i32
    scf.if %11 {
      %c0_10 = arith.constant 0 : index
      %c0_11 = arith.constant 0 : index
      %12 = vector.load %arg7[%c0_10, %c0_11] : memref<32x64xf32, #tpu.memory_space<vmem>>, vector<32x64xf32>
      %c0_12 = arith.constant 0 : index
      %c0_13 = arith.constant 0 : index
      %13 = vector.load %arg5[%c0_12, %c0_13] : memref<1x64xf32, #tpu.memory_space<vmem>>, vector<1x64xf32>
      %14 = vector.broadcast %13 : vector<1x64xf32> to vector<32x64xf32>
      %15 = arith.addf %12, %14 : vector<32x64xf32>
      %16 = arith.truncf %15 : vector<32x64xf32> to vector<32x64xbf16>
      %c0_14 = arith.constant 0 : index
      %c0_15 = arith.constant 0 : index
      %17 = vector.load %arg6[%c0_14, %c0_15] : memref<32x64xbf16, #tpu.memory_space<vmem>>, vector<32x64xbf16>
      tpu.vector_store %arg6[%c0_14, %c0_15], %16 {strides = array<i32>} : memref<32x64xbf16, #tpu.memory_space<vmem>>, vector<32x64xbf16>,
    } else {
    }
    return
  }
  func.func @transform_0(%arg0: i32, %arg1: i32, %arg2: i32) -> (i32, i32) {
    %c0_i32 = arith.constant 0 : i32
    return %arg0, %arg2 : i32, i32
  }
  func.func @transform_1(%arg0: i32, %arg1: i32, %arg2: i32) -> (i32, i32) {
    %c0_i32 = arith.constant 0 : i32
    return %arg2, %arg1 : i32, i32
  }
  func.func @transform_2(%arg0: i32, %arg1: i32, %arg2: i32) -> (i32, i32) {
    %c0_i32 = arith.constant 0 : i32
    %c0_i32_0 = arith.constant 0 : i32
    return %c0_i32, %arg1 : i32, i32
  }
  func.func @transform_3(%arg0: i32, %arg1: i32, %arg2: i32) -> (i32, i32) {
    %c0_i32 = arith.constant 0 : i32
    return %arg0, %arg1 : i32, i32
  }
}

module attributes {stable_mosaic.version = 11 : i64} {
  func.func @_mm_kernel(%arg0: i32, %arg1: i32, %arg2: i32, %arg3: memref<32x16xbf16, #tpu.memory_space<vmem>>, %arg4: memref<16x64xbf16, #tpu.memory_space<vmem>>, %arg5: memref<1x64xf32, #tpu.memory_space<vmem>>, %arg6: memref<32x64xbf16, #tpu.memory_space<vmem>>, %arg7: memref<32x64xbf16, #tpu.memory_space<vmem>>, %arg8: memref<32x64xf32, #tpu.memory_space<vmem>>) attributes {dimension_semantics = [#tpu.dimension_semantics<parallel>, #tpu.dimension_semantics<parallel>, #tpu.dimension_semantics<arbitrary>], iteration_bounds = array<i64: 1, 1, 1>, scalar_prefetch = 0 : i64, scratch_operands = 1 : i64, tpu.core_type = #tpu.core_type<tc>, window_params = [{transform_indices = @transform_0, window_bounds = array<i64: 32, 16>}, {transform_indices = @transform_1, window_bounds = array<i64: 16, 64>}, {transform_indices = @transform_2, window_bounds = array<i64: 1, 64>}, {transform_indices = @transform_3, window_bounds = array<i64: 32, 64>}, {transform_indices = @transform_4, window_bounds = array<i64: 32, 64>}]} {
    %c0_i32 = arith.constant 0 : i32
    %0 = arith.cmpi eq, %arg2, %c0_i32 : i32
    %1 = arith.extui %0 : i1 to i32
    %c0_i32_0 = arith.constant 0 : i32
    %2 = arith.cmpi ne, %1, %c0_i32_0 : i32
    scf.if %2 {
      %cst_10 = arith.constant 0.000000e+00 : f32
      %12 = vector.broadcast %cst_10 : f32 to vector<32x64xf32>
      %c0_11 = arith.constant 0 : index
      %c0_12 = arith.constant 0 : index
      %13 = vector.load %arg8[%c0_11, %c0_12] : memref<32x64xf32, #tpu.memory_space<vmem>>, vector<32x64xf32>
      tpu.vector_store %arg8[%c0_11, %c0_12], %12 {strides = array<i32>} : memref<32x64xf32, #tpu.memory_space<vmem>>, vector<32x64xf32>,
    } else {
    }
    %c0 = arith.constant 0 : index
    %c0_1 = arith.constant 0 : index
    %3 = vector.load %arg8[%c0, %c0_1] : memref<32x64xf32, #tpu.memory_space<vmem>>, vector<32x64xf32>
    %c0_2 = arith.constant 0 : index
    %c0_3 = arith.constant 0 : index
    %4 = vector.load %arg3[%c0_2, %c0_3] : memref<32x16xbf16, #tpu.memory_space<vmem>>, vector<32x16xbf16>
    %c0_4 = arith.constant 0 : index
    %c0_5 = arith.constant 0 : index
    %5 = vector.load %arg4[%c0_4, %c0_5] : memref<16x64xbf16, #tpu.memory_space<vmem>>, vector<16x64xbf16>
    %cst = arith.constant dense<0.000000e+00> : vector<32x64xf32>
    %6 = tpu.matmul %4, %5, %cst {dimension_numbers = #tpu.dot_dimension_numbers<[1], [0], [0], [1], [0, 0, 1, 1], [], []>} : vector<32x16xbf16>, vector<16x64xbf16>, vector<32x64xf32> -> vector<32x64xf32>
    %7 = arith.addf %3, %6 : vector<32x64xf32>
    %c0_6 = arith.constant 0 : index
    %c0_7 = arith.constant 0 : index
    %8 = vector.load %arg8[%c0_6, %c0_7] : memref<32x64xf32, #tpu.memory_space<vmem>>, vector<32x64xf32>
    tpu.vector_store %arg8[%c0_6, %c0_7], %7 {strides = array<i32>} : memref<32x64xf32, #tpu.memory_space<vmem>>, vector<32x64xf32>,
    %c0_i32_8 = arith.constant 0 : i32
    %9 = arith.cmpi eq, %arg2, %c0_i32_8 : i32
    %10 = arith.extui %9 : i1 to i32
    %c0_i32_9 = arith.constant 0 : i32
    %11 = arith.cmpi ne, %10, %c0_i32_9 : i32
    scf.if %11 {
      %c0_10 = arith.constant 0 : index
      %c0_11 = arith.constant 0 : index
      %12 = vector.load %arg8[%c0_10, %c0_11] : memref<32x64xf32, #tpu.memory_space<vmem>>, vector<32x64xf32>
      %c0_12 = arith.constant 0 : index
      %c0_13 = arith.constant 0 : index
      %13 = vector.load %arg5[%c0_12, %c0_13] : memref<1x64xf32, #tpu.memory_space<vmem>>, vector<1x64xf32>
      %14 = vector.broadcast %13 : vector<1x64xf32> to vector<32x64xf32>
      %15 = arith.addf %12, %14 : vector<32x64xf32>
      %c0_14 = arith.constant 0 : index
      %c0_15 = arith.constant 0 : index
      %16 = vector.load %arg6[%c0_14, %c0_15] : memref<32x64xbf16, #tpu.memory_space<vmem>>, vector<32x64xbf16>
      %17 = arith.extf %16 : vector<32x64xbf16> to vector<32x64xf32>
      %18 = arith.addf %15, %17 : vector<32x64xf32>
      %cst_16 = arith.constant 0.000000e+00 : f32
      %19 = vector.broadcast %cst_16 : f32 to vector<32x64xf32>
      %20 = arith.maximumf %18, %19 : vector<32x64xf32>
      %21 = arith.truncf %20 : vector<32x64xf32> to vector<32x64xbf16>
      %c0_17 = arith.constant 0 : index
      %c0_18 = arith.constant 0 : index
      %22 = vector.load %arg7[%c0_17, %c0_18] : memref<32x64xbf16, #tpu.memory_space<vmem>>, vector<32x64xbf16>
      tpu.vector_store %arg7[%c0_17, %c0_18], %21 {strides = array<i32>} : memref<32x64xbf16, #tpu.memory_space<vmem>>, vector<32x64xbf16>,
    } else {
    }
    return
  }
  func.func @transform_0(%arg0: i32, %arg1: i32, %arg2: i32) -> (i32, i32) {
    %c0_i32 = arith.constant 0 : i32
    return %arg0, %arg2 : i32, i32
  }
  func.func @transform_1(%arg0: i32, %arg1: i32, %arg2: i32) -> (i32, i32) {
    %c0_i32 = arith.constant 0 : i32
    return %arg2, %arg1 : i32, i32
  }
  func.func @transform_2(%arg0: i32, %arg1: i32, %arg2: i32) -> (i32, i32) {
    %c0_i32 = arith.constant 0 : i32
    %c0_i32_0 = arith.constant 0 : i32
    return %c0_i32, %arg1 : i32, i32
  }
  func.func @transform_3(%arg0: i32, %arg1: i32, %arg2: i32) -> (i32, i32) {
    %c0_i32 = arith.constant 0 : i32
    return %arg0, %arg1 : i32, i32
  }
  func.func @transform_4(%arg0: i32, %arg1: i32, %arg2: i32) -> (i32, i32) {
    %c0_i32 = arith.constant 0 : i32
    return %arg0, %arg1 : i32, i32
  }
}

module attributes {stable_mosaic.version = 11 : i64} {
  func.func @_mm_kernel(%arg0: i32, %arg1: i32, %arg2: i32, %arg3: memref<32x64xbf16, #tpu.memory_space<vmem>>, %arg4: memref<64x16xbf16, #tpu.memory_space<vmem>>, %arg5: memref<1x16xf32, #tpu.memory_space<vmem>>, %arg6: memref<32x16xbf16, #tpu.memory_space<vmem>>, %arg7: memref<32x16xf32, #tpu.memory_space<vmem>>) attributes {dimension_semantics = [#tpu.dimension_semantics<parallel>, #tpu.dimension_semantics<parallel>, #tpu.dimension_semantics<arbitrary>], iteration_bounds = array<i64: 1, 1, 1>, scalar_prefetch = 0 : i64, scratch_operands = 1 : i64, tpu.core_type = #tpu.core_type<tc>, window_params = [{transform_indices = @transform_0, window_bounds = array<i64: 32, 64>}, {transform_indices = @transform_1, window_bounds = array<i64: 64, 16>}, {transform_indices = @transform_2, window_bounds = array<i64: 1, 16>}, {transform_indices = @transform_3, window_bounds = array<i64: 32, 16>}]} {
    %c0_i32 = arith.constant 0 : i32
    %0 = arith.cmpi eq, %arg2, %c0_i32 : i32
    %1 = arith.extui %0 : i1 to i32
    %c0_i32_0 = arith.constant 0 : i32
    %2 = arith.cmpi ne, %1, %c0_i32_0 : i32
    scf.if %2 {
      %cst_10 = arith.constant 0.000000e+00 : f32
      %12 = vector.broadcast %cst_10 : f32 to vector<32x16xf32>
      %c0_11 = arith.constant 0 : index
      %c0_12 = arith.constant 0 : index
      %13 = vector.load %arg7[%c0_11, %c0_12] : memref<32x16xf32, #tpu.memory_space<vmem>>, vector<32x16xf32>
      tpu.vector_store %arg7[%c0_11, %c0_12], %12 {strides = array<i32>} : memref<32x16xf32, #tpu.memory_space<vmem>>, vector<32x16xf32>,
    } else {
    }
    %c0 = arith.constant 0 : index
    %c0_1 = arith.constant 0 : index
    %3 = vector.load %arg7[%c0, %c0_1] : memref<32x16xf32, #tpu.memory_space<vmem>>, vector<32x16xf32>
    %c0_2 = arith.constant 0 : index
    %c0_3 = arith.constant 0 : index
    %4 = vector.load %arg3[%c0_2, %c0_3] : memref<32x64xbf16, #tpu.memory_space<vmem>>, vector<32x64xbf16>
    %c0_4 = arith.constant 0 : index
    %c0_5 = arith.constant 0 : index
    %5 = vector.load %arg4[%c0_4, %c0_5] : memref<64x16xbf16, #tpu.memory_space<vmem>>, vector<64x16xbf16>
    %cst = arith.constant dense<0.000000e+00> : vector<32x16xf32>
    %6 = tpu.matmul %4, %5, %cst {dimension_numbers = #tpu.dot_dimension_numbers<[1], [0], [0], [1], [0, 0, 1, 1], [], []>} : vector<32x64xbf16>, vector<64x16xbf16>, vector<32x16xf32> -> vector<32x16xf32>
    %7 = arith.addf %3, %6 : vector<32x16xf32>
    %c0_6 = arith.constant 0 : index
    %c0_7 = arith.constant 0 : index
    %8 = vector.load %arg7[%c0_6, %c0_7] : memref<32x16xf32, #tpu.memory_space<vmem>>, vector<32x16xf32>
    tpu.vector_store %arg7[%c0_6, %c0_7], %7 {strides = array<i32>} : memref<32x16xf32, #tpu.memory_space<vmem>>, vector<32x16xf32>,
    %c0_i32_8 = arith.constant 0 : i32
    %9 = arith.cmpi eq, %arg2, %c0_i32_8 : i32
    %10 = arith.extui %9 : i1 to i32
    %c0_i32_9 = arith.constant 0 : i32
    %11 = arith.cmpi ne, %10, %c0_i32_9 : i32
    scf.if %11 {
      %c0_10 = arith.constant 0 : index
      %c0_11 = arith.constant 0 : index
      %12 = vector.load %arg7[%c0_10, %c0_11] : memref<32x16xf32, #tpu.memory_space<vmem>>, vector<32x16xf32>
      %c0_12 = arith.constant 0 : index
      %c0_13 = arith.constant 0 : index
      %13 = vector.load %arg5[%c0_12, %c0_13] : memref<1x16xf32, #tpu.memory_space<vmem>>, vector<1x16xf32>
      %14 = vector.broadcast %13 : vector<1x16xf32> to vector<32x16xf32>
      %15 = arith.addf %12, %14 : vector<32x16xf32>
      %cst_14 = arith.constant 0.000000e+00 : f32
      %16 = vector.broadcast %cst_14 : f32 to vector<32x16xf32>
      %17 = arith.maximumf %15, %16 : vector<32x16xf32>
      %18 = arith.truncf %17 : vector<32x16xf32> to vector<32x16xbf16>
      %c0_15 = arith.constant 0 : index
      %c0_16 = arith.constant 0 : index
      %19 = vector.load %arg6[%c0_15, %c0_16] : memref<32x16xbf16, #tpu.memory_space<vmem>>, vector<32x16xbf16>
      tpu.vector_store %arg6[%c0_15, %c0_16], %18 {strides = array<i32>} : memref<32x16xbf16, #tpu.memory_space<vmem>>, vector<32x16xbf16>,
    } else {
    }
    return
  }
  func.func @transform_0(%arg0: i32, %arg1: i32, %arg2: i32) -> (i32, i32) {
    %c0_i32 = arith.constant 0 : i32
    return %arg0, %arg2 : i32, i32
  }
  func.func @transform_1(%arg0: i32, %arg1: i32, %arg2: i32) -> (i32, i32) {
    %c0_i32 = arith.constant 0 : i32
    return %arg2, %arg1 : i32, i32
  }
  func.func @transform_2(%arg0: i32, %arg1: i32, %arg2: i32) -> (i32, i32) {
    %c0_i32 = arith.constant 0 : i32
    %c0_i32_0 = arith.constant 0 : i32
    return %c0_i32, %arg1 : i32, i32
  }
  func.func @transform_3(%arg0: i32, %arg1: i32, %arg2: i32) -> (i32, i32) {
    %c0_i32 = arith.constant 0 : i32
    return %arg0, %arg1 : i32, i32
  }
}

module attributes {stable_mosaic.version = 11 : i64} {
  func.func @_mm_kernel(%arg0: i32, %arg1: i32, %arg2: i32, %arg3: memref<32x64xbf16, #tpu.memory_space<vmem>>, %arg4: memref<64x32xbf16, #tpu.memory_space<vmem>>, %arg5: memref<1x32xf32, #tpu.memory_space<vmem>>, %arg6: memref<32x32xbf16, #tpu.memory_space<vmem>>, %arg7: memref<32x32xf32, #tpu.memory_space<vmem>>) attributes {dimension_semantics = [#tpu.dimension_semantics<parallel>, #tpu.dimension_semantics<parallel>, #tpu.dimension_semantics<arbitrary>], iteration_bounds = array<i64: 1, 1, 1>, scalar_prefetch = 0 : i64, scratch_operands = 1 : i64, tpu.core_type = #tpu.core_type<tc>, window_params = [{transform_indices = @transform_0, window_bounds = array<i64: 32, 64>}, {transform_indices = @transform_1, window_bounds = array<i64: 64, 32>}, {transform_indices = @transform_2, window_bounds = array<i64: 1, 32>}, {transform_indices = @transform_3, window_bounds = array<i64: 32, 32>}]} {
    %c0_i32 = arith.constant 0 : i32
    %0 = arith.cmpi eq, %arg2, %c0_i32 : i32
    %1 = arith.extui %0 : i1 to i32
    %c0_i32_0 = arith.constant 0 : i32
    %2 = arith.cmpi ne, %1, %c0_i32_0 : i32
    scf.if %2 {
      %cst_10 = arith.constant 0.000000e+00 : f32
      %12 = vector.broadcast %cst_10 : f32 to vector<32x32xf32>
      %c0_11 = arith.constant 0 : index
      %c0_12 = arith.constant 0 : index
      %13 = vector.load %arg7[%c0_11, %c0_12] : memref<32x32xf32, #tpu.memory_space<vmem>>, vector<32x32xf32>
      tpu.vector_store %arg7[%c0_11, %c0_12], %12 {strides = array<i32>} : memref<32x32xf32, #tpu.memory_space<vmem>>, vector<32x32xf32>,
    } else {
    }
    %c0 = arith.constant 0 : index
    %c0_1 = arith.constant 0 : index
    %3 = vector.load %arg7[%c0, %c0_1] : memref<32x32xf32, #tpu.memory_space<vmem>>, vector<32x32xf32>
    %c0_2 = arith.constant 0 : index
    %c0_3 = arith.constant 0 : index
    %4 = vector.load %arg3[%c0_2, %c0_3] : memref<32x64xbf16, #tpu.memory_space<vmem>>, vector<32x64xbf16>
    %c0_4 = arith.constant 0 : index
    %c0_5 = arith.constant 0 : index
    %5 = vector.load %arg4[%c0_4, %c0_5] : memref<64x32xbf16, #tpu.memory_space<vmem>>, vector<64x32xbf16>
    %cst = arith.constant dense<0.000000e+00> : vector<32x32xf32>
    %6 = tpu.matmul %4, %5, %cst {dimension_numbers = #tpu.dot_dimension_numbers<[1], [0], [0], [1], [0, 0, 1, 1], [], []>} : vector<32x64xbf16>, vector<64x32xbf16>, vector<32x32xf32> -> vector<32x32xf32>
    %7 = arith.addf %3, %6 : vector<32x32xf32>
    %c0_6 = arith.constant 0 : index
    %c0_7 = arith.constant 0 : index
    %8 = vector.load %arg7[%c0_6, %c0_7] : memref<32x32xf32, #tpu.memory_space<vmem>>, vector<32x32xf32>
    tpu.vector_store %arg7[%c0_6, %c0_7], %7 {strides = array<i32>} : memref<32x32xf32, #tpu.memory_space<vmem>>, vector<32x32xf32>,
    %c0_i32_8 = arith.constant 0 : i32
    %9 = arith.cmpi eq, %arg2, %c0_i32_8 : i32
    %10 = arith.extui %9 : i1 to i32
    %c0_i32_9 = arith.constant 0 : i32
    %11 = arith.cmpi ne, %10, %c0_i32_9 : i32
    scf.if %11 {
      %c0_10 = arith.constant 0 : index
      %c0_11 = arith.constant 0 : index
      %12 = vector.load %arg7[%c0_10, %c0_11] : memref<32x32xf32, #tpu.memory_space<vmem>>, vector<32x32xf32>
      %c0_12 = arith.constant 0 : index
      %c0_13 = arith.constant 0 : index
      %13 = vector.load %arg5[%c0_12, %c0_13] : memref<1x32xf32, #tpu.memory_space<vmem>>, vector<1x32xf32>
      %14 = vector.broadcast %13 : vector<1x32xf32> to vector<32x32xf32>
      %15 = arith.addf %12, %14 : vector<32x32xf32>
      %cst_14 = arith.constant 0.000000e+00 : f32
      %16 = vector.broadcast %cst_14 : f32 to vector<32x32xf32>
      %17 = arith.maximumf %15, %16 : vector<32x32xf32>
      %18 = arith.truncf %17 : vector<32x32xf32> to vector<32x32xbf16>
      %c0_15 = arith.constant 0 : index
      %c0_16 = arith.constant 0 : index
      %19 = vector.load %arg6[%c0_15, %c0_16] : memref<32x32xbf16, #tpu.memory_space<vmem>>, vector<32x32xbf16>
      tpu.vector_store %arg6[%c0_15, %c0_16], %18 {strides = array<i32>} : memref<32x32xbf16, #tpu.memory_space<vmem>>, vector<32x32xbf16>,
    } else {
    }
    return
  }
  func.func @transform_0(%arg0: i32, %arg1: i32, %arg2: i32) -> (i32, i32) {
    %c0_i32 = arith.constant 0 : i32
    return %arg0, %arg2 : i32, i32
  }
  func.func @transform_1(%arg0: i32, %arg1: i32, %arg2: i32) -> (i32, i32) {
    %c0_i32 = arith.constant 0 : i32
    return %arg2, %arg1 : i32, i32
  }
  func.func @transform_2(%arg0: i32, %arg1: i32, %arg2: i32) -> (i32, i32) {
    %c0_i32 = arith.constant 0 : i32
    %c0_i32_0 = arith.constant 0 : i32
    return %c0_i32, %arg1 : i32, i32
  }
  func.func @transform_3(%arg0: i32, %arg1: i32, %arg2: i32) -> (i32, i32) {
    %c0_i32 = arith.constant 0 : i32
    return %arg0, %arg1 : i32, i32
  }
}

module attributes {stable_mosaic.version = 11 : i64} {
  func.func @_mm_kernel(%arg0: i32, %arg1: i32, %arg2: i32, %arg3: memref<32x288xbf16, #tpu.memory_space<vmem>>, %arg4: memref<288x32xbf16, #tpu.memory_space<vmem>>, %arg5: memref<1x32xf32, #tpu.memory_space<vmem>>, %arg6: memref<32x32xbf16, #tpu.memory_space<vmem>>, %arg7: memref<32x32xf32, #tpu.memory_space<vmem>>) attributes {dimension_semantics = [#tpu.dimension_semantics<parallel>, #tpu.dimension_semantics<parallel>, #tpu.dimension_semantics<arbitrary>], iteration_bounds = array<i64: 1, 1, 1>, scalar_prefetch = 0 : i64, scratch_operands = 1 : i64, tpu.core_type = #tpu.core_type<tc>, window_params = [{transform_indices = @transform_0, window_bounds = array<i64: 32, 288>}, {transform_indices = @transform_1, window_bounds = array<i64: 288, 32>}, {transform_indices = @transform_2, window_bounds = array<i64: 1, 32>}, {transform_indices = @transform_3, window_bounds = array<i64: 32, 32>}]} {
    %c0_i32 = arith.constant 0 : i32
    %0 = arith.cmpi eq, %arg2, %c0_i32 : i32
    %1 = arith.extui %0 : i1 to i32
    %c0_i32_0 = arith.constant 0 : i32
    %2 = arith.cmpi ne, %1, %c0_i32_0 : i32
    scf.if %2 {
      %cst_10 = arith.constant 0.000000e+00 : f32
      %12 = vector.broadcast %cst_10 : f32 to vector<32x32xf32>
      %c0_11 = arith.constant 0 : index
      %c0_12 = arith.constant 0 : index
      %13 = vector.load %arg7[%c0_11, %c0_12] : memref<32x32xf32, #tpu.memory_space<vmem>>, vector<32x32xf32>
      tpu.vector_store %arg7[%c0_11, %c0_12], %12 {strides = array<i32>} : memref<32x32xf32, #tpu.memory_space<vmem>>, vector<32x32xf32>,
    } else {
    }
    %c0 = arith.constant 0 : index
    %c0_1 = arith.constant 0 : index
    %3 = vector.load %arg7[%c0, %c0_1] : memref<32x32xf32, #tpu.memory_space<vmem>>, vector<32x32xf32>
    %c0_2 = arith.constant 0 : index
    %c0_3 = arith.constant 0 : index
    %4 = vector.load %arg3[%c0_2, %c0_3] : memref<32x288xbf16, #tpu.memory_space<vmem>>, vector<32x288xbf16>
    %c0_4 = arith.constant 0 : index
    %c0_5 = arith.constant 0 : index
    %5 = vector.load %arg4[%c0_4, %c0_5] : memref<288x32xbf16, #tpu.memory_space<vmem>>, vector<288x32xbf16>
    %cst = arith.constant dense<0.000000e+00> : vector<32x32xf32>
    %6 = tpu.matmul %4, %5, %cst {dimension_numbers = #tpu.dot_dimension_numbers<[1], [0], [0], [1], [0, 0, 1, 1], [], []>} : vector<32x288xbf16>, vector<288x32xbf16>, vector<32x32xf32> -> vector<32x32xf32>
    %7 = arith.addf %3, %6 : vector<32x32xf32>
    %c0_6 = arith.constant 0 : index
    %c0_7 = arith.constant 0 : index
    %8 = vector.load %arg7[%c0_6, %c0_7] : memref<32x32xf32, #tpu.memory_space<vmem>>, vector<32x32xf32>
    tpu.vector_store %arg7[%c0_6, %c0_7], %7 {strides = array<i32>} : memref<32x32xf32, #tpu.memory_space<vmem>>, vector<32x32xf32>,
    %c0_i32_8 = arith.constant 0 : i32
    %9 = arith.cmpi eq, %arg2, %c0_i32_8 : i32
    %10 = arith.extui %9 : i1 to i32
    %c0_i32_9 = arith.constant 0 : i32
    %11 = arith.cmpi ne, %10, %c0_i32_9 : i32
    scf.if %11 {
      %c0_10 = arith.constant 0 : index
      %c0_11 = arith.constant 0 : index
      %12 = vector.load %arg7[%c0_10, %c0_11] : memref<32x32xf32, #tpu.memory_space<vmem>>, vector<32x32xf32>
      %c0_12 = arith.constant 0 : index
      %c0_13 = arith.constant 0 : index
      %13 = vector.load %arg5[%c0_12, %c0_13] : memref<1x32xf32, #tpu.memory_space<vmem>>, vector<1x32xf32>
      %14 = vector.broadcast %13 : vector<1x32xf32> to vector<32x32xf32>
      %15 = arith.addf %12, %14 : vector<32x32xf32>
      %cst_14 = arith.constant 0.000000e+00 : f32
      %16 = vector.broadcast %cst_14 : f32 to vector<32x32xf32>
      %17 = arith.maximumf %15, %16 : vector<32x32xf32>
      %18 = arith.truncf %17 : vector<32x32xf32> to vector<32x32xbf16>
      %c0_15 = arith.constant 0 : index
      %c0_16 = arith.constant 0 : index
      %19 = vector.load %arg6[%c0_15, %c0_16] : memref<32x32xbf16, #tpu.memory_space<vmem>>, vector<32x32xbf16>
      tpu.vector_store %arg6[%c0_15, %c0_16], %18 {strides = array<i32>} : memref<32x32xbf16, #tpu.memory_space<vmem>>, vector<32x32xbf16>,
    } else {
    }
    return
  }
  func.func @transform_0(%arg0: i32, %arg1: i32, %arg2: i32) -> (i32, i32) {
    %c0_i32 = arith.constant 0 : i32
    return %arg0, %arg2 : i32, i32
  }
  func.func @transform_1(%arg0: i32, %arg1: i32, %arg2: i32) -> (i32, i32) {
    %c0_i32 = arith.constant 0 : i32
    return %arg2, %arg1 : i32, i32
  }
  func.func @transform_2(%arg0: i32, %arg1: i32, %arg2: i32) -> (i32, i32) {
    %c0_i32 = arith.constant 0 : i32
    %c0_i32_0 = arith.constant 0 : i32
    return %c0_i32, %arg1 : i32, i32
  }
  func.func @transform_3(%arg0: i32, %arg1: i32, %arg2: i32) -> (i32, i32) {
    %c0_i32 = arith.constant 0 : i32
    return %arg0, %arg1 : i32, i32
  }
}

module attributes {stable_mosaic.version = 11 : i64} {
  func.func @_mm_kernel(%arg0: i32, %arg1: i32, %arg2: i32, %arg3: memref<32x64xbf16, #tpu.memory_space<vmem>>, %arg4: memref<64x128xbf16, #tpu.memory_space<vmem>>, %arg5: memref<1x128xf32, #tpu.memory_space<vmem>>, %arg6: memref<32x128xbf16, #tpu.memory_space<vmem>>, %arg7: memref<32x128xf32, #tpu.memory_space<vmem>>) attributes {dimension_semantics = [#tpu.dimension_semantics<parallel>, #tpu.dimension_semantics<parallel>, #tpu.dimension_semantics<arbitrary>], iteration_bounds = array<i64: 1, 1, 1>, scalar_prefetch = 0 : i64, scratch_operands = 1 : i64, tpu.core_type = #tpu.core_type<tc>, window_params = [{transform_indices = @transform_0, window_bounds = array<i64: 32, 64>}, {transform_indices = @transform_1, window_bounds = array<i64: 64, 128>}, {transform_indices = @transform_2, window_bounds = array<i64: 1, 128>}, {transform_indices = @transform_3, window_bounds = array<i64: 32, 128>}]} {
    %c0_i32 = arith.constant 0 : i32
    %0 = arith.cmpi eq, %arg2, %c0_i32 : i32
    %1 = arith.extui %0 : i1 to i32
    %c0_i32_0 = arith.constant 0 : i32
    %2 = arith.cmpi ne, %1, %c0_i32_0 : i32
    scf.if %2 {
      %cst_10 = arith.constant 0.000000e+00 : f32
      %12 = vector.broadcast %cst_10 : f32 to vector<32x128xf32>
      %c0_11 = arith.constant 0 : index
      %c0_12 = arith.constant 0 : index
      %13 = vector.load %arg7[%c0_11, %c0_12] : memref<32x128xf32, #tpu.memory_space<vmem>>, vector<32x128xf32>
      tpu.vector_store %arg7[%c0_11, %c0_12], %12 {strides = array<i32>} : memref<32x128xf32, #tpu.memory_space<vmem>>, vector<32x128xf32>,
    } else {
    }
    %c0 = arith.constant 0 : index
    %c0_1 = arith.constant 0 : index
    %3 = vector.load %arg7[%c0, %c0_1] : memref<32x128xf32, #tpu.memory_space<vmem>>, vector<32x128xf32>
    %c0_2 = arith.constant 0 : index
    %c0_3 = arith.constant 0 : index
    %4 = vector.load %arg3[%c0_2, %c0_3] : memref<32x64xbf16, #tpu.memory_space<vmem>>, vector<32x64xbf16>
    %c0_4 = arith.constant 0 : index
    %c0_5 = arith.constant 0 : index
    %5 = vector.load %arg4[%c0_4, %c0_5] : memref<64x128xbf16, #tpu.memory_space<vmem>>, vector<64x128xbf16>
    %cst = arith.constant dense<0.000000e+00> : vector<32x128xf32>
    %6 = tpu.matmul %4, %5, %cst {dimension_numbers = #tpu.dot_dimension_numbers<[1], [0], [0], [1], [0, 0, 1, 1], [], []>} : vector<32x64xbf16>, vector<64x128xbf16>, vector<32x128xf32> -> vector<32x128xf32>
    %7 = arith.addf %3, %6 : vector<32x128xf32>
    %c0_6 = arith.constant 0 : index
    %c0_7 = arith.constant 0 : index
    %8 = vector.load %arg7[%c0_6, %c0_7] : memref<32x128xf32, #tpu.memory_space<vmem>>, vector<32x128xf32>
    tpu.vector_store %arg7[%c0_6, %c0_7], %7 {strides = array<i32>} : memref<32x128xf32, #tpu.memory_space<vmem>>, vector<32x128xf32>,
    %c0_i32_8 = arith.constant 0 : i32
    %9 = arith.cmpi eq, %arg2, %c0_i32_8 : i32
    %10 = arith.extui %9 : i1 to i32
    %c0_i32_9 = arith.constant 0 : i32
    %11 = arith.cmpi ne, %10, %c0_i32_9 : i32
    scf.if %11 {
      %c0_10 = arith.constant 0 : index
      %c0_11 = arith.constant 0 : index
      %12 = vector.load %arg7[%c0_10, %c0_11] : memref<32x128xf32, #tpu.memory_space<vmem>>, vector<32x128xf32>
      %c0_12 = arith.constant 0 : index
      %c0_13 = arith.constant 0 : index
      %13 = vector.load %arg5[%c0_12, %c0_13] : memref<1x128xf32, #tpu.memory_space<vmem>>, vector<1x128xf32>
      %14 = vector.broadcast %13 : vector<1x128xf32> to vector<32x128xf32>
      %15 = arith.addf %12, %14 : vector<32x128xf32>
      %16 = arith.truncf %15 : vector<32x128xf32> to vector<32x128xbf16>
      %c0_14 = arith.constant 0 : index
      %c0_15 = arith.constant 0 : index
      %17 = vector.load %arg6[%c0_14, %c0_15] : memref<32x128xbf16, #tpu.memory_space<vmem>>, vector<32x128xbf16>
      tpu.vector_store %arg6[%c0_14, %c0_15], %16 {strides = array<i32>} : memref<32x128xbf16, #tpu.memory_space<vmem>>, vector<32x128xbf16>,
    } else {
    }
    return
  }
  func.func @transform_0(%arg0: i32, %arg1: i32, %arg2: i32) -> (i32, i32) {
    %c0_i32 = arith.constant 0 : i32
    return %arg0, %arg2 : i32, i32
  }
  func.func @transform_1(%arg0: i32, %arg1: i32, %arg2: i32) -> (i32, i32) {
    %c0_i32 = arith.constant 0 : i32
    return %arg2, %arg1 : i32, i32
  }
  func.func @transform_2(%arg0: i32, %arg1: i32, %arg2: i32) -> (i32, i32) {
    %c0_i32 = arith.constant 0 : i32
    %c0_i32_0 = arith.constant 0 : i32
    return %c0_i32, %arg1 : i32, i32
  }
  func.func @transform_3(%arg0: i32, %arg1: i32, %arg2: i32) -> (i32, i32) {
    %c0_i32 = arith.constant 0 : i32
    return %arg0, %arg1 : i32, i32
  }
}

module attributes {stable_mosaic.version = 11 : i64} {
  func.func @_mm_kernel(%arg0: i32, %arg1: i32, %arg2: i32, %arg3: memref<32x32xbf16, #tpu.memory_space<vmem>>, %arg4: memref<32x128xbf16, #tpu.memory_space<vmem>>, %arg5: memref<1x128xf32, #tpu.memory_space<vmem>>, %arg6: memref<32x128xbf16, #tpu.memory_space<vmem>>, %arg7: memref<32x128xbf16, #tpu.memory_space<vmem>>, %arg8: memref<32x128xf32, #tpu.memory_space<vmem>>) attributes {dimension_semantics = [#tpu.dimension_semantics<parallel>, #tpu.dimension_semantics<parallel>, #tpu.dimension_semantics<arbitrary>], iteration_bounds = array<i64: 1, 1, 1>, scalar_prefetch = 0 : i64, scratch_operands = 1 : i64, tpu.core_type = #tpu.core_type<tc>, window_params = [{transform_indices = @transform_0, window_bounds = array<i64: 32, 32>}, {transform_indices = @transform_1, window_bounds = array<i64: 32, 128>}, {transform_indices = @transform_2, window_bounds = array<i64: 1, 128>}, {transform_indices = @transform_3, window_bounds = array<i64: 32, 128>}, {transform_indices = @transform_4, window_bounds = array<i64: 32, 128>}]} {
    %c0_i32 = arith.constant 0 : i32
    %0 = arith.cmpi eq, %arg2, %c0_i32 : i32
    %1 = arith.extui %0 : i1 to i32
    %c0_i32_0 = arith.constant 0 : i32
    %2 = arith.cmpi ne, %1, %c0_i32_0 : i32
    scf.if %2 {
      %cst_10 = arith.constant 0.000000e+00 : f32
      %12 = vector.broadcast %cst_10 : f32 to vector<32x128xf32>
      %c0_11 = arith.constant 0 : index
      %c0_12 = arith.constant 0 : index
      %13 = vector.load %arg8[%c0_11, %c0_12] : memref<32x128xf32, #tpu.memory_space<vmem>>, vector<32x128xf32>
      tpu.vector_store %arg8[%c0_11, %c0_12], %12 {strides = array<i32>} : memref<32x128xf32, #tpu.memory_space<vmem>>, vector<32x128xf32>,
    } else {
    }
    %c0 = arith.constant 0 : index
    %c0_1 = arith.constant 0 : index
    %3 = vector.load %arg8[%c0, %c0_1] : memref<32x128xf32, #tpu.memory_space<vmem>>, vector<32x128xf32>
    %c0_2 = arith.constant 0 : index
    %c0_3 = arith.constant 0 : index
    %4 = vector.load %arg3[%c0_2, %c0_3] : memref<32x32xbf16, #tpu.memory_space<vmem>>, vector<32x32xbf16>
    %c0_4 = arith.constant 0 : index
    %c0_5 = arith.constant 0 : index
    %5 = vector.load %arg4[%c0_4, %c0_5] : memref<32x128xbf16, #tpu.memory_space<vmem>>, vector<32x128xbf16>
    %cst = arith.constant dense<0.000000e+00> : vector<32x128xf32>
    %6 = tpu.matmul %4, %5, %cst {dimension_numbers = #tpu.dot_dimension_numbers<[1], [0], [0], [1], [0, 0, 1, 1], [], []>} : vector<32x32xbf16>, vector<32x128xbf16>, vector<32x128xf32> -> vector<32x128xf32>
    %7 = arith.addf %3, %6 : vector<32x128xf32>
    %c0_6 = arith.constant 0 : index
    %c0_7 = arith.constant 0 : index
    %8 = vector.load %arg8[%c0_6, %c0_7] : memref<32x128xf32, #tpu.memory_space<vmem>>, vector<32x128xf32>
    tpu.vector_store %arg8[%c0_6, %c0_7], %7 {strides = array<i32>} : memref<32x128xf32, #tpu.memory_space<vmem>>, vector<32x128xf32>,
    %c0_i32_8 = arith.constant 0 : i32
    %9 = arith.cmpi eq, %arg2, %c0_i32_8 : i32
    %10 = arith.extui %9 : i1 to i32
    %c0_i32_9 = arith.constant 0 : i32
    %11 = arith.cmpi ne, %10, %c0_i32_9 : i32
    scf.if %11 {
      %c0_10 = arith.constant 0 : index
      %c0_11 = arith.constant 0 : index
      %12 = vector.load %arg8[%c0_10, %c0_11] : memref<32x128xf32, #tpu.memory_space<vmem>>, vector<32x128xf32>
      %c0_12 = arith.constant 0 : index
      %c0_13 = arith.constant 0 : index
      %13 = vector.load %arg5[%c0_12, %c0_13] : memref<1x128xf32, #tpu.memory_space<vmem>>, vector<1x128xf32>
      %14 = vector.broadcast %13 : vector<1x128xf32> to vector<32x128xf32>
      %15 = arith.addf %12, %14 : vector<32x128xf32>
      %c0_14 = arith.constant 0 : index
      %c0_15 = arith.constant 0 : index
      %16 = vector.load %arg6[%c0_14, %c0_15] : memref<32x128xbf16, #tpu.memory_space<vmem>>, vector<32x128xbf16>
      %17 = arith.extf %16 : vector<32x128xbf16> to vector<32x128xf32>
      %18 = arith.addf %15, %17 : vector<32x128xf32>
      %cst_16 = arith.constant 0.000000e+00 : f32
      %19 = vector.broadcast %cst_16 : f32 to vector<32x128xf32>
      %20 = arith.maximumf %18, %19 : vector<32x128xf32>
      %21 = arith.truncf %20 : vector<32x128xf32> to vector<32x128xbf16>
      %c0_17 = arith.constant 0 : index
      %c0_18 = arith.constant 0 : index
      %22 = vector.load %arg7[%c0_17, %c0_18] : memref<32x128xbf16, #tpu.memory_space<vmem>>, vector<32x128xbf16>
      tpu.vector_store %arg7[%c0_17, %c0_18], %21 {strides = array<i32>} : memref<32x128xbf16, #tpu.memory_space<vmem>>, vector<32x128xbf16>,
    } else {
    }
    return
  }
  func.func @transform_0(%arg0: i32, %arg1: i32, %arg2: i32) -> (i32, i32) {
    %c0_i32 = arith.constant 0 : i32
    return %arg0, %arg2 : i32, i32
  }
  func.func @transform_1(%arg0: i32, %arg1: i32, %arg2: i32) -> (i32, i32) {
    %c0_i32 = arith.constant 0 : i32
    return %arg2, %arg1 : i32, i32
  }
  func.func @transform_2(%arg0: i32, %arg1: i32, %arg2: i32) -> (i32, i32) {
    %c0_i32 = arith.constant 0 : i32
    %c0_i32_0 = arith.constant 0 : i32
    return %c0_i32, %arg1 : i32, i32
  }
  func.func @transform_3(%arg0: i32, %arg1: i32, %arg2: i32) -> (i32, i32) {
    %c0_i32 = arith.constant 0 : i32
    return %arg0, %arg1 : i32, i32
  }
  func.func @transform_4(%arg0: i32, %arg1: i32, %arg2: i32) -> (i32, i32) {
    %c0_i32 = arith.constant 0 : i32
    return %arg0, %arg1 : i32, i32
  }
}

module attributes {stable_mosaic.version = 11 : i64} {
  func.func @_mm_kernel(%arg0: i32, %arg1: i32, %arg2: i32, %arg3: memref<32x128xbf16, #tpu.memory_space<vmem>>, %arg4: memref<128x32xbf16, #tpu.memory_space<vmem>>, %arg5: memref<1x32xf32, #tpu.memory_space<vmem>>, %arg6: memref<32x32xbf16, #tpu.memory_space<vmem>>, %arg7: memref<32x32xf32, #tpu.memory_space<vmem>>) attributes {dimension_semantics = [#tpu.dimension_semantics<parallel>, #tpu.dimension_semantics<parallel>, #tpu.dimension_semantics<arbitrary>], iteration_bounds = array<i64: 1, 1, 1>, scalar_prefetch = 0 : i64, scratch_operands = 1 : i64, tpu.core_type = #tpu.core_type<tc>, window_params = [{transform_indices = @transform_0, window_bounds = array<i64: 32, 128>}, {transform_indices = @transform_1, window_bounds = array<i64: 128, 32>}, {transform_indices = @transform_2, window_bounds = array<i64: 1, 32>}, {transform_indices = @transform_3, window_bounds = array<i64: 32, 32>}]} {
    %c0_i32 = arith.constant 0 : i32
    %0 = arith.cmpi eq, %arg2, %c0_i32 : i32
    %1 = arith.extui %0 : i1 to i32
    %c0_i32_0 = arith.constant 0 : i32
    %2 = arith.cmpi ne, %1, %c0_i32_0 : i32
    scf.if %2 {
      %cst_10 = arith.constant 0.000000e+00 : f32
      %12 = vector.broadcast %cst_10 : f32 to vector<32x32xf32>
      %c0_11 = arith.constant 0 : index
      %c0_12 = arith.constant 0 : index
      %13 = vector.load %arg7[%c0_11, %c0_12] : memref<32x32xf32, #tpu.memory_space<vmem>>, vector<32x32xf32>
      tpu.vector_store %arg7[%c0_11, %c0_12], %12 {strides = array<i32>} : memref<32x32xf32, #tpu.memory_space<vmem>>, vector<32x32xf32>,
    } else {
    }
    %c0 = arith.constant 0 : index
    %c0_1 = arith.constant 0 : index
    %3 = vector.load %arg7[%c0, %c0_1] : memref<32x32xf32, #tpu.memory_space<vmem>>, vector<32x32xf32>
    %c0_2 = arith.constant 0 : index
    %c0_3 = arith.constant 0 : index
    %4 = vector.load %arg3[%c0_2, %c0_3] : memref<32x128xbf16, #tpu.memory_space<vmem>>, vector<32x128xbf16>
    %c0_4 = arith.constant 0 : index
    %c0_5 = arith.constant 0 : index
    %5 = vector.load %arg4[%c0_4, %c0_5] : memref<128x32xbf16, #tpu.memory_space<vmem>>, vector<128x32xbf16>
    %cst = arith.constant dense<0.000000e+00> : vector<32x32xf32>
    %6 = tpu.matmul %4, %5, %cst {dimension_numbers = #tpu.dot_dimension_numbers<[1], [0], [0], [1], [0, 0, 1, 1], [], []>} : vector<32x128xbf16>, vector<128x32xbf16>, vector<32x32xf32> -> vector<32x32xf32>
    %7 = arith.addf %3, %6 : vector<32x32xf32>
    %c0_6 = arith.constant 0 : index
    %c0_7 = arith.constant 0 : index
    %8 = vector.load %arg7[%c0_6, %c0_7] : memref<32x32xf32, #tpu.memory_space<vmem>>, vector<32x32xf32>
    tpu.vector_store %arg7[%c0_6, %c0_7], %7 {strides = array<i32>} : memref<32x32xf32, #tpu.memory_space<vmem>>, vector<32x32xf32>,
    %c0_i32_8 = arith.constant 0 : i32
    %9 = arith.cmpi eq, %arg2, %c0_i32_8 : i32
    %10 = arith.extui %9 : i1 to i32
    %c0_i32_9 = arith.constant 0 : i32
    %11 = arith.cmpi ne, %10, %c0_i32_9 : i32
    scf.if %11 {
      %c0_10 = arith.constant 0 : index
      %c0_11 = arith.constant 0 : index
      %12 = vector.load %arg7[%c0_10, %c0_11] : memref<32x32xf32, #tpu.memory_space<vmem>>, vector<32x32xf32>
      %c0_12 = arith.constant 0 : index
      %c0_13 = arith.constant 0 : index
      %13 = vector.load %arg5[%c0_12, %c0_13] : memref<1x32xf32, #tpu.memory_space<vmem>>, vector<1x32xf32>
      %14 = vector.broadcast %13 : vector<1x32xf32> to vector<32x32xf32>
      %15 = arith.addf %12, %14 : vector<32x32xf32>
      %cst_14 = arith.constant 0.000000e+00 : f32
      %16 = vector.broadcast %cst_14 : f32 to vector<32x32xf32>
      %17 = arith.maximumf %15, %16 : vector<32x32xf32>
      %18 = arith.truncf %17 : vector<32x32xf32> to vector<32x32xbf16>
      %c0_15 = arith.constant 0 : index
      %c0_16 = arith.constant 0 : index
      %19 = vector.load %arg6[%c0_15, %c0_16] : memref<32x32xbf16, #tpu.memory_space<vmem>>, vector<32x32xbf16>
      tpu.vector_store %arg6[%c0_15, %c0_16], %18 {strides = array<i32>} : memref<32x32xbf16, #tpu.memory_space<vmem>>, vector<32x32xbf16>,
    } else {
    }
    return
  }
  func.func @transform_0(%arg0: i32, %arg1: i32, %arg2: i32) -> (i32, i32) {
    %c0_i32 = arith.constant 0 : i32
    return %arg0, %arg2 : i32, i32
  }
  func.func @transform_1(%arg0: i32, %arg1: i32, %arg2: i32) -> (i32, i32) {
    %c0_i32 = arith.constant 0 : i32
    return %arg2, %arg1 : i32, i32
  }
  func.func @transform_2(%arg0: i32, %arg1: i32, %arg2: i32) -> (i32, i32) {
    %c0_i32 = arith.constant 0 : i32
    %c0_i32_0 = arith.constant 0 : i32
    return %c0_i32, %arg1 : i32, i32
  }
  func.func @transform_3(%arg0: i32, %arg1: i32, %arg2: i32) -> (i32, i32) {
    %c0_i32 = arith.constant 0 : i32
    return %arg0, %arg1 : i32, i32
  }
}

module attributes {stable_mosaic.version = 11 : i64} {
  func.func @_mm_kernel(%arg0: i32, %arg1: i32, %arg2: i32, %arg3: memref<32x128xbf16, #tpu.memory_space<vmem>>, %arg4: memref<128x256xbf16, #tpu.memory_space<vmem>>, %arg5: memref<1x256xf32, #tpu.memory_space<vmem>>, %arg6: memref<32x256xbf16, #tpu.memory_space<vmem>>, %arg7: memref<32x256xf32, #tpu.memory_space<vmem>>) attributes {dimension_semantics = [#tpu.dimension_semantics<parallel>, #tpu.dimension_semantics<parallel>, #tpu.dimension_semantics<arbitrary>], iteration_bounds = array<i64: 1, 1, 1>, scalar_prefetch = 0 : i64, scratch_operands = 1 : i64, tpu.core_type = #tpu.core_type<tc>, window_params = [{transform_indices = @transform_0, window_bounds = array<i64: 32, 128>}, {transform_indices = @transform_1, window_bounds = array<i64: 128, 256>}, {transform_indices = @transform_2, window_bounds = array<i64: 1, 256>}, {transform_indices = @transform_3, window_bounds = array<i64: 32, 256>}]} {
    %c0_i32 = arith.constant 0 : i32
    %0 = arith.cmpi eq, %arg2, %c0_i32 : i32
    %1 = arith.extui %0 : i1 to i32
    %c0_i32_0 = arith.constant 0 : i32
    %2 = arith.cmpi ne, %1, %c0_i32_0 : i32
    scf.if %2 {
      %cst_10 = arith.constant 0.000000e+00 : f32
      %12 = vector.broadcast %cst_10 : f32 to vector<32x256xf32>
      %c0_11 = arith.constant 0 : index
      %c0_12 = arith.constant 0 : index
      %13 = vector.load %arg7[%c0_11, %c0_12] : memref<32x256xf32, #tpu.memory_space<vmem>>, vector<32x256xf32>
      tpu.vector_store %arg7[%c0_11, %c0_12], %12 {strides = array<i32>} : memref<32x256xf32, #tpu.memory_space<vmem>>, vector<32x256xf32>,
    } else {
    }
    %c0 = arith.constant 0 : index
    %c0_1 = arith.constant 0 : index
    %3 = vector.load %arg7[%c0, %c0_1] : memref<32x256xf32, #tpu.memory_space<vmem>>, vector<32x256xf32>
    %c0_2 = arith.constant 0 : index
    %c0_3 = arith.constant 0 : index
    %4 = vector.load %arg3[%c0_2, %c0_3] : memref<32x128xbf16, #tpu.memory_space<vmem>>, vector<32x128xbf16>
    %c0_4 = arith.constant 0 : index
    %c0_5 = arith.constant 0 : index
    %5 = vector.load %arg4[%c0_4, %c0_5] : memref<128x256xbf16, #tpu.memory_space<vmem>>, vector<128x256xbf16>
    %cst = arith.constant dense<0.000000e+00> : vector<32x256xf32>
    %6 = tpu.matmul %4, %5, %cst {dimension_numbers = #tpu.dot_dimension_numbers<[1], [0], [0], [1], [0, 0, 1, 1], [], []>} : vector<32x128xbf16>, vector<128x256xbf16>, vector<32x256xf32> -> vector<32x256xf32>
    %7 = arith.addf %3, %6 : vector<32x256xf32>
    %c0_6 = arith.constant 0 : index
    %c0_7 = arith.constant 0 : index
    %8 = vector.load %arg7[%c0_6, %c0_7] : memref<32x256xf32, #tpu.memory_space<vmem>>, vector<32x256xf32>
    tpu.vector_store %arg7[%c0_6, %c0_7], %7 {strides = array<i32>} : memref<32x256xf32, #tpu.memory_space<vmem>>, vector<32x256xf32>,
    %c0_i32_8 = arith.constant 0 : i32
    %9 = arith.cmpi eq, %arg2, %c0_i32_8 : i32
    %10 = arith.extui %9 : i1 to i32
    %c0_i32_9 = arith.constant 0 : i32
    %11 = arith.cmpi ne, %10, %c0_i32_9 : i32
    scf.if %11 {
      %c0_10 = arith.constant 0 : index
      %c0_11 = arith.constant 0 : index
      %12 = vector.load %arg7[%c0_10, %c0_11] : memref<32x256xf32, #tpu.memory_space<vmem>>, vector<32x256xf32>
      %c0_12 = arith.constant 0 : index
      %c0_13 = arith.constant 0 : index
      %13 = vector.load %arg5[%c0_12, %c0_13] : memref<1x256xf32, #tpu.memory_space<vmem>>, vector<1x256xf32>
      %14 = vector.broadcast %13 : vector<1x256xf32> to vector<32x256xf32>
      %15 = arith.addf %12, %14 : vector<32x256xf32>
      %16 = arith.truncf %15 : vector<32x256xf32> to vector<32x256xbf16>
      %c0_14 = arith.constant 0 : index
      %c0_15 = arith.constant 0 : index
      %17 = vector.load %arg6[%c0_14, %c0_15] : memref<32x256xbf16, #tpu.memory_space<vmem>>, vector<32x256xbf16>
      tpu.vector_store %arg6[%c0_14, %c0_15], %16 {strides = array<i32>} : memref<32x256xbf16, #tpu.memory_space<vmem>>, vector<32x256xbf16>,
    } else {
    }
    return
  }
  func.func @transform_0(%arg0: i32, %arg1: i32, %arg2: i32) -> (i32, i32) {
    %c0_i32 = arith.constant 0 : i32
    return %arg0, %arg2 : i32, i32
  }
  func.func @transform_1(%arg0: i32, %arg1: i32, %arg2: i32) -> (i32, i32) {
    %c0_i32 = arith.constant 0 : i32
    return %arg2, %arg1 : i32, i32
  }
  func.func @transform_2(%arg0: i32, %arg1: i32, %arg2: i32) -> (i32, i32) {
    %c0_i32 = arith.constant 0 : i32
    %c0_i32_0 = arith.constant 0 : i32
    return %c0_i32, %arg1 : i32, i32
  }
  func.func @transform_3(%arg0: i32, %arg1: i32, %arg2: i32) -> (i32, i32) {
    %c0_i32 = arith.constant 0 : i32
    return %arg0, %arg1 : i32, i32
  }
}

module attributes {stable_mosaic.version = 11 : i64} {
  func.func @_mm_kernel(%arg0: i32, %arg1: i32, %arg2: i32, %arg3: memref<32x128xbf16, #tpu.memory_space<vmem>>, %arg4: memref<128x64xbf16, #tpu.memory_space<vmem>>, %arg5: memref<1x64xf32, #tpu.memory_space<vmem>>, %arg6: memref<32x64xbf16, #tpu.memory_space<vmem>>, %arg7: memref<32x64xf32, #tpu.memory_space<vmem>>) attributes {dimension_semantics = [#tpu.dimension_semantics<parallel>, #tpu.dimension_semantics<parallel>, #tpu.dimension_semantics<arbitrary>], iteration_bounds = array<i64: 1, 1, 1>, scalar_prefetch = 0 : i64, scratch_operands = 1 : i64, tpu.core_type = #tpu.core_type<tc>, window_params = [{transform_indices = @transform_0, window_bounds = array<i64: 32, 128>}, {transform_indices = @transform_1, window_bounds = array<i64: 128, 64>}, {transform_indices = @transform_2, window_bounds = array<i64: 1, 64>}, {transform_indices = @transform_3, window_bounds = array<i64: 32, 64>}]} {
    %c0_i32 = arith.constant 0 : i32
    %0 = arith.cmpi eq, %arg2, %c0_i32 : i32
    %1 = arith.extui %0 : i1 to i32
    %c0_i32_0 = arith.constant 0 : i32
    %2 = arith.cmpi ne, %1, %c0_i32_0 : i32
    scf.if %2 {
      %cst_10 = arith.constant 0.000000e+00 : f32
      %12 = vector.broadcast %cst_10 : f32 to vector<32x64xf32>
      %c0_11 = arith.constant 0 : index
      %c0_12 = arith.constant 0 : index
      %13 = vector.load %arg7[%c0_11, %c0_12] : memref<32x64xf32, #tpu.memory_space<vmem>>, vector<32x64xf32>
      tpu.vector_store %arg7[%c0_11, %c0_12], %12 {strides = array<i32>} : memref<32x64xf32, #tpu.memory_space<vmem>>, vector<32x64xf32>,
    } else {
    }
    %c0 = arith.constant 0 : index
    %c0_1 = arith.constant 0 : index
    %3 = vector.load %arg7[%c0, %c0_1] : memref<32x64xf32, #tpu.memory_space<vmem>>, vector<32x64xf32>
    %c0_2 = arith.constant 0 : index
    %c0_3 = arith.constant 0 : index
    %4 = vector.load %arg3[%c0_2, %c0_3] : memref<32x128xbf16, #tpu.memory_space<vmem>>, vector<32x128xbf16>
    %c0_4 = arith.constant 0 : index
    %c0_5 = arith.constant 0 : index
    %5 = vector.load %arg4[%c0_4, %c0_5] : memref<128x64xbf16, #tpu.memory_space<vmem>>, vector<128x64xbf16>
    %cst = arith.constant dense<0.000000e+00> : vector<32x64xf32>
    %6 = tpu.matmul %4, %5, %cst {dimension_numbers = #tpu.dot_dimension_numbers<[1], [0], [0], [1], [0, 0, 1, 1], [], []>} : vector<32x128xbf16>, vector<128x64xbf16>, vector<32x64xf32> -> vector<32x64xf32>
    %7 = arith.addf %3, %6 : vector<32x64xf32>
    %c0_6 = arith.constant 0 : index
    %c0_7 = arith.constant 0 : index
    %8 = vector.load %arg7[%c0_6, %c0_7] : memref<32x64xf32, #tpu.memory_space<vmem>>, vector<32x64xf32>
    tpu.vector_store %arg7[%c0_6, %c0_7], %7 {strides = array<i32>} : memref<32x64xf32, #tpu.memory_space<vmem>>, vector<32x64xf32>,
    %c0_i32_8 = arith.constant 0 : i32
    %9 = arith.cmpi eq, %arg2, %c0_i32_8 : i32
    %10 = arith.extui %9 : i1 to i32
    %c0_i32_9 = arith.constant 0 : i32
    %11 = arith.cmpi ne, %10, %c0_i32_9 : i32
    scf.if %11 {
      %c0_10 = arith.constant 0 : index
      %c0_11 = arith.constant 0 : index
      %12 = vector.load %arg7[%c0_10, %c0_11] : memref<32x64xf32, #tpu.memory_space<vmem>>, vector<32x64xf32>
      %c0_12 = arith.constant 0 : index
      %c0_13 = arith.constant 0 : index
      %13 = vector.load %arg5[%c0_12, %c0_13] : memref<1x64xf32, #tpu.memory_space<vmem>>, vector<1x64xf32>
      %14 = vector.broadcast %13 : vector<1x64xf32> to vector<32x64xf32>
      %15 = arith.addf %12, %14 : vector<32x64xf32>
      %cst_14 = arith.constant 0.000000e+00 : f32
      %16 = vector.broadcast %cst_14 : f32 to vector<32x64xf32>
      %17 = arith.maximumf %15, %16 : vector<32x64xf32>
      %18 = arith.truncf %17 : vector<32x64xf32> to vector<32x64xbf16>
      %c0_15 = arith.constant 0 : index
      %c0_16 = arith.constant 0 : index
      %19 = vector.load %arg6[%c0_15, %c0_16] : memref<32x64xbf16, #tpu.memory_space<vmem>>, vector<32x64xbf16>
      tpu.vector_store %arg6[%c0_15, %c0_16], %18 {strides = array<i32>} : memref<32x64xbf16, #tpu.memory_space<vmem>>, vector<32x64xbf16>,
    } else {
    }
    return
  }
  func.func @transform_0(%arg0: i32, %arg1: i32, %arg2: i32) -> (i32, i32) {
    %c0_i32 = arith.constant 0 : i32
    return %arg0, %arg2 : i32, i32
  }
  func.func @transform_1(%arg0: i32, %arg1: i32, %arg2: i32) -> (i32, i32) {
    %c0_i32 = arith.constant 0 : i32
    return %arg2, %arg1 : i32, i32
  }
  func.func @transform_2(%arg0: i32, %arg1: i32, %arg2: i32) -> (i32, i32) {
    %c0_i32 = arith.constant 0 : i32
    %c0_i32_0 = arith.constant 0 : i32
    return %c0_i32, %arg1 : i32, i32
  }
  func.func @transform_3(%arg0: i32, %arg1: i32, %arg2: i32) -> (i32, i32) {
    %c0_i32 = arith.constant 0 : i32
    return %arg0, %arg1 : i32, i32
  }
}

module attributes {stable_mosaic.version = 11 : i64} {
  func.func @_mm_kernel(%arg0: i32, %arg1: i32, %arg2: i32, %arg3: memref<32x576xbf16, #tpu.memory_space<vmem>>, %arg4: memref<576x64xbf16, #tpu.memory_space<vmem>>, %arg5: memref<1x64xf32, #tpu.memory_space<vmem>>, %arg6: memref<32x64xbf16, #tpu.memory_space<vmem>>, %arg7: memref<32x64xf32, #tpu.memory_space<vmem>>) attributes {dimension_semantics = [#tpu.dimension_semantics<parallel>, #tpu.dimension_semantics<parallel>, #tpu.dimension_semantics<arbitrary>], iteration_bounds = array<i64: 1, 1, 1>, scalar_prefetch = 0 : i64, scratch_operands = 1 : i64, tpu.core_type = #tpu.core_type<tc>, window_params = [{transform_indices = @transform_0, window_bounds = array<i64: 32, 576>}, {transform_indices = @transform_1, window_bounds = array<i64: 576, 64>}, {transform_indices = @transform_2, window_bounds = array<i64: 1, 64>}, {transform_indices = @transform_3, window_bounds = array<i64: 32, 64>}]} {
    %c0_i32 = arith.constant 0 : i32
    %0 = arith.cmpi eq, %arg2, %c0_i32 : i32
    %1 = arith.extui %0 : i1 to i32
    %c0_i32_0 = arith.constant 0 : i32
    %2 = arith.cmpi ne, %1, %c0_i32_0 : i32
    scf.if %2 {
      %cst_10 = arith.constant 0.000000e+00 : f32
      %12 = vector.broadcast %cst_10 : f32 to vector<32x64xf32>
      %c0_11 = arith.constant 0 : index
      %c0_12 = arith.constant 0 : index
      %13 = vector.load %arg7[%c0_11, %c0_12] : memref<32x64xf32, #tpu.memory_space<vmem>>, vector<32x64xf32>
      tpu.vector_store %arg7[%c0_11, %c0_12], %12 {strides = array<i32>} : memref<32x64xf32, #tpu.memory_space<vmem>>, vector<32x64xf32>,
    } else {
    }
    %c0 = arith.constant 0 : index
    %c0_1 = arith.constant 0 : index
    %3 = vector.load %arg7[%c0, %c0_1] : memref<32x64xf32, #tpu.memory_space<vmem>>, vector<32x64xf32>
    %c0_2 = arith.constant 0 : index
    %c0_3 = arith.constant 0 : index
    %4 = vector.load %arg3[%c0_2, %c0_3] : memref<32x576xbf16, #tpu.memory_space<vmem>>, vector<32x576xbf16>
    %c0_4 = arith.constant 0 : index
    %c0_5 = arith.constant 0 : index
    %5 = vector.load %arg4[%c0_4, %c0_5] : memref<576x64xbf16, #tpu.memory_space<vmem>>, vector<576x64xbf16>
    %cst = arith.constant dense<0.000000e+00> : vector<32x64xf32>
    %6 = tpu.matmul %4, %5, %cst {dimension_numbers = #tpu.dot_dimension_numbers<[1], [0], [0], [1], [0, 0, 1, 1], [], []>} : vector<32x576xbf16>, vector<576x64xbf16>, vector<32x64xf32> -> vector<32x64xf32>
    %7 = arith.addf %3, %6 : vector<32x64xf32>
    %c0_6 = arith.constant 0 : index
    %c0_7 = arith.constant 0 : index
    %8 = vector.load %arg7[%c0_6, %c0_7] : memref<32x64xf32, #tpu.memory_space<vmem>>, vector<32x64xf32>
    tpu.vector_store %arg7[%c0_6, %c0_7], %7 {strides = array<i32>} : memref<32x64xf32, #tpu.memory_space<vmem>>, vector<32x64xf32>,
    %c0_i32_8 = arith.constant 0 : i32
    %9 = arith.cmpi eq, %arg2, %c0_i32_8 : i32
    %10 = arith.extui %9 : i1 to i32
    %c0_i32_9 = arith.constant 0 : i32
    %11 = arith.cmpi ne, %10, %c0_i32_9 : i32
    scf.if %11 {
      %c0_10 = arith.constant 0 : index
      %c0_11 = arith.constant 0 : index
      %12 = vector.load %arg7[%c0_10, %c0_11] : memref<32x64xf32, #tpu.memory_space<vmem>>, vector<32x64xf32>
      %c0_12 = arith.constant 0 : index
      %c0_13 = arith.constant 0 : index
      %13 = vector.load %arg5[%c0_12, %c0_13] : memref<1x64xf32, #tpu.memory_space<vmem>>, vector<1x64xf32>
      %14 = vector.broadcast %13 : vector<1x64xf32> to vector<32x64xf32>
      %15 = arith.addf %12, %14 : vector<32x64xf32>
      %cst_14 = arith.constant 0.000000e+00 : f32
      %16 = vector.broadcast %cst_14 : f32 to vector<32x64xf32>
      %17 = arith.maximumf %15, %16 : vector<32x64xf32>
      %18 = arith.truncf %17 : vector<32x64xf32> to vector<32x64xbf16>
      %c0_15 = arith.constant 0 : index
      %c0_16 = arith.constant 0 : index
      %19 = vector.load %arg6[%c0_15, %c0_16] : memref<32x64xbf16, #tpu.memory_space<vmem>>, vector<32x64xbf16>
      tpu.vector_store %arg6[%c0_15, %c0_16], %18 {strides = array<i32>} : memref<32x64xbf16, #tpu.memory_space<vmem>>, vector<32x64xbf16>,
    } else {
    }
    return
  }
  func.func @transform_0(%arg0: i32, %arg1: i32, %arg2: i32) -> (i32, i32) {
    %c0_i32 = arith.constant 0 : i32
    return %arg0, %arg2 : i32, i32
  }
  func.func @transform_1(%arg0: i32, %arg1: i32, %arg2: i32) -> (i32, i32) {
    %c0_i32 = arith.constant 0 : i32
    return %arg2, %arg1 : i32, i32
  }
  func.func @transform_2(%arg0: i32, %arg1: i32, %arg2: i32) -> (i32, i32) {
    %c0_i32 = arith.constant 0 : i32
    %c0_i32_0 = arith.constant 0 : i32
    return %c0_i32, %arg1 : i32, i32
  }
  func.func @transform_3(%arg0: i32, %arg1: i32, %arg2: i32) -> (i32, i32) {
    %c0_i32 = arith.constant 0 : i32
    return %arg0, %arg1 : i32, i32
  }
}

module attributes {stable_mosaic.version = 11 : i64} {
  func.func @_mm_kernel(%arg0: i32, %arg1: i32, %arg2: i32, %arg3: memref<32x64xbf16, #tpu.memory_space<vmem>>, %arg4: memref<64x256xbf16, #tpu.memory_space<vmem>>, %arg5: memref<1x256xf32, #tpu.memory_space<vmem>>, %arg6: memref<32x256xbf16, #tpu.memory_space<vmem>>, %arg7: memref<32x256xbf16, #tpu.memory_space<vmem>>, %arg8: memref<32x256xf32, #tpu.memory_space<vmem>>) attributes {dimension_semantics = [#tpu.dimension_semantics<parallel>, #tpu.dimension_semantics<parallel>, #tpu.dimension_semantics<arbitrary>], iteration_bounds = array<i64: 1, 1, 1>, scalar_prefetch = 0 : i64, scratch_operands = 1 : i64, tpu.core_type = #tpu.core_type<tc>, window_params = [{transform_indices = @transform_0, window_bounds = array<i64: 32, 64>}, {transform_indices = @transform_1, window_bounds = array<i64: 64, 256>}, {transform_indices = @transform_2, window_bounds = array<i64: 1, 256>}, {transform_indices = @transform_3, window_bounds = array<i64: 32, 256>}, {transform_indices = @transform_4, window_bounds = array<i64: 32, 256>}]} {
    %c0_i32 = arith.constant 0 : i32
    %0 = arith.cmpi eq, %arg2, %c0_i32 : i32
    %1 = arith.extui %0 : i1 to i32
    %c0_i32_0 = arith.constant 0 : i32
    %2 = arith.cmpi ne, %1, %c0_i32_0 : i32
    scf.if %2 {
      %cst_10 = arith.constant 0.000000e+00 : f32
      %12 = vector.broadcast %cst_10 : f32 to vector<32x256xf32>
      %c0_11 = arith.constant 0 : index
      %c0_12 = arith.constant 0 : index
      %13 = vector.load %arg8[%c0_11, %c0_12] : memref<32x256xf32, #tpu.memory_space<vmem>>, vector<32x256xf32>
      tpu.vector_store %arg8[%c0_11, %c0_12], %12 {strides = array<i32>} : memref<32x256xf32, #tpu.memory_space<vmem>>, vector<32x256xf32>,
    } else {
    }
    %c0 = arith.constant 0 : index
    %c0_1 = arith.constant 0 : index
    %3 = vector.load %arg8[%c0, %c0_1] : memref<32x256xf32, #tpu.memory_space<vmem>>, vector<32x256xf32>
    %c0_2 = arith.constant 0 : index
    %c0_3 = arith.constant 0 : index
    %4 = vector.load %arg3[%c0_2, %c0_3] : memref<32x64xbf16, #tpu.memory_space<vmem>>, vector<32x64xbf16>
    %c0_4 = arith.constant 0 : index
    %c0_5 = arith.constant 0 : index
    %5 = vector.load %arg4[%c0_4, %c0_5] : memref<64x256xbf16, #tpu.memory_space<vmem>>, vector<64x256xbf16>
    %cst = arith.constant dense<0.000000e+00> : vector<32x256xf32>
    %6 = tpu.matmul %4, %5, %cst {dimension_numbers = #tpu.dot_dimension_numbers<[1], [0], [0], [1], [0, 0, 1, 1], [], []>} : vector<32x64xbf16>, vector<64x256xbf16>, vector<32x256xf32> -> vector<32x256xf32>
    %7 = arith.addf %3, %6 : vector<32x256xf32>
    %c0_6 = arith.constant 0 : index
    %c0_7 = arith.constant 0 : index
    %8 = vector.load %arg8[%c0_6, %c0_7] : memref<32x256xf32, #tpu.memory_space<vmem>>, vector<32x256xf32>
    tpu.vector_store %arg8[%c0_6, %c0_7], %7 {strides = array<i32>} : memref<32x256xf32, #tpu.memory_space<vmem>>, vector<32x256xf32>,
    %c0_i32_8 = arith.constant 0 : i32
    %9 = arith.cmpi eq, %arg2, %c0_i32_8 : i32
    %10 = arith.extui %9 : i1 to i32
    %c0_i32_9 = arith.constant 0 : i32
    %11 = arith.cmpi ne, %10, %c0_i32_9 : i32
    scf.if %11 {
      %c0_10 = arith.constant 0 : index
      %c0_11 = arith.constant 0 : index
      %12 = vector.load %arg8[%c0_10, %c0_11] : memref<32x256xf32, #tpu.memory_space<vmem>>, vector<32x256xf32>
      %c0_12 = arith.constant 0 : index
      %c0_13 = arith.constant 0 : index
      %13 = vector.load %arg5[%c0_12, %c0_13] : memref<1x256xf32, #tpu.memory_space<vmem>>, vector<1x256xf32>
      %14 = vector.broadcast %13 : vector<1x256xf32> to vector<32x256xf32>
      %15 = arith.addf %12, %14 : vector<32x256xf32>
      %c0_14 = arith.constant 0 : index
      %c0_15 = arith.constant 0 : index
      %16 = vector.load %arg6[%c0_14, %c0_15] : memref<32x256xbf16, #tpu.memory_space<vmem>>, vector<32x256xbf16>
      %17 = arith.extf %16 : vector<32x256xbf16> to vector<32x256xf32>
      %18 = arith.addf %15, %17 : vector<32x256xf32>
      %cst_16 = arith.constant 0.000000e+00 : f32
      %19 = vector.broadcast %cst_16 : f32 to vector<32x256xf32>
      %20 = arith.maximumf %18, %19 : vector<32x256xf32>
      %21 = arith.truncf %20 : vector<32x256xf32> to vector<32x256xbf16>
      %c0_17 = arith.constant 0 : index
      %c0_18 = arith.constant 0 : index
      %22 = vector.load %arg7[%c0_17, %c0_18] : memref<32x256xbf16, #tpu.memory_space<vmem>>, vector<32x256xbf16>
      tpu.vector_store %arg7[%c0_17, %c0_18], %21 {strides = array<i32>} : memref<32x256xbf16, #tpu.memory_space<vmem>>, vector<32x256xbf16>,
    } else {
    }
    return
  }
  func.func @transform_0(%arg0: i32, %arg1: i32, %arg2: i32) -> (i32, i32) {
    %c0_i32 = arith.constant 0 : i32
    return %arg0, %arg2 : i32, i32
  }
  func.func @transform_1(%arg0: i32, %arg1: i32, %arg2: i32) -> (i32, i32) {
    %c0_i32 = arith.constant 0 : i32
    return %arg2, %arg1 : i32, i32
  }
  func.func @transform_2(%arg0: i32, %arg1: i32, %arg2: i32) -> (i32, i32) {
    %c0_i32 = arith.constant 0 : i32
    %c0_i32_0 = arith.constant 0 : i32
    return %c0_i32, %arg1 : i32, i32
  }
  func.func @transform_3(%arg0: i32, %arg1: i32, %arg2: i32) -> (i32, i32) {
    %c0_i32 = arith.constant 0 : i32
    return %arg0, %arg1 : i32, i32
  }
  func.func @transform_4(%arg0: i32, %arg1: i32, %arg2: i32) -> (i32, i32) {
    %c0_i32 = arith.constant 0 : i32
    return %arg0, %arg1 : i32, i32
  }
}

module attributes {stable_mosaic.version = 11 : i64} {
  func.func @_mm_kernel(%arg0: i32, %arg1: i32, %arg2: i32, %arg3: memref<32x256xbf16, #tpu.memory_space<vmem>>, %arg4: memref<256x64xbf16, #tpu.memory_space<vmem>>, %arg5: memref<1x64xf32, #tpu.memory_space<vmem>>, %arg6: memref<32x64xbf16, #tpu.memory_space<vmem>>, %arg7: memref<32x64xf32, #tpu.memory_space<vmem>>) attributes {dimension_semantics = [#tpu.dimension_semantics<parallel>, #tpu.dimension_semantics<parallel>, #tpu.dimension_semantics<arbitrary>], iteration_bounds = array<i64: 1, 1, 1>, scalar_prefetch = 0 : i64, scratch_operands = 1 : i64, tpu.core_type = #tpu.core_type<tc>, window_params = [{transform_indices = @transform_0, window_bounds = array<i64: 32, 256>}, {transform_indices = @transform_1, window_bounds = array<i64: 256, 64>}, {transform_indices = @transform_2, window_bounds = array<i64: 1, 64>}, {transform_indices = @transform_3, window_bounds = array<i64: 32, 64>}]} {
    %c0_i32 = arith.constant 0 : i32
    %0 = arith.cmpi eq, %arg2, %c0_i32 : i32
    %1 = arith.extui %0 : i1 to i32
    %c0_i32_0 = arith.constant 0 : i32
    %2 = arith.cmpi ne, %1, %c0_i32_0 : i32
    scf.if %2 {
      %cst_10 = arith.constant 0.000000e+00 : f32
      %12 = vector.broadcast %cst_10 : f32 to vector<32x64xf32>
      %c0_11 = arith.constant 0 : index
      %c0_12 = arith.constant 0 : index
      %13 = vector.load %arg7[%c0_11, %c0_12] : memref<32x64xf32, #tpu.memory_space<vmem>>, vector<32x64xf32>
      tpu.vector_store %arg7[%c0_11, %c0_12], %12 {strides = array<i32>} : memref<32x64xf32, #tpu.memory_space<vmem>>, vector<32x64xf32>,
    } else {
    }
    %c0 = arith.constant 0 : index
    %c0_1 = arith.constant 0 : index
    %3 = vector.load %arg7[%c0, %c0_1] : memref<32x64xf32, #tpu.memory_space<vmem>>, vector<32x64xf32>
    %c0_2 = arith.constant 0 : index
    %c0_3 = arith.constant 0 : index
    %4 = vector.load %arg3[%c0_2, %c0_3] : memref<32x256xbf16, #tpu.memory_space<vmem>>, vector<32x256xbf16>
    %c0_4 = arith.constant 0 : index
    %c0_5 = arith.constant 0 : index
    %5 = vector.load %arg4[%c0_4, %c0_5] : memref<256x64xbf16, #tpu.memory_space<vmem>>, vector<256x64xbf16>
    %cst = arith.constant dense<0.000000e+00> : vector<32x64xf32>
    %6 = tpu.matmul %4, %5, %cst {dimension_numbers = #tpu.dot_dimension_numbers<[1], [0], [0], [1], [0, 0, 1, 1], [], []>} : vector<32x256xbf16>, vector<256x64xbf16>, vector<32x64xf32> -> vector<32x64xf32>
    %7 = arith.addf %3, %6 : vector<32x64xf32>
    %c0_6 = arith.constant 0 : index
    %c0_7 = arith.constant 0 : index
    %8 = vector.load %arg7[%c0_6, %c0_7] : memref<32x64xf32, #tpu.memory_space<vmem>>, vector<32x64xf32>
    tpu.vector_store %arg7[%c0_6, %c0_7], %7 {strides = array<i32>} : memref<32x64xf32, #tpu.memory_space<vmem>>, vector<32x64xf32>,
    %c0_i32_8 = arith.constant 0 : i32
    %9 = arith.cmpi eq, %arg2, %c0_i32_8 : i32
    %10 = arith.extui %9 : i1 to i32
    %c0_i32_9 = arith.constant 0 : i32
    %11 = arith.cmpi ne, %10, %c0_i32_9 : i32
    scf.if %11 {
      %c0_10 = arith.constant 0 : index
      %c0_11 = arith.constant 0 : index
      %12 = vector.load %arg7[%c0_10, %c0_11] : memref<32x64xf32, #tpu.memory_space<vmem>>, vector<32x64xf32>
      %c0_12 = arith.constant 0 : index
      %c0_13 = arith.constant 0 : index
      %13 = vector.load %arg5[%c0_12, %c0_13] : memref<1x64xf32, #tpu.memory_space<vmem>>, vector<1x64xf32>
      %14 = vector.broadcast %13 : vector<1x64xf32> to vector<32x64xf32>
      %15 = arith.addf %12, %14 : vector<32x64xf32>
      %cst_14 = arith.constant 0.000000e+00 : f32
      %16 = vector.broadcast %cst_14 : f32 to vector<32x64xf32>
      %17 = arith.maximumf %15, %16 : vector<32x64xf32>
      %18 = arith.truncf %17 : vector<32x64xf32> to vector<32x64xbf16>
      %c0_15 = arith.constant 0 : index
      %c0_16 = arith.constant 0 : index
      %19 = vector.load %arg6[%c0_15, %c0_16] : memref<32x64xbf16, #tpu.memory_space<vmem>>, vector<32x64xbf16>
      tpu.vector_store %arg6[%c0_15, %c0_16], %18 {strides = array<i32>} : memref<32x64xbf16, #tpu.memory_space<vmem>>, vector<32x64xbf16>,
    } else {
    }
    return
  }
  func.func @transform_0(%arg0: i32, %arg1: i32, %arg2: i32) -> (i32, i32) {
    %c0_i32 = arith.constant 0 : i32
    return %arg0, %arg2 : i32, i32
  }
  func.func @transform_1(%arg0: i32, %arg1: i32, %arg2: i32) -> (i32, i32) {
    %c0_i32 = arith.constant 0 : i32
    return %arg2, %arg1 : i32, i32
  }
  func.func @transform_2(%arg0: i32, %arg1: i32, %arg2: i32) -> (i32, i32) {
    %c0_i32 = arith.constant 0 : i32
    %c0_i32_0 = arith.constant 0 : i32
    return %c0_i32, %arg1 : i32, i32
  }
  func.func @transform_3(%arg0: i32, %arg1: i32, %arg2: i32) -> (i32, i32) {
    %c0_i32 = arith.constant 0 : i32
    return %arg0, %arg1 : i32, i32
  }
}

module attributes {stable_mosaic.version = 11 : i64} {
  func.func @_mm_kernel(%arg0: i32, %arg1: i32, %arg2: i32, %arg3: memref<32x2304xbf16, #tpu.memory_space<vmem>>, %arg4: memref<2304x256xbf16, #tpu.memory_space<vmem>>, %arg5: memref<1x256xf32, #tpu.memory_space<vmem>>, %arg6: memref<32x256xbf16, #tpu.memory_space<vmem>>, %arg7: memref<32x256xf32, #tpu.memory_space<vmem>>) attributes {dimension_semantics = [#tpu.dimension_semantics<parallel>, #tpu.dimension_semantics<parallel>, #tpu.dimension_semantics<arbitrary>], iteration_bounds = array<i64: 1, 1, 1>, scalar_prefetch = 0 : i64, scratch_operands = 1 : i64, tpu.core_type = #tpu.core_type<tc>, window_params = [{transform_indices = @transform_0, window_bounds = array<i64: 32, 2304>}, {transform_indices = @transform_1, window_bounds = array<i64: 2304, 256>}, {transform_indices = @transform_2, window_bounds = array<i64: 1, 256>}, {transform_indices = @transform_3, window_bounds = array<i64: 32, 256>}]} {
    %c0_i32 = arith.constant 0 : i32
    %0 = arith.cmpi eq, %arg2, %c0_i32 : i32
    %1 = arith.extui %0 : i1 to i32
    %c0_i32_0 = arith.constant 0 : i32
    %2 = arith.cmpi ne, %1, %c0_i32_0 : i32
    scf.if %2 {
      %cst_10 = arith.constant 0.000000e+00 : f32
      %12 = vector.broadcast %cst_10 : f32 to vector<32x256xf32>
      %c0_11 = arith.constant 0 : index
      %c0_12 = arith.constant 0 : index
      %13 = vector.load %arg7[%c0_11, %c0_12] : memref<32x256xf32, #tpu.memory_space<vmem>>, vector<32x256xf32>
      tpu.vector_store %arg7[%c0_11, %c0_12], %12 {strides = array<i32>} : memref<32x256xf32, #tpu.memory_space<vmem>>, vector<32x256xf32>,
    } else {
    }
    %c0 = arith.constant 0 : index
    %c0_1 = arith.constant 0 : index
    %3 = vector.load %arg7[%c0, %c0_1] : memref<32x256xf32, #tpu.memory_space<vmem>>, vector<32x256xf32>
    %c0_2 = arith.constant 0 : index
    %c0_3 = arith.constant 0 : index
    %4 = vector.load %arg3[%c0_2, %c0_3] : memref<32x2304xbf16, #tpu.memory_space<vmem>>, vector<32x2304xbf16>
    %c0_4 = arith.constant 0 : index
    %c0_5 = arith.constant 0 : index
    %5 = vector.load %arg4[%c0_4, %c0_5] : memref<2304x256xbf16, #tpu.memory_space<vmem>>, vector<2304x256xbf16>
    %cst = arith.constant dense<0.000000e+00> : vector<32x256xf32>
    %6 = tpu.matmul %4, %5, %cst {dimension_numbers = #tpu.dot_dimension_numbers<[1], [0], [0], [1], [0, 0, 1, 1], [], []>} : vector<32x2304xbf16>, vector<2304x256xbf16>, vector<32x256xf32> -> vector<32x256xf32>
    %7 = arith.addf %3, %6 : vector<32x256xf32>
    %c0_6 = arith.constant 0 : index
    %c0_7 = arith.constant 0 : index
    %8 = vector.load %arg7[%c0_6, %c0_7] : memref<32x256xf32, #tpu.memory_space<vmem>>, vector<32x256xf32>
    tpu.vector_store %arg7[%c0_6, %c0_7], %7 {strides = array<i32>} : memref<32x256xf32, #tpu.memory_space<vmem>>, vector<32x256xf32>,
    %c0_i32_8 = arith.constant 0 : i32
    %9 = arith.cmpi eq, %arg2, %c0_i32_8 : i32
    %10 = arith.extui %9 : i1 to i32
    %c0_i32_9 = arith.constant 0 : i32
    %11 = arith.cmpi ne, %10, %c0_i32_9 : i32
    scf.if %11 {
      %c0_10 = arith.constant 0 : index
      %c0_11 = arith.constant 0 : index
      %12 = vector.load %arg7[%c0_10, %c0_11] : memref<32x256xf32, #tpu.memory_space<vmem>>, vector<32x256xf32>
      %c0_12 = arith.constant 0 : index
      %c0_13 = arith.constant 0 : index
      %13 = vector.load %arg5[%c0_12, %c0_13] : memref<1x256xf32, #tpu.memory_space<vmem>>, vector<1x256xf32>
      %14 = vector.broadcast %13 : vector<1x256xf32> to vector<32x256xf32>
      %15 = arith.addf %12, %14 : vector<32x256xf32>
      %cst_14 = arith.constant 0.000000e+00 : f32
      %16 = vector.broadcast %cst_14 : f32 to vector<32x256xf32>
      %17 = arith.maximumf %15, %16 : vector<32x256xf32>
      %18 = arith.truncf %17 : vector<32x256xf32> to vector<32x256xbf16>
      %c0_15 = arith.constant 0 : index
      %c0_16 = arith.constant 0 : index
      %19 = vector.load %arg6[%c0_15, %c0_16] : memref<32x256xbf16, #tpu.memory_space<vmem>>, vector<32x256xbf16>
      tpu.vector_store %arg6[%c0_15, %c0_16], %18 {strides = array<i32>} : memref<32x256xbf16, #tpu.memory_space<vmem>>, vector<32x256xbf16>,
    } else {
    }
    return
  }
  func.func @transform_0(%arg0: i32, %arg1: i32, %arg2: i32) -> (i32, i32) {
    %c0_i32 = arith.constant 0 : i32
    return %arg0, %arg2 : i32, i32
  }
  func.func @transform_1(%arg0: i32, %arg1: i32, %arg2: i32) -> (i32, i32) {
    %c0_i32 = arith.constant 0 : i32
    return %arg2, %arg1 : i32, i32
  }
  func.func @transform_2(%arg0: i32, %arg1: i32, %arg2: i32) -> (i32, i32) {
    %c0_i32 = arith.constant 0 : i32
    %c0_i32_0 = arith.constant 0 : i32
    return %c0_i32, %arg1 : i32, i32
  }
  func.func @transform_3(%arg0: i32, %arg1: i32, %arg2: i32) -> (i32, i32) {
    %c0_i32 = arith.constant 0 : i32
    return %arg0, %arg1 : i32, i32
  }
}

module attributes {stable_mosaic.version = 11 : i64} {
  func.func @_mm_kernel(%arg0: i32, %arg1: i32, %arg2: i32, %arg3: memref<32x256xbf16, #tpu.memory_space<vmem>>, %arg4: memref<256x256xbf16, #tpu.memory_space<vmem>>, %arg5: memref<1x256xf32, #tpu.memory_space<vmem>>, %arg6: memref<32x256xbf16, #tpu.memory_space<vmem>>, %arg7: memref<32x256xf32, #tpu.memory_space<vmem>>) attributes {dimension_semantics = [#tpu.dimension_semantics<parallel>, #tpu.dimension_semantics<parallel>, #tpu.dimension_semantics<arbitrary>], iteration_bounds = array<i64: 1, 1, 1>, scalar_prefetch = 0 : i64, scratch_operands = 1 : i64, tpu.core_type = #tpu.core_type<tc>, window_params = [{transform_indices = @transform_0, window_bounds = array<i64: 32, 256>}, {transform_indices = @transform_1, window_bounds = array<i64: 256, 256>}, {transform_indices = @transform_2, window_bounds = array<i64: 1, 256>}, {transform_indices = @transform_3, window_bounds = array<i64: 32, 256>}]} {
    %c0_i32 = arith.constant 0 : i32
    %0 = arith.cmpi eq, %arg2, %c0_i32 : i32
    %1 = arith.extui %0 : i1 to i32
    %c0_i32_0 = arith.constant 0 : i32
    %2 = arith.cmpi ne, %1, %c0_i32_0 : i32
    scf.if %2 {
      %cst_10 = arith.constant 0.000000e+00 : f32
      %12 = vector.broadcast %cst_10 : f32 to vector<32x256xf32>
      %c0_11 = arith.constant 0 : index
      %c0_12 = arith.constant 0 : index
      %13 = vector.load %arg7[%c0_11, %c0_12] : memref<32x256xf32, #tpu.memory_space<vmem>>, vector<32x256xf32>
      tpu.vector_store %arg7[%c0_11, %c0_12], %12 {strides = array<i32>} : memref<32x256xf32, #tpu.memory_space<vmem>>, vector<32x256xf32>,
    } else {
    }
    %c0 = arith.constant 0 : index
    %c0_1 = arith.constant 0 : index
    %3 = vector.load %arg7[%c0, %c0_1] : memref<32x256xf32, #tpu.memory_space<vmem>>, vector<32x256xf32>
    %c0_2 = arith.constant 0 : index
    %c0_3 = arith.constant 0 : index
    %4 = vector.load %arg3[%c0_2, %c0_3] : memref<32x256xbf16, #tpu.memory_space<vmem>>, vector<32x256xbf16>
    %c0_4 = arith.constant 0 : index
    %c0_5 = arith.constant 0 : index
    %5 = vector.load %arg4[%c0_4, %c0_5] : memref<256x256xbf16, #tpu.memory_space<vmem>>, vector<256x256xbf16>
    %cst = arith.constant dense<0.000000e+00> : vector<32x256xf32>
    %6 = tpu.matmul %4, %5, %cst {dimension_numbers = #tpu.dot_dimension_numbers<[1], [0], [0], [1], [0, 0, 1, 1], [], []>} : vector<32x256xbf16>, vector<256x256xbf16>, vector<32x256xf32> -> vector<32x256xf32>
    %7 = arith.addf %3, %6 : vector<32x256xf32>
    %c0_6 = arith.constant 0 : index
    %c0_7 = arith.constant 0 : index
    %8 = vector.load %arg7[%c0_6, %c0_7] : memref<32x256xf32, #tpu.memory_space<vmem>>, vector<32x256xf32>
    tpu.vector_store %arg7[%c0_6, %c0_7], %7 {strides = array<i32>} : memref<32x256xf32, #tpu.memory_space<vmem>>, vector<32x256xf32>,
    %c0_i32_8 = arith.constant 0 : i32
    %9 = arith.cmpi eq, %arg2, %c0_i32_8 : i32
    %10 = arith.extui %9 : i1 to i32
    %c0_i32_9 = arith.constant 0 : i32
    %11 = arith.cmpi ne, %10, %c0_i32_9 : i32
    scf.if %11 {
      %c0_10 = arith.constant 0 : index
      %c0_11 = arith.constant 0 : index
      %12 = vector.load %arg7[%c0_10, %c0_11] : memref<32x256xf32, #tpu.memory_space<vmem>>, vector<32x256xf32>
      %c0_12 = arith.constant 0 : index
      %c0_13 = arith.constant 0 : index
      %13 = vector.load %arg5[%c0_12, %c0_13] : memref<1x256xf32, #tpu.memory_space<vmem>>, vector<1x256xf32>
      %14 = vector.broadcast %13 : vector<1x256xf32> to vector<32x256xf32>
      %15 = arith.addf %12, %14 : vector<32x256xf32>
      %cst_14 = arith.constant 0.000000e+00 : f32
      %16 = vector.broadcast %cst_14 : f32 to vector<32x256xf32>
      %17 = arith.maximumf %15, %16 : vector<32x256xf32>
      %18 = arith.truncf %17 : vector<32x256xf32> to vector<32x256xbf16>
      %c0_15 = arith.constant 0 : index
      %c0_16 = arith.constant 0 : index
      %19 = vector.load %arg6[%c0_15, %c0_16] : memref<32x256xbf16, #tpu.memory_space<vmem>>, vector<32x256xbf16>
      tpu.vector_store %arg6[%c0_15, %c0_16], %18 {strides = array<i32>} : memref<32x256xbf16, #tpu.memory_space<vmem>>, vector<32x256xbf16>,
    } else {
    }
    return
  }
  func.func @transform_0(%arg0: i32, %arg1: i32, %arg2: i32) -> (i32, i32) {
    %c0_i32 = arith.constant 0 : i32
    return %arg0, %arg2 : i32, i32
  }
  func.func @transform_1(%arg0: i32, %arg1: i32, %arg2: i32) -> (i32, i32) {
    %c0_i32 = arith.constant 0 : i32
    return %arg2, %arg1 : i32, i32
  }
  func.func @transform_2(%arg0: i32, %arg1: i32, %arg2: i32) -> (i32, i32) {
    %c0_i32 = arith.constant 0 : i32
    %c0_i32_0 = arith.constant 0 : i32
    return %c0_i32, %arg1 : i32, i32
  }
  func.func @transform_3(%arg0: i32, %arg1: i32, %arg2: i32) -> (i32, i32) {
    %c0_i32 = arith.constant 0 : i32
    return %arg0, %arg1 : i32, i32
  }
}

module attributes {stable_mosaic.version = 11 : i64} {
  func.func @_mm_kernel(%arg0: i32, %arg1: i32, %arg2: i32, %arg3: memref<32x256xbf16, #tpu.memory_space<vmem>>, %arg4: memref<256x32xbf16, #tpu.memory_space<vmem>>, %arg5: memref<1x32xf32, #tpu.memory_space<vmem>>, %arg6: memref<32x32xf32, #tpu.memory_space<vmem>>, %arg7: memref<32x32xf32, #tpu.memory_space<vmem>>) attributes {dimension_semantics = [#tpu.dimension_semantics<parallel>, #tpu.dimension_semantics<parallel>, #tpu.dimension_semantics<arbitrary>], iteration_bounds = array<i64: 1, 1, 1>, scalar_prefetch = 0 : i64, scratch_operands = 1 : i64, tpu.core_type = #tpu.core_type<tc>, window_params = [{transform_indices = @transform_0, window_bounds = array<i64: 32, 256>}, {transform_indices = @transform_1, window_bounds = array<i64: 256, 32>}, {transform_indices = @transform_2, window_bounds = array<i64: 1, 32>}, {transform_indices = @transform_3, window_bounds = array<i64: 32, 32>}]} {
    %c0_i32 = arith.constant 0 : i32
    %0 = arith.cmpi eq, %arg2, %c0_i32 : i32
    %1 = arith.extui %0 : i1 to i32
    %c0_i32_0 = arith.constant 0 : i32
    %2 = arith.cmpi ne, %1, %c0_i32_0 : i32
    scf.if %2 {
      %cst_10 = arith.constant 0.000000e+00 : f32
      %12 = vector.broadcast %cst_10 : f32 to vector<32x32xf32>
      %c0_11 = arith.constant 0 : index
      %c0_12 = arith.constant 0 : index
      %13 = vector.load %arg7[%c0_11, %c0_12] : memref<32x32xf32, #tpu.memory_space<vmem>>, vector<32x32xf32>
      tpu.vector_store %arg7[%c0_11, %c0_12], %12 {strides = array<i32>} : memref<32x32xf32, #tpu.memory_space<vmem>>, vector<32x32xf32>,
    } else {
    }
    %c0 = arith.constant 0 : index
    %c0_1 = arith.constant 0 : index
    %3 = vector.load %arg7[%c0, %c0_1] : memref<32x32xf32, #tpu.memory_space<vmem>>, vector<32x32xf32>
    %c0_2 = arith.constant 0 : index
    %c0_3 = arith.constant 0 : index
    %4 = vector.load %arg3[%c0_2, %c0_3] : memref<32x256xbf16, #tpu.memory_space<vmem>>, vector<32x256xbf16>
    %c0_4 = arith.constant 0 : index
    %c0_5 = arith.constant 0 : index
    %5 = vector.load %arg4[%c0_4, %c0_5] : memref<256x32xbf16, #tpu.memory_space<vmem>>, vector<256x32xbf16>
    %cst = arith.constant dense<0.000000e+00> : vector<32x32xf32>
    %6 = tpu.matmul %4, %5, %cst {dimension_numbers = #tpu.dot_dimension_numbers<[1], [0], [0], [1], [0, 0, 1, 1], [], []>} : vector<32x256xbf16>, vector<256x32xbf16>, vector<32x32xf32> -> vector<32x32xf32>
    %7 = arith.addf %3, %6 : vector<32x32xf32>
    %c0_6 = arith.constant 0 : index
    %c0_7 = arith.constant 0 : index
    %8 = vector.load %arg7[%c0_6, %c0_7] : memref<32x32xf32, #tpu.memory_space<vmem>>, vector<32x32xf32>
    tpu.vector_store %arg7[%c0_6, %c0_7], %7 {strides = array<i32>} : memref<32x32xf32, #tpu.memory_space<vmem>>, vector<32x32xf32>,
    %c0_i32_8 = arith.constant 0 : i32
    %9 = arith.cmpi eq, %arg2, %c0_i32_8 : i32
    %10 = arith.extui %9 : i1 to i32
    %c0_i32_9 = arith.constant 0 : i32
    %11 = arith.cmpi ne, %10, %c0_i32_9 : i32
    scf.if %11 {
      %c0_10 = arith.constant 0 : index
      %c0_11 = arith.constant 0 : index
      %12 = vector.load %arg7[%c0_10, %c0_11] : memref<32x32xf32, #tpu.memory_space<vmem>>, vector<32x32xf32>
      %c0_12 = arith.constant 0 : index
      %c0_13 = arith.constant 0 : index
      %13 = vector.load %arg5[%c0_12, %c0_13] : memref<1x32xf32, #tpu.memory_space<vmem>>, vector<1x32xf32>
      %14 = vector.broadcast %13 : vector<1x32xf32> to vector<32x32xf32>
      %15 = arith.addf %12, %14 : vector<32x32xf32>
      %c0_14 = arith.constant 0 : index
      %c0_15 = arith.constant 0 : index
      %16 = vector.load %arg6[%c0_14, %c0_15] : memref<32x32xf32, #tpu.memory_space<vmem>>, vector<32x32xf32>
      tpu.vector_store %arg6[%c0_14, %c0_15], %15 {strides = array<i32>} : memref<32x32xf32, #tpu.memory_space<vmem>>, vector<32x32xf32>,
    } else {
    }
    return
  }
  func.func @transform_0(%arg0: i32, %arg1: i32, %arg2: i32) -> (i32, i32) {
    %c0_i32 = arith.constant 0 : i32
    return %arg0, %arg2 : i32, i32
  }
  func.func @transform_1(%arg0: i32, %arg1: i32, %arg2: i32) -> (i32, i32) {
    %c0_i32 = arith.constant 0 : i32
    return %arg2, %arg1 : i32, i32
  }
  func.func @transform_2(%arg0: i32, %arg1: i32, %arg2: i32) -> (i32, i32) {
    %c0_i32 = arith.constant 0 : i32
    %c0_i32_0 = arith.constant 0 : i32
    return %c0_i32, %arg1 : i32, i32
  }
  func.func @transform_3(%arg0: i32, %arg1: i32, %arg2: i32) -> (i32, i32) {
    %c0_i32 = arith.constant 0 : i32
    return %arg0, %arg1 : i32, i32
  }
}

</mosaic_0001>

<bundles_post_ra>
// kernel: _lambda_.57
= control target key start
LH: loop header
LB: loop body
LE: loop exit
PB: predicated region body
PF: predicated region fallthrough
CT: control target
= control target key end

     0   :  { %vm134_vm0 = vcmask 1043456   ;;  %vm19_vm1 = vcmask 64512   ;;  %v499_v1 = vmov 0.0   ;;  %vm389_vm2 = vcmask 60416   ;;  %s675_s1 = inlined_call_operand.vmem [shape: bf16[8,8], index: 1, kind: input, shape index: {}]   ;;  %s676_s0 = inlined_call_operand.vmem [shape: bf16[128,8], index: 0, kind: input, shape index: {}]   ;;  %s677_s2 = inlined_call_operand.vmem [shape: f32[1,8], index: 2, kind: input, shape index: {}]   ;;  %s678_s3 = inlined_call_operand.vmem [shape: bf16[128,8], index: 3, kind: output, shape index: {}]  }
   0x1   :  { %v68_v0 = vld [vmem:[%s675_s1] sm:$0xf]  ;;  %22 = vst.msk [vmem:[#allocation2 + $0x10] sm:$0xff] %vm19_vm1, %v499_v1  ;;  %20 = vst.msk [vmem:[#allocation2] sm:$0xff] %vm19_vm1, %v499_v1  ;;  %v493_v5 = vld [vmem:[%s676_s0 + $0x8] sm:$0xff]  }
   0x2   :  { %21 = vst.msk [vmem:[#allocation2 + $0x8] sm:$0xff] %vm19_vm1, %v499_v1  ;;  %23 = vst.msk [vmem:[#allocation2 + $0x18] sm:$0xff] %vm19_vm1, %v499_v1  ;;  %488 = vmatprep.subr.msk.bf16.mxu0 %vm134_vm0, %v68_v0  ;;  %489 = vmatprep.subr.msk.bf16.mxu1 %vm134_vm0, %v68_v0  ;;  %v136_v2 = vsel %vm134_vm0, %v68_v0, 0  ;;  %v491_v3 = vld [vmem:[%s676_s0] sm:$0xff]   ;;  %v494_v6 = vld [vmem:[%s676_s0 + $0x28] sm:$0xff]  }
   0x3   :  { %24 = vst.msk [vmem:[#allocation2 + $0x20] sm:$0xff] %vm19_vm1, %v499_v1  ;;  %25 = vst.msk [vmem:[#allocation2 + $0x28] sm:$0xff] %vm19_vm1, %v499_v1  ;;  %469 = vmatpush3.bf16.msra.mxu0 %v136_v2  ;;  %487 = vmatpush3.bf16.msra.mxu1 %v136_v2  ;;  %v492_v4 = vld [vmem:[%s676_s0 + $0x20] sm:$0xff]   ;;  %v495_v7 = vld [vmem:[%s676_s0 + $0x10] sm:$0xff]  }
   0x4   :  { %26 = vst.msk [vmem:[#allocation2 + $0x30] sm:$0xff] %vm19_vm1, %v499_v1  ;;  %27 = vst.msk [vmem:[#allocation2 + $0x38] sm:$0xff] %vm19_vm1, %v499_v1  ;;  %470 = vmatprep.mubr.msk.bf16.mxu0 %vm19_vm1, %v491_v3  ;;  %478 = vmatprep.mubr.msk.bf16.mxu1 %vm19_vm1, %v492_v4  ;;  %v496_v8 = vld [vmem:[%s676_s0 + $0x30] sm:$0xff]   ;;  %v497_v9 = vld [vmem:[%s676_s0 + $0x18] sm:$0xff]  }
   0x5   :  { %28 = vst.msk [vmem:[#allocation2 + $0x40] sm:$0xff] %vm19_vm1, %v499_v1  ;;  %29 = vst.msk [vmem:[#allocation2 + $0x48] sm:$0xff] %vm19_vm1, %v499_v1  ;;  %v498_v10 = vld [vmem:[%s676_s0 + $0x38] sm:$0xff]   ;;  %v585_v38 = vld [vmem:[%s677_s2] ss:$0 sm:$0xff] }
   0x6   :  { %30 = vst.msk [vmem:[#allocation2 + $0x50] sm:$0xff] %vm19_vm1, %v499_v1  ;;  %31 = vst.msk [vmem:[#allocation2 + $0x58] sm:$0xff] %vm19_vm1, %v499_v1  ;;  %471 = vmatmul.mubr.msk.bf16.vlgmr.msra.gmra.mrb[0].mxu0 %vm19_vm1, %v493_v5  ;;  %479 = vmatmul.mubr.msk.bf16.vlgmr.msra.gmra.mrb[0].mxu1 %vm19_vm1, %v494_v6 }
   0x7   :  { %32 = vst.msk [vmem:[#allocation2 + $0x60] sm:$0xff] %vm19_vm1, %v499_v1  ;;  %33 = vst.msk [vmem:[#allocation2 + $0x68] sm:$0xff] %vm19_vm1, %v499_v1  ;;  %474 = vmatprep.mubr.msk.bf16.mxu0 %vm19_vm1, %v495_v7  ;;  %482 = vmatprep.mubr.msk.bf16.mxu1 %vm19_vm1, %v496_v8 }
   0x8   :  { %34 = vst.msk [vmem:[#allocation2 + $0x70] sm:$0xff] %vm19_vm1, %v499_v1  ;;  %35 = vst.msk [vmem:[#allocation2 + $0x78] sm:$0xff] %vm19_vm1, %v499_v1  ;;  %v38_v11 = vld [vmem:[#allocation2 + $0x10] sm:$0xff]  ;;  %v36_v13 = vld [vmem:[#allocation2] sm:$0xff] }
   0x9   :  { %v39_v16 = vld [vmem:[#allocation2 + $0x18] sm:$0xff]  ;;  %v37_v21 = vld [vmem:[#allocation2 + $0x8] sm:$0xff] }
   0xa   :  { %v40_v37 = vld [vmem:[#allocation2 + $0x20] sm:$0xff]  ;;  %v41_v46 = vld [vmem:[#allocation2 + $0x28] sm:$0xff] }
   0xb   :  { %v42_v35 = vld [vmem:[#allocation2 + $0x30] sm:$0xff]  ;;  %v43_v41 = vld [vmem:[#allocation2 + $0x38] sm:$0xff] }
   0xc   :  { %v44_v15 = vld [vmem:[#allocation2 + $0x40] sm:$0xff]  ;;  %v45_v26 = vld [vmem:[#allocation2 + $0x48] sm:$0xff] }
   0xd   :  { %v46_v12 = vld [vmem:[#allocation2 + $0x50] sm:$0xff]  ;;  %v47_v20 = vld [vmem:[#allocation2 + $0x58] sm:$0xff] }
   0xe   :  { %475 = vmatmul.mubr.msk.bf16.gmra.mrb[4].mxu0 %vm19_vm1, %v497_v9  ;;  %483 = vmatmul.mubr.msk.bf16.gmra.mrb[4].mxu1 %vm19_vm1, %v498_v10  ;;  %v48_v40 = vld [vmem:[#allocation2 + $0x60] sm:$0xff]  ;;  %v49_v52 = vld [vmem:[#allocation2 + $0x68] sm:$0xff] }
   0xf   :  { %v50_v36 = vld [vmem:[#allocation2 + $0x70] sm:$0xff]  ;;  %v51_v45 = vld [vmem:[#allocation2 + $0x78] sm:$0xff] }
  0xd9   :  { %v472_v14 = vpop.f32.mrb[0].mxu0  ;;  %v480_v18 = vpop.f32.mrb[0].mxu1 }
  0xda   :  { %v237_v17 = vadd.f32 %v472_v14, %v38_v11  ;;  %v172_v19 = vpop.f32.mrb[1].mxu0  ;;  %v245_v22 = vadd.f32 %v480_v18, %v46_v12  ;;  %v204_v24 = vpop.f32.mrb[1].mxu1 }
  0xdb   :  { %v235_v23 = vadd.f32 %v172_v19, %v36_v13  ;;  %v473_v25 = vpop.f32.mrb[2].mxu0  ;;  %v243_v27 = vadd.f32 %v204_v24, %v44_v15  ;;  %v481_v29 = vpop.f32.mrb[2].mxu1 }
  0xdc   :  { %253 = vst.msk [vmem:[#allocation2 + $0x10] sm:$0xff] %vm19_vm1, %v237_v17  ;;  %v238_v28 = vadd.f32 %v473_v25, %v39_v16  ;;  %v175_v30 = vpop.f32.mrb[3].mxu0  ;;  %261 = vst.msk [vmem:[#allocation2 + $0x50] sm:$0xff] %vm19_vm1, %v245_v22  ;;  %v246_v31 = vadd.f32 %v481_v29, %v47_v20  ;;  %v207_v33 = vpop.f32.mrb[3].mxu1 }
  0xdd   :  { %251 = vst.msk [vmem:[#allocation2] sm:$0xff] %vm19_vm1, %v235_v23  ;;  %v236_v32 = vadd.f32 %v175_v30, %v37_v21  ;;  %259 = vst.msk [vmem:[#allocation2 + $0x40] sm:$0xff] %vm19_vm1, %v243_v27  ;;  %v244_v34 = vadd.f32 %v207_v33, %v45_v26 }
  0xde   :  { %254 = vst.msk [vmem:[#allocation2 + $0x18] sm:$0xff] %vm19_vm1, %v238_v28  ;;  %262 = vst.msk [vmem:[#allocation2 + $0x58] sm:$0xff] %vm19_vm1, %v246_v31 }
  0xdf   :  { %252 = vst.msk [vmem:[#allocation2 + $0x8] sm:$0xff] %vm19_vm1, %v236_v32  ;;  %260 = vst.msk [vmem:[#allocation2 + $0x48] sm:$0xff] %vm19_vm1, %v244_v34 }
  0xe1   :  { %v476_v39 = vpop.f32.mrb[4].mxu0  ;;  %v484_v43 = vpop.f32.mrb[4].mxu1 }
  0xe2   :  { %v241_v42 = vadd.f32 %v476_v39, %v42_v35  ;;  %v188_v44 = vpop.f32.mrb[5].mxu0  ;;  %v249_v48 = vadd.f32 %v484_v43, %v50_v36  ;;  %v220_v50 = vpop.f32.mrb[5].mxu1 }
  0xe3   :  { %v272_v47 = vld [vmem:[#allocation2 + $0x10] sm:$0xff]  ;;  %v239_v49 = vadd.f32 %v188_v44, %v40_v37  ;;  %v477_v51 = vpop.f32.mrb[6].mxu0  ;;  %v247_v56 = vadd.f32 %v220_v50, %v48_v40  ;;  %v485_v58 = vpop.f32.mrb[6].mxu1 }
  0xe4   :  { %v295_v53 = vadd.f32 %v585_v38, %v272_v47  ;;  %v280_v54 = vld [vmem:[#allocation2 + $0x50] sm:$0xff]  ;;  %v270_v55 = vld [vmem:[#allocation2] sm:$0xff]  ;;  %257 = vst.msk [vmem:[#allocation2 + $0x30] sm:$0xff] %vm19_vm1, %v241_v42  ;;  %v242_v57 = vadd.f32 %v477_v51, %v43_v41  ;;  %v191_v59 = vpop.f32.mrb[7].mxu0  ;;  %265 = vst.msk [vmem:[#allocation2 + $0x70] sm:$0xff] %vm19_vm1, %v249_v48  ;;  %v250_v0 = vadd.f32 %v485_v58, %v51_v45  ;;  %v223_v2 = vpop.f32.mrb[7].mxu1 }
  0xe5   :  { %v303_v60 = vadd.f32 %v585_v38, %v280_v54  ;;  %v293_v61 = vadd.f32 %v585_v38, %v270_v55  ;;  %v278_v62 = vld [vmem:[#allocation2 + $0x40] sm:$0xff]  ;;  %v273_v63 = vld [vmem:[#allocation2 + $0x18] sm:$0xff]  ;;  %255 = vst.msk [vmem:[#allocation2 + $0x20] sm:$0xff] %vm19_vm1, %v239_v49  ;;  %v240_v1 = vadd.f32 %v191_v59, %v41_v46  ;;  %263 = vst.msk [vmem:[#allocation2 + $0x60] sm:$0xff] %vm19_vm1, %v247_v56 }
  0xe6   :  { %v311_v3 = vmax.f32 %v295_v53, 0.0  ;;  %v301_v4 = vadd.f32 %v585_v38, %v278_v62  ;;  %v296_v5 = vadd.f32 %v585_v38, %v273_v63  ;;  %v281_v6 = vld [vmem:[#allocation2 + $0x58] sm:$0xff]  ;;  %v271_v7 = vld [vmem:[#allocation2 + $0x8] sm:$0xff]  ;;  %258 = vst.msk [vmem:[#allocation2 + $0x38] sm:$0xff] %vm19_vm1, %v242_v57  ;;  %v248_v8 = vadd.f32 %v223_v2, %v49_v52  ;;  %266 = vst.msk [vmem:[#allocation2 + $0x78] sm:$0xff] %vm19_vm1, %v250_v0 }
  0xe7   :  { %v319_v9 = vmax.f32 %v303_v60, 0.0  ;;  %v309_v10 = vmax.f32 %v293_v61, 0.0  ;;  %v304_v11 = vadd.f32 %v585_v38, %v281_v6  ;;  %v294_v12 = vadd.f32 %v585_v38, %v271_v7  ;;  %v279_v13 = vld [vmem:[#allocation2 + $0x48] sm:$0xff]  ;;  %256 = vst.msk [vmem:[#allocation2 + $0x28] sm:$0xff] %vm19_vm1, %v240_v1 }
  0xe8   :  { %v445_v14 = vpack.c.bf16 %v311_v3, %v311_v3  ;;  %v317_v15 = vmax.f32 %v301_v4, 0.0  ;;  %v312_v16 = vmax.f32 %v296_v5, 0.0  ;;  %v302_v17 = vadd.f32 %v585_v38, %v279_v13  ;;  %264 = vst.msk [vmem:[#allocation2 + $0x68] sm:$0xff] %vm19_vm1, %v248_v8 }
  0xe9   :  { %v453_v18 = vpack.c.bf16 %v319_v9, %v319_v9  ;;  %v443_v19 = vpack.c.bf16 %v309_v10, %v309_v10  ;;  %v320_v20 = vmax.f32 %v304_v11, 0.0  ;;  %v310_v21 = vmax.f32 %v294_v12, 0.0 }
  0xea   :  { %392 = vst.msk [vmem:[%s678_s3 + $0x8] sm:$0xf] %vm389_vm2, %v445_v14  ;;  %v451_v22 = vpack.c.bf16 %v317_v15, %v317_v15  ;;  %v446_v23 = vpack.c.bf16 %v312_v16, %v312_v16  ;;  %v318_v24 = vmax.f32 %v302_v17, 0.0 }
  0xeb   :  { %400 = vst.msk [vmem:[%s678_s3 + $0x28] sm:$0xf] %vm389_vm2, %v453_v18  ;;  %390 = vst.msk [vmem:[%s678_s3] sm:$0xf] %vm389_vm2, %v443_v19  ;;  %v454_v25 = vpack.c.bf16 %v320_v20, %v320_v20  ;;  %v444_v26 = vpack.c.bf16 %v310_v21, %v310_v21  ;;  %v276_v27 = vld [vmem:[#allocation2 + $0x30] sm:$0xff] }
  0xec   :  { %398 = vst.msk [vmem:[%s678_s3 + $0x20] sm:$0xf] %vm389_vm2, %v451_v22  ;;  %393 = vst.msk [vmem:[%s678_s3 + $0xc] sm:$0xf] %vm389_vm2, %v446_v23  ;;  %v452_v28 = vpack.c.bf16 %v318_v24, %v318_v24  ;;  %v299_v29 = vadd.f32 %v585_v38, %v276_v27  ;;  %v284_v30 = vld [vmem:[#allocation2 + $0x70] sm:$0xff]  ;;  %v274_v31 = vld [vmem:[#allocation2 + $0x20] sm:$0xff] }
  0xed   :  { %401 = vst.msk [vmem:[%s678_s3 + $0x2c] sm:$0xf] %vm389_vm2, %v454_v25  ;;  %391 = vst.msk [vmem:[%s678_s3 + $0x4] sm:$0xf] %vm389_vm2, %v444_v26  ;;  %v307_v32 = vadd.f32 %v585_v38, %v284_v30  ;;  %v297_v33 = vadd.f32 %v585_v38, %v274_v31  ;;  %v282_v34 = vld [vmem:[#allocation2 + $0x60] sm:$0xff]  ;;  %v277_v35 = vld [vmem:[#allocation2 + $0x38] sm:$0xff] }
  0xee   :  { %399 = vst.msk [vmem:[%s678_s3 + $0x24] sm:$0xf] %vm389_vm2, %v452_v28  ;;  %v315_v36 = vmax.f32 %v299_v29, 0.0  ;;  %v305_v37 = vadd.f32 %v585_v38, %v282_v34  ;;  %v300_v39 = vadd.f32 %v585_v38, %v277_v35  ;;  %v285_v40 = vld [vmem:[#allocation2 + $0x78] sm:$0xff]  ;;  %v275_v41 = vld [vmem:[#allocation2 + $0x28] sm:$0xff] }
  0xef   :  { %v323_v42 = vmax.f32 %v307_v32, 0.0  ;;  %v313_v43 = vmax.f32 %v297_v33, 0.0  ;;  %v308_v44 = vadd.f32 %v585_v38, %v285_v40  ;;  %v298_v45 = vadd.f32 %v585_v38, %v275_v41  ;;  %v283_v46 = vld [vmem:[#allocation2 + $0x68] sm:$0xff] }
  0xf0   :  { %v449_v47 = vpack.c.bf16 %v315_v36, %v315_v36  ;;  %v321_v48 = vmax.f32 %v305_v37, 0.0  ;;  %v316_v49 = vmax.f32 %v300_v39, 0.0  ;;  %v306_v50 = vadd.f32 %v585_v38, %v283_v46 }
  0xf1   :  { %v457_v51 = vpack.c.bf16 %v323_v42, %v323_v42  ;;  %v447_v52 = vpack.c.bf16 %v313_v43, %v313_v43  ;;  %v324_v53 = vmax.f32 %v308_v44, 0.0  ;;  %v314_v54 = vmax.f32 %v298_v45, 0.0 }
  0xf2   :  { %396 = vst.msk [vmem:[%s678_s3 + $0x18] sm:$0xf] %vm389_vm2, %v449_v47  ;;  %v455_v55 = vpack.c.bf16 %v321_v48, %v321_v48  ;;  %v450_v56 = vpack.c.bf16 %v316_v49, %v316_v49  ;;  %v322_v57 = vmax.f32 %v306_v50, 0.0 }
  0xf3   :  { %404 = vst.msk [vmem:[%s678_s3 + $0x38] sm:$0xf] %vm389_vm2, %v457_v51  ;;  %394 = vst.msk [vmem:[%s678_s3 + $0x10] sm:$0xf] %vm389_vm2, %v447_v52  ;;  %v458_v38 = vpack.c.bf16 %v324_v53, %v324_v53  ;;  %v448_v58 = vpack.c.bf16 %v314_v54, %v314_v54 }
  0xf4   :  { %402 = vst.msk [vmem:[%s678_s3 + $0x30] sm:$0xf] %vm389_vm2, %v455_v55  ;;  %397 = vst.msk [vmem:[%s678_s3 + $0x1c] sm:$0xf] %vm389_vm2, %v450_v56  ;;  %v456_v59 = vpack.c.bf16 %v322_v57, %v322_v57 }
  0xf5   :  { %405 = vst.msk [vmem:[%s678_s3 + $0x3c] sm:$0xf] %vm389_vm2, %v458_v38  ;;  %395 = vst.msk [vmem:[%s678_s3 + $0x14] sm:$0xf] %vm389_vm2, %v448_v58 }
  0xf6   :  { %403 = vst.msk [vmem:[%s678_s3 + $0x34] sm:$0xf] %vm389_vm2, %v456_v59 }

// kernel: _lambda_.56
= control target key start
LH: loop header
LB: loop body
LE: loop exit
PB: predicated region body
PF: predicated region fallthrough
CT: control target
= control target key end

     0   :  { %s1542_s12 = smov 0   ;;  %s1544_s13 = smov 0   ;;  %s1848_s0 = inlined_call_operand.vmem [shape: bf16[512,147], index: 0, kind: input, shape index: {}]   ;;  %s1849_s1 = inlined_call_operand.vmem [shape: bf16[147,8], index: 1, kind: input, shape index: {}]   ;;  %s1850_s2 = inlined_call_operand.vmem [shape: f32[1,8], index: 2, kind: input, shape index: {}]   ;;  %s1851_s3 = inlined_call_operand.vmem [shape: bf16[512,8], index: 3, kind: output, shape index: {}]  }
   0x1   :  { %s1546_s14 = smov 0  }
   0x2 LB: > { %s32_s15 = sadd.s32 1, %s1513_s13  ;;  %p1258_p0 = scmp.ge.s32.totalorder %s1517_s14, 1  ;;  %s1517_s14 = sphi %s1546_s14, %s13_s14   ;;  %s1513_s13 = sphi %s1544_s13, %s1853_s13   ;;  %s1509_s12 = sphi %s1542_s12, %s1852_s12  }
   0x3   : > { %p34_p1 = scmp.ge.s32.totalorder %s32_s15, 2  ;;  %p191_p2 = scmp.lt.s32.totalorder %s1517_s14, 3 }
   0x5   : > { %s1855_s15 = smov (%p34_p1, %s32_s15), 0  ;;  %p192_p3 = pnand %p1258_p0, %p191_p2 }
   0x6   : > { %v1437_v0 = vld [vmem:[%s1849_s1] sm:$0xff] (!%p192_p3)   ;;  %v1519_v1 = vmov (!%p192_p3), 0   ;;  %v1438_v2 = vld [vmem:[%s1849_s1 + $0x8] sm:$0xff] (!%p192_p3)   ;;  %v1439_v3 = vld [vmem:[%s1849_s1 + $0x10] sm:$0xff] (!%p192_p3)   ;;  %s1259_s22 = sshll.u32 (!%p192_p3), %s1509_s12, 5  ;;  %vm272_vm0 = vcmask (!%p192_p3), 64512  }
   0x7   : > { %195 = sbr.rel (%p192_p3) target bundleno = 337 (0x151), region = 32  ;;  %645 = vmatprep.subr.bf16.mxu0 (!%p192_p3), %v1519_v1  ;;  %1390 = vmatprep.subr.bf16.mxu1 (!%p192_p3), %v1519_v1  ;;  %p236_p4 = scmp.lt.s32.totalorder (!%p192_p3), %s1259_s22, 63  ;;  %v1440_v4 = vld [vmem:[%s1849_s1 + $0x18] sm:$0xff] (!%p192_p3)   ;;  %v1520_v5 = vmov (!%p192_p3), 0.0   ;;  %v1441_v6 = vld [vmem:[%s1849_s1 + $0x20] sm:$0xff] (!%p192_p3)   ;;  %vm589_vm1 = vcmask (!%p192_p3), 154624  }
   0x8   : > { %646 = vmatpush1.bf16.msra.mxu0 (!%p192_p3), %v1437_v0  ;;  %1400 = vmatpush1.bf16.msra.mxu1 (!%p192_p3), %v1437_v0  ;;  %273 = vst.msk [vmem:[#allocation2] sm:$0xff] (!%p192_p3), %vm272_vm0, %v1520_v5  ;;  %274 = vst.msk [vmem:[#allocation2 + $0x8] sm:$0xff] (!%p192_p3), %vm272_vm0, %v1520_v5  ;;  %v1442_v9 = vld [vmem:[%s1849_s1 + $0x28] sm:$0xff] (!%p192_p3)   ;;  %v1443_v10 = vld [vmem:[%s1849_s1 + $0x30] sm:$0xff] (!%p192_p3)   ;;  %vm638_vm2 = vcmask (!%p192_p3), 1040384   ;;  %vm639_vm3 = vcmask (!%p192_p3), 1041408  }
   0x9   : > { %647 = vmatprep.subr.bf16.mxu0 (!%p192_p3), %v1519_v1  ;;  %1391 = vmatprep.subr.bf16.mxu1 (!%p192_p3), %v1519_v1  ;;  %275 = vst.msk [vmem:[#allocation2 + $0x10] sm:$0xff] (!%p192_p3), %vm272_vm0, %v1520_v5  ;;  %276 = vst.msk [vmem:[#allocation2 + $0x18] sm:$0xff] (!%p192_p3), %vm272_vm0, %v1520_v5  ;;  %v1444_v11 = vld [vmem:[%s1849_s1 + $0x38] sm:$0xff] (!%p192_p3)   ;;  %v1521_v12 = vmov (!%p192_p3), 65535   ;;  %v1445_v14 = vld [vmem:[%s1849_s1 + $0x40] sm:$0xff] (!%p192_p3)   ;;  %vm1105_vm4 = vcmask (!%p192_p3), 60416  }
   0xa   : > { %277 = vst.msk [vmem:[#allocation2 + $0x20] sm:$0xff] (!%p192_p3), %vm272_vm0, %v1520_v5  ;;  %278 = vst.msk [vmem:[#allocation2 + $0x28] sm:$0xff] (!%p192_p3), %vm272_vm0, %v1520_v5  ;;  %v640_v13 = vsel (!%p192_p3), %vm638_vm2, 4294967295, %v1521_v12  ;;  %v1446_v15 = vld [vmem:[%s1849_s1 + $0x48] ss:$0 sps:$4 sm:$0x33] (!%p192_p3)  }
   0xb   : > { %279 = vst.msk [vmem:[#allocation2 + $0x30] sm:$0xff] (!%p192_p3), %vm272_vm0, %v1520_v5  ;;  %280 = vst.msk [vmem:[#allocation2 + $0x38] sm:$0xff] (!%p192_p3), %vm272_vm0, %v1520_v5  ;;  %v641_v16 = vsel (!%p192_p3), %vm639_vm3, %v640_v13, 0 }
   0xc   : > { %648 = vmatpush1.bf16.msra.mxu0 (!%p192_p3), %v1438_v2  ;;  %1401 = vmatpush1.bf16.msra.mxu1 (!%p192_p3), %v1438_v2  ;;  %281 = vst.msk [vmem:[#allocation2 + $0x40] sm:$0xff] (!%p192_p3), %vm272_vm0, %v1520_v5  ;;  %282 = vst.msk [vmem:[#allocation2 + $0x48] sm:$0xff] (!%p192_p3), %vm272_vm0, %v1520_v5  ;;  %v643_v17 = vand.u32 (!%p192_p3), %v1446_v15, %v641_v16  ;;  %v1707_v2 = vld [vmem:[%s1850_s2] ss:$0 sm:$0xff] (!%p192_p3) }
   0xd   : > { %649 = vmatprep.subr.bf16.mxu0 (!%p192_p3), %v1519_v1  ;;  %1392 = vmatprep.subr.bf16.mxu1 (!%p192_p3), %v1519_v1  ;;  %283 = vst.msk [vmem:[#allocation2 + $0x50] sm:$0xff] (!%p192_p3), %vm272_vm0, %v1520_v5  ;;  %284 = vst.msk [vmem:[#allocation2 + $0x58] sm:$0xff] (!%p192_p3), %vm272_vm0, %v1520_v5 }
   0xe   : > { %s1857_s22 = smov (!%p236_p4, %s1259_s22), 63  ;;  %285 = vst.msk [vmem:[#allocation2 + $0x60] sm:$0xff] %vm272_vm0, %v1520_v5  ;;  %286 = vst.msk [vmem:[#allocation2 + $0x68] sm:$0xff] %vm272_vm0, %v1520_v5 }
   0xf   : > { %s1357_s25 = sshll.u32 %s1857_s22, 3  ;;  %287 = vst.msk [vmem:[#allocation2 + $0x70] sm:$0xff] %vm272_vm0, %v1520_v5  ;;  %288 = vst.msk [vmem:[#allocation2 + $0x78] sm:$0xff] %vm272_vm0, %v1520_v5  ;;  %v305_v48 = vld [vmem:[#allocation2] sm:$0xff]  ;;  %v306_v52 = vld [vmem:[#allocation2 + $0x8] sm:$0xff]  ;;  %s1263_s19 = sshll.u32 %s1857_s22, 2 }
  0x10   : > { %650 = vmatpush1.bf16.msra.mxu0 %v1439_v3  ;;  %1402 = vmatpush1.bf16.msra.mxu1 %v1439_v3  ;;  %289 = vst.msk [vmem:[#allocation2 + $0x80] sm:$0xff] %vm272_vm0, %v1520_v5  ;;  %290 = vst.msk [vmem:[#allocation2 + $0x88] sm:$0xff] %vm272_vm0, %v1520_v5  ;;  %s1620_s28 = scalar_lea.vmem %s1848_s0, %s1357_s25  ;;  %v307_v0 = vld [vmem:[#allocation2 + $0x10] sm:$0xff]  ;;  %s1721_s22 = scalar_lea.vmem %s1851_s3, %s1263_s19 }
  0x11   : > { %651 = vmatprep.subr.bf16.mxu0 %v1519_v1  ;;  %1393 = vmatprep.subr.bf16.mxu1 %v1519_v1  ;;  %291 = vst.msk [vmem:[#allocation2 + $0x90] sm:$0xff] %vm272_vm0, %v1520_v5  ;;  %292 = vst.msk [vmem:[#allocation2 + $0x98] sm:$0xff] %vm272_vm0, %v1520_v5  ;;  %v1449_v7 = vld [vmem:[%s1620_s28 + $0x4] ss:$8 sps:$4 sm:$0xff]   ;;  %v1447_v18 = vld [vmem:[%s1620_s28] ss:$8 sps:$4 sm:$0xff]  }
  0x12   : > { %293 = vst.msk [vmem:[#allocation2 + $0xa0] sm:$0xff] %vm272_vm0, %v1520_v5  ;;  %294 = vst.msk [vmem:[#allocation2 + $0xa8] sm:$0xff] %vm272_vm0, %v1520_v5  ;;  %v1452_v8 = vld [vmem:[%s1620_s28 + $0x84] ss:$8 sps:$4 sm:$0xff]   ;;  %1306 = vmatprep.mubr.msk.bf16.mxu0 %vm589_vm1, %v1449_v7  ;;  %v1450_v19 = vld [vmem:[%s1620_s28 + $0x80] ss:$8 sps:$4 sm:$0xff]  }
  0x13   : > { %295 = vst.msk [vmem:[#allocation2 + $0xb0] sm:$0xff] %vm272_vm0, %v1520_v5  ;;  %296 = vst.msk [vmem:[#allocation2 + $0xb8] sm:$0xff] %vm272_vm0, %v1520_v5  ;;  %1314 = vmatprep.mubr.msk.bf16.mxu1 %vm589_vm1, %v1452_v8  ;;  %v1453_v20 = vld [vmem:[%s1620_s28 + $0x14] ss:$8 sps:$4 sm:$0xff]   ;;  %v1457_v22 = vld [vmem:[%s1620_s28 + $0x10] ss:$8 sps:$4 sm:$0xff]  }
  0x14   : > { %297 = vst.msk [vmem:[#allocation2 + $0xc0] sm:$0xff] %vm272_vm0, %v1520_v5  ;;  %298 = vst.msk [vmem:[#allocation2 + $0xc8] sm:$0xff] %vm272_vm0, %v1520_v5  ;;  %652 = vmatpush1.bf16.msra.mxu0 %v1440_v4  ;;  %1403 = vmatpush1.bf16.msra.mxu1 %v1440_v4  ;;  %v1455_v21 = vld [vmem:[%s1620_s28 + $0x94] ss:$8 sps:$4 sm:$0xff]   ;;  %v1458_v23 = vld [vmem:[%s1620_s28 + $0x90] ss:$8 sps:$4 sm:$0xff]  }
  0x15   : > { %299 = vst.msk [vmem:[#allocation2 + $0xd0] sm:$0xff] %vm272_vm0, %v1520_v5  ;;  %300 = vst.msk [vmem:[#allocation2 + $0xd8] sm:$0xff] %vm272_vm0, %v1520_v5  ;;  %653 = vmatprep.subr.bf16.mxu0 %v1519_v1  ;;  %1394 = vmatprep.subr.bf16.mxu1 %v1519_v1  ;;  %v1459_v24 = vld [vmem:[%s1620_s28 + $0x24] ss:$8 sps:$4 sm:$0xff]   ;;  %v1463_v26 = vld [vmem:[%s1620_s28 + $0x20] ss:$8 sps:$4 sm:$0xff]  }
  0x16   : > { %301 = vst.msk [vmem:[#allocation2 + $0xe0] sm:$0xff] %vm272_vm0, %v1520_v5  ;;  %302 = vst.msk [vmem:[#allocation2 + $0xe8] sm:$0xff] %vm272_vm0, %v1520_v5  ;;  %v1461_v25 = vld [vmem:[%s1620_s28 + $0xa4] ss:$8 sps:$4 sm:$0xff]   ;;  %v1464_v27 = vld [vmem:[%s1620_s28 + $0xa0] ss:$8 sps:$4 sm:$0xff]  }
  0x17   : > { %303 = vst.msk [vmem:[#allocation2 + $0xf0] sm:$0xff] %vm272_vm0, %v1520_v5  ;;  %304 = vst.msk [vmem:[#allocation2 + $0xf8] sm:$0xff] %vm272_vm0, %v1520_v5  ;;  %v1465_v28 = vld [vmem:[%s1620_s28 + $0x34] ss:$8 sps:$4 sm:$0xff]   ;;  %v1469_v30 = vld [vmem:[%s1620_s28 + $0x30] ss:$8 sps:$4 sm:$0xff]  }
  0x18   : > { %654 = vmatpush1.bf16.msra.mxu0 %v1441_v6  ;;  %1404 = vmatpush1.bf16.msra.mxu1 %v1441_v6  ;;  %v1467_v29 = vld [vmem:[%s1620_s28 + $0xb4] ss:$8 sps:$4 sm:$0xff]   ;;  %v1470_v31 = vld [vmem:[%s1620_s28 + $0xb0] ss:$8 sps:$4 sm:$0xff]   ;;  %v1471_v32 = vld [vmem:[%s1620_s28 + $0x44] ss:$8 sps:$4 sm:$0xff]  }
  0x19   : > { %655 = vmatprep.subr.bf16.mxu0 %v1519_v1  ;;  %1395 = vmatprep.subr.bf16.mxu1 %v1519_v1  ;;  %v1473_v33 = vld [vmem:[%s1620_s28 + $0xc4] ss:$8 sps:$4 sm:$0xff]   ;;  %v1475_v34 = vld [vmem:[%s1620_s28 + $0x40] ss:$8 sps:$4 sm:$0xff]   ;;  %v1477_v36 = vld [vmem:[%s1620_s28 + $0x54] ss:$8 sps:$4 sm:$0xff]  }
  0x1a   : > { %v1476_v35 = vld [vmem:[%s1620_s28 + $0xc0] ss:$8 sps:$4 sm:$0xff]   ;;  %v1479_v37 = vld [vmem:[%s1620_s28 + $0xd4] ss:$8 sps:$4 sm:$0xff]   ;;  %v1481_v38 = vld [vmem:[%s1620_s28 + $0x50] ss:$8 sps:$4 sm:$0xff]  }
  0x1b   : > { %v1482_v39 = vld [vmem:[%s1620_s28 + $0xd0] ss:$8 sps:$4 sm:$0xff]   ;;  %v1483_v40 = vld [vmem:[%s1620_s28 + $0x64] ss:$8 sps:$4 sm:$0xff]   ;;  %v1487_v42 = vld [vmem:[%s1620_s28 + $0x60] ss:$8 sps:$4 sm:$0xff]  }
  0x1c   : > { %656 = vmatpush1.bf16.msra.mxu0 %v1442_v9  ;;  %1405 = vmatpush1.bf16.msra.mxu1 %v1442_v9  ;;  %v1485_v41 = vld [vmem:[%s1620_s28 + $0xe4] ss:$8 sps:$4 sm:$0xff]   ;;  %v1488_v43 = vld [vmem:[%s1620_s28 + $0xe0] ss:$8 sps:$4 sm:$0xff]   ;;  %v1489_v44 = vld [vmem:[%s1620_s28 + $0x74] ss:$8 sps:$4 sm:$0xff]  }
  0x1d   : > { %657 = vmatprep.subr.bf16.mxu0 %v1519_v1  ;;  %1396 = vmatprep.subr.bf16.mxu1 %v1519_v1  ;;  %v1491_v45 = vld [vmem:[%s1620_s28 + $0xf4] ss:$8 sps:$4 sm:$0xff]   ;;  %v1493_v46 = vld [vmem:[%s1620_s28 + $0x70] ss:$8 sps:$4 sm:$0xff]   ;;  %v321_v49 = vld [vmem:[#allocation2 + $0x80] sm:$0xff] }
  0x1e   : > { %v1494_v47 = vld [vmem:[%s1620_s28 + $0xf0] ss:$8 sps:$4 sm:$0xff]   ;;  %v322_v53 = vld [vmem:[#allocation2 + $0x88] sm:$0xff] }
  0x1f   : > { %v308_v5 = vld [vmem:[#allocation2 + $0x18] sm:$0xff] }
  0x20   : > { %658 = vmatpush1.bf16.msra.mxu0 %v1443_v10  ;;  %1406 = vmatpush1.bf16.msra.mxu1 %v1443_v10  ;;  %v324_v6 = vld [vmem:[#allocation2 + $0x98] sm:$0xff] }
  0x21   : > { %659 = vmatprep.subr.bf16.mxu0 %v1519_v1  ;;  %1397 = vmatprep.subr.bf16.mxu1 %v1519_v1 }
  0x24   : > { %660 = vmatpush1.bf16.msra.mxu0 %v1444_v11  ;;  %1407 = vmatpush1.bf16.msra.mxu1 %v1444_v11 }
  0x25   : > { %661 = vmatprep.subr.bf16.mxu0 %v1519_v1  ;;  %1398 = vmatprep.subr.bf16.mxu1 %v1519_v1 }
  0x28   : > { %662 = vmatpush1.bf16.msra.mxu0 %v1445_v14  ;;  %1408 = vmatpush1.bf16.msra.mxu1 %v1445_v14 }
  0x29   : > { %663 = vmatprep.subr.bf16.mxu0 %v1519_v1  ;;  %1399 = vmatprep.subr.bf16.mxu1 %v1519_v1  ;;  %v323_v1 = vld [vmem:[#allocation2 + $0x90] sm:$0xff] }
  0x2c   : > { %664 = vmatpush1.bf16.msra.mxu0 %v643_v17  ;;  %1409 = vmatpush1.bf16.msra.mxu1 %v643_v17 }
  0x2f   : > { %678 = vmatmul.mubr.bf16.vlgmr.msra.gmra.mrb[0].mxu0 %v1447_v18  ;;  %742 = vmatmul.mubr.bf16.vlgmr.msra.gmra.mrb[0].mxu1 %v1450_v19 }
  0x30   : > { %1307 = vmatprep.mubr.msk.bf16.mxu0 %vm589_vm1, %v1453_v20  ;;  %1315 = vmatprep.mubr.msk.bf16.mxu1 %vm589_vm1, %v1455_v21 }
  0x37   : > { %686 = vmatmul.mubr.bf16.gmra.mrb[4].mxu0 %v1457_v22  ;;  %750 = vmatmul.mubr.bf16.gmra.mrb[4].mxu1 %v1458_v23 }
  0x38   : > { %1308 = vmatprep.mubr.msk.bf16.mxu0 %vm589_vm1, %v1459_v24  ;;  %1316 = vmatprep.mubr.msk.bf16.mxu1 %vm589_vm1, %v1461_v25 }
  0x3f   : > { %694 = vmatmul.mubr.bf16.gmra.mrb[8].mxu0 %v1463_v26  ;;  %758 = vmatmul.mubr.bf16.gmra.mrb[8].mxu1 %v1464_v27  ;;  %v309_v27 = vld [vmem:[#allocation2 + $0x20] sm:$0xff] }
  0x40   : > { %1309 = vmatprep.mubr.msk.bf16.mxu0 %vm589_vm1, %v1465_v28  ;;  %1317 = vmatprep.mubr.msk.bf16.mxu1 %vm589_vm1, %v1467_v29  ;;  %v325_v28 = vld [vmem:[#allocation2 + $0xa0] sm:$0xff] }
  0x47   : > { %702 = vmatmul.mubr.bf16.gmra.mrb[12].mxu0 %v1469_v30  ;;  %766 = vmatmul.mubr.bf16.gmra.mrb[12].mxu1 %v1470_v31 }
  0x48   : > { %1310 = vmatprep.mubr.msk.bf16.mxu0 %vm589_vm1, %v1471_v32  ;;  %1318 = vmatprep.mubr.msk.bf16.mxu1 %vm589_vm1, %v1473_v33 }
  0x4f   : > { %710 = vmatmul.mubr.bf16.gmra.mrb[16].mxu0 %v1475_v34  ;;  %774 = vmatmul.mubr.bf16.gmra.mrb[16].mxu1 %v1476_v35  ;;  %v310_v35 = vld [vmem:[#allocation2 + $0x28] sm:$0xff] }
  0x50   : > { %1311 = vmatprep.mubr.msk.bf16.mxu0 %vm589_vm1, %v1477_v36  ;;  %1319 = vmatprep.mubr.msk.bf16.mxu1 %vm589_vm1, %v1479_v37  ;;  %v326_v36 = vld [vmem:[#allocation2 + $0xa8] sm:$0xff] }
  0x57   : > { %718 = vmatmul.mubr.bf16.gmra.mrb[20].mxu0 %v1481_v38  ;;  %782 = vmatmul.mubr.bf16.gmra.mrb[20].mxu1 %v1482_v39 }
  0x58   : > { %1312 = vmatprep.mubr.msk.bf16.mxu0 %vm589_vm1, %v1483_v40  ;;  %1320 = vmatprep.mubr.msk.bf16.mxu1 %vm589_vm1, %v1485_v41 }
  0x5f   : > { %726 = vmatmul.mubr.bf16.gmra.mrb[24].mxu0 %v1487_v42  ;;  %790 = vmatmul.mubr.bf16.gmra.mrb[24].mxu1 %v1488_v43 }
  0x60   : > { %1313 = vmatprep.mubr.msk.bf16.mxu0 %vm589_vm1, %v1489_v44  ;;  %1321 = vmatprep.mubr.msk.bf16.mxu1 %vm589_vm1, %v1491_v45 }
  0x67   : > { %734 = vmatmul.mubr.bf16.gmra.mrb[28].mxu0 %v1493_v46  ;;  %798 = vmatmul.mubr.bf16.gmra.mrb[28].mxu1 %v1494_v47 }
 0x102   : > { %v679_v50 = vpop.f32.mrb[0].mxu0  ;;  %v743_v51 = vpop.f32.mrb[0].mxu1 }
 0x103   : > { %v806_v54 = vadd.f32 %v679_v50, %v305_v48  ;;  %v822_v55 = vadd.f32 %v743_v51, %v321_v49  ;;  %v681_v56 = vpop.f32.mrb[1].mxu0  ;;  %v745_v57 = vpop.f32.mrb[1].mxu1 }
 0x104   : > { %v682_v58 = vpop.f32.mrb[2].mxu0  ;;  %v746_v59 = vpop.f32.mrb[2].mxu1 }
 0x105   : > { %839 = vst.msk [vmem:[#allocation2] sm:$0xff] %vm272_vm0, %v806_v54  ;;  %855 = vst.msk [vmem:[#allocation2 + $0x80] sm:$0xff] %vm272_vm0, %v822_v55  ;;  %v807_v60 = vadd.f32 %v682_v58, %v306_v52  ;;  %v823_v61 = vadd.f32 %v746_v59, %v322_v53  ;;  %v684_v62 = vpop.f32.mrb[3].mxu0  ;;  %v748_v63 = vpop.f32.mrb[3].mxu1  ;;  %v311_v59 = vld [vmem:[#allocation2 + $0x30] sm:$0xff] }
 0x107   : > { %840 = vst.msk [vmem:[#allocation2 + $0x8] sm:$0xff] %vm272_vm0, %v807_v60  ;;  %856 = vst.msk [vmem:[#allocation2 + $0x88] sm:$0xff] %vm272_vm0, %v823_v61  ;;  %v327_v60 = vld [vmem:[#allocation2 + $0xb0] sm:$0xff] }
 0x10a   : > { %v687_v3 = vpop.f32.mrb[4].mxu0  ;;  %v751_v4 = vpop.f32.mrb[4].mxu1 }
 0x10b   : > { %v808_v7 = vadd.f32 %v687_v3, %v307_v0  ;;  %v824_v8 = vadd.f32 %v751_v4, %v323_v1  ;;  %v689_v9 = vpop.f32.mrb[5].mxu0  ;;  %v753_v10 = vpop.f32.mrb[5].mxu1  ;;  %v312_v4 = vld [vmem:[#allocation2 + $0x38] sm:$0xff] }
 0x10c   : > { %v874_v11 = vld [vmem:[#allocation2] sm:$0xff]  ;;  %v690_v13 = vpop.f32.mrb[6].mxu0  ;;  %v754_v14 = vpop.f32.mrb[6].mxu1 }
 0x10d   : > { %v890_v12 = vld [vmem:[#allocation2 + $0x80] sm:$0xff]  ;;  %v913_v15 = vadd.f32 %v1707_v2, %v874_v11  ;;  %841 = vst.msk [vmem:[#allocation2 + $0x10] sm:$0xff] %vm272_vm0, %v808_v7  ;;  %857 = vst.msk [vmem:[#allocation2 + $0x90] sm:$0xff] %vm272_vm0, %v824_v8  ;;  %v809_v17 = vadd.f32 %v690_v13, %v308_v5  ;;  %v825_v18 = vadd.f32 %v754_v14, %v324_v6  ;;  %v692_v19 = vpop.f32.mrb[7].mxu0  ;;  %v756_v20 = vpop.f32.mrb[7].mxu1  ;;  %v328_v5 = vld [vmem:[#allocation2 + $0xb8] sm:$0xff] }
 0x10e   : > { %v929_v16 = vadd.f32 %v1707_v2, %v890_v12  ;;  %v875_v21 = vld [vmem:[#allocation2 + $0x8] sm:$0xff] }
 0x10f   : > { %v891_v22 = vld [vmem:[#allocation2 + $0x88] sm:$0xff]  ;;  %v945_v23 = vmax.f32 %v913_v15, 0.0  ;;  %v914_v25 = vadd.f32 %v1707_v2, %v875_v21  ;;  %842 = vst.msk [vmem:[#allocation2 + $0x18] sm:$0xff] %vm272_vm0, %v809_v17  ;;  %858 = vst.msk [vmem:[#allocation2 + $0x98] sm:$0xff] %vm272_vm0, %v825_v18 }
 0x110   : > { %v961_v24 = vmax.f32 %v929_v16, 0.0  ;;  %v930_v26 = vadd.f32 %v1707_v2, %v891_v22 }
 0x111   : > { %v1358_v29 = vpack.c.bf16 %v945_v23, %v945_v23  ;;  %v946_v31 = vmax.f32 %v914_v25, 0.0 }
 0x112   : > { %v1374_v30 = vpack.c.bf16 %v961_v24, %v961_v24  ;;  %v962_v32 = vmax.f32 %v930_v26, 0.0  ;;  %v695_v33 = vpop.f32.mrb[8].mxu0  ;;  %v759_v34 = vpop.f32.mrb[8].mxu1 }
 0x113   : > { %1106 = vst.msk [vmem:[%s1721_s22] sm:$0xf] %vm1105_vm4, %v1358_v29  ;;  %v1359_v37 = vpack.c.bf16 %v946_v31, %v946_v31  ;;  %v810_v39 = vadd.f32 %v695_v33, %v309_v27  ;;  %v826_v40 = vadd.f32 %v759_v34, %v325_v28  ;;  %v697_v41 = vpop.f32.mrb[9].mxu0  ;;  %v761_v42 = vpop.f32.mrb[9].mxu1  ;;  %v313_v28 = vld [vmem:[#allocation2 + $0x40] sm:$0xff] }
 0x114   : > { %1122 = vst.msk [vmem:[%s1721_s22 + $0x40] sm:$0xf] %vm1105_vm4, %v1374_v30  ;;  %v1375_v38 = vpack.c.bf16 %v962_v32, %v962_v32  ;;  %v876_v43 = vld [vmem:[#allocation2 + $0x10] sm:$0xff]  ;;  %v698_v45 = vpop.f32.mrb[10].mxu0  ;;  %v762_v46 = vpop.f32.mrb[10].mxu1  ;;  %v329_v29 = vld [vmem:[#allocation2 + $0xc0] sm:$0xff] }
 0x115   : > { %v892_v44 = vld [vmem:[#allocation2 + $0x90] sm:$0xff]  ;;  %1107 = vst.msk [vmem:[%s1721_s22 + $0x4] sm:$0xf] %vm1105_vm4, %v1359_v37  ;;  %v915_v47 = vadd.f32 %v1707_v2, %v876_v43  ;;  %v811_v49 = vadd.f32 %v698_v45, %v310_v35  ;;  %v827_v50 = vadd.f32 %v762_v46, %v326_v36  ;;  %v700_v51 = vpop.f32.mrb[11].mxu0  ;;  %v764_v52 = vpop.f32.mrb[11].mxu1  ;;  %v314_v36 = vld [vmem:[#allocation2 + $0x48] sm:$0xff] }
 0x116   : > { %1123 = vst.msk [vmem:[%s1721_s22 + $0x44] sm:$0xf] %vm1105_vm4, %v1375_v38  ;;  %v931_v48 = vadd.f32 %v1707_v2, %v892_v44  ;;  %v877_v53 = vld [vmem:[#allocation2 + $0x18] sm:$0xff]  ;;  %v330_v37 = vld [vmem:[#allocation2 + $0xc8] sm:$0xff] }
 0x117   : > { %843 = vst.msk [vmem:[#allocation2 + $0x20] sm:$0xff] %vm272_vm0, %v810_v39  ;;  %859 = vst.msk [vmem:[#allocation2 + $0xa0] sm:$0xff] %vm272_vm0, %v826_v40  ;;  %v893_v54 = vld [vmem:[#allocation2 + $0x98] sm:$0xff]  ;;  %v947_v55 = vmax.f32 %v915_v47, 0.0  ;;  %v916_v57 = vadd.f32 %v1707_v2, %v877_v53 }
 0x118   : > { %v963_v56 = vmax.f32 %v931_v48, 0.0  ;;  %v932_v58 = vadd.f32 %v1707_v2, %v893_v54  ;;  %844 = vst.msk [vmem:[#allocation2 + $0x28] sm:$0xff] %vm272_vm0, %v811_v49  ;;  %860 = vst.msk [vmem:[#allocation2 + $0xa8] sm:$0xff] %vm272_vm0, %v827_v50 }
 0x119   : > { %v1360_v61 = vpack.c.bf16 %v947_v55, %v947_v55  ;;  %v948_v63 = vmax.f32 %v916_v57, 0.0 }
 0x11a   : > { %v1376_v62 = vpack.c.bf16 %v963_v56, %v963_v56  ;;  %v964_v0 = vmax.f32 %v932_v58, 0.0  ;;  %v703_v1 = vpop.f32.mrb[12].mxu0  ;;  %v767_v3 = vpop.f32.mrb[12].mxu1 }
 0x11b   : > { %1108 = vst.msk [vmem:[%s1721_s22 + $0x8] sm:$0xf] %vm1105_vm4, %v1360_v61  ;;  %v1361_v6 = vpack.c.bf16 %v948_v63, %v948_v63  ;;  %v812_v8 = vadd.f32 %v703_v1, %v311_v59  ;;  %v828_v9 = vadd.f32 %v767_v3, %v327_v60  ;;  %v705_v10 = vpop.f32.mrb[13].mxu0  ;;  %v769_v11 = vpop.f32.mrb[13].mxu1  ;;  %v315_v60 = vld [vmem:[#allocation2 + $0x50] sm:$0xff] }
 0x11c   : > { %1124 = vst.msk [vmem:[%s1721_s22 + $0x48] sm:$0xf] %vm1105_vm4, %v1376_v62  ;;  %v1377_v7 = vpack.c.bf16 %v964_v0, %v964_v0  ;;  %v706_v14 = vpop.f32.mrb[14].mxu0  ;;  %v770_v15 = vpop.f32.mrb[14].mxu1  ;;  %v331_v61 = vld [vmem:[#allocation2 + $0xd0] sm:$0xff] }
 0x11d   : > { %1109 = vst.msk [vmem:[%s1721_s22 + $0xc] sm:$0xf] %vm1105_vm4, %v1361_v6  ;;  %v813_v18 = vadd.f32 %v706_v14, %v312_v4  ;;  %v829_v19 = vadd.f32 %v770_v15, %v328_v5  ;;  %v708_v20 = vpop.f32.mrb[15].mxu0  ;;  %v772_v21 = vpop.f32.mrb[15].mxu1  ;;  %v316_v5 = vld [vmem:[#allocation2 + $0x58] sm:$0xff] }
 0x11e   : > { %v878_v12 = vld [vmem:[#allocation2 + $0x20] sm:$0xff]  ;;  %1125 = vst.msk [vmem:[%s1721_s22 + $0x4c] sm:$0xf] %vm1105_vm4, %v1377_v7  ;;  %v332_v6 = vld [vmem:[#allocation2 + $0xd8] sm:$0xff] }
 0x11f   : > { %v894_v13 = vld [vmem:[#allocation2 + $0xa0] sm:$0xff]  ;;  %v917_v16 = vadd.f32 %v1707_v2, %v878_v12  ;;  %845 = vst.msk [vmem:[#allocation2 + $0x30] sm:$0xff] %vm272_vm0, %v812_v8  ;;  %861 = vst.msk [vmem:[#allocation2 + $0xb0] sm:$0xff] %vm272_vm0, %v828_v9  ;;  %v879_v22 = vld [vmem:[#allocation2 + $0x28] sm:$0xff] }
 0x120   : > { %v933_v17 = vadd.f32 %v1707_v2, %v894_v13  ;;  %v895_v23 = vld [vmem:[#allocation2 + $0xa8] sm:$0xff]  ;;  %v918_v26 = vadd.f32 %v1707_v2, %v879_v22  ;;  %846 = vst.msk [vmem:[#allocation2 + $0x38] sm:$0xff] %vm272_vm0, %v813_v18  ;;  %862 = vst.msk [vmem:[#allocation2 + $0xb8] sm:$0xff] %vm272_vm0, %v829_v19 }
 0x121   : > { %v949_v24 = vmax.f32 %v917_v16, 0.0  ;;  %v934_v27 = vadd.f32 %v1707_v2, %v895_v23 }
 0x122   : > { %v965_v25 = vmax.f32 %v933_v17, 0.0  ;;  %v950_v32 = vmax.f32 %v918_v26, 0.0  ;;  %v711_v34 = vpop.f32.mrb[16].mxu0  ;;  %v775_v35 = vpop.f32.mrb[16].mxu1 }
 0x123   : > { %v1362_v30 = vpack.c.bf16 %v949_v24, %v949_v24  ;;  %v966_v33 = vmax.f32 %v934_v27, 0.0  ;;  %v814_v40 = vadd.f32 %v711_v34, %v313_v28  ;;  %v830_v41 = vadd.f32 %v775_v35, %v329_v29  ;;  %v713_v42 = vpop.f32.mrb[17].mxu0  ;;  %v777_v43 = vpop.f32.mrb[17].mxu1  ;;  %v317_v29 = vld [vmem:[#allocation2 + $0x60] sm:$0xff] }
 0x124   : > { %v1378_v31 = vpack.c.bf16 %v965_v25, %v965_v25  ;;  %v1363_v38 = vpack.c.bf16 %v950_v32, %v950_v32  ;;  %v714_v46 = vpop.f32.mrb[18].mxu0  ;;  %v778_v47 = vpop.f32.mrb[18].mxu1 }
 0x125   : > { %1110 = vst.msk [vmem:[%s1721_s22 + $0x10] sm:$0xf] %vm1105_vm4, %v1362_v30  ;;  %v1379_v39 = vpack.c.bf16 %v966_v33, %v966_v33  ;;  %v815_v50 = vadd.f32 %v714_v46, %v314_v36  ;;  %v831_v51 = vadd.f32 %v778_v47, %v330_v37  ;;  %v716_v52 = vpop.f32.mrb[19].mxu0  ;;  %v780_v53 = vpop.f32.mrb[19].mxu1  ;;  %v333_v30 = vld [vmem:[#allocation2 + $0xe0] sm:$0xff]  ;;  %v318_v37 = vld [vmem:[#allocation2 + $0x68] sm:$0xff] }
 0x126   : > { %1126 = vst.msk [vmem:[%s1721_s22 + $0x50] sm:$0xf] %vm1105_vm4, %v1378_v31  ;;  %v880_v44 = vld [vmem:[#allocation2 + $0x30] sm:$0xff]  ;;  %1111 = vst.msk [vmem:[%s1721_s22 + $0x14] sm:$0xf] %vm1105_vm4, %v1363_v38  ;;  %v334_v38 = vld [vmem:[#allocation2 + $0xe8] sm:$0xff] }
 0x127   : > { %v896_v45 = vld [vmem:[#allocation2 + $0xb0] sm:$0xff]  ;;  %1127 = vst.msk [vmem:[%s1721_s22 + $0x54] sm:$0xf] %vm1105_vm4, %v1379_v39  ;;  %v919_v48 = vadd.f32 %v1707_v2, %v880_v44  ;;  %v881_v54 = vld [vmem:[#allocation2 + $0x38] sm:$0xff] }
 0x128   : > { %v935_v49 = vadd.f32 %v1707_v2, %v896_v45  ;;  %847 = vst.msk [vmem:[#allocation2 + $0x40] sm:$0xff] %vm272_vm0, %v814_v40  ;;  %863 = vst.msk [vmem:[#allocation2 + $0xc0] sm:$0xff] %vm272_vm0, %v830_v41  ;;  %v897_v55 = vld [vmem:[#allocation2 + $0xb8] sm:$0xff]  ;;  %v920_v58 = vadd.f32 %v1707_v2, %v881_v54 }
 0x129   : > { %v951_v56 = vmax.f32 %v919_v48, 0.0  ;;  %v936_v59 = vadd.f32 %v1707_v2, %v897_v55  ;;  %848 = vst.msk [vmem:[#allocation2 + $0x48] sm:$0xff] %vm272_vm0, %v815_v50  ;;  %864 = vst.msk [vmem:[#allocation2 + $0xc8] sm:$0xff] %vm272_vm0, %v831_v51 }
 0x12a   : > { %v967_v57 = vmax.f32 %v935_v49, 0.0  ;;  %v952_v0 = vmax.f32 %v920_v58, 0.0  ;;  %v719_v3 = vpop.f32.mrb[20].mxu0  ;;  %v783_v4 = vpop.f32.mrb[20].mxu1 }
 0x12b   : > { %v1364_v62 = vpack.c.bf16 %v951_v56, %v951_v56  ;;  %v968_v1 = vmax.f32 %v936_v59, 0.0  ;;  %v816_v9 = vadd.f32 %v719_v3, %v315_v60  ;;  %v832_v10 = vadd.f32 %v783_v4, %v331_v61  ;;  %v721_v11 = vpop.f32.mrb[21].mxu0  ;;  %v785_v12 = vpop.f32.mrb[21].mxu1  ;;  %v319_v61 = vld [vmem:[#allocation2 + $0x70] sm:$0xff] }
 0x12c   : > { %v1380_v63 = vpack.c.bf16 %v967_v57, %v967_v57  ;;  %v1365_v7 = vpack.c.bf16 %v952_v0, %v952_v0  ;;  %v722_v15 = vpop.f32.mrb[22].mxu0  ;;  %v786_v16 = vpop.f32.mrb[22].mxu1 }
 0x12d   : > { %1112 = vst.msk [vmem:[%s1721_s22 + $0x18] sm:$0xf] %vm1105_vm4, %v1364_v62  ;;  %v1381_v8 = vpack.c.bf16 %v968_v1, %v968_v1  ;;  %v817_v19 = vadd.f32 %v722_v15, %v316_v5  ;;  %v833_v20 = vadd.f32 %v786_v16, %v332_v6  ;;  %v724_v21 = vpop.f32.mrb[23].mxu0  ;;  %v788_v22 = vpop.f32.mrb[23].mxu1  ;;  %v335_v62 = vld [vmem:[#allocation2 + $0xf0] sm:$0xff]  ;;  %v320_v6 = vld [vmem:[#allocation2 + $0x78] sm:$0xff] }
 0x12e   : > { %1128 = vst.msk [vmem:[%s1721_s22 + $0x58] sm:$0xf] %vm1105_vm4, %v1380_v63  ;;  %1113 = vst.msk [vmem:[%s1721_s22 + $0x1c] sm:$0xf] %vm1105_vm4, %v1365_v7  ;;  %v336_v7 = vld [vmem:[#allocation2 + $0xf8] sm:$0xff] }
 0x12f   : > { %v882_v13 = vld [vmem:[#allocation2 + $0x40] sm:$0xff]  ;;  %1129 = vst.msk [vmem:[%s1721_s22 + $0x5c] sm:$0xf] %vm1105_vm4, %v1381_v8 }
 0x130   : > { %v898_v14 = vld [vmem:[#allocation2 + $0xc0] sm:$0xff]  ;;  %v921_v17 = vadd.f32 %v1707_v2, %v882_v13  ;;  %849 = vst.msk [vmem:[#allocation2 + $0x50] sm:$0xff] %vm272_vm0, %v816_v9  ;;  %865 = vst.msk [vmem:[#allocation2 + $0xd0] sm:$0xff] %vm272_vm0, %v832_v10  ;;  %v883_v23 = vld [vmem:[#allocation2 + $0x48] sm:$0xff] }
 0x131   : > { %v937_v18 = vadd.f32 %v1707_v2, %v898_v14  ;;  %v899_v24 = vld [vmem:[#allocation2 + $0xc8] sm:$0xff]  ;;  %v922_v27 = vadd.f32 %v1707_v2, %v883_v23  ;;  %850 = vst.msk [vmem:[#allocation2 + $0x58] sm:$0xff] %vm272_vm0, %v817_v19  ;;  %866 = vst.msk [vmem:[#allocation2 + $0xd8] sm:$0xff] %vm272_vm0, %v833_v20 }
 0x132   : > { %v953_v25 = vmax.f32 %v921_v17, 0.0  ;;  %v938_v28 = vadd.f32 %v1707_v2, %v899_v24  ;;  %v727_v35 = vpop.f32.mrb[24].mxu0  ;;  %v791_v36 = vpop.f32.mrb[24].mxu1 }
 0x133   : > { %v969_v26 = vmax.f32 %v937_v18, 0.0  ;;  %v954_v33 = vmax.f32 %v922_v27, 0.0  ;;  %v818_v41 = vadd.f32 %v727_v35, %v317_v29  ;;  %v834_v42 = vadd.f32 %v791_v36, %v333_v30  ;;  %v729_v43 = vpop.f32.mrb[25].mxu0  ;;  %v793_v44 = vpop.f32.mrb[25].mxu1 }
 0x134   : > { %v1366_v31 = vpack.c.bf16 %v953_v25, %v953_v25  ;;  %v970_v34 = vmax.f32 %v938_v28, 0.0  ;;  %v730_v47 = vpop.f32.mrb[26].mxu0  ;;  %v794_v48 = vpop.f32.mrb[26].mxu1 }
 0x135   : > { %v1382_v32 = vpack.c.bf16 %v969_v26, %v969_v26  ;;  %v1367_v39 = vpack.c.bf16 %v954_v33, %v954_v33  ;;  %851 = vst.msk [vmem:[#allocation2 + $0x60] sm:$0xff] %vm272_vm0, %v818_v41  ;;  %867 = vst.msk [vmem:[#allocation2 + $0xe0] sm:$0xff] %vm272_vm0, %v834_v42  ;;  %v819_v51 = vadd.f32 %v730_v47, %v318_v37  ;;  %v732_v53 = vpop.f32.mrb[27].mxu0  ;;  %v796_v54 = vpop.f32.mrb[27].mxu1 }
 0x136   : > { %1114 = vst.msk [vmem:[%s1721_s22 + $0x20] sm:$0xf] %vm1105_vm4, %v1366_v31  ;;  %v1383_v40 = vpack.c.bf16 %v970_v34, %v970_v34  ;;  %v835_v52 = vadd.f32 %v794_v48, %v334_v38 }
 0x137   : > { %1130 = vst.msk [vmem:[%s1721_s22 + $0x60] sm:$0xf] %vm1105_vm4, %v1382_v32  ;;  %v884_v45 = vld [vmem:[#allocation2 + $0x50] sm:$0xff]  ;;  %1115 = vst.msk [vmem:[%s1721_s22 + $0x24] sm:$0xf] %vm1105_vm4, %v1367_v39 }
 0x138   : > { %v900_v46 = vld [vmem:[#allocation2 + $0xd0] sm:$0xff]  ;;  %1131 = vst.msk [vmem:[%s1721_s22 + $0x64] sm:$0xf] %vm1105_vm4, %v1383_v40  ;;  %v923_v49 = vadd.f32 %v1707_v2, %v884_v45  ;;  %v885_v55 = vld [vmem:[#allocation2 + $0x58] sm:$0xff] }
 0x139   : > { %v939_v50 = vadd.f32 %v1707_v2, %v900_v46  ;;  %v901_v56 = vld [vmem:[#allocation2 + $0xd8] sm:$0xff]  ;;  %v924_v59 = vadd.f32 %v1707_v2, %v885_v55  ;;  %852 = vst.msk [vmem:[#allocation2 + $0x68] sm:$0xff] %vm272_vm0, %v819_v51  ;;  %868 = vst.msk [vmem:[#allocation2 + $0xe8] sm:$0xff] %vm272_vm0, %v835_v52 }
 0x13a   : > { %v955_v57 = vmax.f32 %v923_v49, 0.0  ;;  %v940_v60 = vadd.f32 %v1707_v2, %v901_v56  ;;  %v735_v4 = vpop.f32.mrb[28].mxu0  ;;  %v799_v5 = vpop.f32.mrb[28].mxu1 }
 0x13b   : > { %v971_v58 = vmax.f32 %v939_v50, 0.0  ;;  %v956_v1 = vmax.f32 %v924_v59, 0.0  ;;  %v820_v10 = vadd.f32 %v735_v4, %v319_v61  ;;  %v836_v11 = vadd.f32 %v799_v5, %v335_v62  ;;  %v737_v12 = vpop.f32.mrb[29].mxu0  ;;  %v801_v13 = vpop.f32.mrb[29].mxu1 }
 0x13c   : > { %v1368_v63 = vpack.c.bf16 %v955_v57, %v955_v57  ;;  %v972_v3 = vmax.f32 %v940_v60, 0.0  ;;  %v886_v14 = vld [vmem:[#allocation2 + $0x60] sm:$0xff]  ;;  %v738_v16 = vpop.f32.mrb[30].mxu0  ;;  %v802_v17 = vpop.f32.mrb[30].mxu1 }
 0x13d   : > { %v1384_v0 = vpack.c.bf16 %v971_v58, %v971_v58  ;;  %v1369_v8 = vpack.c.bf16 %v956_v1, %v956_v1  ;;  %v902_v15 = vld [vmem:[#allocation2 + $0xe0] sm:$0xff]  ;;  %v925_v18 = vadd.f32 %v1707_v2, %v886_v14  ;;  %853 = vst.msk [vmem:[#allocation2 + $0x70] sm:$0xff] %vm272_vm0, %v820_v10  ;;  %869 = vst.msk [vmem:[#allocation2 + $0xf0] sm:$0xff] %vm272_vm0, %v836_v11  ;;  %v740_v22 = vpop.f32.mrb[31].mxu0  ;;  %v804_v23 = vpop.f32.mrb[31].mxu1 }
 0x13e   : > { %1116 = vst.msk [vmem:[%s1721_s22 + $0x28] sm:$0xf] %vm1105_vm4, %v1368_v63  ;;  %v1385_v9 = vpack.c.bf16 %v972_v3, %v972_v3  ;;  %v941_v19 = vadd.f32 %v1707_v2, %v902_v15  ;;  %v821_v20 = vadd.f32 %v738_v16, %v320_v6  ;;  %v837_v21 = vadd.f32 %v802_v17, %v336_v7 }
 0x13f   : > { %1132 = vst.msk [vmem:[%s1721_s22 + $0x68] sm:$0xf] %vm1105_vm4, %v1384_v0  ;;  %1117 = vst.msk [vmem:[%s1721_s22 + $0x2c] sm:$0xf] %vm1105_vm4, %v1369_v8  ;;  %v957_v26 = vmax.f32 %v925_v18, 0.0 }
 0x140   : > { %1133 = vst.msk [vmem:[%s1721_s22 + $0x6c] sm:$0xf] %vm1105_vm4, %v1385_v9  ;;  %v887_v24 = vld [vmem:[#allocation2 + $0x68] sm:$0xff]  ;;  %v973_v27 = vmax.f32 %v941_v19, 0.0 }
 0x141   : > { %v903_v25 = vld [vmem:[#allocation2 + $0xe8] sm:$0xff]  ;;  %v926_v28 = vadd.f32 %v1707_v2, %v887_v24  ;;  %854 = vst.msk [vmem:[#allocation2 + $0x78] sm:$0xff] %vm272_vm0, %v821_v20  ;;  %870 = vst.msk [vmem:[#allocation2 + $0xf8] sm:$0xff] %vm272_vm0, %v837_v21  ;;  %v1370_v30 = vpack.c.bf16 %v957_v26, %v957_v26 }
 0x142   : > { %v942_v29 = vadd.f32 %v1707_v2, %v903_v25  ;;  %v1386_v31 = vpack.c.bf16 %v973_v27, %v973_v27 }
 0x143   : > { %v958_v32 = vmax.f32 %v926_v28, 0.0  ;;  %1118 = vst.msk [vmem:[%s1721_s22 + $0x30] sm:$0xf] %vm1105_vm4, %v1370_v30 }
 0x144   : > { %v974_v33 = vmax.f32 %v942_v29, 0.0  ;;  %1134 = vst.msk [vmem:[%s1721_s22 + $0x70] sm:$0xf] %vm1105_vm4, %v1386_v31  ;;  %v888_v36 = vld [vmem:[#allocation2 + $0x70] sm:$0xff] }
 0x145   : > { %v1371_v34 = vpack.c.bf16 %v958_v32, %v958_v32  ;;  %v904_v37 = vld [vmem:[#allocation2 + $0xf0] sm:$0xff]  ;;  %v927_v38 = vadd.f32 %v1707_v2, %v888_v36 }
 0x146   : > { %v1387_v35 = vpack.c.bf16 %v974_v33, %v974_v33  ;;  %v943_v39 = vadd.f32 %v1707_v2, %v904_v37 }
 0x147   : > { %1119 = vst.msk [vmem:[%s1721_s22 + $0x34] sm:$0xf] %vm1105_vm4, %v1371_v34  ;;  %v959_v42 = vmax.f32 %v927_v38, 0.0 }
 0x148   : > { %1135 = vst.msk [vmem:[%s1721_s22 + $0x74] sm:$0xf] %vm1105_vm4, %v1387_v35  ;;  %v889_v40 = vld [vmem:[#allocation2 + $0x78] sm:$0xff]  ;;  %v975_v43 = vmax.f32 %v943_v39, 0.0 }
 0x149   : > { %v905_v41 = vld [vmem:[#allocation2 + $0xf8] sm:$0xff]  ;;  %v928_v44 = vadd.f32 %v1707_v2, %v889_v40  ;;  %v1372_v46 = vpack.c.bf16 %v959_v42, %v959_v42 }
 0x14a   : > { %v944_v45 = vadd.f32 %v1707_v2, %v905_v41  ;;  %v1388_v47 = vpack.c.bf16 %v975_v43, %v975_v43 }
 0x14b   : > { %v960_v48 = vmax.f32 %v928_v44, 0.0  ;;  %1120 = vst.msk [vmem:[%s1721_s22 + $0x38] sm:$0xf] %vm1105_vm4, %v1372_v46 }
 0x14c   : > { %v976_v49 = vmax.f32 %v944_v45, 0.0  ;;  %1136 = vst.msk [vmem:[%s1721_s22 + $0x78] sm:$0xf] %vm1105_vm4, %v1388_v47 }
 0x14d   : > { %v1373_v50 = vpack.c.bf16 %v960_v48, %v960_v48 }
 0x14e   : > { %v1389_v51 = vpack.c.bf16 %v976_v49, %v976_v49 }
 0x14f   : > { %1121 = vst.msk [vmem:[%s1721_s22 + $0x3c] sm:$0xf] %vm1105_vm4, %v1373_v50 }
 0x150   : > { %1137 = vst.msk [vmem:[%s1721_s22 + $0x7c] sm:$0xf] %vm1105_vm4, %v1389_v51 }
 0x151 PF: > { %s13_s14 = sadd.s32 1, %s1517_s14   ;;  %s1852_s12 = smov %s1513_s13 }
 0x152   : > { %p10_p5 = scmp.ge.s32.totalorder %s13_s14, 4   ;;  %s1853_s13 = smov %s1855_s15 }
 0x154   :  { %12 = sbr.rel (!%p10_p5) target bundleno = 2 (0x2), region = 76 }

// kernel: _lambda_.58
= control target key start
LH: loop header
LB: loop body
LE: loop exit
PB: predicated region body
PF: predicated region fallthrough
CT: control target
= control target key end

     0   :  { %vm19_vm0 = vcmask 64512   ;;  %v565_v1 = vmov 0.0   ;;  %vm144_vm1 = vcmask 588800   ;;  %vm169_vm2 = vcmask 1043456   ;;  %s750_s1 = inlined_call_operand.vmem [shape: bf16[72,8], index: 1, kind: input, shape index: {}]   ;;  %s751_s0 = inlined_call_operand.vmem [shape: bf16[128,72], index: 0, kind: input, shape index: {}]   ;;  %s752_s2 = inlined_call_operand.vmem [shape: f32[1,8], index: 2, kind: input, shape index: {}]   ;;  %s753_s3 = inlined_call_operand.vmem [shape: bf16[128,8], index: 3, kind: output, shape index: {}]  }
   0x1   :  { %v552_v0 = vld [vmem:[%s750_s1] sm:$0xff]   ;;  %22 = vst.msk [vmem:[#allocation2 + $0x10] sm:$0xff] %vm19_vm0, %v565_v1  ;;  %20 = vst.msk [vmem:[#allocation2] sm:$0xff] %vm19_vm0, %v565_v1  ;;  %v553_v2 = vld [vmem:[%s750_s1 + $0x8] sm:$0xff]   ;;  %vm425_vm3 = vcmask 60416  }
   0x2   :  { %21 = vst.msk [vmem:[#allocation2 + $0x8] sm:$0xff] %vm19_vm0, %v565_v1  ;;  %23 = vst.msk [vmem:[#allocation2 + $0x18] sm:$0xff] %vm19_vm0, %v565_v1  ;;  %513 = vmatprep.subr.bf16.mxu0 %v552_v0  ;;  %539 = vmatprep.subr.bf16.mxu1 %v552_v0  ;;  %v554_v3 = vld [vmem:[%s750_s1 + $0x10] sm:$0xff]   ;;  %v557_v4 = vld [vmem:[%s751_s0] sm:$0xff]  }
   0x3   :  { %24 = vst.msk [vmem:[#allocation2 + $0x20] sm:$0xff] %vm19_vm0, %v565_v1  ;;  %25 = vst.msk [vmem:[#allocation2 + $0x28] sm:$0xff] %vm19_vm0, %v565_v1  ;;  %514 = vmatpush3.bf16.msra.mxu0 %v552_v0  ;;  %544 = vmatpush3.bf16.msra.mxu1 %v552_v0  ;;  %v558_v5 = vld [vmem:[%s751_s0 + $0x20] sm:$0xff]   ;;  %v555_v6 = vld [vmem:[%s750_s1 + $0x18] sm:$0xff]  }
   0x4   :  { %26 = vst.msk [vmem:[#allocation2 + $0x30] sm:$0xff] %vm19_vm0, %v565_v1  ;;  %27 = vst.msk [vmem:[#allocation2 + $0x38] sm:$0xff] %vm19_vm0, %v565_v1  ;;  %515 = vmatprep.subr.bf16.mxu0 %v553_v2  ;;  %540 = vmatprep.subr.bf16.mxu1 %v553_v2  ;;  %v556_v7 = vld [vmem:[%s750_s1 + $0x20] ss:$0 sps:$4 sm:$0xff]   ;;  %v559_v9 = vld [vmem:[%s751_s0 + $0x8] sm:$0xff]  }
   0x5   :  { %28 = vst.msk [vmem:[#allocation2 + $0x40] sm:$0xff] %vm19_vm0, %v565_v1  ;;  %29 = vst.msk [vmem:[#allocation2 + $0x48] sm:$0xff] %vm19_vm0, %v565_v1  ;;  %523 = vmatprep.mubr.msk.bf16.mxu0 %vm144_vm1, %v557_v4  ;;  %531 = vmatprep.mubr.msk.bf16.mxu1 %vm144_vm1, %v558_v5  ;;  %v171_v8 = vsel %vm169_vm2, %v556_v7, 0  ;;  %v560_v10 = vld [vmem:[%s751_s0 + $0x28] sm:$0xff]   ;;  %v561_v11 = vld [vmem:[%s751_s0 + $0x10] sm:$0xff]  }
   0x6   :  { %30 = vst.msk [vmem:[#allocation2 + $0x50] sm:$0xff] %vm19_vm0, %v565_v1  ;;  %31 = vst.msk [vmem:[#allocation2 + $0x58] sm:$0xff] %vm19_vm0, %v565_v1  ;;  %v562_v12 = vld [vmem:[%s751_s0 + $0x30] sm:$0xff]   ;;  %v563_v13 = vld [vmem:[%s751_s0 + $0x18] sm:$0xff]  }
   0x7   :  { %32 = vst.msk [vmem:[#allocation2 + $0x60] sm:$0xff] %vm19_vm0, %v565_v1  ;;  %33 = vst.msk [vmem:[#allocation2 + $0x68] sm:$0xff] %vm19_vm0, %v565_v1  ;;  %516 = vmatpush3.bf16.msra.mxu0 %v553_v2  ;;  %545 = vmatpush3.bf16.msra.mxu1 %v553_v2  ;;  %v564_v14 = vld [vmem:[%s751_s0 + $0x38] sm:$0xff]   ;;  %v660_v43 = vld [vmem:[%s752_s2] ss:$0 sm:$0xff] }
   0x8   :  { %34 = vst.msk [vmem:[#allocation2 + $0x70] sm:$0xff] %vm19_vm0, %v565_v1  ;;  %35 = vst.msk [vmem:[#allocation2 + $0x78] sm:$0xff] %vm19_vm0, %v565_v1  ;;  %517 = vmatprep.subr.bf16.mxu0 %v554_v3  ;;  %541 = vmatprep.subr.bf16.mxu1 %v554_v3  ;;  %v38_v15 = vld [vmem:[#allocation2 + $0x10] sm:$0xff]  ;;  %v36_v17 = vld [vmem:[#allocation2] sm:$0xff] }
   0x9   :  { %v39_v21 = vld [vmem:[#allocation2 + $0x18] sm:$0xff]  ;;  %v37_v27 = vld [vmem:[#allocation2 + $0x8] sm:$0xff] }
   0xa   :  { %v40_v41 = vld [vmem:[#allocation2 + $0x20] sm:$0xff]  ;;  %v41_v52 = vld [vmem:[#allocation2 + $0x28] sm:$0xff] }
   0xb   :  { %518 = vmatpush3.bf16.msra.mxu0 %v554_v3  ;;  %546 = vmatpush3.bf16.msra.mxu1 %v554_v3  ;;  %v42_v39 = vld [vmem:[#allocation2 + $0x30] sm:$0xff]  ;;  %v43_v46 = vld [vmem:[#allocation2 + $0x38] sm:$0xff] }
   0xc   :  { %519 = vmatprep.subr.bf16.mxu0 %v555_v6  ;;  %542 = vmatprep.subr.bf16.mxu1 %v555_v6  ;;  %v44_v18 = vld [vmem:[#allocation2 + $0x40] sm:$0xff]  ;;  %v45_v28 = vld [vmem:[#allocation2 + $0x48] sm:$0xff] }
   0xd   :  { %v46_v16 = vld [vmem:[#allocation2 + $0x50] sm:$0xff]  ;;  %v47_v22 = vld [vmem:[#allocation2 + $0x58] sm:$0xff] }
   0xe   :  { %v48_v42 = vld [vmem:[#allocation2 + $0x60] sm:$0xff]  ;;  %v49_v53 = vld [vmem:[#allocation2 + $0x68] sm:$0xff] }
   0xf   :  { %520 = vmatpush3.bf16.msra.mxu0 %v555_v6  ;;  %547 = vmatpush3.bf16.msra.mxu1 %v555_v6  ;;  %v50_v40 = vld [vmem:[#allocation2 + $0x70] sm:$0xff]  ;;  %v51_v47 = vld [vmem:[#allocation2 + $0x78] sm:$0xff] }
  0x10   :  { %549 = vmatprep.subr.msk.bf16.mxu0 %vm169_vm2, %v556_v7  ;;  %550 = vmatprep.subr.msk.bf16.mxu1 %vm169_vm2, %v556_v7 }
  0x13   :  { %522 = vmatpush3.bf16.msra.mxu0 %v171_v8  ;;  %548 = vmatpush3.bf16.msra.mxu1 %v171_v8 }
  0x16   :  { %524 = vmatmul.mubr.msk.bf16.vlgmr.msra.gmra.mrb[0].mxu0 %vm144_vm1, %v559_v9  ;;  %532 = vmatmul.mubr.msk.bf16.vlgmr.msra.gmra.mrb[0].mxu1 %vm144_vm1, %v560_v10 }
  0x17   :  { %527 = vmatprep.mubr.msk.bf16.mxu0 %vm144_vm1, %v561_v11  ;;  %535 = vmatprep.mubr.msk.bf16.mxu1 %vm144_vm1, %v562_v12 }
  0x1e   :  { %528 = vmatmul.mubr.msk.bf16.gmra.mrb[4].mxu0 %vm144_vm1, %v563_v13  ;;  %536 = vmatmul.mubr.msk.bf16.gmra.mrb[4].mxu1 %vm144_vm1, %v564_v14 }
  0xe9   :  { %v525_v19 = vpop.f32.mrb[0].mxu0  ;;  %v533_v20 = vpop.f32.mrb[0].mxu1 }
  0xea   :  { %v272_v23 = vadd.f32 %v525_v19, %v38_v15  ;;  %v280_v24 = vadd.f32 %v533_v20, %v46_v16  ;;  %v207_v25 = vpop.f32.mrb[1].mxu0  ;;  %v239_v26 = vpop.f32.mrb[1].mxu1 }
  0xeb   :  { %v270_v29 = vadd.f32 %v207_v25, %v36_v17  ;;  %v278_v30 = vadd.f32 %v239_v26, %v44_v18  ;;  %v526_v31 = vpop.f32.mrb[2].mxu0  ;;  %v534_v32 = vpop.f32.mrb[2].mxu1 }
  0xec   :  { %289 = vst.msk [vmem:[#allocation2 + $0x10] sm:$0xff] %vm19_vm0, %v272_v23  ;;  %297 = vst.msk [vmem:[#allocation2 + $0x50] sm:$0xff] %vm19_vm0, %v280_v24  ;;  %v273_v33 = vadd.f32 %v526_v31, %v39_v21  ;;  %v281_v34 = vadd.f32 %v534_v32, %v47_v22  ;;  %v210_v35 = vpop.f32.mrb[3].mxu0  ;;  %v242_v36 = vpop.f32.mrb[3].mxu1 }
  0xed   :  { %287 = vst.msk [vmem:[#allocation2] sm:$0xff] %vm19_vm0, %v270_v29  ;;  %295 = vst.msk [vmem:[#allocation2 + $0x40] sm:$0xff] %vm19_vm0, %v278_v30  ;;  %v271_v37 = vadd.f32 %v210_v35, %v37_v27  ;;  %v279_v38 = vadd.f32 %v242_v36, %v45_v28 }
  0xee   :  { %290 = vst.msk [vmem:[#allocation2 + $0x18] sm:$0xff] %vm19_vm0, %v273_v33  ;;  %298 = vst.msk [vmem:[#allocation2 + $0x58] sm:$0xff] %vm19_vm0, %v281_v34 }
  0xef   :  { %288 = vst.msk [vmem:[#allocation2 + $0x8] sm:$0xff] %vm19_vm0, %v271_v37  ;;  %296 = vst.msk [vmem:[#allocation2 + $0x48] sm:$0xff] %vm19_vm0, %v279_v38 }
  0xf1   :  { %v529_v44 = vpop.f32.mrb[4].mxu0  ;;  %v537_v45 = vpop.f32.mrb[4].mxu1 }
  0xf2   :  { %v276_v48 = vadd.f32 %v529_v44, %v42_v39  ;;  %v284_v49 = vadd.f32 %v537_v45, %v50_v40  ;;  %v223_v50 = vpop.f32.mrb[5].mxu0  ;;  %v255_v51 = vpop.f32.mrb[5].mxu1 }
  0xf3   :  { %v308_v54 = vld [vmem:[#allocation2 + $0x10] sm:$0xff]  ;;  %v274_v56 = vadd.f32 %v223_v50, %v40_v41  ;;  %v282_v57 = vadd.f32 %v255_v51, %v48_v42  ;;  %v530_v58 = vpop.f32.mrb[6].mxu0  ;;  %v538_v59 = vpop.f32.mrb[6].mxu1 }
  0xf4   :  { %v316_v55 = vld [vmem:[#allocation2 + $0x50] sm:$0xff]  ;;  %v331_v60 = vadd.f32 %v660_v43, %v308_v54  ;;  %v306_v62 = vld [vmem:[#allocation2] sm:$0xff]  ;;  %293 = vst.msk [vmem:[#allocation2 + $0x30] sm:$0xff] %vm19_vm0, %v276_v48  ;;  %301 = vst.msk [vmem:[#allocation2 + $0x70] sm:$0xff] %vm19_vm0, %v284_v49  ;;  %v277_v0 = vadd.f32 %v530_v58, %v43_v46  ;;  %v285_v1 = vadd.f32 %v538_v59, %v51_v47  ;;  %v226_v2 = vpop.f32.mrb[7].mxu0  ;;  %v258_v3 = vpop.f32.mrb[7].mxu1 }
  0xf5   :  { %v339_v61 = vadd.f32 %v660_v43, %v316_v55  ;;  %v314_v63 = vld [vmem:[#allocation2 + $0x40] sm:$0xff]  ;;  %v329_v4 = vadd.f32 %v660_v43, %v306_v62  ;;  %v309_v6 = vld [vmem:[#allocation2 + $0x18] sm:$0xff]  ;;  %291 = vst.msk [vmem:[#allocation2 + $0x20] sm:$0xff] %vm19_vm0, %v274_v56  ;;  %299 = vst.msk [vmem:[#allocation2 + $0x60] sm:$0xff] %vm19_vm0, %v282_v57  ;;  %v275_v8 = vadd.f32 %v226_v2, %v41_v52 }
  0xf6   :  { %v337_v5 = vadd.f32 %v660_v43, %v314_v63  ;;  %v317_v7 = vld [vmem:[#allocation2 + $0x58] sm:$0xff]  ;;  %v283_v9 = vadd.f32 %v258_v3, %v49_v53  ;;  %v347_v10 = vmax.f32 %v331_v60, 0.0  ;;  %v332_v12 = vadd.f32 %v660_v43, %v309_v6  ;;  %v307_v14 = vld [vmem:[#allocation2 + $0x8] sm:$0xff]  ;;  %294 = vst.msk [vmem:[#allocation2 + $0x38] sm:$0xff] %vm19_vm0, %v277_v0  ;;  %302 = vst.msk [vmem:[#allocation2 + $0x78] sm:$0xff] %vm19_vm0, %v285_v1 }
  0xf7   :  { %v355_v11 = vmax.f32 %v339_v61, 0.0  ;;  %v340_v13 = vadd.f32 %v660_v43, %v317_v7  ;;  %v315_v15 = vld [vmem:[#allocation2 + $0x48] sm:$0xff]  ;;  %v345_v16 = vmax.f32 %v329_v4, 0.0  ;;  %v330_v18 = vadd.f32 %v660_v43, %v307_v14  ;;  %292 = vst.msk [vmem:[#allocation2 + $0x28] sm:$0xff] %vm19_vm0, %v275_v8 }
  0xf8   :  { %v353_v17 = vmax.f32 %v337_v5, 0.0  ;;  %v338_v19 = vadd.f32 %v660_v43, %v315_v15  ;;  %300 = vst.msk [vmem:[#allocation2 + $0x68] sm:$0xff] %vm19_vm0, %v283_v9  ;;  %v486_v20 = vpack.c.bf16 %v347_v10, %v347_v10  ;;  %v348_v22 = vmax.f32 %v332_v12, 0.0 }
  0xf9   :  { %v494_v21 = vpack.c.bf16 %v355_v11, %v355_v11  ;;  %v356_v23 = vmax.f32 %v340_v13, 0.0  ;;  %v484_v24 = vpack.c.bf16 %v345_v16, %v345_v16  ;;  %v346_v26 = vmax.f32 %v330_v18, 0.0 }
  0xfa   :  { %v492_v25 = vpack.c.bf16 %v353_v17, %v353_v17  ;;  %v354_v27 = vmax.f32 %v338_v19, 0.0  ;;  %428 = vst.msk [vmem:[%s753_s3 + $0x8] sm:$0xf] %vm425_vm3, %v486_v20  ;;  %v487_v28 = vpack.c.bf16 %v348_v22, %v348_v22 }
  0xfb   :  { %436 = vst.msk [vmem:[%s753_s3 + $0x28] sm:$0xf] %vm425_vm3, %v494_v21  ;;  %v495_v29 = vpack.c.bf16 %v356_v23, %v356_v23  ;;  %426 = vst.msk [vmem:[%s753_s3] sm:$0xf] %vm425_vm3, %v484_v24  ;;  %v485_v30 = vpack.c.bf16 %v346_v26, %v346_v26  ;;  %v312_v32 = vld [vmem:[#allocation2 + $0x30] sm:$0xff] }
  0xfc   :  { %434 = vst.msk [vmem:[%s753_s3 + $0x20] sm:$0xf] %vm425_vm3, %v492_v25  ;;  %v493_v31 = vpack.c.bf16 %v354_v27, %v354_v27  ;;  %v320_v33 = vld [vmem:[#allocation2 + $0x70] sm:$0xff]  ;;  %429 = vst.msk [vmem:[%s753_s3 + $0xc] sm:$0xf] %vm425_vm3, %v487_v28  ;;  %v335_v34 = vadd.f32 %v660_v43, %v312_v32  ;;  %v310_v36 = vld [vmem:[#allocation2 + $0x20] sm:$0xff] }
  0xfd   :  { %437 = vst.msk [vmem:[%s753_s3 + $0x2c] sm:$0xf] %vm425_vm3, %v495_v29  ;;  %v343_v35 = vadd.f32 %v660_v43, %v320_v33  ;;  %v318_v37 = vld [vmem:[#allocation2 + $0x60] sm:$0xff]  ;;  %427 = vst.msk [vmem:[%s753_s3 + $0x4] sm:$0xf] %vm425_vm3, %v485_v30  ;;  %v333_v38 = vadd.f32 %v660_v43, %v310_v36  ;;  %v313_v40 = vld [vmem:[#allocation2 + $0x38] sm:$0xff] }
  0xfe   :  { %435 = vst.msk [vmem:[%s753_s3 + $0x24] sm:$0xf] %vm425_vm3, %v493_v31  ;;  %v341_v39 = vadd.f32 %v660_v43, %v318_v37  ;;  %v321_v41 = vld [vmem:[#allocation2 + $0x78] sm:$0xff]  ;;  %v351_v42 = vmax.f32 %v335_v34, 0.0  ;;  %v336_v45 = vadd.f32 %v660_v43, %v313_v40  ;;  %v311_v47 = vld [vmem:[#allocation2 + $0x28] sm:$0xff] }
  0xff   :  { %v359_v44 = vmax.f32 %v343_v35, 0.0  ;;  %v344_v46 = vadd.f32 %v660_v43, %v321_v41  ;;  %v319_v48 = vld [vmem:[#allocation2 + $0x68] sm:$0xff]  ;;  %v349_v49 = vmax.f32 %v333_v38, 0.0  ;;  %v334_v51 = vadd.f32 %v660_v43, %v311_v47 }
 0x100   :  { %v357_v50 = vmax.f32 %v341_v39, 0.0  ;;  %v342_v52 = vadd.f32 %v660_v43, %v319_v48  ;;  %v490_v53 = vpack.c.bf16 %v351_v42, %v351_v42  ;;  %v352_v55 = vmax.f32 %v336_v45, 0.0 }
 0x101   :  { %v498_v54 = vpack.c.bf16 %v359_v44, %v359_v44  ;;  %v360_v56 = vmax.f32 %v344_v46, 0.0  ;;  %v488_v57 = vpack.c.bf16 %v349_v49, %v349_v49  ;;  %v350_v59 = vmax.f32 %v334_v51, 0.0 }
 0x102   :  { %v496_v58 = vpack.c.bf16 %v357_v50, %v357_v50  ;;  %v358_v60 = vmax.f32 %v342_v52, 0.0  ;;  %432 = vst.msk [vmem:[%s753_s3 + $0x18] sm:$0xf] %vm425_vm3, %v490_v53  ;;  %v491_v61 = vpack.c.bf16 %v352_v55, %v352_v55 }
 0x103   :  { %440 = vst.msk [vmem:[%s753_s3 + $0x38] sm:$0xf] %vm425_vm3, %v498_v54  ;;  %v499_v43 = vpack.c.bf16 %v360_v56, %v360_v56  ;;  %430 = vst.msk [vmem:[%s753_s3 + $0x10] sm:$0xf] %vm425_vm3, %v488_v57  ;;  %v489_v62 = vpack.c.bf16 %v350_v59, %v350_v59 }
 0x104   :  { %438 = vst.msk [vmem:[%s753_s3 + $0x30] sm:$0xf] %vm425_vm3, %v496_v58  ;;  %v497_v63 = vpack.c.bf16 %v358_v60, %v358_v60  ;;  %433 = vst.msk [vmem:[%s753_s3 + $0x1c] sm:$0xf] %vm425_vm3, %v491_v61 }
 0x105   :  { %441 = vst.msk [vmem:[%s753_s3 + $0x3c] sm:$0xf] %vm425_vm3, %v499_v43  ;;  %431 = vst.msk [vmem:[%s753_s3 + $0x14] sm:$0xf] %vm425_vm3, %v489_v62 }
 0x106   :  { %439 = vst.msk [vmem:[%s753_s3 + $0x34] sm:$0xf] %vm425_vm3, %v497_v63 }

// kernel: _lambda_.60
= control target key start
LH: loop header
LB: loop body
LE: loop exit
PB: predicated region body
PF: predicated region fallthrough
CT: control target
= control target key end

     0   :  { %vm137_vm0 = vcmask 1043456   ;;  %vm112_vm1 = vcmask 64512   ;;  %vm22_vm2 = vcmask 261120   ;;  %v590_v1 = vmov 0.0   ;;  %s857_s1 = inlined_call_operand.vmem [shape: bf16[8,32], index: 1, kind: input, shape index: {}]   ;;  %s858_s0 = inlined_call_operand.vmem [shape: bf16[128,8], index: 0, kind: input, shape index: {}]   ;;  %s859_s3 = inlined_call_operand.vmem [shape: bf16[128,32], index: 3, kind: input, shape index: {}]   ;;  %s860_s2 = inlined_call_operand.vmem [shape: f32[1,32], index: 2, kind: input, shape index: {}]   ;;  %s861_s4 = inlined_call_operand.vmem [shape: bf16[128,32], index: 4, kind: output, shape index: {}]  }
   0x1   :  { %v71_v0 = vld [vmem:[%s857_s1] sm:$0xf]  ;;  %25 = vst.msk [vmem:[#allocation2 + $0x10] sm:$0xff] %vm22_vm2, %v590_v1  ;;  %23 = vst.msk [vmem:[#allocation2] sm:$0xff] %vm22_vm2, %v590_v1  ;;  %v584_v5 = vld [vmem:[%s858_s0 + $0x8] sm:$0xff]   ;;  %vm441_vm3 = vcmask 257024  }
   0x2   :  { %24 = vst.msk [vmem:[#allocation2 + $0x8] sm:$0xff] %vm22_vm2, %v590_v1  ;;  %26 = vst.msk [vmem:[#allocation2 + $0x18] sm:$0xff] %vm22_vm2, %v590_v1  ;;  %579 = vmatprep.subr.msk.bf16.mxu0 %vm137_vm0, %v71_v0  ;;  %580 = vmatprep.subr.msk.bf16.mxu1 %vm137_vm0, %v71_v0  ;;  %v139_v2 = vsel %vm137_vm0, %v71_v0, 0  ;;  %v582_v3 = vld [vmem:[%s858_s0] sm:$0xff]   ;;  %v585_v6 = vld [vmem:[%s858_s0 + $0x28] sm:$0xff]  }
   0x3   :  { %27 = vst.msk [vmem:[#allocation2 + $0x20] sm:$0xff] %vm22_vm2, %v590_v1  ;;  %28 = vst.msk [vmem:[#allocation2 + $0x28] sm:$0xff] %vm22_vm2, %v590_v1  ;;  %560 = vmatpush3.bf16.msra.mxu0 %v139_v2  ;;  %578 = vmatpush3.bf16.msra.mxu1 %v139_v2  ;;  %v583_v4 = vld [vmem:[%s858_s0 + $0x20] sm:$0xff]   ;;  %v586_v7 = vld [vmem:[%s858_s0 + $0x10] sm:$0xff]  }
   0x4   :  { %29 = vst.msk [vmem:[#allocation2 + $0x30] sm:$0xff] %vm22_vm2, %v590_v1  ;;  %30 = vst.msk [vmem:[#allocation2 + $0x38] sm:$0xff] %vm22_vm2, %v590_v1  ;;  %561 = vmatprep.mubr.msk.bf16.mxu0 %vm112_vm1, %v582_v3  ;;  %569 = vmatprep.mubr.msk.bf16.mxu1 %vm112_vm1, %v583_v4  ;;  %v587_v8 = vld [vmem:[%s858_s0 + $0x30] sm:$0xff]   ;;  %v588_v9 = vld [vmem:[%s858_s0 + $0x18] sm:$0xff]  }
   0x5   :  { %31 = vst.msk [vmem:[#allocation2 + $0x40] sm:$0xff] %vm22_vm2, %v590_v1  ;;  %32 = vst.msk [vmem:[#allocation2 + $0x48] sm:$0xff] %vm22_vm2, %v590_v1  ;;  %v589_v10 = vld [vmem:[%s858_s0 + $0x38] sm:$0xff]   ;;  %v674_v27 = vld [vmem:[%s859_s3 + $0x8] sm:$0xff]  }
   0x6   :  { %33 = vst.msk [vmem:[#allocation2 + $0x50] sm:$0xff] %vm22_vm2, %v590_v1  ;;  %34 = vst.msk [vmem:[#allocation2 + $0x58] sm:$0xff] %vm22_vm2, %v590_v1  ;;  %562 = vmatmul.mubr.msk.bf16.vlgmr.msra.gmra.mrb[0].mxu0 %vm112_vm1, %v584_v5  ;;  %570 = vmatmul.mubr.msk.bf16.vlgmr.msra.gmra.mrb[0].mxu1 %vm112_vm1, %v585_v6  ;;  %v679_v28 = vld [vmem:[%s859_s3 + $0x28] sm:$0xff]   ;;  %v684_v29 = vld [vmem:[%s859_s3] sm:$0xff]   ;;  %v517_v41 = vunpack.c.l.bf16 %v674_v27  ;;  %v518_v48 = vunpack.c.h.bf16 %v674_v27 }
   0x7   :  { %35 = vst.msk [vmem:[#allocation2 + $0x60] sm:$0xff] %vm22_vm2, %v590_v1  ;;  %36 = vst.msk [vmem:[#allocation2 + $0x68] sm:$0xff] %vm22_vm2, %v590_v1  ;;  %565 = vmatprep.mubr.msk.bf16.mxu0 %vm112_vm1, %v586_v7  ;;  %573 = vmatprep.mubr.msk.bf16.mxu1 %vm112_vm1, %v587_v8  ;;  %v691_v34 = vld [vmem:[%s859_s3 + $0x20] sm:$0xff]   ;;  %v698_v39 = vld [vmem:[%s859_s3 + $0x18] sm:$0xff]   ;;  %v533_v42 = vunpack.c.l.bf16 %v679_v28  ;;  %v513_v43 = vunpack.c.l.bf16 %v684_v29  ;;  %v534_v49 = vunpack.c.h.bf16 %v679_v28  ;;  %v514_v50 = vunpack.c.h.bf16 %v684_v29 }
   0x8   :  { %37 = vst.msk [vmem:[#allocation2 + $0x70] sm:$0xff] %vm22_vm2, %v590_v1  ;;  %38 = vst.msk [vmem:[#allocation2 + $0x78] sm:$0xff] %vm22_vm2, %v590_v1  ;;  %v41_v11 = vld [vmem:[#allocation2 + $0x10] sm:$0xff]  ;;  %v39_v13 = vld [vmem:[#allocation2] sm:$0xff]  ;;  %v529_v47 = vunpack.c.l.bf16 %v691_v34  ;;  %v530_v54 = vunpack.c.h.bf16 %v691_v34  ;;  %v525_v56 = vunpack.c.l.bf16 %v698_v39  ;;  %v526_v1 = vunpack.c.h.bf16 %v698_v39 }
   0x9   :  { %v42_v16 = vld [vmem:[#allocation2 + $0x18] sm:$0xff]  ;;  %v40_v21 = vld [vmem:[#allocation2 + $0x8] sm:$0xff]  ;;  %v713_v45 = vld [vmem:[%s859_s3 + $0x10] sm:$0xff]  }
   0xa   :  { %v703_v40 = vld [vmem:[%s859_s3 + $0x38] sm:$0xff]   ;;  %v718_v46 = vld [vmem:[%s859_s3 + $0x30] sm:$0xff]   ;;  %v43_v52 = vld [vmem:[#allocation2 + $0x20] sm:$0xff]  ;;  %v521_v63 = vunpack.c.l.bf16 %v713_v45 }
   0xb   :  { %v45_v44 = vld [vmem:[#allocation2 + $0x30] sm:$0xff]  ;;  %v728_v53 = vld [vmem:[%s860_s2] ss:$0 sm:$0xff]  ;;  %v541_v57 = vunpack.c.l.bf16 %v703_v40  ;;  %v46_v59 = vld [vmem:[#allocation2 + $0x38] sm:$0xff]  ;;  %v537_v0 = vunpack.c.l.bf16 %v718_v46 }
   0xc   :  { %v47_v15 = vld [vmem:[#allocation2 + $0x40] sm:$0xff]  ;;  %v48_v26 = vld [vmem:[#allocation2 + $0x48] sm:$0xff] }
   0xd   :  { %v49_v12 = vld [vmem:[#allocation2 + $0x50] sm:$0xff]  ;;  %v50_v20 = vld [vmem:[#allocation2 + $0x58] sm:$0xff]  ;;  %v44_v3 = vld [vmem:[#allocation2 + $0x28] sm:$0xff] }
   0xe   :  { %566 = vmatmul.mubr.msk.bf16.gmra.mrb[4].mxu0 %vm112_vm1, %v588_v9  ;;  %574 = vmatmul.mubr.msk.bf16.gmra.mrb[4].mxu1 %vm112_vm1, %v589_v10  ;;  %v51_v58 = vld [vmem:[#allocation2 + $0x60] sm:$0xff]  ;;  %v542_v9 = vunpack.c.h.bf16 %v703_v40  ;;  %v522_v10 = vunpack.c.h.bf16 %v713_v45 }
   0xf   :  { %v53_v51 = vld [vmem:[#allocation2 + $0x70] sm:$0xff]  ;;  %v54_v2 = vld [vmem:[#allocation2 + $0x78] sm:$0xff] }
  0xd9   :  { %v563_v14 = vpop.f32.mrb[0].mxu0  ;;  %v571_v18 = vpop.f32.mrb[0].mxu1 }
  0xda   :  { %v240_v17 = vadd.f32 %v563_v14, %v41_v11  ;;  %v175_v19 = vpop.f32.mrb[1].mxu0  ;;  %v248_v22 = vadd.f32 %v571_v18, %v49_v12  ;;  %v207_v24 = vpop.f32.mrb[1].mxu1  ;;  %v52_v11 = vld [vmem:[#allocation2 + $0x68] sm:$0xff] }
  0xdb   :  { %v238_v23 = vadd.f32 %v175_v19, %v39_v13  ;;  %v564_v25 = vpop.f32.mrb[2].mxu0  ;;  %v246_v30 = vadd.f32 %v207_v24, %v47_v15  ;;  %v572_v32 = vpop.f32.mrb[2].mxu1  ;;  %v538_v19 = vunpack.c.h.bf16 %v718_v46 }
  0xdc   :  { %257 = vst.msk [vmem:[#allocation2 + $0x10] sm:$0xff] %vm22_vm2, %v240_v17  ;;  %v241_v31 = vadd.f32 %v564_v25, %v42_v16  ;;  %v178_v33 = vpop.f32.mrb[3].mxu0  ;;  %265 = vst.msk [vmem:[#allocation2 + $0x50] sm:$0xff] %vm22_vm2, %v248_v22  ;;  %v249_v35 = vadd.f32 %v572_v32, %v50_v20  ;;  %v210_v37 = vpop.f32.mrb[3].mxu1 }
  0xdd   :  { %255 = vst.msk [vmem:[#allocation2] sm:$0xff] %vm22_vm2, %v238_v23  ;;  %v239_v36 = vadd.f32 %v178_v33, %v40_v21  ;;  %263 = vst.msk [vmem:[#allocation2 + $0x40] sm:$0xff] %vm22_vm2, %v246_v30  ;;  %v247_v38 = vadd.f32 %v210_v37, %v48_v26 }
  0xde   :  { %258 = vst.msk [vmem:[#allocation2 + $0x18] sm:$0xff] %vm22_vm2, %v241_v31  ;;  %266 = vst.msk [vmem:[#allocation2 + $0x58] sm:$0xff] %vm22_vm2, %v249_v35 }
  0xdf   :  { %256 = vst.msk [vmem:[#allocation2 + $0x8] sm:$0xff] %vm22_vm2, %v239_v36  ;;  %264 = vst.msk [vmem:[#allocation2 + $0x48] sm:$0xff] %vm22_vm2, %v247_v38 }
  0xe1   :  { %v567_v55 = vpop.f32.mrb[4].mxu0  ;;  %v575_v61 = vpop.f32.mrb[4].mxu1 }
  0xe2   :  { %v244_v60 = vadd.f32 %v567_v55, %v45_v44  ;;  %v191_v62 = vpop.f32.mrb[5].mxu0  ;;  %v252_v5 = vadd.f32 %v575_v61, %v53_v51  ;;  %v223_v7 = vpop.f32.mrb[5].mxu1 }
  0xe3   :  { %v276_v4 = vld [vmem:[#allocation2 + $0x10] sm:$0xff]  ;;  %v242_v6 = vadd.f32 %v191_v62, %v43_v52  ;;  %v568_v8 = vpop.f32.mrb[6].mxu0  ;;  %v250_v15 = vadd.f32 %v223_v7, %v51_v58  ;;  %v576_v17 = vpop.f32.mrb[6].mxu1 }
  0xe4   :  { %v299_v12 = vadd.f32 %v728_v53, %v276_v4  ;;  %v284_v13 = vld [vmem:[#allocation2 + $0x50] sm:$0xff]  ;;  %v274_v14 = vld [vmem:[#allocation2] sm:$0xff]  ;;  %261 = vst.msk [vmem:[#allocation2 + $0x30] sm:$0xff] %vm22_vm2, %v244_v60  ;;  %v245_v16 = vadd.f32 %v568_v8, %v46_v59  ;;  %v194_v18 = vpop.f32.mrb[7].mxu0  ;;  %269 = vst.msk [vmem:[#allocation2 + $0x70] sm:$0xff] %vm22_vm2, %v252_v5  ;;  %v253_v24 = vadd.f32 %v576_v17, %v54_v2  ;;  %v226_v26 = vpop.f32.mrb[7].mxu1 }
  0xe5   :  { %v307_v20 = vadd.f32 %v728_v53, %v284_v13  ;;  %v297_v21 = vadd.f32 %v728_v53, %v274_v14  ;;  %v282_v22 = vld [vmem:[#allocation2 + $0x40] sm:$0xff]  ;;  %v277_v23 = vld [vmem:[#allocation2 + $0x18] sm:$0xff]  ;;  %259 = vst.msk [vmem:[#allocation2 + $0x20] sm:$0xff] %vm22_vm2, %v242_v6  ;;  %v243_v25 = vadd.f32 %v194_v18, %v44_v3  ;;  %267 = vst.msk [vmem:[#allocation2 + $0x60] sm:$0xff] %vm22_vm2, %v250_v15 }
  0xe6   :  { %v347_v30 = vadd.f32 %v517_v41, %v299_v12  ;;  %v305_v31 = vadd.f32 %v728_v53, %v282_v22  ;;  %v300_v32 = vadd.f32 %v728_v53, %v277_v23  ;;  %v285_v33 = vld [vmem:[#allocation2 + $0x58] sm:$0xff]  ;;  %v275_v35 = vld [vmem:[#allocation2 + $0x8] sm:$0xff]  ;;  %262 = vst.msk [vmem:[#allocation2 + $0x38] sm:$0xff] %vm22_vm2, %v245_v16  ;;  %v251_v36 = vadd.f32 %v226_v26, %v52_v11 }
  0xe7   :  { %v355_v37 = vadd.f32 %v533_v42, %v307_v20  ;;  %v345_v38 = vadd.f32 %v513_v43, %v297_v21  ;;  %v308_v44 = vadd.f32 %v728_v53, %v285_v33  ;;  %v298_v41 = vadd.f32 %v728_v53, %v275_v35  ;;  %v283_v51 = vld [vmem:[#allocation2 + $0x48] sm:$0xff]  ;;  %270 = vst.msk [vmem:[#allocation2 + $0x78] sm:$0xff] %vm22_vm2, %v253_v24 }
  0xe8   :  { %260 = vst.msk [vmem:[#allocation2 + $0x28] sm:$0xff] %vm22_vm2, %v243_v25  ;;  %v363_v52 = vmax.f32 %v347_v30, 0.0  ;;  %v353_v55 = vadd.f32 %v529_v47, %v305_v31  ;;  %v348_v58 = vadd.f32 %v518_v48, %v300_v32  ;;  %v306_v42 = vadd.f32 %v728_v53, %v283_v51  ;;  %268 = vst.msk [vmem:[#allocation2 + $0x68] sm:$0xff] %vm22_vm2, %v251_v36 }
  0xe9   :  { %v371_v43 = vmax.f32 %v355_v37, 0.0  ;;  %v361_v59 = vmax.f32 %v345_v38, 0.0  ;;  %v356_v60 = vadd.f32 %v534_v49, %v308_v44  ;;  %v346_v61 = vadd.f32 %v514_v50, %v298_v41 }
  0xea   :  { %v497_v62 = vpack.c.bf16 %v363_v52, %v363_v52  ;;  %v369_v2 = vmax.f32 %v353_v55, 0.0  ;;  %v364_v3 = vmax.f32 %v348_v58, 0.0  ;;  %v354_v47 = vadd.f32 %v530_v54, %v306_v42 }
  0xeb   :  { %v505_v27 = vpack.c.bf16 %v371_v43, %v371_v43  ;;  %v495_v48 = vpack.c.bf16 %v361_v59, %v361_v59  ;;  %v372_v4 = vmax.f32 %v356_v60, 0.0  ;;  %v362_v5 = vmax.f32 %v346_v61, 0.0  ;;  %v280_v6 = vld [vmem:[#allocation2 + $0x30] sm:$0xff] }
  0xec   :  { %444 = vst.msk [vmem:[%s861_s4 + $0x8] sm:$0xf] %vm441_vm3, %v497_v62  ;;  %v503_v28 = vpack.c.bf16 %v369_v2, %v369_v2  ;;  %v498_v49 = vpack.c.bf16 %v364_v3, %v364_v3  ;;  %v370_v29 = vmax.f32 %v354_v47, 0.0  ;;  %v303_v50 = vadd.f32 %v728_v53, %v280_v6  ;;  %v288_v7 = vld [vmem:[#allocation2 + $0x70] sm:$0xff]  ;;  %v278_v8 = vld [vmem:[#allocation2 + $0x20] sm:$0xff] }
  0xed   :  { %452 = vst.msk [vmem:[%s861_s4 + $0x28] sm:$0xf] %vm441_vm3, %v505_v27  ;;  %442 = vst.msk [vmem:[%s861_s4] sm:$0xf] %vm441_vm3, %v495_v48  ;;  %v506_v34 = vpack.c.bf16 %v372_v4, %v372_v4  ;;  %v496_v54 = vpack.c.bf16 %v362_v5, %v362_v5  ;;  %v311_v11 = vadd.f32 %v728_v53, %v288_v7  ;;  %v286_v13 = vld [vmem:[#allocation2 + $0x60] sm:$0xff]  ;;  %v281_v14 = vld [vmem:[#allocation2 + $0x38] sm:$0xff] }
  0xee   :  { %v301_v12 = vadd.f32 %v728_v53, %v278_v8  ;;  %450 = vst.msk [vmem:[%s861_s4 + $0x20] sm:$0xf] %vm441_vm3, %v503_v28  ;;  %445 = vst.msk [vmem:[%s861_s4 + $0xc] sm:$0xf] %vm441_vm3, %v498_v49  ;;  %v504_v15 = vpack.c.bf16 %v370_v29, %v370_v29  ;;  %v351_v16 = vadd.f32 %v525_v56, %v303_v50  ;;  %v289_v20 = vld [vmem:[#allocation2 + $0x78] sm:$0xff] }
  0xef   :  { %v309_v17 = vadd.f32 %v728_v53, %v286_v13  ;;  %v304_v18 = vadd.f32 %v728_v53, %v281_v14  ;;  %v279_v21 = vld [vmem:[#allocation2 + $0x28] sm:$0xff]  ;;  %453 = vst.msk [vmem:[%s861_s4 + $0x2c] sm:$0xf] %vm441_vm3, %v506_v34  ;;  %443 = vst.msk [vmem:[%s861_s4 + $0x4] sm:$0xf] %vm441_vm3, %v496_v54  ;;  %v359_v22 = vadd.f32 %v541_v57, %v311_v11 }
  0xf0   :  { %v349_v56 = vadd.f32 %v521_v63, %v301_v12  ;;  %v312_v23 = vadd.f32 %v728_v53, %v289_v20  ;;  %v302_v24 = vadd.f32 %v728_v53, %v279_v21  ;;  %v287_v25 = vld [vmem:[#allocation2 + $0x68] sm:$0xff]  ;;  %451 = vst.msk [vmem:[%s861_s4 + $0x24] sm:$0xf] %vm441_vm3, %v504_v15  ;;  %v367_v26 = vmax.f32 %v351_v16, 0.0 }
  0xf1   :  { %v357_v30 = vadd.f32 %v537_v0, %v309_v17  ;;  %v352_v57 = vadd.f32 %v526_v1, %v304_v18  ;;  %v310_v31 = vadd.f32 %v728_v53, %v287_v25  ;;  %v375_v63 = vmax.f32 %v359_v22, 0.0 }
  0xf2   :  { %v365_v32 = vmax.f32 %v349_v56, 0.0  ;;  %v360_v33 = vadd.f32 %v542_v9, %v312_v23  ;;  %v350_v35 = vadd.f32 %v522_v10, %v302_v24  ;;  %v501_v36 = vpack.c.bf16 %v367_v26, %v367_v26 }
  0xf3   :  { %v373_v37 = vmax.f32 %v357_v30, 0.0  ;;  %v368_v38 = vmax.f32 %v352_v57, 0.0  ;;  %v358_v44 = vadd.f32 %v538_v19, %v310_v31  ;;  %v509_v0 = vpack.c.bf16 %v375_v63, %v375_v63 }
  0xf4   :  { %v499_v41 = vpack.c.bf16 %v365_v32, %v365_v32  ;;  %v376_v39 = vmax.f32 %v360_v33, 0.0  ;;  %v366_v1 = vmax.f32 %v350_v35, 0.0  ;;  %448 = vst.msk [vmem:[%s861_s4 + $0x18] sm:$0xf] %vm441_vm3, %v501_v36 }
  0xf5   :  { %v507_v40 = vpack.c.bf16 %v373_v37, %v373_v37  ;;  %v502_v53 = vpack.c.bf16 %v368_v38, %v368_v38  ;;  %v374_v9 = vmax.f32 %v358_v44, 0.0  ;;  %456 = vst.msk [vmem:[%s861_s4 + $0x38] sm:$0xf] %vm441_vm3, %v509_v0 }
  0xf6   :  { %446 = vst.msk [vmem:[%s861_s4 + $0x10] sm:$0xf] %vm441_vm3, %v499_v41  ;;  %v510_v45 = vpack.c.bf16 %v376_v39, %v376_v39  ;;  %v500_v46 = vpack.c.bf16 %v366_v1, %v366_v1 }
  0xf7   :  { %454 = vst.msk [vmem:[%s861_s4 + $0x30] sm:$0xf] %vm441_vm3, %v507_v40  ;;  %449 = vst.msk [vmem:[%s861_s4 + $0x1c] sm:$0xf] %vm441_vm3, %v502_v53  ;;  %v508_v10 = vpack.c.bf16 %v374_v9, %v374_v9 }
  0xf8   :  { %457 = vst.msk [vmem:[%s861_s4 + $0x3c] sm:$0xf] %vm441_vm3, %v510_v45  ;;  %447 = vst.msk [vmem:[%s861_s4 + $0x14] sm:$0xf] %vm441_vm3, %v500_v46 }
  0xf9   :  { %455 = vst.msk [vmem:[%s861_s4 + $0x34] sm:$0xf] %vm441_vm3, %v508_v10 }

// kernel: _lambda_.61
= control target key start
LH: loop header
LB: loop body
LE: loop exit
PB: predicated region body
PF: predicated region fallthrough
CT: control target
= control target key end

     0   :  { %vm19_vm0 = vcmask 64512   ;;  %v518_v1 = vmov 0.0   ;;  %vm124_vm1 = vcmask 261120   ;;  %vm401_vm2 = vcmask 60416   ;;  %s694_s1 = inlined_call_operand.vmem [shape: bf16[32,8], index: 1, kind: input, shape index: {}]   ;;  %s695_s0 = inlined_call_operand.vmem [shape: bf16[128,32], index: 0, kind: input, shape index: {}]   ;;  %s696_s2 = inlined_call_operand.vmem [shape: f32[1,8], index: 2, kind: input, shape index: {}]   ;;  %s697_s3 = inlined_call_operand.vmem [shape: bf16[128,8], index: 3, kind: output, shape index: {}]  }
   0x1   :  { %v508_v0 = vld [vmem:[%s694_s1] sm:$0xff]   ;;  %22 = vst.msk [vmem:[#allocation2 + $0x10] sm:$0xff] %vm19_vm0, %v518_v1  ;;  %20 = vst.msk [vmem:[#allocation2] sm:$0xff] %vm19_vm0, %v518_v1  ;;  %v509_v2 = vld [vmem:[%s694_s1 + $0x8] sm:$0xff]  }
   0x2   :  { %21 = vst.msk [vmem:[#allocation2 + $0x8] sm:$0xff] %vm19_vm0, %v518_v1  ;;  %23 = vst.msk [vmem:[#allocation2 + $0x18] sm:$0xff] %vm19_vm0, %v518_v1  ;;  %483 = vmatprep.subr.bf16.mxu0 %v508_v0  ;;  %503 = vmatprep.subr.bf16.mxu1 %v508_v0  ;;  %v510_v3 = vld [vmem:[%s695_s0] sm:$0xff]   ;;  %v512_v5 = vld [vmem:[%s695_s0 + $0x8] sm:$0xff]  }
   0x3   :  { %24 = vst.msk [vmem:[#allocation2 + $0x20] sm:$0xff] %vm19_vm0, %v518_v1  ;;  %25 = vst.msk [vmem:[#allocation2 + $0x28] sm:$0xff] %vm19_vm0, %v518_v1  ;;  %484 = vmatpush3.bf16.msra.mxu0 %v508_v0  ;;  %505 = vmatpush3.bf16.msra.mxu1 %v508_v0  ;;  %v511_v4 = vld [vmem:[%s695_s0 + $0x20] sm:$0xff]   ;;  %v513_v6 = vld [vmem:[%s695_s0 + $0x28] sm:$0xff]  }
   0x4   :  { %26 = vst.msk [vmem:[#allocation2 + $0x30] sm:$0xff] %vm19_vm0, %v518_v1  ;;  %27 = vst.msk [vmem:[#allocation2 + $0x38] sm:$0xff] %vm19_vm0, %v518_v1  ;;  %485 = vmatprep.subr.bf16.mxu0 %v509_v2  ;;  %504 = vmatprep.subr.bf16.mxu1 %v509_v2  ;;  %v514_v7 = vld [vmem:[%s695_s0 + $0x10] sm:$0xff]   ;;  %v516_v9 = vld [vmem:[%s695_s0 + $0x18] sm:$0xff]  }
   0x5   :  { %28 = vst.msk [vmem:[#allocation2 + $0x40] sm:$0xff] %vm19_vm0, %v518_v1  ;;  %29 = vst.msk [vmem:[#allocation2 + $0x48] sm:$0xff] %vm19_vm0, %v518_v1  ;;  %487 = vmatprep.mubr.msk.bf16.mxu0 %vm124_vm1, %v510_v3  ;;  %495 = vmatprep.mubr.msk.bf16.mxu1 %vm124_vm1, %v511_v4  ;;  %v515_v8 = vld [vmem:[%s695_s0 + $0x30] sm:$0xff]   ;;  %v517_v10 = vld [vmem:[%s695_s0 + $0x38] sm:$0xff]  }
   0x6   :  { %30 = vst.msk [vmem:[#allocation2 + $0x50] sm:$0xff] %vm19_vm0, %v518_v1  ;;  %31 = vst.msk [vmem:[#allocation2 + $0x58] sm:$0xff] %vm19_vm0, %v518_v1  ;;  %v604_v39 = vld [vmem:[%s696_s2] ss:$0 sm:$0xff] }
   0x7   :  { %32 = vst.msk [vmem:[#allocation2 + $0x60] sm:$0xff] %vm19_vm0, %v518_v1  ;;  %33 = vst.msk [vmem:[#allocation2 + $0x68] sm:$0xff] %vm19_vm0, %v518_v1  ;;  %486 = vmatpush3.bf16.msra.mxu0 %v509_v2  ;;  %506 = vmatpush3.bf16.msra.mxu1 %v509_v2 }
   0x8   :  { %34 = vst.msk [vmem:[#allocation2 + $0x70] sm:$0xff] %vm19_vm0, %v518_v1  ;;  %35 = vst.msk [vmem:[#allocation2 + $0x78] sm:$0xff] %vm19_vm0, %v518_v1  ;;  %v38_v11 = vld [vmem:[#allocation2 + $0x10] sm:$0xff]  ;;  %v36_v13 = vld [vmem:[#allocation2] sm:$0xff] }
   0x9   :  { %v39_v17 = vld [vmem:[#allocation2 + $0x18] sm:$0xff]  ;;  %v37_v23 = vld [vmem:[#allocation2 + $0x8] sm:$0xff] }
   0xa   :  { %488 = vmatmul.mubr.msk.bf16.vlgmr.msra.gmra.mrb[0].mxu0 %vm124_vm1, %v512_v5  ;;  %496 = vmatmul.mubr.msk.bf16.vlgmr.msra.gmra.mrb[0].mxu1 %vm124_vm1, %v513_v6  ;;  %v40_v37 = vld [vmem:[#allocation2 + $0x20] sm:$0xff]  ;;  %v41_v48 = vld [vmem:[#allocation2 + $0x28] sm:$0xff] }
   0xb   :  { %491 = vmatprep.mubr.msk.bf16.mxu0 %vm124_vm1, %v514_v7  ;;  %499 = vmatprep.mubr.msk.bf16.mxu1 %vm124_vm1, %v515_v8  ;;  %v42_v35 = vld [vmem:[#allocation2 + $0x30] sm:$0xff]  ;;  %v43_v42 = vld [vmem:[#allocation2 + $0x38] sm:$0xff] }
   0xc   :  { %v44_v14 = vld [vmem:[#allocation2 + $0x40] sm:$0xff]  ;;  %v45_v24 = vld [vmem:[#allocation2 + $0x48] sm:$0xff] }
   0xd   :  { %v46_v12 = vld [vmem:[#allocation2 + $0x50] sm:$0xff]  ;;  %v47_v18 = vld [vmem:[#allocation2 + $0x58] sm:$0xff] }
   0xe   :  { %v48_v38 = vld [vmem:[#allocation2 + $0x60] sm:$0xff]  ;;  %v49_v49 = vld [vmem:[#allocation2 + $0x68] sm:$0xff] }
   0xf   :  { %v50_v36 = vld [vmem:[#allocation2 + $0x70] sm:$0xff]  ;;  %v51_v43 = vld [vmem:[#allocation2 + $0x78] sm:$0xff] }
  0x12   :  { %492 = vmatmul.mubr.msk.bf16.gmra.mrb[4].mxu0 %vm124_vm1, %v516_v9  ;;  %500 = vmatmul.mubr.msk.bf16.gmra.mrb[4].mxu1 %vm124_vm1, %v517_v10 }
  0xdd   :  { %v489_v15 = vpop.f32.mrb[0].mxu0  ;;  %v497_v16 = vpop.f32.mrb[0].mxu1 }
  0xde   :  { %v248_v19 = vadd.f32 %v489_v15, %v38_v11  ;;  %v256_v20 = vadd.f32 %v497_v16, %v46_v12  ;;  %v183_v21 = vpop.f32.mrb[1].mxu0  ;;  %v215_v22 = vpop.f32.mrb[1].mxu1 }
  0xdf   :  { %v246_v25 = vadd.f32 %v183_v21, %v36_v13  ;;  %v254_v26 = vadd.f32 %v215_v22, %v44_v14  ;;  %v490_v27 = vpop.f32.mrb[2].mxu0  ;;  %v498_v28 = vpop.f32.mrb[2].mxu1 }
  0xe0   :  { %265 = vst.msk [vmem:[#allocation2 + $0x10] sm:$0xff] %vm19_vm0, %v248_v19  ;;  %273 = vst.msk [vmem:[#allocation2 + $0x50] sm:$0xff] %vm19_vm0, %v256_v20  ;;  %v249_v29 = vadd.f32 %v490_v27, %v39_v17  ;;  %v257_v30 = vadd.f32 %v498_v28, %v47_v18  ;;  %v186_v31 = vpop.f32.mrb[3].mxu0  ;;  %v218_v32 = vpop.f32.mrb[3].mxu1 }
  0xe1   :  { %263 = vst.msk [vmem:[#allocation2] sm:$0xff] %vm19_vm0, %v246_v25  ;;  %271 = vst.msk [vmem:[#allocation2 + $0x40] sm:$0xff] %vm19_vm0, %v254_v26  ;;  %v247_v33 = vadd.f32 %v186_v31, %v37_v23  ;;  %v255_v34 = vadd.f32 %v218_v32, %v45_v24 }
  0xe2   :  { %266 = vst.msk [vmem:[#allocation2 + $0x18] sm:$0xff] %vm19_vm0, %v249_v29  ;;  %274 = vst.msk [vmem:[#allocation2 + $0x58] sm:$0xff] %vm19_vm0, %v257_v30 }
  0xe3   :  { %264 = vst.msk [vmem:[#allocation2 + $0x8] sm:$0xff] %vm19_vm0, %v247_v33  ;;  %272 = vst.msk [vmem:[#allocation2 + $0x48] sm:$0xff] %vm19_vm0, %v255_v34 }
  0xe5   :  { %v493_v40 = vpop.f32.mrb[4].mxu0  ;;  %v501_v41 = vpop.f32.mrb[4].mxu1 }
  0xe6   :  { %v252_v44 = vadd.f32 %v493_v40, %v42_v35  ;;  %v260_v45 = vadd.f32 %v501_v41, %v50_v36  ;;  %v199_v46 = vpop.f32.mrb[5].mxu0  ;;  %v231_v47 = vpop.f32.mrb[5].mxu1 }
  0xe7   :  { %v284_v50 = vld [vmem:[#allocation2 + $0x10] sm:$0xff]  ;;  %v250_v52 = vadd.f32 %v199_v46, %v40_v37  ;;  %v258_v53 = vadd.f32 %v231_v47, %v48_v38  ;;  %v494_v54 = vpop.f32.mrb[6].mxu0  ;;  %v502_v55 = vpop.f32.mrb[6].mxu1 }
  0xe8   :  { %v292_v51 = vld [vmem:[#allocation2 + $0x50] sm:$0xff]  ;;  %v307_v56 = vadd.f32 %v604_v39, %v284_v50  ;;  %v282_v58 = vld [vmem:[#allocation2] sm:$0xff]  ;;  %269 = vst.msk [vmem:[#allocation2 + $0x30] sm:$0xff] %vm19_vm0, %v252_v44  ;;  %277 = vst.msk [vmem:[#allocation2 + $0x70] sm:$0xff] %vm19_vm0, %v260_v45  ;;  %v253_v60 = vadd.f32 %v494_v54, %v43_v42  ;;  %v261_v61 = vadd.f32 %v502_v55, %v51_v43  ;;  %v202_v62 = vpop.f32.mrb[7].mxu0  ;;  %v234_v63 = vpop.f32.mrb[7].mxu1 }
  0xe9   :  { %v315_v57 = vadd.f32 %v604_v39, %v292_v51  ;;  %v290_v59 = vld [vmem:[#allocation2 + $0x40] sm:$0xff]  ;;  %v305_v0 = vadd.f32 %v604_v39, %v282_v58  ;;  %v285_v2 = vld [vmem:[#allocation2 + $0x18] sm:$0xff]  ;;  %267 = vst.msk [vmem:[#allocation2 + $0x20] sm:$0xff] %vm19_vm0, %v250_v52  ;;  %275 = vst.msk [vmem:[#allocation2 + $0x60] sm:$0xff] %vm19_vm0, %v258_v53  ;;  %v251_v4 = vadd.f32 %v202_v62, %v41_v48 }
  0xea   :  { %v313_v1 = vadd.f32 %v604_v39, %v290_v59  ;;  %v293_v3 = vld [vmem:[#allocation2 + $0x58] sm:$0xff]  ;;  %v259_v5 = vadd.f32 %v234_v63, %v49_v49  ;;  %v323_v6 = vmax.f32 %v307_v56, 0.0  ;;  %v308_v8 = vadd.f32 %v604_v39, %v285_v2  ;;  %v283_v10 = vld [vmem:[#allocation2 + $0x8] sm:$0xff]  ;;  %270 = vst.msk [vmem:[#allocation2 + $0x38] sm:$0xff] %vm19_vm0, %v253_v60  ;;  %278 = vst.msk [vmem:[#allocation2 + $0x78] sm:$0xff] %vm19_vm0, %v261_v61 }
  0xeb   :  { %v331_v7 = vmax.f32 %v315_v57, 0.0  ;;  %v316_v9 = vadd.f32 %v604_v39, %v293_v3  ;;  %v291_v11 = vld [vmem:[#allocation2 + $0x48] sm:$0xff]  ;;  %v321_v12 = vmax.f32 %v305_v0, 0.0  ;;  %v306_v14 = vadd.f32 %v604_v39, %v283_v10  ;;  %268 = vst.msk [vmem:[#allocation2 + $0x28] sm:$0xff] %vm19_vm0, %v251_v4 }
  0xec   :  { %v329_v13 = vmax.f32 %v313_v1, 0.0  ;;  %v314_v15 = vadd.f32 %v604_v39, %v291_v11  ;;  %276 = vst.msk [vmem:[#allocation2 + $0x68] sm:$0xff] %vm19_vm0, %v259_v5  ;;  %v459_v16 = vpack.c.bf16 %v323_v6, %v323_v6  ;;  %v324_v18 = vmax.f32 %v308_v8, 0.0 }
  0xed   :  { %v467_v17 = vpack.c.bf16 %v331_v7, %v331_v7  ;;  %v332_v19 = vmax.f32 %v316_v9, 0.0  ;;  %v457_v20 = vpack.c.bf16 %v321_v12, %v321_v12  ;;  %v322_v22 = vmax.f32 %v306_v14, 0.0 }
  0xee   :  { %v465_v21 = vpack.c.bf16 %v329_v13, %v329_v13  ;;  %v330_v23 = vmax.f32 %v314_v15, 0.0  ;;  %404 = vst.msk [vmem:[%s697_s3 + $0x8] sm:$0xf] %vm401_vm2, %v459_v16  ;;  %v460_v24 = vpack.c.bf16 %v324_v18, %v324_v18 }
  0xef   :  { %412 = vst.msk [vmem:[%s697_s3 + $0x28] sm:$0xf] %vm401_vm2, %v467_v17  ;;  %v468_v25 = vpack.c.bf16 %v332_v19, %v332_v19  ;;  %402 = vst.msk [vmem:[%s697_s3] sm:$0xf] %vm401_vm2, %v457_v20  ;;  %v458_v26 = vpack.c.bf16 %v322_v22, %v322_v22  ;;  %v288_v28 = vld [vmem:[#allocation2 + $0x30] sm:$0xff] }
  0xf0   :  { %410 = vst.msk [vmem:[%s697_s3 + $0x20] sm:$0xf] %vm401_vm2, %v465_v21  ;;  %v466_v27 = vpack.c.bf16 %v330_v23, %v330_v23  ;;  %v296_v29 = vld [vmem:[#allocation2 + $0x70] sm:$0xff]  ;;  %405 = vst.msk [vmem:[%s697_s3 + $0xc] sm:$0xf] %vm401_vm2, %v460_v24  ;;  %v311_v30 = vadd.f32 %v604_v39, %v288_v28  ;;  %v286_v32 = vld [vmem:[#allocation2 + $0x20] sm:$0xff] }
  0xf1   :  { %413 = vst.msk [vmem:[%s697_s3 + $0x2c] sm:$0xf] %vm401_vm2, %v468_v25  ;;  %v319_v31 = vadd.f32 %v604_v39, %v296_v29  ;;  %v294_v33 = vld [vmem:[#allocation2 + $0x60] sm:$0xff]  ;;  %403 = vst.msk [vmem:[%s697_s3 + $0x4] sm:$0xf] %vm401_vm2, %v458_v26  ;;  %v309_v34 = vadd.f32 %v604_v39, %v286_v32  ;;  %v289_v36 = vld [vmem:[#allocation2 + $0x38] sm:$0xff] }
  0xf2   :  { %411 = vst.msk [vmem:[%s697_s3 + $0x24] sm:$0xf] %vm401_vm2, %v466_v27  ;;  %v317_v35 = vadd.f32 %v604_v39, %v294_v33  ;;  %v297_v37 = vld [vmem:[#allocation2 + $0x78] sm:$0xff]  ;;  %v327_v38 = vmax.f32 %v311_v30, 0.0  ;;  %v312_v41 = vadd.f32 %v604_v39, %v289_v36  ;;  %v287_v43 = vld [vmem:[#allocation2 + $0x28] sm:$0xff] }
  0xf3   :  { %v335_v40 = vmax.f32 %v319_v31, 0.0  ;;  %v320_v42 = vadd.f32 %v604_v39, %v297_v37  ;;  %v295_v44 = vld [vmem:[#allocation2 + $0x68] sm:$0xff]  ;;  %v325_v45 = vmax.f32 %v309_v34, 0.0  ;;  %v310_v47 = vadd.f32 %v604_v39, %v287_v43 }
  0xf4   :  { %v333_v46 = vmax.f32 %v317_v35, 0.0  ;;  %v318_v48 = vadd.f32 %v604_v39, %v295_v44  ;;  %v463_v49 = vpack.c.bf16 %v327_v38, %v327_v38  ;;  %v328_v51 = vmax.f32 %v312_v41, 0.0 }
  0xf5   :  { %v471_v50 = vpack.c.bf16 %v335_v40, %v335_v40  ;;  %v336_v52 = vmax.f32 %v320_v42, 0.0  ;;  %v461_v53 = vpack.c.bf16 %v325_v45, %v325_v45  ;;  %v326_v55 = vmax.f32 %v310_v47, 0.0 }
  0xf6   :  { %v469_v54 = vpack.c.bf16 %v333_v46, %v333_v46  ;;  %v334_v56 = vmax.f32 %v318_v48, 0.0  ;;  %408 = vst.msk [vmem:[%s697_s3 + $0x18] sm:$0xf] %vm401_vm2, %v463_v49  ;;  %v464_v57 = vpack.c.bf16 %v328_v51, %v328_v51 }
  0xf7   :  { %416 = vst.msk [vmem:[%s697_s3 + $0x38] sm:$0xf] %vm401_vm2, %v471_v50  ;;  %v472_v39 = vpack.c.bf16 %v336_v52, %v336_v52  ;;  %406 = vst.msk [vmem:[%s697_s3 + $0x10] sm:$0xf] %vm401_vm2, %v461_v53  ;;  %v462_v58 = vpack.c.bf16 %v326_v55, %v326_v55 }
  0xf8   :  { %414 = vst.msk [vmem:[%s697_s3 + $0x30] sm:$0xf] %vm401_vm2, %v469_v54  ;;  %v470_v59 = vpack.c.bf16 %v334_v56, %v334_v56  ;;  %409 = vst.msk [vmem:[%s697_s3 + $0x1c] sm:$0xf] %vm401_vm2, %v464_v57 }
  0xf9   :  { %417 = vst.msk [vmem:[%s697_s3 + $0x3c] sm:$0xf] %vm401_vm2, %v472_v39  ;;  %407 = vst.msk [vmem:[%s697_s3 + $0x14] sm:$0xf] %vm401_vm2, %v462_v58 }
  0xfa   :  { %415 = vst.msk [vmem:[%s697_s3 + $0x34] sm:$0xf] %vm401_vm2, %v470_v59 }

// kernel: _lambda_.67
= control target key start
LH: loop header
LB: loop body
LE: loop exit
PB: predicated region body
PF: predicated region fallthrough
CT: control target
= control target key end

     0   :  { %vm19_vm0 = vcmask 130048   ;;  %v518_v1 = vmov 0.0   ;;  %vm124_vm1 = vcmask 261120   ;;  %vm401_vm2 = vcmask 125952   ;;  %s694_s1 = inlined_call_operand.vmem [shape: bf16[32,16], index: 1, kind: input, shape index: {}]   ;;  %s695_s0 = inlined_call_operand.vmem [shape: bf16[128,32], index: 0, kind: input, shape index: {}]   ;;  %s696_s2 = inlined_call_operand.vmem [shape: f32[1,16], index: 2, kind: input, shape index: {}]   ;;  %s697_s3 = inlined_call_operand.vmem [shape: bf16[128,16], index: 3, kind: output, shape index: {}]  }
   0x1   :  { %v508_v0 = vld [vmem:[%s694_s1] sm:$0xff]   ;;  %22 = vst.msk [vmem:[#allocation2 + $0x10] sm:$0xff] %vm19_vm0, %v518_v1  ;;  %20 = vst.msk [vmem:[#allocation2] sm:$0xff] %vm19_vm0, %v518_v1  ;;  %v509_v2 = vld [vmem:[%s694_s1 + $0x8] sm:$0xff]  }
   0x2   :  { %21 = vst.msk [vmem:[#allocation2 + $0x8] sm:$0xff] %vm19_vm0, %v518_v1  ;;  %23 = vst.msk [vmem:[#allocation2 + $0x18] sm:$0xff] %vm19_vm0, %v518_v1  ;;  %483 = vmatprep.subr.bf16.mxu0 %v508_v0  ;;  %503 = vmatprep.subr.bf16.mxu1 %v508_v0  ;;  %v510_v3 = vld [vmem:[%s695_s0] sm:$0xff]   ;;  %v512_v5 = vld [vmem:[%s695_s0 + $0x8] sm:$0xff]  }
   0x3   :  { %24 = vst.msk [vmem:[#allocation2 + $0x20] sm:$0xff] %vm19_vm0, %v518_v1  ;;  %25 = vst.msk [vmem:[#allocation2 + $0x28] sm:$0xff] %vm19_vm0, %v518_v1  ;;  %484 = vmatpush3.bf16.msra.mxu0 %v508_v0  ;;  %505 = vmatpush3.bf16.msra.mxu1 %v508_v0  ;;  %v511_v4 = vld [vmem:[%s695_s0 + $0x20] sm:$0xff]   ;;  %v513_v6 = vld [vmem:[%s695_s0 + $0x28] sm:$0xff]  }
   0x4   :  { %26 = vst.msk [vmem:[#allocation2 + $0x30] sm:$0xff] %vm19_vm0, %v518_v1  ;;  %27 = vst.msk [vmem:[#allocation2 + $0x38] sm:$0xff] %vm19_vm0, %v518_v1  ;;  %485 = vmatprep.subr.bf16.mxu0 %v509_v2  ;;  %504 = vmatprep.subr.bf16.mxu1 %v509_v2  ;;  %v514_v7 = vld [vmem:[%s695_s0 + $0x10] sm:$0xff]   ;;  %v516_v9 = vld [vmem:[%s695_s0 + $0x18] sm:$0xff]  }
   0x5   :  { %28 = vst.msk [vmem:[#allocation2 + $0x40] sm:$0xff] %vm19_vm0, %v518_v1  ;;  %29 = vst.msk [vmem:[#allocation2 + $0x48] sm:$0xff] %vm19_vm0, %v518_v1  ;;  %487 = vmatprep.mubr.msk.bf16.mxu0 %vm124_vm1, %v510_v3  ;;  %495 = vmatprep.mubr.msk.bf16.mxu1 %vm124_vm1, %v511_v4  ;;  %v515_v8 = vld [vmem:[%s695_s0 + $0x30] sm:$0xff]   ;;  %v517_v10 = vld [vmem:[%s695_s0 + $0x38] sm:$0xff]  }
   0x6   :  { %30 = vst.msk [vmem:[#allocation2 + $0x50] sm:$0xff] %vm19_vm0, %v518_v1  ;;  %31 = vst.msk [vmem:[#allocation2 + $0x58] sm:$0xff] %vm19_vm0, %v518_v1  ;;  %v604_v39 = vld [vmem:[%s696_s2] ss:$0 sm:$0xff] }
   0x7   :  { %32 = vst.msk [vmem:[#allocation2 + $0x60] sm:$0xff] %vm19_vm0, %v518_v1  ;;  %33 = vst.msk [vmem:[#allocation2 + $0x68] sm:$0xff] %vm19_vm0, %v518_v1  ;;  %486 = vmatpush3.bf16.msra.mxu0 %v509_v2  ;;  %506 = vmatpush3.bf16.msra.mxu1 %v509_v2 }
   0x8   :  { %34 = vst.msk [vmem:[#allocation2 + $0x70] sm:$0xff] %vm19_vm0, %v518_v1  ;;  %35 = vst.msk [vmem:[#allocation2 + $0x78] sm:$0xff] %vm19_vm0, %v518_v1  ;;  %v38_v11 = vld [vmem:[#allocation2 + $0x10] sm:$0xff]  ;;  %v36_v13 = vld [vmem:[#allocation2] sm:$0xff] }
   0x9   :  { %v39_v17 = vld [vmem:[#allocation2 + $0x18] sm:$0xff]  ;;  %v37_v23 = vld [vmem:[#allocation2 + $0x8] sm:$0xff] }
   0xa   :  { %488 = vmatmul.mubr.msk.bf16.vlgmr.msra.gmra.mrb[0].mxu0 %vm124_vm1, %v512_v5  ;;  %496 = vmatmul.mubr.msk.bf16.vlgmr.msra.gmra.mrb[0].mxu1 %vm124_vm1, %v513_v6  ;;  %v40_v37 = vld [vmem:[#allocation2 + $0x20] sm:$0xff]  ;;  %v41_v48 = vld [vmem:[#allocation2 + $0x28] sm:$0xff] }
   0xb   :  { %491 = vmatprep.mubr.msk.bf16.mxu0 %vm124_vm1, %v514_v7  ;;  %499 = vmatprep.mubr.msk.bf16.mxu1 %vm124_vm1, %v515_v8  ;;  %v42_v35 = vld [vmem:[#allocation2 + $0x30] sm:$0xff]  ;;  %v43_v42 = vld [vmem:[#allocation2 + $0x38] sm:$0xff] }
   0xc   :  { %v44_v14 = vld [vmem:[#allocation2 + $0x40] sm:$0xff]  ;;  %v45_v24 = vld [vmem:[#allocation2 + $0x48] sm:$0xff] }
   0xd   :  { %v46_v12 = vld [vmem:[#allocation2 + $0x50] sm:$0xff]  ;;  %v47_v18 = vld [vmem:[#allocation2 + $0x58] sm:$0xff] }
   0xe   :  { %v48_v38 = vld [vmem:[#allocation2 + $0x60] sm:$0xff]  ;;  %v49_v49 = vld [vmem:[#allocation2 + $0x68] sm:$0xff] }
   0xf   :  { %v50_v36 = vld [vmem:[#allocation2 + $0x70] sm:$0xff]  ;;  %v51_v43 = vld [vmem:[#allocation2 + $0x78] sm:$0xff] }
  0x12   :  { %492 = vmatmul.mubr.msk.bf16.gmra.mrb[4].mxu0 %vm124_vm1, %v516_v9  ;;  %500 = vmatmul.mubr.msk.bf16.gmra.mrb[4].mxu1 %vm124_vm1, %v517_v10 }
  0xdd   :  { %v489_v15 = vpop.f32.mrb[0].mxu0  ;;  %v497_v16 = vpop.f32.mrb[0].mxu1 }
  0xde   :  { %v248_v19 = vadd.f32 %v489_v15, %v38_v11  ;;  %v256_v20 = vadd.f32 %v497_v16, %v46_v12  ;;  %v183_v21 = vpop.f32.mrb[1].mxu0  ;;  %v215_v22 = vpop.f32.mrb[1].mxu1 }
  0xdf   :  { %v246_v25 = vadd.f32 %v183_v21, %v36_v13  ;;  %v254_v26 = vadd.f32 %v215_v22, %v44_v14  ;;  %v490_v27 = vpop.f32.mrb[2].mxu0  ;;  %v498_v28 = vpop.f32.mrb[2].mxu1 }
  0xe0   :  { %265 = vst.msk [vmem:[#allocation2 + $0x10] sm:$0xff] %vm19_vm0, %v248_v19  ;;  %273 = vst.msk [vmem:[#allocation2 + $0x50] sm:$0xff] %vm19_vm0, %v256_v20  ;;  %v249_v29 = vadd.f32 %v490_v27, %v39_v17  ;;  %v257_v30 = vadd.f32 %v498_v28, %v47_v18  ;;  %v186_v31 = vpop.f32.mrb[3].mxu0  ;;  %v218_v32 = vpop.f32.mrb[3].mxu1 }
  0xe1   :  { %263 = vst.msk [vmem:[#allocation2] sm:$0xff] %vm19_vm0, %v246_v25  ;;  %271 = vst.msk [vmem:[#allocation2 + $0x40] sm:$0xff] %vm19_vm0, %v254_v26  ;;  %v247_v33 = vadd.f32 %v186_v31, %v37_v23  ;;  %v255_v34 = vadd.f32 %v218_v32, %v45_v24 }
  0xe2   :  { %266 = vst.msk [vmem:[#allocation2 + $0x18] sm:$0xff] %vm19_vm0, %v249_v29  ;;  %274 = vst.msk [vmem:[#allocation2 + $0x58] sm:$0xff] %vm19_vm0, %v257_v30 }
  0xe3   :  { %264 = vst.msk [vmem:[#allocation2 + $0x8] sm:$0xff] %vm19_vm0, %v247_v33  ;;  %272 = vst.msk [vmem:[#allocation2 + $0x48] sm:$0xff] %vm19_vm0, %v255_v34 }
  0xe5   :  { %v493_v40 = vpop.f32.mrb[4].mxu0  ;;  %v501_v41 = vpop.f32.mrb[4].mxu1 }
  0xe6   :  { %v252_v44 = vadd.f32 %v493_v40, %v42_v35  ;;  %v260_v45 = vadd.f32 %v501_v41, %v50_v36  ;;  %v199_v46 = vpop.f32.mrb[5].mxu0  ;;  %v231_v47 = vpop.f32.mrb[5].mxu1 }
  0xe7   :  { %v284_v50 = vld [vmem:[#allocation2 + $0x10] sm:$0xff]  ;;  %v250_v52 = vadd.f32 %v199_v46, %v40_v37  ;;  %v258_v53 = vadd.f32 %v231_v47, %v48_v38  ;;  %v494_v54 = vpop.f32.mrb[6].mxu0  ;;  %v502_v55 = vpop.f32.mrb[6].mxu1 }
  0xe8   :  { %v292_v51 = vld [vmem:[#allocation2 + $0x50] sm:$0xff]  ;;  %v307_v56 = vadd.f32 %v604_v39, %v284_v50  ;;  %v282_v58 = vld [vmem:[#allocation2] sm:$0xff]  ;;  %269 = vst.msk [vmem:[#allocation2 + $0x30] sm:$0xff] %vm19_vm0, %v252_v44  ;;  %277 = vst.msk [vmem:[#allocation2 + $0x70] sm:$0xff] %vm19_vm0, %v260_v45  ;;  %v253_v60 = vadd.f32 %v494_v54, %v43_v42  ;;  %v261_v61 = vadd.f32 %v502_v55, %v51_v43  ;;  %v202_v62 = vpop.f32.mrb[7].mxu0  ;;  %v234_v63 = vpop.f32.mrb[7].mxu1 }
  0xe9   :  { %v315_v57 = vadd.f32 %v604_v39, %v292_v51  ;;  %v290_v59 = vld [vmem:[#allocation2 + $0x40] sm:$0xff]  ;;  %v305_v0 = vadd.f32 %v604_v39, %v282_v58  ;;  %v285_v2 = vld [vmem:[#allocation2 + $0x18] sm:$0xff]  ;;  %267 = vst.msk [vmem:[#allocation2 + $0x20] sm:$0xff] %vm19_vm0, %v250_v52  ;;  %275 = vst.msk [vmem:[#allocation2 + $0x60] sm:$0xff] %vm19_vm0, %v258_v53  ;;  %v251_v4 = vadd.f32 %v202_v62, %v41_v48 }
  0xea   :  { %v313_v1 = vadd.f32 %v604_v39, %v290_v59  ;;  %v293_v3 = vld [vmem:[#allocation2 + $0x58] sm:$0xff]  ;;  %v259_v5 = vadd.f32 %v234_v63, %v49_v49  ;;  %v323_v6 = vmax.f32 %v307_v56, 0.0  ;;  %v308_v8 = vadd.f32 %v604_v39, %v285_v2  ;;  %v283_v10 = vld [vmem:[#allocation2 + $0x8] sm:$0xff]  ;;  %270 = vst.msk [vmem:[#allocation2 + $0x38] sm:$0xff] %vm19_vm0, %v253_v60  ;;  %278 = vst.msk [vmem:[#allocation2 + $0x78] sm:$0xff] %vm19_vm0, %v261_v61 }
  0xeb   :  { %v331_v7 = vmax.f32 %v315_v57, 0.0  ;;  %v316_v9 = vadd.f32 %v604_v39, %v293_v3  ;;  %v291_v11 = vld [vmem:[#allocation2 + $0x48] sm:$0xff]  ;;  %v321_v12 = vmax.f32 %v305_v0, 0.0  ;;  %v306_v14 = vadd.f32 %v604_v39, %v283_v10  ;;  %268 = vst.msk [vmem:[#allocation2 + $0x28] sm:$0xff] %vm19_vm0, %v251_v4 }
  0xec   :  { %v329_v13 = vmax.f32 %v313_v1, 0.0  ;;  %v314_v15 = vadd.f32 %v604_v39, %v291_v11  ;;  %276 = vst.msk [vmem:[#allocation2 + $0x68] sm:$0xff] %vm19_vm0, %v259_v5  ;;  %v459_v16 = vpack.c.bf16 %v323_v6, %v323_v6  ;;  %v324_v18 = vmax.f32 %v308_v8, 0.0 }
  0xed   :  { %v467_v17 = vpack.c.bf16 %v331_v7, %v331_v7  ;;  %v332_v19 = vmax.f32 %v316_v9, 0.0  ;;  %v457_v20 = vpack.c.bf16 %v321_v12, %v321_v12  ;;  %v322_v22 = vmax.f32 %v306_v14, 0.0 }
  0xee   :  { %v465_v21 = vpack.c.bf16 %v329_v13, %v329_v13  ;;  %v330_v23 = vmax.f32 %v314_v15, 0.0  ;;  %404 = vst.msk [vmem:[%s697_s3 + $0x8] sm:$0xf] %vm401_vm2, %v459_v16  ;;  %v460_v24 = vpack.c.bf16 %v324_v18, %v324_v18 }
  0xef   :  { %412 = vst.msk [vmem:[%s697_s3 + $0x28] sm:$0xf] %vm401_vm2, %v467_v17  ;;  %v468_v25 = vpack.c.bf16 %v332_v19, %v332_v19  ;;  %402 = vst.msk [vmem:[%s697_s3] sm:$0xf] %vm401_vm2, %v457_v20  ;;  %v458_v26 = vpack.c.bf16 %v322_v22, %v322_v22  ;;  %v288_v28 = vld [vmem:[#allocation2 + $0x30] sm:$0xff] }
  0xf0   :  { %410 = vst.msk [vmem:[%s697_s3 + $0x20] sm:$0xf] %vm401_vm2, %v465_v21  ;;  %v466_v27 = vpack.c.bf16 %v330_v23, %v330_v23  ;;  %v296_v29 = vld [vmem:[#allocation2 + $0x70] sm:$0xff]  ;;  %405 = vst.msk [vmem:[%s697_s3 + $0xc] sm:$0xf] %vm401_vm2, %v460_v24  ;;  %v311_v30 = vadd.f32 %v604_v39, %v288_v28  ;;  %v286_v32 = vld [vmem:[#allocation2 + $0x20] sm:$0xff] }
  0xf1   :  { %413 = vst.msk [vmem:[%s697_s3 + $0x2c] sm:$0xf] %vm401_vm2, %v468_v25  ;;  %v319_v31 = vadd.f32 %v604_v39, %v296_v29  ;;  %v294_v33 = vld [vmem:[#allocation2 + $0x60] sm:$0xff]  ;;  %403 = vst.msk [vmem:[%s697_s3 + $0x4] sm:$0xf] %vm401_vm2, %v458_v26  ;;  %v309_v34 = vadd.f32 %v604_v39, %v286_v32  ;;  %v289_v36 = vld [vmem:[#allocation2 + $0x38] sm:$0xff] }
  0xf2   :  { %411 = vst.msk [vmem:[%s697_s3 + $0x24] sm:$0xf] %vm401_vm2, %v466_v27  ;;  %v317_v35 = vadd.f32 %v604_v39, %v294_v33  ;;  %v297_v37 = vld [vmem:[#allocation2 + $0x78] sm:$0xff]  ;;  %v327_v38 = vmax.f32 %v311_v30, 0.0  ;;  %v312_v41 = vadd.f32 %v604_v39, %v289_v36  ;;  %v287_v43 = vld [vmem:[#allocation2 + $0x28] sm:$0xff] }
  0xf3   :  { %v335_v40 = vmax.f32 %v319_v31, 0.0  ;;  %v320_v42 = vadd.f32 %v604_v39, %v297_v37  ;;  %v295_v44 = vld [vmem:[#allocation2 + $0x68] sm:$0xff]  ;;  %v325_v45 = vmax.f32 %v309_v34, 0.0  ;;  %v310_v47 = vadd.f32 %v604_v39, %v287_v43 }
  0xf4   :  { %v333_v46 = vmax.f32 %v317_v35, 0.0  ;;  %v318_v48 = vadd.f32 %v604_v39, %v295_v44  ;;  %v463_v49 = vpack.c.bf16 %v327_v38, %v327_v38  ;;  %v328_v51 = vmax.f32 %v312_v41, 0.0 }
  0xf5   :  { %v471_v50 = vpack.c.bf16 %v335_v40, %v335_v40  ;;  %v336_v52 = vmax.f32 %v320_v42, 0.0  ;;  %v461_v53 = vpack.c.bf16 %v325_v45, %v325_v45  ;;  %v326_v55 = vmax.f32 %v310_v47, 0.0 }
  0xf6   :  { %v469_v54 = vpack.c.bf16 %v333_v46, %v333_v46  ;;  %v334_v56 = vmax.f32 %v318_v48, 0.0  ;;  %408 = vst.msk [vmem:[%s697_s3 + $0x18] sm:$0xf] %vm401_vm2, %v463_v49  ;;  %v464_v57 = vpack.c.bf16 %v328_v51, %v328_v51 }
  0xf7   :  { %416 = vst.msk [vmem:[%s697_s3 + $0x38] sm:$0xf] %vm401_vm2, %v471_v50  ;;  %v472_v39 = vpack.c.bf16 %v336_v52, %v336_v52  ;;  %406 = vst.msk [vmem:[%s697_s3 + $0x10] sm:$0xf] %vm401_vm2, %v461_v53  ;;  %v462_v58 = vpack.c.bf16 %v326_v55, %v326_v55 }
  0xf8   :  { %414 = vst.msk [vmem:[%s697_s3 + $0x30] sm:$0xf] %vm401_vm2, %v469_v54  ;;  %v470_v59 = vpack.c.bf16 %v334_v56, %v334_v56  ;;  %409 = vst.msk [vmem:[%s697_s3 + $0x1c] sm:$0xf] %vm401_vm2, %v464_v57 }
  0xf9   :  { %417 = vst.msk [vmem:[%s697_s3 + $0x3c] sm:$0xf] %vm401_vm2, %v472_v39  ;;  %407 = vst.msk [vmem:[%s697_s3 + $0x14] sm:$0xf] %vm401_vm2, %v462_v58 }
  0xfa   :  { %415 = vst.msk [vmem:[%s697_s3 + $0x34] sm:$0xf] %vm401_vm2, %v470_v59 }

// kernel: _lambda_.59
= control target key start
LH: loop header
LB: loop body
LE: loop exit
PB: predicated region body
PF: predicated region fallthrough
CT: control target
= control target key end

     0   :  { %vm134_vm0 = vcmask 1043456   ;;  %vm109_vm1 = vcmask 64512   ;;  %vm19_vm2 = vcmask 261120   ;;  %v484_v1 = vmov 0.0   ;;  %s660_s1 = inlined_call_operand.vmem [shape: bf16[8,32], index: 1, kind: input, shape index: {}]   ;;  %s661_s0 = inlined_call_operand.vmem [shape: bf16[128,8], index: 0, kind: input, shape index: {}]   ;;  %s662_s2 = inlined_call_operand.vmem [shape: f32[1,32], index: 2, kind: input, shape index: {}]   ;;  %s663_s3 = inlined_call_operand.vmem [shape: bf16[128,32], index: 3, kind: output, shape index: {}]  }
   0x1   :  { %v68_v0 = vld [vmem:[%s660_s1] sm:$0xf]  ;;  %22 = vst.msk [vmem:[#allocation2 + $0x10] sm:$0xff] %vm19_vm2, %v484_v1  ;;  %20 = vst.msk [vmem:[#allocation2] sm:$0xff] %vm19_vm2, %v484_v1  ;;  %v478_v5 = vld [vmem:[%s661_s0 + $0x8] sm:$0xff]   ;;  %vm374_vm3 = vcmask 257024  }
   0x2   :  { %21 = vst.msk [vmem:[#allocation2 + $0x8] sm:$0xff] %vm19_vm2, %v484_v1  ;;  %23 = vst.msk [vmem:[#allocation2 + $0x18] sm:$0xff] %vm19_vm2, %v484_v1  ;;  %473 = vmatprep.subr.msk.bf16.mxu0 %vm134_vm0, %v68_v0  ;;  %474 = vmatprep.subr.msk.bf16.mxu1 %vm134_vm0, %v68_v0  ;;  %v136_v2 = vsel %vm134_vm0, %v68_v0, 0  ;;  %v476_v3 = vld [vmem:[%s661_s0] sm:$0xff]   ;;  %v479_v6 = vld [vmem:[%s661_s0 + $0x28] sm:$0xff]  }
   0x3   :  { %24 = vst.msk [vmem:[#allocation2 + $0x20] sm:$0xff] %vm19_vm2, %v484_v1  ;;  %25 = vst.msk [vmem:[#allocation2 + $0x28] sm:$0xff] %vm19_vm2, %v484_v1  ;;  %454 = vmatpush3.bf16.msra.mxu0 %v136_v2  ;;  %472 = vmatpush3.bf16.msra.mxu1 %v136_v2  ;;  %v477_v4 = vld [vmem:[%s661_s0 + $0x20] sm:$0xff]   ;;  %v480_v7 = vld [vmem:[%s661_s0 + $0x10] sm:$0xff]  }
   0x4   :  { %26 = vst.msk [vmem:[#allocation2 + $0x30] sm:$0xff] %vm19_vm2, %v484_v1  ;;  %27 = vst.msk [vmem:[#allocation2 + $0x38] sm:$0xff] %vm19_vm2, %v484_v1  ;;  %455 = vmatprep.mubr.msk.bf16.mxu0 %vm109_vm1, %v476_v3  ;;  %463 = vmatprep.mubr.msk.bf16.mxu1 %vm109_vm1, %v477_v4  ;;  %v481_v8 = vld [vmem:[%s661_s0 + $0x30] sm:$0xff]   ;;  %v482_v9 = vld [vmem:[%s661_s0 + $0x18] sm:$0xff]  }
   0x5   :  { %28 = vst.msk [vmem:[#allocation2 + $0x40] sm:$0xff] %vm19_vm2, %v484_v1  ;;  %29 = vst.msk [vmem:[#allocation2 + $0x48] sm:$0xff] %vm19_vm2, %v484_v1  ;;  %v483_v10 = vld [vmem:[%s661_s0 + $0x38] sm:$0xff]   ;;  %v570_v38 = vld [vmem:[%s662_s2] ss:$0 sm:$0xff] }
   0x6   :  { %30 = vst.msk [vmem:[#allocation2 + $0x50] sm:$0xff] %vm19_vm2, %v484_v1  ;;  %31 = vst.msk [vmem:[#allocation2 + $0x58] sm:$0xff] %vm19_vm2, %v484_v1  ;;  %456 = vmatmul.mubr.msk.bf16.vlgmr.msra.gmra.mrb[0].mxu0 %vm109_vm1, %v478_v5  ;;  %464 = vmatmul.mubr.msk.bf16.vlgmr.msra.gmra.mrb[0].mxu1 %vm109_vm1, %v479_v6 }
   0x7   :  { %32 = vst.msk [vmem:[#allocation2 + $0x60] sm:$0xff] %vm19_vm2, %v484_v1  ;;  %33 = vst.msk [vmem:[#allocation2 + $0x68] sm:$0xff] %vm19_vm2, %v484_v1  ;;  %459 = vmatprep.mubr.msk.bf16.mxu0 %vm109_vm1, %v480_v7  ;;  %467 = vmatprep.mubr.msk.bf16.mxu1 %vm109_vm1, %v481_v8 }
   0x8   :  { %34 = vst.msk [vmem:[#allocation2 + $0x70] sm:$0xff] %vm19_vm2, %v484_v1  ;;  %35 = vst.msk [vmem:[#allocation2 + $0x78] sm:$0xff] %vm19_vm2, %v484_v1  ;;  %v38_v11 = vld [vmem:[#allocation2 + $0x10] sm:$0xff]  ;;  %v36_v13 = vld [vmem:[#allocation2] sm:$0xff] }
   0x9   :  { %v39_v16 = vld [vmem:[#allocation2 + $0x18] sm:$0xff]  ;;  %v37_v21 = vld [vmem:[#allocation2 + $0x8] sm:$0xff] }
   0xa   :  { %v40_v37 = vld [vmem:[#allocation2 + $0x20] sm:$0xff]  ;;  %v41_v46 = vld [vmem:[#allocation2 + $0x28] sm:$0xff] }
   0xb   :  { %v42_v35 = vld [vmem:[#allocation2 + $0x30] sm:$0xff]  ;;  %v43_v41 = vld [vmem:[#allocation2 + $0x38] sm:$0xff] }
   0xc   :  { %v44_v15 = vld [vmem:[#allocation2 + $0x40] sm:$0xff]  ;;  %v45_v26 = vld [vmem:[#allocation2 + $0x48] sm:$0xff] }
   0xd   :  { %v46_v12 = vld [vmem:[#allocation2 + $0x50] sm:$0xff]  ;;  %v47_v20 = vld [vmem:[#allocation2 + $0x58] sm:$0xff] }
   0xe   :  { %460 = vmatmul.mubr.msk.bf16.gmra.mrb[4].mxu0 %vm109_vm1, %v482_v9  ;;  %468 = vmatmul.mubr.msk.bf16.gmra.mrb[4].mxu1 %vm109_vm1, %v483_v10  ;;  %v48_v40 = vld [vmem:[#allocation2 + $0x60] sm:$0xff]  ;;  %v49_v52 = vld [vmem:[#allocation2 + $0x68] sm:$0xff] }
   0xf   :  { %v50_v36 = vld [vmem:[#allocation2 + $0x70] sm:$0xff]  ;;  %v51_v45 = vld [vmem:[#allocation2 + $0x78] sm:$0xff] }
  0xd9   :  { %v457_v14 = vpop.f32.mrb[0].mxu0  ;;  %v465_v18 = vpop.f32.mrb[0].mxu1 }
  0xda   :  { %v237_v17 = vadd.f32 %v457_v14, %v38_v11  ;;  %v172_v19 = vpop.f32.mrb[1].mxu0  ;;  %v245_v22 = vadd.f32 %v465_v18, %v46_v12  ;;  %v204_v24 = vpop.f32.mrb[1].mxu1 }
  0xdb   :  { %v235_v23 = vadd.f32 %v172_v19, %v36_v13  ;;  %v458_v25 = vpop.f32.mrb[2].mxu0  ;;  %v243_v27 = vadd.f32 %v204_v24, %v44_v15  ;;  %v466_v29 = vpop.f32.mrb[2].mxu1 }
  0xdc   :  { %254 = vst.msk [vmem:[#allocation2 + $0x10] sm:$0xff] %vm19_vm2, %v237_v17  ;;  %v238_v28 = vadd.f32 %v458_v25, %v39_v16  ;;  %v175_v30 = vpop.f32.mrb[3].mxu0  ;;  %262 = vst.msk [vmem:[#allocation2 + $0x50] sm:$0xff] %vm19_vm2, %v245_v22  ;;  %v246_v31 = vadd.f32 %v466_v29, %v47_v20  ;;  %v207_v33 = vpop.f32.mrb[3].mxu1 }
  0xdd   :  { %252 = vst.msk [vmem:[#allocation2] sm:$0xff] %vm19_vm2, %v235_v23  ;;  %v236_v32 = vadd.f32 %v175_v30, %v37_v21  ;;  %260 = vst.msk [vmem:[#allocation2 + $0x40] sm:$0xff] %vm19_vm2, %v243_v27  ;;  %v244_v34 = vadd.f32 %v207_v33, %v45_v26 }
  0xde   :  { %255 = vst.msk [vmem:[#allocation2 + $0x18] sm:$0xff] %vm19_vm2, %v238_v28  ;;  %263 = vst.msk [vmem:[#allocation2 + $0x58] sm:$0xff] %vm19_vm2, %v246_v31 }
  0xdf   :  { %253 = vst.msk [vmem:[#allocation2 + $0x8] sm:$0xff] %vm19_vm2, %v236_v32  ;;  %261 = vst.msk [vmem:[#allocation2 + $0x48] sm:$0xff] %vm19_vm2, %v244_v34 }
  0xe1   :  { %v461_v39 = vpop.f32.mrb[4].mxu0  ;;  %v469_v43 = vpop.f32.mrb[4].mxu1 }
  0xe2   :  { %v241_v42 = vadd.f32 %v461_v39, %v42_v35  ;;  %v188_v44 = vpop.f32.mrb[5].mxu0  ;;  %v249_v48 = vadd.f32 %v469_v43, %v50_v36  ;;  %v220_v50 = vpop.f32.mrb[5].mxu1 }
  0xe3   :  { %v273_v47 = vld [vmem:[#allocation2 + $0x10] sm:$0xff]  ;;  %v239_v49 = vadd.f32 %v188_v44, %v40_v37  ;;  %v462_v51 = vpop.f32.mrb[6].mxu0  ;;  %v247_v56 = vadd.f32 %v220_v50, %v48_v40  ;;  %v470_v58 = vpop.f32.mrb[6].mxu1 }
  0xe4   :  { %v296_v53 = vadd.f32 %v570_v38, %v273_v47  ;;  %v281_v54 = vld [vmem:[#allocation2 + $0x50] sm:$0xff]  ;;  %v271_v55 = vld [vmem:[#allocation2] sm:$0xff]  ;;  %258 = vst.msk [vmem:[#allocation2 + $0x30] sm:$0xff] %vm19_vm2, %v241_v42  ;;  %v242_v57 = vadd.f32 %v462_v51, %v43_v41  ;;  %v191_v59 = vpop.f32.mrb[7].mxu0  ;;  %266 = vst.msk [vmem:[#allocation2 + $0x70] sm:$0xff] %vm19_vm2, %v249_v48  ;;  %v250_v0 = vadd.f32 %v470_v58, %v51_v45  ;;  %v223_v2 = vpop.f32.mrb[7].mxu1 }
  0xe5   :  { %v304_v60 = vadd.f32 %v570_v38, %v281_v54  ;;  %v294_v61 = vadd.f32 %v570_v38, %v271_v55  ;;  %v279_v62 = vld [vmem:[#allocation2 + $0x40] sm:$0xff]  ;;  %v274_v63 = vld [vmem:[#allocation2 + $0x18] sm:$0xff]  ;;  %256 = vst.msk [vmem:[#allocation2 + $0x20] sm:$0xff] %vm19_vm2, %v239_v49  ;;  %v240_v1 = vadd.f32 %v191_v59, %v41_v46  ;;  %264 = vst.msk [vmem:[#allocation2 + $0x60] sm:$0xff] %vm19_vm2, %v247_v56 }
  0xe6   :  { %v430_v3 = vpack.c.bf16 %v296_v53, %v296_v53  ;;  %v302_v4 = vadd.f32 %v570_v38, %v279_v62  ;;  %v297_v5 = vadd.f32 %v570_v38, %v274_v63  ;;  %v282_v6 = vld [vmem:[#allocation2 + $0x58] sm:$0xff]  ;;  %v272_v7 = vld [vmem:[#allocation2 + $0x8] sm:$0xff]  ;;  %259 = vst.msk [vmem:[#allocation2 + $0x38] sm:$0xff] %vm19_vm2, %v242_v57  ;;  %v248_v8 = vadd.f32 %v223_v2, %v49_v52 }
  0xe7   :  { %v438_v9 = vpack.c.bf16 %v304_v60, %v304_v60  ;;  %v428_v10 = vpack.c.bf16 %v294_v61, %v294_v61  ;;  %v305_v11 = vadd.f32 %v570_v38, %v282_v6  ;;  %v295_v12 = vadd.f32 %v570_v38, %v272_v7  ;;  %v280_v13 = vld [vmem:[#allocation2 + $0x48] sm:$0xff]  ;;  %267 = vst.msk [vmem:[#allocation2 + $0x78] sm:$0xff] %vm19_vm2, %v250_v0 }
  0xe8   :  { %257 = vst.msk [vmem:[#allocation2 + $0x28] sm:$0xff] %vm19_vm2, %v240_v1  ;;  %v436_v14 = vpack.c.bf16 %v302_v4, %v302_v4  ;;  %v431_v15 = vpack.c.bf16 %v297_v5, %v297_v5  ;;  %v303_v16 = vadd.f32 %v570_v38, %v280_v13  ;;  %265 = vst.msk [vmem:[#allocation2 + $0x68] sm:$0xff] %vm19_vm2, %v248_v8 }
  0xe9   :  { %377 = vst.msk [vmem:[%s663_s3 + $0x8] sm:$0xf] %vm374_vm3, %v430_v3  ;;  %385 = vst.msk [vmem:[%s663_s3 + $0x28] sm:$0xf] %vm374_vm3, %v438_v9  ;;  %v439_v17 = vpack.c.bf16 %v305_v11, %v305_v11  ;;  %v429_v18 = vpack.c.bf16 %v295_v12, %v295_v12 }
  0xea   :  { %375 = vst.msk [vmem:[%s663_s3] sm:$0xf] %vm374_vm3, %v428_v10  ;;  %383 = vst.msk [vmem:[%s663_s3 + $0x20] sm:$0xf] %vm374_vm3, %v436_v14  ;;  %v437_v19 = vpack.c.bf16 %v303_v16, %v303_v16 }
  0xeb   :  { %378 = vst.msk [vmem:[%s663_s3 + $0xc] sm:$0xf] %vm374_vm3, %v431_v15  ;;  %386 = vst.msk [vmem:[%s663_s3 + $0x2c] sm:$0xf] %vm374_vm3, %v439_v17  ;;  %v277_v20 = vld [vmem:[#allocation2 + $0x30] sm:$0xff] }
  0xec   :  { %376 = vst.msk [vmem:[%s663_s3 + $0x4] sm:$0xf] %vm374_vm3, %v429_v18  ;;  %384 = vst.msk [vmem:[%s663_s3 + $0x24] sm:$0xf] %vm374_vm3, %v437_v19  ;;  %v300_v21 = vadd.f32 %v570_v38, %v277_v20  ;;  %v285_v22 = vld [vmem:[#allocation2 + $0x70] sm:$0xff]  ;;  %v275_v23 = vld [vmem:[#allocation2 + $0x20] sm:$0xff] }
  0xed   :  { %v308_v24 = vadd.f32 %v570_v38, %v285_v22  ;;  %v298_v25 = vadd.f32 %v570_v38, %v275_v23  ;;  %v283_v26 = vld [vmem:[#allocation2 + $0x60] sm:$0xff]  ;;  %v278_v27 = vld [vmem:[#allocation2 + $0x38] sm:$0xff] }
  0xee   :  { %v434_v28 = vpack.c.bf16 %v300_v21, %v300_v21  ;;  %v306_v29 = vadd.f32 %v570_v38, %v283_v26  ;;  %v301_v30 = vadd.f32 %v570_v38, %v278_v27  ;;  %v286_v31 = vld [vmem:[#allocation2 + $0x78] sm:$0xff] }
  0xef   :  { %v276_v32 = vld [vmem:[#allocation2 + $0x28] sm:$0xff]  ;;  %v442_v33 = vpack.c.bf16 %v308_v24, %v308_v24  ;;  %v432_v34 = vpack.c.bf16 %v298_v25, %v298_v25  ;;  %v309_v35 = vadd.f32 %v570_v38, %v286_v31 }
  0xf0   :  { %v299_v36 = vadd.f32 %v570_v38, %v276_v32  ;;  %v284_v37 = vld [vmem:[#allocation2 + $0x68] sm:$0xff]  ;;  %381 = vst.msk [vmem:[%s663_s3 + $0x18] sm:$0xf] %vm374_vm3, %v434_v28  ;;  %v440_v39 = vpack.c.bf16 %v306_v29, %v306_v29  ;;  %v435_v40 = vpack.c.bf16 %v301_v30, %v301_v30 }
  0xf1   :  { %v307_v41 = vadd.f32 %v570_v38, %v284_v37  ;;  %389 = vst.msk [vmem:[%s663_s3 + $0x38] sm:$0xf] %vm374_vm3, %v442_v33  ;;  %379 = vst.msk [vmem:[%s663_s3 + $0x10] sm:$0xf] %vm374_vm3, %v432_v34  ;;  %v443_v42 = vpack.c.bf16 %v309_v35, %v309_v35 }
  0xf2   :  { %v433_v43 = vpack.c.bf16 %v299_v36, %v299_v36  ;;  %387 = vst.msk [vmem:[%s663_s3 + $0x30] sm:$0xf] %vm374_vm3, %v440_v39  ;;  %382 = vst.msk [vmem:[%s663_s3 + $0x1c] sm:$0xf] %vm374_vm3, %v435_v40 }
  0xf3   :  { %v441_v38 = vpack.c.bf16 %v307_v41, %v307_v41  ;;  %390 = vst.msk [vmem:[%s663_s3 + $0x3c] sm:$0xf] %vm374_vm3, %v443_v42 }
  0xf4   :  { %380 = vst.msk [vmem:[%s663_s3 + $0x14] sm:$0xf] %vm374_vm3, %v433_v43 }
  0xf5   :  { %388 = vst.msk [vmem:[%s663_s3 + $0x34] sm:$0xf] %vm374_vm3, %v441_v38 }

// kernel: _lambda_.68
= control target key start
LH: loop header
LB: loop body
LE: loop exit
PB: predicated region body
PF: predicated region fallthrough
CT: control target
= control target key end

     0   :  { %vm19_vm0 = vcmask 130048   ;;  %v292_v0 = vmov 0   ;;  %v293_v2 = vmov 0.0   ;;  %vm224_vm1 = vcmask 125952   ;;  %s378_s1 = inlined_call_operand.vmem [shape: bf16[144,16], index: 1, kind: input, shape index: {}]   ;;  %s379_s0 = inlined_call_operand.vmem [shape: bf16[32,144], index: 0, kind: input, shape index: {}]   ;;  %s380_s2 = inlined_call_operand.vmem [shape: f32[1,16], index: 2, kind: input, shape index: {}]   ;;  %s381_s3 = inlined_call_operand.vmem [shape: bf16[32,16], index: 3, kind: output, shape index: {}]  }
   0x1   :  { %129 = vmatprep.subr.bf16.mxu0 %v292_v0  ;;  %257 = vmatprep.subr.bf16.mxu1 %v292_v0  ;;  %v277_v1 = vld [vmem:[%s378_s1] sm:$0xff]   ;;  %20 = vst.msk [vmem:[#allocation2] sm:$0xff] %vm19_vm0, %v293_v2  ;;  %21 = vst.msk [vmem:[#allocation2 + $0x8] sm:$0xff] %vm19_vm0, %v293_v2  ;;  %v278_v3 = vld [vmem:[%s378_s1 + $0x8] sm:$0xff]  }
   0x2   :  { %22 = vst.msk [vmem:[#allocation2 + $0x10] sm:$0xff] %vm19_vm0, %v293_v2  ;;  %23 = vst.msk [vmem:[#allocation2 + $0x18] sm:$0xff] %vm19_vm0, %v293_v2  ;;  %130 = vmatpush1.bf16.msra.mxu0 %v277_v1  ;;  %266 = vmatpush1.bf16.msra.mxu1 %v277_v1  ;;  %v279_v4 = vld [vmem:[%s378_s1 + $0x10] sm:$0xff]   ;;  %v280_v5 = vld [vmem:[%s378_s1 + $0x18] sm:$0xff]  }
   0x3   :  { %131 = vmatprep.subr.bf16.mxu0 %v292_v0  ;;  %258 = vmatprep.subr.bf16.mxu1 %v292_v0  ;;  %v288_v6 = vld [vmem:[%s379_s0 + $0x4] ss:$8 sps:$4 sm:$0xff]   ;;  %v291_v7 = vld [vmem:[%s379_s0 + $0x14] ss:$8 sps:$4 sm:$0xff]   ;;  %v286_v13 = vld [vmem:[%s379_s0] ss:$8 sps:$4 sm:$0xff]  }
   0x4   :  { %246 = vmatprep.mubr.msk.bf16.mxu0 %vm19_vm0, %v288_v6  ;;  %247 = vmatprep.mubr.msk.bf16.mxu1 %vm19_vm0, %v291_v7  ;;  %v281_v8 = vld [vmem:[%s378_s1 + $0x20] sm:$0xff]   ;;  %v282_v9 = vld [vmem:[%s378_s1 + $0x28] sm:$0xff]   ;;  %v283_v10 = vld [vmem:[%s378_s1 + $0x30] sm:$0xff]  }
   0x5   :  { %v284_v11 = vld [vmem:[%s378_s1 + $0x38] sm:$0xff]   ;;  %v285_v12 = vld [vmem:[%s378_s1 + $0x40] sm:$0xff]  }
   0x6   :  { %132 = vmatpush1.bf16.msra.mxu0 %v278_v3  ;;  %267 = vmatpush1.bf16.msra.mxu1 %v278_v3  ;;  %v289_v14 = vld [vmem:[%s379_s0 + $0x10] ss:$8 sps:$4 sm:$0xff]   ;;  %v248_v31 = vld [vmem:[%s380_s2] ss:$0 sm:$0xff] }
   0x7   :  { %133 = vmatprep.subr.bf16.mxu0 %v292_v0  ;;  %259 = vmatprep.subr.bf16.mxu1 %v292_v0 }
   0x8   :  { %v24_v15 = vld [vmem:[#allocation2] sm:$0xff]  ;;  %v25_v19 = vld [vmem:[#allocation2 + $0x8] sm:$0xff] }
   0x9   :  { %v26_v16 = vld [vmem:[#allocation2 + $0x10] sm:$0xff]  ;;  %v27_v20 = vld [vmem:[#allocation2 + $0x18] sm:$0xff] }
   0xa   :  { %134 = vmatpush1.bf16.msra.mxu0 %v279_v4  ;;  %268 = vmatpush1.bf16.msra.mxu1 %v279_v4 }
   0xb   :  { %135 = vmatprep.subr.bf16.mxu0 %v292_v0  ;;  %260 = vmatprep.subr.bf16.mxu1 %v292_v0 }
   0xe   :  { %136 = vmatpush1.bf16.msra.mxu0 %v280_v5  ;;  %269 = vmatpush1.bf16.msra.mxu1 %v280_v5 }
   0xf   :  { %137 = vmatprep.subr.bf16.mxu0 %v292_v0  ;;  %261 = vmatprep.subr.bf16.mxu1 %v292_v0 }
  0x12   :  { %138 = vmatpush1.bf16.msra.mxu0 %v281_v8  ;;  %270 = vmatpush1.bf16.msra.mxu1 %v281_v8 }
  0x13   :  { %139 = vmatprep.subr.bf16.mxu0 %v292_v0  ;;  %262 = vmatprep.subr.bf16.mxu1 %v292_v0 }
  0x16   :  { %140 = vmatpush1.bf16.msra.mxu0 %v282_v9  ;;  %271 = vmatpush1.bf16.msra.mxu1 %v282_v9 }
  0x17   :  { %141 = vmatprep.subr.bf16.mxu0 %v292_v0  ;;  %263 = vmatprep.subr.bf16.mxu1 %v292_v0 }
  0x1a   :  { %142 = vmatpush1.bf16.msra.mxu0 %v283_v10  ;;  %272 = vmatpush1.bf16.msra.mxu1 %v283_v10 }
  0x1b   :  { %143 = vmatprep.subr.bf16.mxu0 %v292_v0  ;;  %264 = vmatprep.subr.bf16.mxu1 %v292_v0 }
  0x1e   :  { %144 = vmatpush1.bf16.msra.mxu0 %v284_v11  ;;  %273 = vmatpush1.bf16.msra.mxu1 %v284_v11 }
  0x1f   :  { %145 = vmatprep.subr.bf16.mxu0 %v292_v0  ;;  %265 = vmatprep.subr.bf16.mxu1 %v292_v0 }
  0x22   :  { %146 = vmatpush1.bf16.msra.mxu0 %v285_v12  ;;  %274 = vmatpush1.bf16.msra.mxu1 %v285_v12 }
  0x25   :  { %162 = vmatmul.mubr.bf16.vlgmr.msra.gmra.mrb[0].mxu0 %v286_v13  ;;  %170 = vmatmul.mubr.bf16.vlgmr.msra.gmra.mrb[0].mxu1 %v289_v14 }
  0xf8   :  { %v163_v17 = vpop.f32.mrb[0].mxu0  ;;  %v171_v18 = vpop.f32.mrb[0].mxu1 }
  0xf9   :  { %v178_v21 = vadd.f32 %v163_v17, %v24_v15  ;;  %v180_v22 = vadd.f32 %v171_v18, %v26_v16  ;;  %v165_v23 = vpop.f32.mrb[1].mxu0  ;;  %v173_v24 = vpop.f32.mrb[1].mxu1 }
  0xfa   :  { %v166_v25 = vpop.f32.mrb[2].mxu0  ;;  %v174_v26 = vpop.f32.mrb[2].mxu1 }
  0xfb   :  { %182 = vst.msk [vmem:[#allocation2] sm:$0xff] %vm19_vm0, %v178_v21  ;;  %184 = vst.msk [vmem:[#allocation2 + $0x10] sm:$0xff] %vm19_vm0, %v180_v22  ;;  %v179_v27 = vadd.f32 %v166_v25, %v25_v19  ;;  %v181_v28 = vadd.f32 %v174_v26, %v27_v20  ;;  %v168_v29 = vpop.f32.mrb[3].mxu0  ;;  %v176_v30 = vpop.f32.mrb[3].mxu1 }
  0xfd   :  { %183 = vst.msk [vmem:[#allocation2 + $0x8] sm:$0xff] %vm19_vm0, %v179_v27  ;;  %185 = vst.msk [vmem:[#allocation2 + $0x18] sm:$0xff] %vm19_vm0, %v181_v28 }
 0x102   :  { %v189_v32 = vld [vmem:[#allocation2] sm:$0xff]  ;;  %v191_v33 = vld [vmem:[#allocation2 + $0x10] sm:$0xff] }
 0x103   :  { %v200_v34 = vadd.f32 %v248_v31, %v189_v32  ;;  %v202_v35 = vadd.f32 %v248_v31, %v191_v33 }
 0x104   :  { %v190_v36 = vld [vmem:[#allocation2 + $0x8] sm:$0xff]  ;;  %v192_v37 = vld [vmem:[#allocation2 + $0x18] sm:$0xff] }
 0x105   :  { %v204_v38 = vmax.f32 %v200_v34, 0.0  ;;  %v206_v39 = vmax.f32 %v202_v35, 0.0  ;;  %v201_v40 = vadd.f32 %v248_v31, %v190_v36  ;;  %v203_v41 = vadd.f32 %v248_v31, %v192_v37 }
 0x107   :  { %v253_v42 = vpack.c.bf16 %v204_v38, %v204_v38  ;;  %v255_v43 = vpack.c.bf16 %v206_v39, %v206_v39  ;;  %v205_v44 = vmax.f32 %v201_v40, 0.0  ;;  %v207_v45 = vmax.f32 %v203_v41, 0.0 }
 0x109   :  { %225 = vst.msk [vmem:[%s381_s3] sm:$0xf] %vm224_vm1, %v253_v42  ;;  %227 = vst.msk [vmem:[%s381_s3 + $0x8] sm:$0xf] %vm224_vm1, %v255_v43  ;;  %v254_v46 = vpack.c.bf16 %v205_v44, %v205_v44  ;;  %v256_v47 = vpack.c.bf16 %v207_v45, %v207_v45 }
 0x10b   :  { %226 = vst.msk [vmem:[%s381_s3 + $0x4] sm:$0xf] %vm224_vm1, %v254_v46  ;;  %228 = vst.msk [vmem:[%s381_s3 + $0xc] sm:$0xf] %vm224_vm1, %v256_v47 }

// kernel: _lambda_.69
= control target key start
LH: loop header
LB: loop body
LE: loop exit
PB: predicated region body
PF: predicated region fallthrough
CT: control target
= control target key end

     0   :  { %vm19_vm0 = vcmask 523264   ;;  %v198_v1 = vmov 0.0   ;;  %vm58_vm1 = vcmask 261120   ;;  %vm157_vm2 = vcmask 519168   ;;  %s254_s1 = inlined_call_operand.vmem [shape: bf16[32,64], index: 1, kind: input, shape index: {}]   ;;  %s255_s0 = inlined_call_operand.vmem [shape: bf16[32,32], index: 0, kind: input, shape index: {}]   ;;  %s256_s2 = inlined_call_operand.vmem [shape: f32[1,64], index: 2, kind: input, shape index: {}]   ;;  %s257_s3 = inlined_call_operand.vmem [shape: bf16[32,64], index: 3, kind: output, shape index: {}]  }
   0x1   :  { %v194_v0 = vld [vmem:[%s254_s1] sm:$0xff]   ;;  %22 = vst.msk [vmem:[#allocation2 + $0x10] sm:$0xff] %vm19_vm0, %v198_v1  ;;  %20 = vst.msk [vmem:[#allocation2] sm:$0xff] %vm19_vm0, %v198_v1  ;;  %v195_v2 = vld [vmem:[%s254_s1 + $0x8] sm:$0xff]  }
   0x2   :  { %21 = vst.msk [vmem:[#allocation2 + $0x8] sm:$0xff] %vm19_vm0, %v198_v1  ;;  %23 = vst.msk [vmem:[#allocation2 + $0x18] sm:$0xff] %vm19_vm0, %v198_v1  ;;  %185 = vmatprep.subr.bf16.mxu0 %v194_v0  ;;  %v196_v3 = vld [vmem:[%s255_s0] sm:$0xff]   ;;  %v197_v4 = vld [vmem:[%s255_s0 + $0x8] sm:$0xff]  }
   0x3   :  { %186 = vmatpush3.bf16.msra.mxu0 %v194_v0  ;;  %189 = vmatprep.mubr.msk.bf16.mxu0 %vm58_vm1, %v196_v3  ;;  %v172_v17 = vld [vmem:[%s256_s2] ss:$0 sm:$0xff] }
   0x4   :  { %187 = vmatprep.subr.bf16.mxu0 %v195_v2 }
   0x7   :  { %188 = vmatpush3.bf16.msra.mxu0 %v195_v2 }
   0x8   :  { %v26_v5 = vld [vmem:[#allocation2 + $0x10] sm:$0xff]  ;;  %v24_v6 = vld [vmem:[#allocation2] sm:$0xff] }
   0x9   :  { %v27_v8 = vld [vmem:[#allocation2 + $0x18] sm:$0xff]  ;;  %v25_v11 = vld [vmem:[#allocation2 + $0x8] sm:$0xff] }
   0xa   :  { %190 = vmatmul.mubr.msk.bf16.vlgmr.msra.gmra.mrb[0].mxu0 %vm58_vm1, %v197_v4 }
  0xdd   :  { %v191_v7 = vpop.f32.mrb[0].mxu0 }
  0xde   :  { %v116_v9 = vadd.f32 %v191_v7, %v26_v5  ;;  %v99_v10 = vpop.f32.mrb[1].mxu0 }
  0xdf   :  { %v114_v12 = vadd.f32 %v99_v10, %v24_v6  ;;  %v192_v13 = vpop.f32.mrb[2].mxu0 }
  0xe0   :  { %121 = vst.msk [vmem:[#allocation2 + $0x10] sm:$0xff] %vm19_vm0, %v116_v9  ;;  %v117_v14 = vadd.f32 %v192_v13, %v27_v8  ;;  %v102_v15 = vpop.f32.mrb[3].mxu0 }
  0xe1   :  { %119 = vst.msk [vmem:[#allocation2] sm:$0xff] %vm19_vm0, %v114_v12  ;;  %v115_v16 = vadd.f32 %v102_v15, %v25_v11 }
  0xe2   :  { %122 = vst.msk [vmem:[#allocation2 + $0x18] sm:$0xff] %vm19_vm0, %v117_v14 }
  0xe3   :  { %120 = vst.msk [vmem:[#allocation2 + $0x8] sm:$0xff] %vm19_vm0, %v115_v16 }
  0xe7   :  { %v128_v18 = vld [vmem:[#allocation2 + $0x10] sm:$0xff] }
  0xe8   :  { %v139_v19 = vadd.f32 %v172_v17, %v128_v18  ;;  %v126_v20 = vld [vmem:[#allocation2] sm:$0xff] }
  0xe9   :  { %v137_v21 = vadd.f32 %v172_v17, %v126_v20  ;;  %v129_v22 = vld [vmem:[#allocation2 + $0x18] sm:$0xff] }
  0xea   :  { %v179_v23 = vpack.c.bf16 %v139_v19, %v139_v19  ;;  %v140_v24 = vadd.f32 %v172_v17, %v129_v22  ;;  %v127_v25 = vld [vmem:[#allocation2 + $0x8] sm:$0xff] }
  0xeb   :  { %v177_v26 = vpack.c.bf16 %v137_v21, %v137_v21  ;;  %v138_v27 = vadd.f32 %v172_v17, %v127_v25 }
  0xec   :  { %160 = vst.msk [vmem:[%s257_s3 + $0x8] sm:$0xf] %vm157_vm2, %v179_v23  ;;  %v180_v28 = vpack.c.bf16 %v140_v24, %v140_v24 }
  0xed   :  { %158 = vst.msk [vmem:[%s257_s3] sm:$0xf] %vm157_vm2, %v177_v26  ;;  %v178_v29 = vpack.c.bf16 %v138_v27, %v138_v27 }
  0xee   :  { %161 = vst.msk [vmem:[%s257_s3 + $0xc] sm:$0xf] %vm157_vm2, %v180_v28 }
  0xef   :  { %159 = vst.msk [vmem:[%s257_s3 + $0x4] sm:$0xf] %vm157_vm2, %v178_v29 }

// kernel: _lambda_.70
= control target key start
LH: loop header
LB: loop body
LE: loop exit
PB: predicated region body
PF: predicated region fallthrough
CT: control target
= control target key end

     0   :  { %vm22_vm0 = vcmask 523264   ;;  %vm53_vm1 = vcmask 130048   ;;  %v213_v1 = vmov 0.0   ;;  %vm168_vm2 = vcmask 519168   ;;  %s277_s1 = inlined_call_operand.vmem [shape: bf16[16,64], index: 1, kind: input, shape index: {}]   ;;  %s278_s0 = inlined_call_operand.vmem [shape: bf16[32,16], index: 0, kind: input, shape index: {}]   ;;  %s279_s3 = inlined_call_operand.vmem [shape: bf16[32,64], index: 3, kind: input, shape index: {}]   ;;  %s280_s2 = inlined_call_operand.vmem [shape: f32[1,64], index: 2, kind: input, shape index: {}]   ;;  %s281_s4 = inlined_call_operand.vmem [shape: bf16[32,64], index: 4, kind: output, shape index: {}]  }
   0x1   :  { %v210_v0 = vld [vmem:[%s277_s1] sm:$0xff]   ;;  %25 = vst.msk [vmem:[#allocation2 + $0x10] sm:$0xff] %vm22_vm0, %v213_v1  ;;  %23 = vst.msk [vmem:[#allocation2] sm:$0xff] %vm22_vm0, %v213_v1  ;;  %v212_v3 = vld [vmem:[%s278_s0 + $0x8] sm:$0xff]  }
   0x2   :  { %24 = vst.msk [vmem:[#allocation2 + $0x8] sm:$0xff] %vm22_vm0, %v213_v1  ;;  %26 = vst.msk [vmem:[#allocation2 + $0x18] sm:$0xff] %vm22_vm0, %v213_v1  ;;  %v211_v2 = vld [vmem:[%s278_s0] sm:$0xff]   ;;  %203 = vmatprep.subr.bf16.mxu0 %v210_v0  ;;  %v199_v16 = vld [vmem:[%s279_s3 + $0x8] sm:$0xff]  }
   0x3   :  { %204 = vmatpush3.bf16.msra.mxu0 %v210_v0  ;;  %205 = vmatprep.mubr.msk.bf16.mxu0 %vm53_vm1, %v211_v2  ;;  %v192_v17 = vld [vmem:[%s279_s3] sm:$0xff]   ;;  %v197_v19 = vunpack.c.l.bf16 %v199_v16  ;;  %v198_v24 = vunpack.c.h.bf16 %v199_v16 }
   0x4   :  { %v182_v18 = vld [vmem:[%s280_s2] ss:$0 sm:$0xff]  ;;  %v193_v21 = vunpack.c.l.bf16 %v192_v17  ;;  %v194_v27 = vunpack.c.h.bf16 %v192_v17 }
   0x6   :  { %206 = vmatmul.mubr.msk.bf16.vlgmr.msra.gmra.mrb[0].mxu0 %vm53_vm1, %v212_v3 }
   0x8   :  { %v29_v4 = vld [vmem:[#allocation2 + $0x10] sm:$0xff]  ;;  %v27_v5 = vld [vmem:[#allocation2] sm:$0xff] }
   0x9   :  { %v30_v7 = vld [vmem:[#allocation2 + $0x18] sm:$0xff]  ;;  %v28_v10 = vld [vmem:[#allocation2 + $0x8] sm:$0xff] }
  0xd9   :  { %v207_v6 = vpop.f32.mrb[0].mxu0 }
  0xda   :  { %v111_v8 = vadd.f32 %v207_v6, %v29_v4  ;;  %v94_v9 = vpop.f32.mrb[1].mxu0 }
  0xdb   :  { %v109_v11 = vadd.f32 %v94_v9, %v27_v5  ;;  %v208_v12 = vpop.f32.mrb[2].mxu0 }
  0xdc   :  { %116 = vst.msk [vmem:[#allocation2 + $0x10] sm:$0xff] %vm22_vm0, %v111_v8  ;;  %v112_v13 = vadd.f32 %v208_v12, %v30_v7  ;;  %v97_v14 = vpop.f32.mrb[3].mxu0 }
  0xdd   :  { %114 = vst.msk [vmem:[#allocation2] sm:$0xff] %vm22_vm0, %v109_v11  ;;  %v110_v15 = vadd.f32 %v97_v14, %v28_v10 }
  0xde   :  { %117 = vst.msk [vmem:[#allocation2 + $0x18] sm:$0xff] %vm22_vm0, %v112_v13 }
  0xdf   :  { %115 = vst.msk [vmem:[#allocation2 + $0x8] sm:$0xff] %vm22_vm0, %v110_v15 }
  0xe3   :  { %v123_v20 = vld [vmem:[#allocation2 + $0x10] sm:$0xff] }
  0xe4   :  { %v134_v22 = vadd.f32 %v182_v18, %v123_v20  ;;  %v121_v23 = vld [vmem:[#allocation2] sm:$0xff] }
  0xe5   :  { %v132_v25 = vadd.f32 %v182_v18, %v121_v23  ;;  %v124_v26 = vld [vmem:[#allocation2 + $0x18] sm:$0xff] }
  0xe6   :  { %v146_v28 = vadd.f32 %v197_v19, %v134_v22  ;;  %v135_v29 = vadd.f32 %v182_v18, %v124_v26  ;;  %v122_v30 = vld [vmem:[#allocation2 + $0x8] sm:$0xff] }
  0xe7   :  { %v144_v31 = vadd.f32 %v193_v21, %v132_v25  ;;  %v133_v32 = vadd.f32 %v182_v18, %v122_v30 }
  0xe8   :  { %v150_v33 = vmax.f32 %v146_v28, 0.0  ;;  %v147_v34 = vadd.f32 %v198_v24, %v135_v29 }
  0xe9   :  { %v148_v35 = vmax.f32 %v144_v31, 0.0  ;;  %v145_v36 = vadd.f32 %v194_v27, %v133_v32 }
  0xea   :  { %v189_v37 = vpack.c.bf16 %v150_v33, %v150_v33  ;;  %v151_v38 = vmax.f32 %v147_v34, 0.0 }
  0xeb   :  { %v187_v39 = vpack.c.bf16 %v148_v35, %v148_v35  ;;  %v149_v40 = vmax.f32 %v145_v36, 0.0 }
  0xec   :  { %171 = vst.msk [vmem:[%s281_s4 + $0x8] sm:$0xf] %vm168_vm2, %v189_v37  ;;  %v190_v41 = vpack.c.bf16 %v151_v38, %v151_v38 }
  0xed   :  { %169 = vst.msk [vmem:[%s281_s4] sm:$0xf] %vm168_vm2, %v187_v39  ;;  %v188_v42 = vpack.c.bf16 %v149_v40, %v149_v40 }
  0xee   :  { %172 = vst.msk [vmem:[%s281_s4 + $0xc] sm:$0xf] %vm168_vm2, %v190_v41 }
  0xef   :  { %170 = vst.msk [vmem:[%s281_s4 + $0x4] sm:$0xf] %vm168_vm2, %v188_v42 }

// kernel: _lambda_.71
= control target key start
LH: loop header
LB: loop body
LE: loop exit
PB: predicated region body
PF: predicated region fallthrough
CT: control target
= control target key end

     0   :  { %vm19_vm0 = vcmask 130048   ;;  %v228_v1 = vmov 0.0   ;;  %vm74_vm1 = vcmask 523264   ;;  %vm177_vm2 = vcmask 125952   ;;  %s290_s1 = inlined_call_operand.vmem [shape: bf16[64,16], index: 1, kind: input, shape index: {}]   ;;  %s291_s0 = inlined_call_operand.vmem [shape: bf16[32,64], index: 0, kind: input, shape index: {}]   ;;  %s292_s2 = inlined_call_operand.vmem [shape: f32[1,16], index: 2, kind: input, shape index: {}]   ;;  %s293_s3 = inlined_call_operand.vmem [shape: bf16[32,16], index: 3, kind: output, shape index: {}]  }
   0x1   :  { %v222_v0 = vld [vmem:[%s290_s1] sm:$0xff]   ;;  %22 = vst.msk [vmem:[#allocation2 + $0x10] sm:$0xff] %vm19_vm0, %v228_v1  ;;  %20 = vst.msk [vmem:[#allocation2] sm:$0xff] %vm19_vm0, %v228_v1  ;;  %v223_v2 = vld [vmem:[%s290_s1 + $0x8] sm:$0xff]  }
   0x2   :  { %21 = vst.msk [vmem:[#allocation2 + $0x8] sm:$0xff] %vm19_vm0, %v228_v1  ;;  %23 = vst.msk [vmem:[#allocation2 + $0x18] sm:$0xff] %vm19_vm0, %v228_v1  ;;  %209 = vmatprep.subr.bf16.mxu0 %v222_v0  ;;  %v224_v3 = vld [vmem:[%s290_s1 + $0x10] sm:$0xff]   ;;  %v226_v4 = vld [vmem:[%s291_s0] sm:$0xff]  }
   0x3   :  { %210 = vmatpush3.bf16.msra.mxu0 %v222_v0  ;;  %217 = vmatprep.mubr.msk.bf16.mxu0 %vm74_vm1, %v226_v4  ;;  %v225_v5 = vld [vmem:[%s290_s1 + $0x18] sm:$0xff]   ;;  %v227_v6 = vld [vmem:[%s291_s0 + $0x8] sm:$0xff]   ;;  %v194_v19 = vld [vmem:[%s292_s2] ss:$0 sm:$0xff] }
   0x4   :  { %211 = vmatprep.subr.bf16.mxu0 %v223_v2 }
   0x7   :  { %212 = vmatpush3.bf16.msra.mxu0 %v223_v2 }
   0x8   :  { %213 = vmatprep.subr.bf16.mxu0 %v224_v3  ;;  %v26_v7 = vld [vmem:[#allocation2 + $0x10] sm:$0xff]  ;;  %v24_v8 = vld [vmem:[#allocation2] sm:$0xff] }
   0x9   :  { %v27_v10 = vld [vmem:[#allocation2 + $0x18] sm:$0xff]  ;;  %v25_v13 = vld [vmem:[#allocation2 + $0x8] sm:$0xff] }
   0xb   :  { %214 = vmatpush3.bf16.msra.mxu0 %v224_v3 }
   0xc   :  { %215 = vmatprep.subr.bf16.mxu0 %v225_v5 }
   0xf   :  { %216 = vmatpush3.bf16.msra.mxu0 %v225_v5 }
  0x12   :  { %218 = vmatmul.mubr.msk.bf16.vlgmr.msra.gmra.mrb[0].mxu0 %vm74_vm1, %v227_v6 }
  0xe5   :  { %v219_v9 = vpop.f32.mrb[0].mxu0 }
  0xe6   :  { %v132_v11 = vadd.f32 %v219_v9, %v26_v7  ;;  %v115_v12 = vpop.f32.mrb[1].mxu0 }
  0xe7   :  { %v130_v14 = vadd.f32 %v115_v12, %v24_v8  ;;  %v220_v15 = vpop.f32.mrb[2].mxu0 }
  0xe8   :  { %137 = vst.msk [vmem:[#allocation2 + $0x10] sm:$0xff] %vm19_vm0, %v132_v11  ;;  %v133_v16 = vadd.f32 %v220_v15, %v27_v10  ;;  %v118_v17 = vpop.f32.mrb[3].mxu0 }
  0xe9   :  { %135 = vst.msk [vmem:[#allocation2] sm:$0xff] %vm19_vm0, %v130_v14  ;;  %v131_v18 = vadd.f32 %v118_v17, %v25_v13 }
  0xea   :  { %138 = vst.msk [vmem:[#allocation2 + $0x18] sm:$0xff] %vm19_vm0, %v133_v16 }
  0xeb   :  { %136 = vst.msk [vmem:[#allocation2 + $0x8] sm:$0xff] %vm19_vm0, %v131_v18 }
  0xef   :  { %v144_v20 = vld [vmem:[#allocation2 + $0x10] sm:$0xff] }
  0xf0   :  { %v155_v21 = vadd.f32 %v194_v19, %v144_v20  ;;  %v142_v22 = vld [vmem:[#allocation2] sm:$0xff] }
  0xf1   :  { %v153_v23 = vadd.f32 %v194_v19, %v142_v22  ;;  %v145_v24 = vld [vmem:[#allocation2 + $0x18] sm:$0xff] }
  0xf2   :  { %v159_v25 = vmax.f32 %v155_v21, 0.0  ;;  %v156_v26 = vadd.f32 %v194_v19, %v145_v24  ;;  %v143_v27 = vld [vmem:[#allocation2 + $0x8] sm:$0xff] }
  0xf3   :  { %v157_v28 = vmax.f32 %v153_v23, 0.0  ;;  %v154_v29 = vadd.f32 %v194_v19, %v143_v27 }
  0xf4   :  { %v201_v30 = vpack.c.bf16 %v159_v25, %v159_v25  ;;  %v160_v31 = vmax.f32 %v156_v26, 0.0 }
  0xf5   :  { %v199_v32 = vpack.c.bf16 %v157_v28, %v157_v28  ;;  %v158_v33 = vmax.f32 %v154_v29, 0.0 }
  0xf6   :  { %180 = vst.msk [vmem:[%s293_s3 + $0x8] sm:$0xf] %vm177_vm2, %v201_v30  ;;  %v202_v34 = vpack.c.bf16 %v160_v31, %v160_v31 }
  0xf7   :  { %178 = vst.msk [vmem:[%s293_s3] sm:$0xf] %vm177_vm2, %v199_v32  ;;  %v200_v35 = vpack.c.bf16 %v158_v33, %v158_v33 }
  0xf8   :  { %181 = vst.msk [vmem:[%s293_s3 + $0xc] sm:$0xf] %vm177_vm2, %v202_v34 }
  0xf9   :  { %179 = vst.msk [vmem:[%s293_s3 + $0x4] sm:$0xf] %vm177_vm2, %v200_v35 }

// kernel: _lambda_.80
= control target key start
LH: loop header
LB: loop body
LE: loop exit
PB: predicated region body
PF: predicated region fallthrough
CT: control target
= control target key end

     0   :  { %vm19_vm0 = vcmask 261120   ;;  %v228_v1 = vmov 0.0   ;;  %vm74_vm1 = vcmask 523264   ;;  %vm177_vm2 = vcmask 257024   ;;  %s290_s1 = inlined_call_operand.vmem [shape: bf16[64,32], index: 1, kind: input, shape index: {}]   ;;  %s291_s0 = inlined_call_operand.vmem [shape: bf16[32,64], index: 0, kind: input, shape index: {}]   ;;  %s292_s2 = inlined_call_operand.vmem [shape: f32[1,32], index: 2, kind: input, shape index: {}]   ;;  %s293_s3 = inlined_call_operand.vmem [shape: bf16[32,32], index: 3, kind: output, shape index: {}]  }
   0x1   :  { %v222_v0 = vld [vmem:[%s290_s1] sm:$0xff]   ;;  %22 = vst.msk [vmem:[#allocation2 + $0x10] sm:$0xff] %vm19_vm0, %v228_v1  ;;  %20 = vst.msk [vmem:[#allocation2] sm:$0xff] %vm19_vm0, %v228_v1  ;;  %v223_v2 = vld [vmem:[%s290_s1 + $0x8] sm:$0xff]  }
   0x2   :  { %21 = vst.msk [vmem:[#allocation2 + $0x8] sm:$0xff] %vm19_vm0, %v228_v1  ;;  %23 = vst.msk [vmem:[#allocation2 + $0x18] sm:$0xff] %vm19_vm0, %v228_v1  ;;  %209 = vmatprep.subr.bf16.mxu0 %v222_v0  ;;  %v224_v3 = vld [vmem:[%s290_s1 + $0x10] sm:$0xff]   ;;  %v226_v4 = vld [vmem:[%s291_s0] sm:$0xff]  }
   0x3   :  { %210 = vmatpush3.bf16.msra.mxu0 %v222_v0  ;;  %217 = vmatprep.mubr.msk.bf16.mxu0 %vm74_vm1, %v226_v4  ;;  %v225_v5 = vld [vmem:[%s290_s1 + $0x18] sm:$0xff]   ;;  %v227_v6 = vld [vmem:[%s291_s0 + $0x8] sm:$0xff]   ;;  %v194_v19 = vld [vmem:[%s292_s2] ss:$0 sm:$0xff] }
   0x4   :  { %211 = vmatprep.subr.bf16.mxu0 %v223_v2 }
   0x7   :  { %212 = vmatpush3.bf16.msra.mxu0 %v223_v2 }
   0x8   :  { %213 = vmatprep.subr.bf16.mxu0 %v224_v3  ;;  %v26_v7 = vld [vmem:[#allocation2 + $0x10] sm:$0xff]  ;;  %v24_v8 = vld [vmem:[#allocation2] sm:$0xff] }
   0x9   :  { %v27_v10 = vld [vmem:[#allocation2 + $0x18] sm:$0xff]  ;;  %v25_v13 = vld [vmem:[#allocation2 + $0x8] sm:$0xff] }
   0xb   :  { %214 = vmatpush3.bf16.msra.mxu0 %v224_v3 }
   0xc   :  { %215 = vmatprep.subr.bf16.mxu0 %v225_v5 }
   0xf   :  { %216 = vmatpush3.bf16.msra.mxu0 %v225_v5 }
  0x12   :  { %218 = vmatmul.mubr.msk.bf16.vlgmr.msra.gmra.mrb[0].mxu0 %vm74_vm1, %v227_v6 }
  0xe5   :  { %v219_v9 = vpop.f32.mrb[0].mxu0 }
  0xe6   :  { %v132_v11 = vadd.f32 %v219_v9, %v26_v7  ;;  %v115_v12 = vpop.f32.mrb[1].mxu0 }
  0xe7   :  { %v130_v14 = vadd.f32 %v115_v12, %v24_v8  ;;  %v220_v15 = vpop.f32.mrb[2].mxu0 }
  0xe8   :  { %137 = vst.msk [vmem:[#allocation2 + $0x10] sm:$0xff] %vm19_vm0, %v132_v11  ;;  %v133_v16 = vadd.f32 %v220_v15, %v27_v10  ;;  %v118_v17 = vpop.f32.mrb[3].mxu0 }
  0xe9   :  { %135 = vst.msk [vmem:[#allocation2] sm:$0xff] %vm19_vm0, %v130_v14  ;;  %v131_v18 = vadd.f32 %v118_v17, %v25_v13 }
  0xea   :  { %138 = vst.msk [vmem:[#allocation2 + $0x18] sm:$0xff] %vm19_vm0, %v133_v16 }
  0xeb   :  { %136 = vst.msk [vmem:[#allocation2 + $0x8] sm:$0xff] %vm19_vm0, %v131_v18 }
  0xef   :  { %v144_v20 = vld [vmem:[#allocation2 + $0x10] sm:$0xff] }
  0xf0   :  { %v155_v21 = vadd.f32 %v194_v19, %v144_v20  ;;  %v142_v22 = vld [vmem:[#allocation2] sm:$0xff] }
  0xf1   :  { %v153_v23 = vadd.f32 %v194_v19, %v142_v22  ;;  %v145_v24 = vld [vmem:[#allocation2 + $0x18] sm:$0xff] }
  0xf2   :  { %v159_v25 = vmax.f32 %v155_v21, 0.0  ;;  %v156_v26 = vadd.f32 %v194_v19, %v145_v24  ;;  %v143_v27 = vld [vmem:[#allocation2 + $0x8] sm:$0xff] }
  0xf3   :  { %v157_v28 = vmax.f32 %v153_v23, 0.0  ;;  %v154_v29 = vadd.f32 %v194_v19, %v143_v27 }
  0xf4   :  { %v201_v30 = vpack.c.bf16 %v159_v25, %v159_v25  ;;  %v160_v31 = vmax.f32 %v156_v26, 0.0 }
  0xf5   :  { %v199_v32 = vpack.c.bf16 %v157_v28, %v157_v28  ;;  %v158_v33 = vmax.f32 %v154_v29, 0.0 }
  0xf6   :  { %180 = vst.msk [vmem:[%s293_s3 + $0x8] sm:$0xf] %vm177_vm2, %v201_v30  ;;  %v202_v34 = vpack.c.bf16 %v160_v31, %v160_v31 }
  0xf7   :  { %178 = vst.msk [vmem:[%s293_s3] sm:$0xf] %vm177_vm2, %v199_v32  ;;  %v200_v35 = vpack.c.bf16 %v158_v33, %v158_v33 }
  0xf8   :  { %181 = vst.msk [vmem:[%s293_s3 + $0xc] sm:$0xf] %vm177_vm2, %v202_v34 }
  0xf9   :  { %179 = vst.msk [vmem:[%s293_s3 + $0x4] sm:$0xf] %vm177_vm2, %v200_v35 }

// kernel: _lambda_.82
= control target key start
LH: loop header
LB: loop body
LE: loop exit
PB: predicated region body
PF: predicated region fallthrough
CT: control target
= control target key end

     0   :  { %vm73_vm0 = vcmask 523264   ;;  %s278_s1 = inlined_call_operand.vmem [shape: bf16[64,128], index: 1, kind: input, shape index: {}]   ;;  %s279_s0 = inlined_call_operand.vmem [shape: bf16[32,64], index: 0, kind: input, shape index: {}]   ;;  %s280_s2 = inlined_call_operand.vmem [shape: f32[1,128], index: 2, kind: input, shape index: {}]   ;;  %s281_s3 = inlined_call_operand.vmem [shape: bf16[32,128], index: 3, kind: output, shape index: {}]  }
   0x1   :  { %v225_v0 = vld [vmem:[%s278_s1] sm:$0xff]   ;;  %v226_v1 = vld [vmem:[%s278_s1 + $0x8] sm:$0xff]   ;;  %v227_v2 = vld [vmem:[%s278_s1 + $0x10] sm:$0xff]  }
   0x2   :  { %213 = vmatprep.subr.bf16.mxu0 %v225_v0  ;;  %v229_v3 = vld [vmem:[%s279_s0] sm:$0xff]   ;;  %v228_v4 = vld [vmem:[%s278_s1 + $0x18] sm:$0xff]   ;;  %v230_v5 = vld [vmem:[%s279_s0 + $0x8] sm:$0xff]  }
   0x3   :  { %214 = vmatpush3.bf16.msra.mxu0 %v225_v0  ;;  %221 = vmatprep.mubr.msk.bf16.mxu0 %vm73_vm0, %v229_v3  ;;  %v187_v7 = vld [vmem:[%s280_s2] ss:$0 sm:$0xff] }
   0x4   :  { %215 = vmatprep.subr.bf16.mxu0 %v226_v1 }
   0x7   :  { %216 = vmatpush3.bf16.msra.mxu0 %v226_v1 }
   0x8   :  { %217 = vmatprep.subr.bf16.mxu0 %v227_v2 }
   0xb   :  { %218 = vmatpush3.bf16.msra.mxu0 %v227_v2 }
   0xc   :  { %219 = vmatprep.subr.bf16.mxu0 %v228_v4 }
   0xf   :  { %220 = vmatpush3.bf16.msra.mxu0 %v228_v4 }
  0x12   :  { %222 = vmatmul.mubr.msk.bf16.vlgmr.msra.gmra.mrb[0].mxu0 %vm73_vm0, %v230_v5 }
  0xe5   :  { %v223_v6 = vpop.f32.mrb[0].mxu0 }
  0xe6   :  { %v114_v8 = vpop.f32.mrb[1].mxu0  ;;  %v153_v10 = vadd.f32 %v223_v6, %v187_v7 }
  0xe7   :  { %v224_v9 = vpop.f32.mrb[2].mxu0  ;;  %v151_v13 = vadd.f32 %v187_v7, %v114_v8 }
  0xe8   :  { %v154_v11 = vadd.f32 %v224_v9, %v187_v7  ;;  %v117_v12 = vpop.f32.mrb[3].mxu0 }
  0xe9   :  { %v152_v14 = vadd.f32 %v187_v7, %v117_v12 }
  0xea   :  { %v204_v15 = vpack.c.bf16 %v154_v11, %v153_v10 }
  0xeb   :  { %v199_v16 = vpack.c.bf16 %v152_v14, %v151_v13 }
  0xec   :  { %206 = vst [vmem:[%s281_s3 + $0x8] sm:$0xff] %v204_v15  }
  0xed   :  { %200 = vst [vmem:[%s281_s3] sm:$0xff] %v199_v16  }

// kernel: _lambda_.81
= control target key start
LH: loop header
LB: loop body
LE: loop exit
PB: predicated region body
PF: predicated region fallthrough
CT: control target
= control target key end

     0   :  { %vm19_vm0 = vcmask 261120   ;;  %v472_v24 = vmov 0.0   ;;  %vm361_vm1 = vcmask 257024   ;;  %s590_s1 = inlined_call_operand.vmem [shape: bf16[288,32], index: 1, kind: input, shape index: {}]   ;;  %s591_s0 = inlined_call_operand.vmem [shape: bf16[32,288], index: 0, kind: input, shape index: {}]   ;;  %s592_s2 = inlined_call_operand.vmem [shape: f32[1,32], index: 2, kind: input, shape index: {}]   ;;  %s593_s3 = inlined_call_operand.vmem [shape: bf16[32,32], index: 3, kind: output, shape index: {}]  }
   0x1   :  { %v446_v0 = vld [vmem:[%s590_s1 + $0x40] sm:$0xff]   ;;  %v448_v2 = vld [vmem:[%s590_s1 + $0x48] sm:$0xff]   ;;  %v450_v4 = vld [vmem:[%s590_s1 + $0x50] sm:$0xff]   ;;  %20 = vst.msk [vmem:[#allocation2] sm:$0xff] %vm19_vm0, %v472_v24 }
   0x2   :  { %v447_v1 = vld [vmem:[%s590_s1] sm:$0xff]   ;;  %405 = vmatprep.subr.bf16.mxu0 %v446_v0  ;;  %v449_v3 = vld [vmem:[%s590_s1 + $0x8] sm:$0xff]   ;;  %v451_v5 = vld [vmem:[%s590_s1 + $0x10] sm:$0xff]   ;;  %21 = vst.msk [vmem:[#allocation2 + $0x8] sm:$0xff] %vm19_vm0, %v472_v24 }
   0x3   :  { %406 = vmatpush3.bf16.msra.mxu0 %v447_v1  ;;  %v452_v6 = vld [vmem:[%s590_s1 + $0x58] sm:$0xff]   ;;  %v454_v8 = vld [vmem:[%s590_s1 + $0x60] sm:$0xff]   ;;  %v456_v11 = vld [vmem:[%s590_s1 + $0x68] sm:$0xff]   ;;  %22 = vst.msk [vmem:[#allocation2 + $0x10] sm:$0xff] %vm19_vm0, %v472_v24 }
   0x4   :  { %407 = vmatprep.subr.bf16.mxu0 %v448_v2  ;;  %v453_v7 = vld [vmem:[%s590_s1 + $0x18] sm:$0xff]   ;;  %v460_v9 = vld [vmem:[%s590_s1 + $0x80] sm:$0xff]   ;;  %v457_v12 = vld [vmem:[%s590_s1 + $0x28] sm:$0xff]   ;;  %23 = vst.msk [vmem:[#allocation2 + $0x18] sm:$0xff] %vm19_vm0, %v472_v24 }
   0x5   :  { %v455_v10 = vld [vmem:[%s590_s1 + $0x20] sm:$0xff]   ;;  %437 = vmatprep.subr.bf16.mxu1 %v460_v9  ;;  %v463_v13 = vld [vmem:[%s590_s1 + $0x88] sm:$0xff]   ;;  %v458_v14 = vld [vmem:[%s590_s1 + $0x70] sm:$0xff]  }
   0x6   :  { %438 = vmatpush3.bf16.msra.mxu1 %v460_v9  ;;  %v466_v15 = vld [vmem:[%s591_s0 + $0x4] ss:$12 sps:$4 sm:$0xff]   ;;  %v467_v16 = vld [vmem:[%s591_s0 + $0x8] ss:$12 sps:$4 sm:$0xff]   ;;  %v468_v17 = vld [vmem:[%s591_s0 + $0x20] ss:$12 sps:$4 sm:$0xff]  }
   0x7   :  { %408 = vmatpush3.bf16.msra.mxu0 %v449_v3  ;;  %439 = vmatprep.subr.bf16.mxu1 %v463_v13  ;;  %v459_v18 = vld [vmem:[%s590_s1 + $0x30] sm:$0xff]   ;;  %v461_v19 = vld [vmem:[%s590_s1 + $0x78] sm:$0xff]   ;;  %v464_v21 = vld [vmem:[%s591_s0] ss:$12 sps:$4 sm:$0xff]  }
   0x8   :  { %409 = vmatprep.subr.bf16.mxu0 %v450_v4  ;;  %249 = vmatprep.mubr.bf16.mxu0 %v466_v15  ;;  %v462_v20 = vld [vmem:[%s590_s1 + $0x38] sm:$0xff]   ;;  %v24_v34 = vld [vmem:[#allocation2] sm:$0xff] }
   0x9   :  { %441 = vmatprep.mubr.msk.bf16.mxu1 %vm19_vm0, %v467_v16  ;;  %v469_v22 = vld [vmem:[%s591_s0 + $0x1c] ss:$12 sps:$4 sm:$0xff]   ;;  %v471_v23 = vld [vmem:[%s591_s0 + $0x18] ss:$12 sps:$4 sm:$0xff]   ;;  %v396_v49 = vld [vmem:[%s592_s2] ss:$0 sm:$0xff] }
   0xa   :  { %440 = vmatpush3.bf16.msra.mxu1 %v463_v13  ;;  %v25_v37 = vld [vmem:[#allocation2 + $0x8] sm:$0xff]  ;;  %v26_v45 = vld [vmem:[#allocation2 + $0x10] sm:$0xff] }
   0xb   :  { %410 = vmatpush3.bf16.msra.mxu0 %v451_v5  ;;  %v27_v50 = vld [vmem:[#allocation2 + $0x18] sm:$0xff] }
   0xc   :  { %411 = vmatprep.subr.bf16.mxu0 %v452_v6 }
   0xd   :  { %442 = vmatmul.mubr.msk.bf16.vlgmr.msra.gmra.mrb[0].mxu1 %vm19_vm0, %v468_v17 }
   0xf   :  { %412 = vmatpush3.bf16.msra.mxu0 %v453_v7 }
  0x10   :  { %413 = vmatprep.subr.bf16.mxu0 %v454_v8 }
  0x13   :  { %414 = vmatpush3.bf16.msra.mxu0 %v455_v10 }
  0x14   :  { %415 = vmatprep.subr.bf16.mxu0 %v456_v11 }
  0x17   :  { %416 = vmatpush3.bf16.msra.mxu0 %v457_v12 }
  0x18   :  { %417 = vmatprep.subr.bf16.mxu0 %v458_v14 }
  0x1b   :  { %418 = vmatpush3.bf16.msra.mxu0 %v459_v18 }
  0x1c   :  { %419 = vmatprep.subr.bf16.mxu0 %v461_v19 }
  0x1f   :  { %420 = vmatpush3.bf16.msra.mxu0 %v462_v20 }
  0x22   :  { %250 = vmatmul.mubr.bf16.vlgmr.msra.gmra.mrb[0].mxu0 %v464_v21 }
  0x23   :  { %257 = vmatprep.mubr.bf16.mxu0 %v469_v22 }
  0x2a   :  { %258 = vmatmul.mubr.bf16.gmra.mrb[4].mxu0 %v471_v23 }
  0xe0   :  { %v443_v25 = vpop.f32.mrb[0].mxu1 }
  0xe1   :  { %v300_v26 = vpop.f32.mrb[1].mxu1 }
  0xe2   :  { %v444_v27 = vpop.f32.mrb[2].mxu1 }
  0xe3   :  { %v303_v28 = vpop.f32.mrb[3].mxu1 }
  0xf5   :  { %v421_v29 = vpop.f32.mrb[0].mxu0 }
  0xf6   :  { %v422_v30 = vpop.f32.mrb[1].mxu0 }
  0xf7   :  { %v423_v31 = vadd.f32 %v422_v30, %v421_v29  ;;  %v424_v32 = vpop.f32.mrb[2].mxu0 }
  0xf8   :  { %v425_v33 = vpop.f32.mrb[3].mxu0 }
  0xf9   :  { %v426_v35 = vadd.f32 %v425_v33, %v424_v32  ;;  %v301_v36 = vadd.f32 %v423_v31, %v300_v26 }
  0xfb   :  { %v315_v38 = vadd.f32 %v301_v36, %v24_v34  ;;  %v304_v39 = vadd.f32 %v426_v35, %v303_v28 }
  0xfd   :  { %319 = vst.msk [vmem:[#allocation2] sm:$0xff] %vm19_vm0, %v315_v38  ;;  %v316_v40 = vadd.f32 %v304_v39, %v25_v37  ;;  %v427_v41 = vpop.f32.mrb[4].mxu0 }
  0xfe   :  { %v428_v42 = vpop.f32.mrb[5].mxu0 }
  0xff   :  { %320 = vst.msk [vmem:[#allocation2 + $0x8] sm:$0xff] %vm19_vm0, %v316_v40  ;;  %v429_v43 = vadd.f32 %v428_v42, %v427_v41  ;;  %v430_v44 = vpop.f32.mrb[6].mxu0 }
 0x100   :  { %v431_v46 = vpop.f32.mrb[7].mxu0 }
 0x101   :  { %v309_v47 = vadd.f32 %v443_v25, %v429_v43  ;;  %v432_v48 = vadd.f32 %v431_v46, %v430_v44 }
 0x103   :  { %v317_v51 = vadd.f32 %v309_v47, %v26_v45  ;;  %v312_v52 = vadd.f32 %v444_v27, %v432_v48 }
 0x104   :  { %v326_v53 = vld [vmem:[#allocation2] sm:$0xff] }
 0x105   :  { %v337_v54 = vadd.f32 %v396_v49, %v326_v53  ;;  %321 = vst.msk [vmem:[#allocation2 + $0x10] sm:$0xff] %vm19_vm0, %v317_v51  ;;  %v318_v55 = vadd.f32 %v312_v52, %v27_v50 }
 0x106   :  { %v327_v56 = vld [vmem:[#allocation2 + $0x8] sm:$0xff] }
 0x107   :  { %v341_v57 = vmax.f32 %v337_v54, 0.0  ;;  %v338_v58 = vadd.f32 %v396_v49, %v327_v56  ;;  %322 = vst.msk [vmem:[#allocation2 + $0x18] sm:$0xff] %vm19_vm0, %v318_v55 }
 0x109   :  { %v401_v59 = vpack.c.bf16 %v341_v57, %v341_v57  ;;  %v342_v60 = vmax.f32 %v338_v58, 0.0 }
 0x10b   :  { %362 = vst.msk [vmem:[%s593_s3] sm:$0xf] %vm361_vm1, %v401_v59  ;;  %v402_v61 = vpack.c.bf16 %v342_v60, %v342_v60 }
 0x10c   :  { %v328_v62 = vld [vmem:[#allocation2 + $0x10] sm:$0xff] }
 0x10d   :  { %363 = vst.msk [vmem:[%s593_s3 + $0x4] sm:$0xf] %vm361_vm1, %v402_v61  ;;  %v339_v63 = vadd.f32 %v396_v49, %v328_v62 }
 0x10e   :  { %v329_v0 = vld [vmem:[#allocation2 + $0x18] sm:$0xff] }
 0x10f   :  { %v343_v1 = vmax.f32 %v339_v63, 0.0  ;;  %v340_v2 = vadd.f32 %v396_v49, %v329_v0 }
 0x111   :  { %v403_v3 = vpack.c.bf16 %v343_v1, %v343_v1  ;;  %v344_v4 = vmax.f32 %v340_v2, 0.0 }
 0x113   :  { %364 = vst.msk [vmem:[%s593_s3 + $0x8] sm:$0xf] %vm361_vm1, %v403_v3  ;;  %v404_v5 = vpack.c.bf16 %v344_v4, %v344_v4 }
 0x115   :  { %365 = vst.msk [vmem:[%s593_s3 + $0xc] sm:$0xf] %vm361_vm1, %v404_v5 }

// kernel: _lambda_.83
= control target key start
LH: loop header
LB: loop body
LE: loop exit
PB: predicated region body
PF: predicated region fallthrough
CT: control target
= control target key end

     0   :  { %vm60_vm0 = vcmask 261120   ;;  %s285_s1 = inlined_call_operand.vmem [shape: bf16[32,128], index: 1, kind: input, shape index: {}]   ;;  %s286_s0 = inlined_call_operand.vmem [shape: bf16[32,32], index: 0, kind: input, shape index: {}]   ;;  %s287_s3 = inlined_call_operand.vmem [shape: bf16[32,128], index: 3, kind: input, shape index: {}]   ;;  %s288_s2 = inlined_call_operand.vmem [shape: f32[1,128], index: 2, kind: input, shape index: {}]   ;;  %s289_s4 = inlined_call_operand.vmem [shape: bf16[32,128], index: 4, kind: output, shape index: {}]  }
   0x1   :  { %v229_v0 = vld [vmem:[%s285_s1] sm:$0xff]   ;;  %v230_v1 = vld [vmem:[%s285_s1 + $0x8] sm:$0xff]  }
   0x2   :  { %221 = vmatprep.subr.bf16.mxu0 %v229_v0  ;;  %v231_v2 = vld [vmem:[%s286_s0] sm:$0xff]   ;;  %v232_v3 = vld [vmem:[%s286_s0 + $0x8] sm:$0xff]  }
   0x3   :  { %222 = vmatpush3.bf16.msra.mxu0 %v229_v0  ;;  %225 = vmatprep.mubr.msk.bf16.mxu0 %vm60_vm0, %v231_v2  ;;  %v215_v4 = vld [vmem:[%s287_s3 + $0x8] sm:$0xff]   ;;  %v198_v5 = vld [vmem:[%s287_s3] sm:$0xff]  }
   0x4   :  { %223 = vmatprep.subr.bf16.mxu0 %v230_v1  ;;  %v188_v6 = vld [vmem:[%s288_s2] ss:$0 sm:$0xff]  ;;  %v203_v7 = vunpack.c.l.bf16 %v215_v4  ;;  %v199_v9 = vunpack.c.l.bf16 %v198_v5  ;;  %v204_v12 = vunpack.c.h.bf16 %v215_v4  ;;  %v200_v15 = vunpack.c.h.bf16 %v198_v5 }
   0x7   :  { %224 = vmatpush3.bf16.msra.mxu0 %v230_v1 }
   0xa   :  { %226 = vmatmul.mubr.msk.bf16.vlgmr.msra.gmra.mrb[0].mxu0 %vm60_vm0, %v232_v3 }
  0xdd   :  { %v227_v8 = vpop.f32.mrb[0].mxu0 }
  0xde   :  { %v140_v10 = vadd.f32 %v227_v8, %v188_v6  ;;  %v101_v11 = vpop.f32.mrb[1].mxu0 }
  0xdf   :  { %v138_v13 = vadd.f32 %v188_v6, %v101_v11  ;;  %v228_v14 = vpop.f32.mrb[2].mxu0 }
  0xe0   :  { %v152_v16 = vadd.f32 %v203_v7, %v140_v10  ;;  %v141_v17 = vadd.f32 %v228_v14, %v188_v6  ;;  %v104_v18 = vpop.f32.mrb[3].mxu0 }
  0xe1   :  { %v150_v19 = vadd.f32 %v199_v9, %v138_v13  ;;  %v139_v20 = vadd.f32 %v188_v6, %v104_v18 }
  0xe2   :  { %v153_v21 = vadd.f32 %v204_v12, %v141_v17  ;;  %v156_v23 = vmax.f32 %v152_v16, 0.0 }
  0xe3   :  { %v151_v22 = vadd.f32 %v200_v15, %v139_v20  ;;  %v154_v25 = vmax.f32 %v150_v19, 0.0 }
  0xe4   :  { %v157_v24 = vmax.f32 %v153_v21, 0.0 }
  0xe5   :  { %v155_v26 = vmax.f32 %v151_v22, 0.0 }
  0xe6   :  { %v213_v27 = vpack.c.bf16 %v157_v24, %v156_v23 }
  0xe7   :  { %v208_v28 = vpack.c.bf16 %v155_v26, %v154_v25 }
  0xe8   :  { %216 = vst [vmem:[%s289_s4 + $0x8] sm:$0xff] %v213_v27  }
  0xe9   :  { %209 = vst [vmem:[%s289_s4] sm:$0xff] %v208_v28  }

// kernel: _lambda_.84
= control target key start
LH: loop header
LB: loop body
LE: loop exit
PB: predicated region body
PF: predicated region fallthrough
CT: control target
= control target key end

     0   :  { %vm19_vm0 = vcmask 261120   ;;  %v273_v1 = vmov 0.0   ;;  %vm204_vm1 = vcmask 257024   ;;  %s347_s1 = inlined_call_operand.vmem [shape: bf16[128,32], index: 1, kind: input, shape index: {}]   ;;  %s348_s0 = inlined_call_operand.vmem [shape: bf16[32,128], index: 0, kind: input, shape index: {}]   ;;  %s349_s2 = inlined_call_operand.vmem [shape: f32[1,32], index: 2, kind: input, shape index: {}]   ;;  %s350_s3 = inlined_call_operand.vmem [shape: bf16[32,32], index: 3, kind: output, shape index: {}]  }
   0x1   :  { %v263_v0 = vld [vmem:[%s347_s1] sm:$0xff]   ;;  %22 = vst.msk [vmem:[#allocation2 + $0x10] sm:$0xff] %vm19_vm0, %v273_v1  ;;  %20 = vst.msk [vmem:[#allocation2] sm:$0xff] %vm19_vm0, %v273_v1  ;;  %v264_v2 = vld [vmem:[%s347_s1 + $0x8] sm:$0xff]  }
   0x2   :  { %21 = vst.msk [vmem:[#allocation2 + $0x8] sm:$0xff] %vm19_vm0, %v273_v1  ;;  %23 = vst.msk [vmem:[#allocation2 + $0x18] sm:$0xff] %vm19_vm0, %v273_v1  ;;  %242 = vmatprep.subr.bf16.mxu0 %v263_v0  ;;  %v265_v3 = vld [vmem:[%s347_s1 + $0x10] sm:$0xff]   ;;  %v266_v4 = vld [vmem:[%s347_s1 + $0x18] sm:$0xff]  }
   0x3   :  { %243 = vmatpush3.bf16.msra.mxu0 %v263_v0  ;;  %v271_v5 = vld [vmem:[%s348_s0] sm:$0xff]   ;;  %v268_v7 = vld [vmem:[%s347_s1 + $0x28] sm:$0xff]   ;;  %v269_v8 = vld [vmem:[%s347_s1 + $0x30] sm:$0xff]  }
   0x4   :  { %244 = vmatprep.subr.bf16.mxu0 %v264_v2  ;;  %258 = vmatprep.mubr.bf16.mxu0 %v271_v5  ;;  %v267_v6 = vld [vmem:[%s347_s1 + $0x20] sm:$0xff]   ;;  %v270_v9 = vld [vmem:[%s347_s1 + $0x38] sm:$0xff]   ;;  %v272_v10 = vld [vmem:[%s348_s0 + $0x8] sm:$0xff]  }
   0x5   :  { %v223_v23 = vld [vmem:[%s349_s2] ss:$0 sm:$0xff] }
   0x7   :  { %245 = vmatpush3.bf16.msra.mxu0 %v264_v2 }
   0x8   :  { %246 = vmatprep.subr.bf16.mxu0 %v265_v3  ;;  %v26_v11 = vld [vmem:[#allocation2 + $0x10] sm:$0xff]  ;;  %v24_v12 = vld [vmem:[#allocation2] sm:$0xff] }
   0x9   :  { %v27_v14 = vld [vmem:[#allocation2 + $0x18] sm:$0xff]  ;;  %v25_v17 = vld [vmem:[#allocation2 + $0x8] sm:$0xff] }
   0xb   :  { %247 = vmatpush3.bf16.msra.mxu0 %v265_v3 }
   0xc   :  { %248 = vmatprep.subr.bf16.mxu0 %v266_v4 }
   0xf   :  { %249 = vmatpush3.bf16.msra.mxu0 %v266_v4 }
  0x10   :  { %250 = vmatprep.subr.bf16.mxu0 %v267_v6 }
  0x13   :  { %251 = vmatpush3.bf16.msra.mxu0 %v267_v6 }
  0x14   :  { %252 = vmatprep.subr.bf16.mxu0 %v268_v7 }
  0x17   :  { %253 = vmatpush3.bf16.msra.mxu0 %v268_v7 }
  0x18   :  { %254 = vmatprep.subr.bf16.mxu0 %v269_v8 }
  0x1b   :  { %255 = vmatpush3.bf16.msra.mxu0 %v269_v8 }
  0x1c   :  { %256 = vmatprep.subr.bf16.mxu0 %v270_v9 }
  0x1f   :  { %257 = vmatpush3.bf16.msra.mxu0 %v270_v9 }
  0x22   :  { %259 = vmatmul.mubr.bf16.vlgmr.msra.gmra.mrb[0].mxu0 %v272_v10 }
  0xf5   :  { %v260_v13 = vpop.f32.mrb[0].mxu0 }
  0xf6   :  { %v159_v15 = vadd.f32 %v260_v13, %v26_v11  ;;  %v142_v16 = vpop.f32.mrb[1].mxu0 }
  0xf7   :  { %v157_v18 = vadd.f32 %v142_v16, %v24_v12  ;;  %v261_v19 = vpop.f32.mrb[2].mxu0 }
  0xf8   :  { %164 = vst.msk [vmem:[#allocation2 + $0x10] sm:$0xff] %vm19_vm0, %v159_v15  ;;  %v160_v20 = vadd.f32 %v261_v19, %v27_v14  ;;  %v145_v21 = vpop.f32.mrb[3].mxu0 }
  0xf9   :  { %162 = vst.msk [vmem:[#allocation2] sm:$0xff] %vm19_vm0, %v157_v18  ;;  %v158_v22 = vadd.f32 %v145_v21, %v25_v17 }
  0xfa   :  { %165 = vst.msk [vmem:[#allocation2 + $0x18] sm:$0xff] %vm19_vm0, %v160_v20 }
  0xfb   :  { %163 = vst.msk [vmem:[#allocation2 + $0x8] sm:$0xff] %vm19_vm0, %v158_v22 }
  0xff   :  { %v171_v24 = vld [vmem:[#allocation2 + $0x10] sm:$0xff] }
 0x100   :  { %v182_v25 = vadd.f32 %v223_v23, %v171_v24  ;;  %v169_v26 = vld [vmem:[#allocation2] sm:$0xff] }
 0x101   :  { %v180_v27 = vadd.f32 %v223_v23, %v169_v26  ;;  %v172_v28 = vld [vmem:[#allocation2 + $0x18] sm:$0xff] }
 0x102   :  { %v186_v29 = vmax.f32 %v182_v25, 0.0  ;;  %v183_v30 = vadd.f32 %v223_v23, %v172_v28  ;;  %v170_v31 = vld [vmem:[#allocation2 + $0x8] sm:$0xff] }
 0x103   :  { %v184_v32 = vmax.f32 %v180_v27, 0.0  ;;  %v181_v33 = vadd.f32 %v223_v23, %v170_v31 }
 0x104   :  { %v230_v34 = vpack.c.bf16 %v186_v29, %v186_v29  ;;  %v187_v35 = vmax.f32 %v183_v30, 0.0 }
 0x105   :  { %v228_v36 = vpack.c.bf16 %v184_v32, %v184_v32  ;;  %v185_v37 = vmax.f32 %v181_v33, 0.0 }
 0x106   :  { %207 = vst.msk [vmem:[%s350_s3 + $0x8] sm:$0xf] %vm204_vm1, %v230_v34  ;;  %v231_v38 = vpack.c.bf16 %v187_v35, %v187_v35 }
 0x107   :  { %205 = vst.msk [vmem:[%s350_s3] sm:$0xf] %vm204_vm1, %v228_v36  ;;  %v229_v39 = vpack.c.bf16 %v185_v37, %v185_v37 }
 0x108   :  { %208 = vst.msk [vmem:[%s350_s3 + $0xc] sm:$0xf] %vm204_vm1, %v231_v38 }
 0x109   :  { %206 = vst.msk [vmem:[%s350_s3 + $0x4] sm:$0xf] %vm204_vm1, %v229_v39 }

// kernel: _lambda_.101
= control target key start
LH: loop header
LB: loop body
LE: loop exit
PB: predicated region body
PF: predicated region fallthrough
CT: control target
= control target key end

     0   :  { %v348_v1 = vmov 0   ;;  %v229_v19 = vlaneseq  ;;  %s438_s1 = inlined_call_operand.vmem [shape: bf16[128,256], index: 1, kind: input, shape index: {}]   ;;  %s439_s0 = inlined_call_operand.vmem [shape: bf16[32,128], index: 0, kind: input, shape index: {}]   ;;  %s440_s2 = inlined_call_operand.vmem [shape: f32[1,256], index: 2, kind: input, shape index: {}]   ;;  %s441_s3 = inlined_call_operand.vmem [shape: bf16[32,256], index: 3, kind: output, shape index: {}]  }
   0x1   :  { %v322_v0 = vld [vmem:[%s438_s1 + $0x4] ss:$8 sps:$4 sm:$0xff]   ;;  %179 = vmatprep.mubr.bf16.mxu0 %v348_v1  ;;  %189 = vmatprep.mubr.bf16.mxu1 %v348_v1  ;;  %v324_v2 = vld [vmem:[%s438_s1] ss:$8 sps:$4 sm:$0xff]   ;;  %v325_v3 = vld [vmem:[%s438_s1 + $0x14] ss:$8 sps:$4 sm:$0xff]  }
   0x2   :  { %147 = vmatprep.subr.bf16.mxu0 %v322_v0  ;;  %305 = vmatprep.subr.bf16.mxu1 %v322_v0  ;;  %v327_v4 = vld [vmem:[%s438_s1 + $0x10] ss:$8 sps:$4 sm:$0xff]   ;;  %v328_v5 = vld [vmem:[%s438_s1 + $0x24] ss:$8 sps:$4 sm:$0xff]   ;;  %v330_v6 = vld [vmem:[%s438_s1 + $0x20] ss:$8 sps:$4 sm:$0xff]  }
   0x3   :  { %148 = vmatpush1.bf16.msra.mxu0 %v324_v2  ;;  %313 = vmatpush1.bf16.msra.mxu1 %v324_v2  ;;  %v331_v7 = vld [vmem:[%s438_s1 + $0x34] ss:$8 sps:$4 sm:$0xff]   ;;  %v333_v8 = vld [vmem:[%s438_s1 + $0x30] ss:$8 sps:$4 sm:$0xff]   ;;  %v334_v9 = vld [vmem:[%s438_s1 + $0x44] ss:$8 sps:$4 sm:$0xff]  }
   0x4   :  { %149 = vmatprep.subr.bf16.mxu0 %v325_v3  ;;  %306 = vmatprep.subr.bf16.mxu1 %v325_v3  ;;  %v336_v10 = vld [vmem:[%s438_s1 + $0x40] ss:$8 sps:$4 sm:$0xff]   ;;  %v337_v11 = vld [vmem:[%s438_s1 + $0x54] ss:$8 sps:$4 sm:$0xff]   ;;  %v339_v12 = vld [vmem:[%s438_s1 + $0x50] ss:$8 sps:$4 sm:$0xff]  }
   0x5   :  { %v340_v13 = vld [vmem:[%s438_s1 + $0x64] ss:$8 sps:$4 sm:$0xff]   ;;  %v342_v14 = vld [vmem:[%s438_s1 + $0x60] ss:$8 sps:$4 sm:$0xff]   ;;  %v343_v15 = vld [vmem:[%s438_s1 + $0x74] ss:$8 sps:$4 sm:$0xff]  }
   0x6   :  { %v345_v16 = vld [vmem:[%s438_s1 + $0x70] ss:$8 sps:$4 sm:$0xff]   ;;  %v346_v17 = vld [vmem:[%s439_s0] sm:$0xff]   ;;  %v347_v18 = vld [vmem:[%s439_s0 + $0x8] sm:$0xff]   ;;  %v230_v20 = vshrl.u32 %v229_v19, 7 }
   0x7   :  { %150 = vmatpush1.bf16.msra.mxu0 %v327_v4  ;;  %314 = vmatpush1.bf16.msra.mxu1 %v327_v4  ;;  %v227_v22 = vld [vmem:[%s440_s2] sm:$0x3] }
   0x8   :  { %151 = vmatprep.subr.bf16.mxu0 %v328_v5  ;;  %307 = vmatprep.subr.bf16.mxu1 %v328_v5  ;;  %v231_v21 = vsub.s32 0, %v230_v20  ;;  %v235_v23 = vsub.s32 1, %v230_v20 }
   0xa   :  { %v232_v24 = vrot.slane %v227_v22, %v231_v21  ;;  %v236_v25 = vrot.slane %v227_v22, %v235_v23 }
   0xb   :  { %152 = vmatpush1.bf16.msra.mxu0 %v330_v6  ;;  %315 = vmatpush1.bf16.msra.mxu1 %v330_v6 }
   0xc   :  { %153 = vmatprep.subr.bf16.mxu0 %v331_v7  ;;  %308 = vmatprep.subr.bf16.mxu1 %v331_v7 }
   0xf   :  { %154 = vmatpush1.bf16.msra.mxu0 %v333_v8  ;;  %316 = vmatpush1.bf16.msra.mxu1 %v333_v8 }
  0x10   :  { %155 = vmatprep.subr.bf16.mxu0 %v334_v9  ;;  %309 = vmatprep.subr.bf16.mxu1 %v334_v9 }
  0x13   :  { %156 = vmatpush1.bf16.msra.mxu0 %v336_v10  ;;  %317 = vmatpush1.bf16.msra.mxu1 %v336_v10 }
  0x14   :  { %157 = vmatprep.subr.bf16.mxu0 %v337_v11  ;;  %310 = vmatprep.subr.bf16.mxu1 %v337_v11 }
  0x17   :  { %158 = vmatpush1.bf16.msra.mxu0 %v339_v12  ;;  %318 = vmatpush1.bf16.msra.mxu1 %v339_v12 }
  0x18   :  { %159 = vmatprep.subr.bf16.mxu0 %v340_v13  ;;  %311 = vmatprep.subr.bf16.mxu1 %v340_v13 }
  0x1b   :  { %160 = vmatpush1.bf16.msra.mxu0 %v342_v14  ;;  %319 = vmatpush1.bf16.msra.mxu1 %v342_v14 }
  0x1c   :  { %161 = vmatprep.subr.bf16.mxu0 %v343_v15  ;;  %312 = vmatprep.subr.bf16.mxu1 %v343_v15 }
  0x1f   :  { %162 = vmatpush1.bf16.msra.mxu0 %v345_v16  ;;  %320 = vmatpush1.bf16.msra.mxu1 %v345_v16 }
  0x22   :  { %180 = vmatmul.mubr.bf16.vlgmr.msra.gmra.mrb[0].mxu0 %v346_v17  ;;  %190 = vmatmul.mubr.bf16.vlgmr.msra.gmra.mrb[0].mxu1 %v347_v18 }
  0xf5   :  { %v181_v26 = vpop.f32.mrb[0].mxu0  ;;  %v191_v27 = vpop.f32.mrb[0].mxu1 }
  0xf6   :  { %v239_v28 = vadd.f32 %v232_v24, %v181_v26  ;;  %v243_v29 = vadd.f32 %v232_v24, %v191_v27  ;;  %v183_v30 = vpop.f32.mrb[1].mxu0  ;;  %v193_v31 = vpop.f32.mrb[1].mxu1 }
  0xf7   :  { %v240_v32 = vadd.f32 %v236_v25, %v183_v30  ;;  %v244_v33 = vadd.f32 %v236_v25, %v193_v31  ;;  %v185_v34 = vpop.f32.mrb[2].mxu0  ;;  %v195_v35 = vpop.f32.mrb[2].mxu1 }
  0xf8   :  { %v241_v36 = vadd.f32 %v232_v24, %v185_v34  ;;  %v245_v37 = vadd.f32 %v232_v24, %v195_v35  ;;  %v187_v38 = vpop.f32.mrb[3].mxu0  ;;  %v197_v39 = vpop.f32.mrb[3].mxu1 }
  0xf9   :  { %v301_v40 = vpack.c.bf16 %v240_v32, %v239_v28  ;;  %v303_v41 = vpack.c.bf16 %v244_v33, %v243_v29  ;;  %v242_v42 = vadd.f32 %v236_v25, %v187_v38  ;;  %v246_v43 = vadd.f32 %v236_v25, %v197_v39 }
  0xfb   :  { %271 = vst [vmem:[%s441_s3] sm:$0xff] %v301_v40  ;;  %273 = vst [vmem:[%s441_s3 + $0x10] sm:$0xff] %v303_v41  ;;  %v302_v44 = vpack.c.bf16 %v242_v42, %v241_v36  ;;  %v304_v45 = vpack.c.bf16 %v246_v43, %v245_v37 }
  0xfd   :  { %272 = vst [vmem:[%s441_s3 + $0x8] sm:$0xff] %v302_v44  ;;  %274 = vst [vmem:[%s441_s3 + $0x18] sm:$0xff] %v304_v45 }

// kernel: _lambda_.99
= control target key start
LH: loop header
LB: loop body
LE: loop exit
PB: predicated region body
PF: predicated region fallthrough
CT: control target
= control target key end

     0   :  { %vm19_vm0 = vcmask 523264   ;;  %v273_v1 = vmov 0.0   ;;  %vm204_vm1 = vcmask 519168   ;;  %s347_s1 = inlined_call_operand.vmem [shape: bf16[128,64], index: 1, kind: input, shape index: {}]   ;;  %s348_s0 = inlined_call_operand.vmem [shape: bf16[32,128], index: 0, kind: input, shape index: {}]   ;;  %s349_s2 = inlined_call_operand.vmem [shape: f32[1,64], index: 2, kind: input, shape index: {}]   ;;  %s350_s3 = inlined_call_operand.vmem [shape: bf16[32,64], index: 3, kind: output, shape index: {}]  }
   0x1   :  { %v263_v0 = vld [vmem:[%s347_s1] sm:$0xff]   ;;  %22 = vst.msk [vmem:[#allocation2 + $0x10] sm:$0xff] %vm19_vm0, %v273_v1  ;;  %20 = vst.msk [vmem:[#allocation2] sm:$0xff] %vm19_vm0, %v273_v1  ;;  %v264_v2 = vld [vmem:[%s347_s1 + $0x8] sm:$0xff]  }
   0x2   :  { %21 = vst.msk [vmem:[#allocation2 + $0x8] sm:$0xff] %vm19_vm0, %v273_v1  ;;  %23 = vst.msk [vmem:[#allocation2 + $0x18] sm:$0xff] %vm19_vm0, %v273_v1  ;;  %242 = vmatprep.subr.bf16.mxu0 %v263_v0  ;;  %v265_v3 = vld [vmem:[%s347_s1 + $0x10] sm:$0xff]   ;;  %v266_v4 = vld [vmem:[%s347_s1 + $0x18] sm:$0xff]  }
   0x3   :  { %243 = vmatpush3.bf16.msra.mxu0 %v263_v0  ;;  %v271_v5 = vld [vmem:[%s348_s0] sm:$0xff]   ;;  %v268_v7 = vld [vmem:[%s347_s1 + $0x28] sm:$0xff]   ;;  %v269_v8 = vld [vmem:[%s347_s1 + $0x30] sm:$0xff]  }
   0x4   :  { %244 = vmatprep.subr.bf16.mxu0 %v264_v2  ;;  %258 = vmatprep.mubr.bf16.mxu0 %v271_v5  ;;  %v267_v6 = vld [vmem:[%s347_s1 + $0x20] sm:$0xff]   ;;  %v270_v9 = vld [vmem:[%s347_s1 + $0x38] sm:$0xff]   ;;  %v272_v10 = vld [vmem:[%s348_s0 + $0x8] sm:$0xff]  }
   0x5   :  { %v223_v23 = vld [vmem:[%s349_s2] ss:$0 sm:$0xff] }
   0x7   :  { %245 = vmatpush3.bf16.msra.mxu0 %v264_v2 }
   0x8   :  { %246 = vmatprep.subr.bf16.mxu0 %v265_v3  ;;  %v26_v11 = vld [vmem:[#allocation2 + $0x10] sm:$0xff]  ;;  %v24_v12 = vld [vmem:[#allocation2] sm:$0xff] }
   0x9   :  { %v27_v14 = vld [vmem:[#allocation2 + $0x18] sm:$0xff]  ;;  %v25_v17 = vld [vmem:[#allocation2 + $0x8] sm:$0xff] }
   0xb   :  { %247 = vmatpush3.bf16.msra.mxu0 %v265_v3 }
   0xc   :  { %248 = vmatprep.subr.bf16.mxu0 %v266_v4 }
   0xf   :  { %249 = vmatpush3.bf16.msra.mxu0 %v266_v4 }
  0x10   :  { %250 = vmatprep.subr.bf16.mxu0 %v267_v6 }
  0x13   :  { %251 = vmatpush3.bf16.msra.mxu0 %v267_v6 }
  0x14   :  { %252 = vmatprep.subr.bf16.mxu0 %v268_v7 }
  0x17   :  { %253 = vmatpush3.bf16.msra.mxu0 %v268_v7 }
  0x18   :  { %254 = vmatprep.subr.bf16.mxu0 %v269_v8 }
  0x1b   :  { %255 = vmatpush3.bf16.msra.mxu0 %v269_v8 }
  0x1c   :  { %256 = vmatprep.subr.bf16.mxu0 %v270_v9 }
  0x1f   :  { %257 = vmatpush3.bf16.msra.mxu0 %v270_v9 }
  0x22   :  { %259 = vmatmul.mubr.bf16.vlgmr.msra.gmra.mrb[0].mxu0 %v272_v10 }
  0xf5   :  { %v260_v13 = vpop.f32.mrb[0].mxu0 }
  0xf6   :  { %v159_v15 = vadd.f32 %v260_v13, %v26_v11  ;;  %v142_v16 = vpop.f32.mrb[1].mxu0 }
  0xf7   :  { %v157_v18 = vadd.f32 %v142_v16, %v24_v12  ;;  %v261_v19 = vpop.f32.mrb[2].mxu0 }
  0xf8   :  { %164 = vst.msk [vmem:[#allocation2 + $0x10] sm:$0xff] %vm19_vm0, %v159_v15  ;;  %v160_v20 = vadd.f32 %v261_v19, %v27_v14  ;;  %v145_v21 = vpop.f32.mrb[3].mxu0 }
  0xf9   :  { %162 = vst.msk [vmem:[#allocation2] sm:$0xff] %vm19_vm0, %v157_v18  ;;  %v158_v22 = vadd.f32 %v145_v21, %v25_v17 }
  0xfa   :  { %165 = vst.msk [vmem:[#allocation2 + $0x18] sm:$0xff] %vm19_vm0, %v160_v20 }
  0xfb   :  { %163 = vst.msk [vmem:[#allocation2 + $0x8] sm:$0xff] %vm19_vm0, %v158_v22 }
  0xff   :  { %v171_v24 = vld [vmem:[#allocation2 + $0x10] sm:$0xff] }
 0x100   :  { %v182_v25 = vadd.f32 %v223_v23, %v171_v24  ;;  %v169_v26 = vld [vmem:[#allocation2] sm:$0xff] }
 0x101   :  { %v180_v27 = vadd.f32 %v223_v23, %v169_v26  ;;  %v172_v28 = vld [vmem:[#allocation2 + $0x18] sm:$0xff] }
 0x102   :  { %v186_v29 = vmax.f32 %v182_v25, 0.0  ;;  %v183_v30 = vadd.f32 %v223_v23, %v172_v28  ;;  %v170_v31 = vld [vmem:[#allocation2 + $0x8] sm:$0xff] }
 0x103   :  { %v184_v32 = vmax.f32 %v180_v27, 0.0  ;;  %v181_v33 = vadd.f32 %v223_v23, %v170_v31 }
 0x104   :  { %v230_v34 = vpack.c.bf16 %v186_v29, %v186_v29  ;;  %v187_v35 = vmax.f32 %v183_v30, 0.0 }
 0x105   :  { %v228_v36 = vpack.c.bf16 %v184_v32, %v184_v32  ;;  %v185_v37 = vmax.f32 %v181_v33, 0.0 }
 0x106   :  { %207 = vst.msk [vmem:[%s350_s3 + $0x8] sm:$0xf] %vm204_vm1, %v230_v34  ;;  %v231_v38 = vpack.c.bf16 %v187_v35, %v187_v35 }
 0x107   :  { %205 = vst.msk [vmem:[%s350_s3] sm:$0xf] %vm204_vm1, %v228_v36  ;;  %v229_v39 = vpack.c.bf16 %v185_v37, %v185_v37 }
 0x108   :  { %208 = vst.msk [vmem:[%s350_s3 + $0xc] sm:$0xf] %vm204_vm1, %v231_v38 }
 0x109   :  { %206 = vst.msk [vmem:[%s350_s3 + $0x4] sm:$0xf] %vm204_vm1, %v229_v39 }

// kernel: _lambda_.100
= control target key start
LH: loop header
LB: loop body
LE: loop exit
PB: predicated region body
PF: predicated region fallthrough
CT: control target
= control target key end

     0   :  { %vm19_vm0 = vcmask 523264   ;;  %v769_v46 = vmov 0.0   ;;  %vm578_vm1 = vcmask 519168   ;;  %s953_s1 = inlined_call_operand.vmem [shape: bf16[576,64], index: 1, kind: input, shape index: {}]   ;;  %s954_s0 = inlined_call_operand.vmem [shape: bf16[32,576], index: 0, kind: input, shape index: {}]   ;;  %s955_s2 = inlined_call_operand.vmem [shape: f32[1,64], index: 2, kind: input, shape index: {}]   ;;  %s956_s3 = inlined_call_operand.vmem [shape: bf16[32,64], index: 3, kind: output, shape index: {}]  }
   0x1   :  { %v719_v0 = vld [vmem:[%s953_s1 + $0x40] sm:$0xff]   ;;  %v723_v4 = vld [vmem:[%s953_s1 + $0x48] sm:$0xff]   ;;  %v727_v8 = vld [vmem:[%s953_s1 + $0x50] sm:$0xff]   ;;  %22 = vst.msk [vmem:[#allocation2 + $0x10] sm:$0xff] %vm19_vm0, %v769_v46 }
   0x2   :  { %v720_v1 = vld [vmem:[%s953_s1 + $0xc0] sm:$0xff]   ;;  %644 = vmatprep.subr.bf16.mxu0 %v719_v0  ;;  %v724_v5 = vld [vmem:[%s953_s1 + $0xc8] sm:$0xff]   ;;  %v728_v9 = vld [vmem:[%s953_s1 + $0xd0] sm:$0xff]   ;;  %20 = vst.msk [vmem:[#allocation2] sm:$0xff] %vm19_vm0, %v769_v46 }
   0x3   :  { %v721_v2 = vld [vmem:[%s953_s1] sm:$0xff]   ;;  %672 = vmatprep.subr.bf16.mxu1 %v720_v1  ;;  %v725_v6 = vld [vmem:[%s953_s1 + $0x8] sm:$0xff]   ;;  %v729_v10 = vld [vmem:[%s953_s1 + $0x10] sm:$0xff]   ;;  %21 = vst.msk [vmem:[#allocation2 + $0x8] sm:$0xff] %vm19_vm0, %v769_v46 }
   0x4   :  { %v722_v3 = vld [vmem:[%s953_s1 + $0x80] sm:$0xff]   ;;  %645 = vmatpush3.bf16.msra.mxu0 %v721_v2  ;;  %v726_v7 = vld [vmem:[%s953_s1 + $0x88] sm:$0xff]   ;;  %v730_v11 = vld [vmem:[%s953_s1 + $0x90] sm:$0xff]   ;;  %23 = vst.msk [vmem:[#allocation2 + $0x18] sm:$0xff] %vm19_vm0, %v769_v46 }
   0x5   :  { %673 = vmatpush3.bf16.msra.mxu1 %v722_v3  ;;  %646 = vmatprep.subr.bf16.mxu0 %v723_v4  ;;  %v731_v12 = vld [vmem:[%s953_s1 + $0x58] sm:$0xff]   ;;  %v735_v16 = vld [vmem:[%s953_s1 + $0x60] sm:$0xff]   ;;  %v739_v20 = vld [vmem:[%s953_s1 + $0x68] sm:$0xff]  }
   0x6   :  { %674 = vmatprep.subr.bf16.mxu1 %v724_v5  ;;  %v732_v13 = vld [vmem:[%s953_s1 + $0xd8] sm:$0xff]   ;;  %v736_v17 = vld [vmem:[%s953_s1 + $0xe0] sm:$0xff]   ;;  %v740_v21 = vld [vmem:[%s953_s1 + $0xe8] sm:$0xff]  }
   0x7   :  { %v733_v14 = vld [vmem:[%s953_s1 + $0x18] sm:$0xff]   ;;  %v737_v18 = vld [vmem:[%s953_s1 + $0x20] sm:$0xff]   ;;  %v741_v22 = vld [vmem:[%s953_s1 + $0x28] sm:$0xff]  }
   0x8   :  { %647 = vmatpush3.bf16.msra.mxu0 %v725_v6  ;;  %v734_v15 = vld [vmem:[%s953_s1 + $0x98] sm:$0xff]   ;;  %v738_v19 = vld [vmem:[%s953_s1 + $0xa0] sm:$0xff]   ;;  %v742_v23 = vld [vmem:[%s953_s1 + $0xa8] sm:$0xff]  }
   0x9   :  { %675 = vmatpush3.bf16.msra.mxu1 %v726_v7  ;;  %648 = vmatprep.subr.bf16.mxu0 %v727_v8  ;;  %v743_v24 = vld [vmem:[%s953_s1 + $0x70] sm:$0xff]   ;;  %v747_v28 = vld [vmem:[%s953_s1 + $0x78] sm:$0xff]   ;;  %v756_v35 = vld [vmem:[%s954_s0 + $0xc] ss:$20 sps:$4 sm:$0xff]  }
   0xa   :  { %676 = vmatprep.subr.bf16.mxu1 %v728_v9  ;;  %v744_v25 = vld [vmem:[%s953_s1 + $0xf0] sm:$0xff]   ;;  %v748_v29 = vld [vmem:[%s953_s1 + $0xf8] sm:$0xff]   ;;  %v757_v36 = vld [vmem:[%s953_s1 + $0x100] sm:$0xff]   ;;  %466 = vmatprep.mubr.bf16.mxu1 %v756_v35 }
   0xb   :  { %v745_v26 = vld [vmem:[%s953_s1 + $0x30] sm:$0xff]   ;;  %v749_v30 = vld [vmem:[%s953_s1 + $0x38] sm:$0xff]   ;;  %v758_v37 = vld [vmem:[%s953_s1 + $0x108] sm:$0xff]  }
   0xc   :  { %649 = vmatpush3.bf16.msra.mxu0 %v729_v10  ;;  %v746_v27 = vld [vmem:[%s953_s1 + $0xb0] sm:$0xff]   ;;  %v750_v31 = vld [vmem:[%s953_s1 + $0xb8] sm:$0xff]   ;;  %v759_v38 = vld [vmem:[%s954_s0 + $0x2c] ss:$20 sps:$4 sm:$0xff]  }
   0xd   :  { %677 = vmatpush3.bf16.msra.mxu1 %v730_v11  ;;  %650 = vmatprep.subr.bf16.mxu0 %v731_v12  ;;  %v751_v32 = vld [vmem:[%s954_s0] ss:$20 sps:$4 sm:$0xff]   ;;  %v753_v33 = vld [vmem:[%s954_s0 + $0x4] ss:$20 sps:$4 sm:$0xff]   ;;  %v754_v34 = vld [vmem:[%s954_s0 + $0x8] ss:$20 sps:$4 sm:$0xff]  }
   0xe   :  { %678 = vmatprep.subr.bf16.mxu1 %v732_v13  ;;  %417 = vmatprep.mubr.bf16.mxu0 %v753_v33  ;;  %v761_v39 = vld [vmem:[%s954_s0 + $0x34] ss:$20 sps:$4 sm:$0xff]   ;;  %v764_v42 = vld [vmem:[%s954_s0 + $0x30] ss:$20 sps:$4 sm:$0xff]   ;;  %v766_v44 = vld [vmem:[%s953_s1 + $0x118] sm:$0xff]  }
   0xf   :  { %v763_v40 = vld [vmem:[%s954_s0 + $0x28] ss:$20 sps:$4 sm:$0xff]   ;;  %v765_v41 = vld [vmem:[%s953_s1 + $0x110] sm:$0xff]   ;;  %v768_v45 = vld [vmem:[%s954_s0 + $0x38] ss:$20 sps:$4 sm:$0xff]  }
  0x10   :  { %651 = vmatpush3.bf16.msra.mxu0 %v733_v14  ;;  %v767_v43 = vld [vmem:[%s954_s0 + $0x10] ss:$20 sps:$4 sm:$0xff]  }
  0x11   :  { %679 = vmatpush3.bf16.msra.mxu1 %v734_v15  ;;  %652 = vmatprep.subr.bf16.mxu0 %v735_v16  ;;  %v26_v11 = vld [vmem:[#allocation2 + $0x10] sm:$0xff]  ;;  %v24_v14 = vld [vmem:[#allocation2] sm:$0xff] }
  0x12   :  { %680 = vmatprep.subr.bf16.mxu1 %v736_v17  ;;  %v27_v17 = vld [vmem:[#allocation2 + $0x18] sm:$0xff] }
  0x14   :  { %653 = vmatpush3.bf16.msra.mxu0 %v737_v18 }
  0x15   :  { %681 = vmatpush3.bf16.msra.mxu1 %v738_v19  ;;  %654 = vmatprep.subr.bf16.mxu0 %v739_v20 }
  0x16   :  { %682 = vmatprep.subr.bf16.mxu1 %v740_v21  ;;  %v25_v21 = vld [vmem:[#allocation2 + $0x8] sm:$0xff] }
  0x18   :  { %655 = vmatpush3.bf16.msra.mxu0 %v741_v22 }
  0x19   :  { %683 = vmatpush3.bf16.msra.mxu1 %v742_v23  ;;  %656 = vmatprep.subr.bf16.mxu0 %v743_v24 }
  0x1a   :  { %684 = vmatprep.subr.bf16.mxu1 %v744_v25 }
  0x1c   :  { %657 = vmatpush3.bf16.msra.mxu0 %v745_v26 }
  0x1d   :  { %685 = vmatpush3.bf16.msra.mxu1 %v746_v27  ;;  %658 = vmatprep.subr.bf16.mxu0 %v747_v28  ;;  %v635_v27 = vld [vmem:[%s955_s2] ss:$0 sm:$0xff] }
  0x1e   :  { %686 = vmatprep.subr.bf16.mxu1 %v748_v29 }
  0x20   :  { %659 = vmatpush3.bf16.msra.mxu0 %v749_v30 }
  0x21   :  { %687 = vmatpush3.bf16.msra.mxu1 %v750_v31  ;;  %706 = vmatprep.subr.bf16.mxu0 %v757_v36 }
  0x23   :  { %418 = vmatmul.mubr.bf16.vlgmr.msra.gmra.mrb[0].mxu0 %v751_v32 }
  0x24   :  { %467 = vmatmul.mubr.bf16.vlgmr.msra.gmra.mrb[0].mxu1 %v754_v34  ;;  %707 = vmatpush3.bf16.msra.mxu0 %v757_v36 }
  0x25   :  { %708 = vmatprep.subr.bf16.mxu0 %v758_v37  ;;  %425 = vmatprep.mubr.bf16.mxu0 %v759_v38 }
  0x26   :  { %474 = vmatprep.mubr.bf16.mxu1 %v761_v39 }
  0x28   :  { %709 = vmatpush3.bf16.msra.mxu0 %v758_v37 }
  0x29   :  { %710 = vmatprep.subr.bf16.mxu0 %v765_v41 }
  0x2b   :  { %426 = vmatmul.mubr.bf16.gmra.mrb[4].mxu0 %v763_v40 }
  0x2c   :  { %475 = vmatmul.mubr.bf16.gmra.mrb[4].mxu1 %v764_v42  ;;  %714 = vmatprep.mubr.msk.bf16.mxu0 %vm19_vm0, %v767_v43 }
  0x2d   :  { %711 = vmatpush3.bf16.msra.mxu0 %v765_v41 }
  0x2e   :  { %712 = vmatprep.subr.bf16.mxu0 %v766_v44 }
  0x31   :  { %713 = vmatpush3.bf16.msra.mxu0 %v766_v44 }
  0x34   :  { %715 = vmatmul.mubr.msk.bf16.vlgmr.msra.gmra.mrb[8].mxu0 %vm19_vm0, %v768_v45 }
  0xf6   :  { %v660_v47 = vpop.f32.mrb[0].mxu0 }
  0xf7   :  { %v688_v48 = vpop.f32.mrb[0].mxu1  ;;  %v661_v49 = vpop.f32.mrb[1].mxu0 }
  0xf8   :  { %v662_v50 = vadd.f32 %v661_v49, %v660_v47  ;;  %v689_v51 = vpop.f32.mrb[1].mxu1  ;;  %v663_v52 = vpop.f32.mrb[2].mxu0 }
  0xf9   :  { %v690_v53 = vadd.f32 %v689_v51, %v688_v48  ;;  %v691_v54 = vpop.f32.mrb[2].mxu1  ;;  %v664_v55 = vpop.f32.mrb[3].mxu0 }
  0xfa   :  { %v665_v56 = vadd.f32 %v664_v55, %v663_v52  ;;  %v692_v57 = vpop.f32.mrb[3].mxu1 }
  0xfb   :  { %v693_v58 = vadd.f32 %v692_v57, %v691_v54  ;;  %v469_v59 = vadd.f32 %v690_v53, %v662_v50 }
  0xfd   :  { %v472_v60 = vadd.f32 %v693_v58, %v665_v56 }
  0xfe   :  { %v666_v61 = vpop.f32.mrb[4].mxu0 }
  0xff   :  { %v694_v62 = vpop.f32.mrb[4].mxu1  ;;  %v667_v63 = vpop.f32.mrb[5].mxu0 }
 0x100   :  { %v668_v0 = vadd.f32 %v667_v63, %v666_v61  ;;  %v695_v1 = vpop.f32.mrb[5].mxu1  ;;  %v669_v2 = vpop.f32.mrb[6].mxu0 }
 0x101   :  { %v696_v3 = vadd.f32 %v695_v1, %v694_v62  ;;  %v697_v4 = vpop.f32.mrb[6].mxu1  ;;  %v670_v5 = vpop.f32.mrb[7].mxu0 }
 0x102   :  { %v671_v6 = vadd.f32 %v670_v5, %v669_v2  ;;  %v698_v7 = vpop.f32.mrb[7].mxu1 }
 0x103   :  { %v699_v8 = vadd.f32 %v698_v7, %v697_v4  ;;  %v477_v9 = vadd.f32 %v696_v3, %v668_v0 }
 0x105   :  { %v480_v10 = vadd.f32 %v699_v8, %v671_v6 }
 0x107   :  { %v716_v12 = vpop.f32.mrb[8].mxu0 }
 0x108   :  { %v526_v13 = vadd.f32 %v716_v12, %v477_v9  ;;  %v517_v15 = vpop.f32.mrb[9].mxu0 }
 0x109   :  { %v518_v16 = vadd.f32 %v517_v15, %v469_v59  ;;  %v717_v18 = vpop.f32.mrb[10].mxu0 }
 0x10a   :  { %v534_v19 = vadd.f32 %v526_v13, %v26_v11  ;;  %v529_v20 = vadd.f32 %v717_v18, %v480_v10  ;;  %v520_v22 = vpop.f32.mrb[11].mxu0 }
 0x10b   :  { %v532_v23 = vadd.f32 %v518_v16, %v24_v14  ;;  %v521_v24 = vadd.f32 %v520_v22, %v472_v60 }
 0x10c   :  { %538 = vst.msk [vmem:[#allocation2 + $0x10] sm:$0xff] %vm19_vm0, %v534_v19  ;;  %v535_v25 = vadd.f32 %v529_v20, %v27_v17 }
 0x10d   :  { %536 = vst.msk [vmem:[#allocation2] sm:$0xff] %vm19_vm0, %v532_v23  ;;  %v533_v26 = vadd.f32 %v521_v24, %v25_v21 }
 0x10e   :  { %539 = vst.msk [vmem:[#allocation2 + $0x18] sm:$0xff] %vm19_vm0, %v535_v25 }
 0x10f   :  { %537 = vst.msk [vmem:[#allocation2 + $0x8] sm:$0xff] %vm19_vm0, %v533_v26 }
 0x113   :  { %v545_v28 = vld [vmem:[#allocation2 + $0x10] sm:$0xff] }
 0x114   :  { %v556_v29 = vadd.f32 %v635_v27, %v545_v28  ;;  %v543_v30 = vld [vmem:[#allocation2] sm:$0xff] }
 0x115   :  { %v554_v31 = vadd.f32 %v635_v27, %v543_v30  ;;  %v546_v32 = vld [vmem:[#allocation2 + $0x18] sm:$0xff] }
 0x116   :  { %v560_v33 = vmax.f32 %v556_v29, 0.0  ;;  %v557_v34 = vadd.f32 %v635_v27, %v546_v32  ;;  %v544_v35 = vld [vmem:[#allocation2 + $0x8] sm:$0xff] }
 0x117   :  { %v558_v36 = vmax.f32 %v554_v31, 0.0  ;;  %v555_v37 = vadd.f32 %v635_v27, %v544_v35 }
 0x118   :  { %v642_v38 = vpack.c.bf16 %v560_v33, %v560_v33  ;;  %v561_v39 = vmax.f32 %v557_v34, 0.0 }
 0x119   :  { %v640_v40 = vpack.c.bf16 %v558_v36, %v558_v36  ;;  %v559_v41 = vmax.f32 %v555_v37, 0.0 }
 0x11a   :  { %581 = vst.msk [vmem:[%s956_s3 + $0x8] sm:$0xf] %vm578_vm1, %v642_v38  ;;  %v643_v42 = vpack.c.bf16 %v561_v39, %v561_v39 }
 0x11b   :  { %579 = vst.msk [vmem:[%s956_s3] sm:$0xf] %vm578_vm1, %v640_v40  ;;  %v641_v43 = vpack.c.bf16 %v559_v41, %v559_v41 }
 0x11c   :  { %582 = vst.msk [vmem:[%s956_s3 + $0xc] sm:$0xf] %vm578_vm1, %v643_v42 }
 0x11d   :  { %580 = vst.msk [vmem:[%s956_s3 + $0x4] sm:$0xf] %vm578_vm1, %v641_v43 }

// kernel: _lambda_.102
= control target key start
LH: loop header
LB: loop body
LE: loop exit
PB: predicated region body
PF: predicated region fallthrough
CT: control target
= control target key end

     0   :  { %v310_v1 = vmov 0   ;;  %vm100_vm0 = vcmask 523264   ;;  %v189_v11 = vlaneseq  ;;  %s393_s1 = inlined_call_operand.vmem [shape: bf16[64,256], index: 1, kind: input, shape index: {}]   ;;  %s394_s0 = inlined_call_operand.vmem [shape: bf16[32,64], index: 0, kind: input, shape index: {}]   ;;  %s395_s2 = inlined_call_operand.vmem [shape: f32[1,256], index: 2, kind: input, shape index: {}]   ;;  %s396_s3 = inlined_call_operand.vmem [shape: bf16[32,256], index: 3, kind: input, shape index: {}]   ;;  %s397_s4 = inlined_call_operand.vmem [shape: bf16[32,256], index: 4, kind: output, shape index: {}]  }
   0x1   :  { %v296_v0 = vld [vmem:[%s393_s1 + $0x4] ss:$8 sps:$4 sm:$0xff]   ;;  %139 = vmatprep.mubr.bf16.mxu0 %v310_v1  ;;  %149 = vmatprep.mubr.bf16.mxu1 %v310_v1  ;;  %v298_v2 = vld [vmem:[%s393_s1] ss:$8 sps:$4 sm:$0xff]   ;;  %v299_v3 = vld [vmem:[%s393_s1 + $0x14] ss:$8 sps:$4 sm:$0xff]  }
   0x2   :  { %107 = vmatprep.subr.bf16.mxu0 %v296_v0  ;;  %287 = vmatprep.subr.bf16.mxu1 %v296_v0  ;;  %v301_v4 = vld [vmem:[%s393_s1 + $0x10] ss:$8 sps:$4 sm:$0xff]   ;;  %v302_v5 = vld [vmem:[%s393_s1 + $0x24] ss:$8 sps:$4 sm:$0xff]   ;;  %v304_v6 = vld [vmem:[%s393_s1 + $0x20] ss:$8 sps:$4 sm:$0xff]  }
   0x3   :  { %108 = vmatpush1.bf16.msra.mxu0 %v298_v2  ;;  %291 = vmatpush1.bf16.msra.mxu1 %v298_v2  ;;  %v305_v7 = vld [vmem:[%s393_s1 + $0x34] ss:$8 sps:$4 sm:$0xff]   ;;  %v307_v8 = vld [vmem:[%s393_s1 + $0x30] ss:$8 sps:$4 sm:$0xff]   ;;  %v308_v9 = vld [vmem:[%s394_s0] sm:$0xff]   ;;  %v190_v12 = vshrl.u32 %v189_v11, 7 }
   0x4   :  { %109 = vmatprep.subr.bf16.mxu0 %v299_v3  ;;  %288 = vmatprep.subr.bf16.mxu1 %v299_v3  ;;  %v309_v10 = vld [vmem:[%s394_s0 + $0x8] sm:$0xff]   ;;  %v187_v14 = vld [vmem:[%s395_s2] sm:$0x3]  ;;  %v209_v17 = vld [vmem:[%s396_s3 + $0x10] sm:$0xff] }
   0x5   :  { %v191_v13 = vsub.s32 0, %v190_v12  ;;  %v195_v15 = vsub.s32 1, %v190_v12  ;;  %v207_v16 = vld [vmem:[%s396_s3] sm:$0xff]  ;;  %v208_v20 = vld [vmem:[%s396_s3 + $0x8] sm:$0xff]  ;;  %v210_v21 = vld [vmem:[%s396_s3 + $0x18] sm:$0xff]  ;;  %v215_v23 = vunpack.c.l.bf16 %v209_v17  ;;  %v216_v27 = vunpack.c.h.bf16 %v209_v17 }
   0x6   :  { %v211_v22 = vunpack.c.l.bf16 %v207_v16  ;;  %v212_v26 = vunpack.c.h.bf16 %v207_v16  ;;  %v213_v32 = vunpack.c.l.bf16 %v208_v20  ;;  %v217_v33 = vunpack.c.l.bf16 %v210_v21 }
   0x7   :  { %110 = vmatpush1.bf16.msra.mxu0 %v301_v4  ;;  %292 = vmatpush1.bf16.msra.mxu1 %v301_v4  ;;  %v192_v18 = vrot.slane %v187_v14, %v191_v13  ;;  %v196_v19 = vrot.slane %v187_v14, %v195_v15  ;;  %v214_v38 = vunpack.c.h.bf16 %v208_v20  ;;  %v218_v39 = vunpack.c.h.bf16 %v210_v21 }
   0x8   :  { %111 = vmatprep.subr.bf16.mxu0 %v302_v5  ;;  %289 = vmatprep.subr.bf16.mxu1 %v302_v5 }
   0xb   :  { %112 = vmatpush1.bf16.msra.mxu0 %v304_v6  ;;  %293 = vmatpush1.bf16.msra.mxu1 %v304_v6 }
   0xc   :  { %113 = vmatprep.subr.bf16.mxu0 %v305_v7  ;;  %290 = vmatprep.subr.bf16.mxu1 %v305_v7 }
   0xf   :  { %114 = vmatpush1.bf16.msra.mxu0 %v307_v8  ;;  %294 = vmatpush1.bf16.msra.mxu1 %v307_v8 }
  0x12   :  { %277 = vmatmul.mubr.msk.bf16.vlgmr.msra.gmra.mrb[0].mxu0 %vm100_vm0, %v308_v9  ;;  %278 = vmatmul.mubr.msk.bf16.vlgmr.msra.gmra.mrb[0].mxu1 %vm100_vm0, %v309_v10 }
  0xe5   :  { %v141_v24 = vpop.f32.mrb[0].mxu0  ;;  %v151_v25 = vpop.f32.mrb[0].mxu1 }
  0xe6   :  { %v199_v28 = vadd.f32 %v192_v18, %v141_v24  ;;  %v203_v29 = vadd.f32 %v192_v18, %v151_v25  ;;  %v143_v30 = vpop.f32.mrb[1].mxu0  ;;  %v153_v31 = vpop.f32.mrb[1].mxu1 }
  0xe7   :  { %v200_v34 = vadd.f32 %v196_v19, %v143_v30  ;;  %v204_v35 = vadd.f32 %v196_v19, %v153_v31  ;;  %v145_v36 = vpop.f32.mrb[2].mxu0  ;;  %v155_v37 = vpop.f32.mrb[2].mxu1 }
  0xe8   :  { %v219_v40 = vadd.f32 %v211_v22, %v199_v28  ;;  %v223_v41 = vadd.f32 %v215_v23, %v203_v29  ;;  %v201_v42 = vadd.f32 %v192_v18, %v145_v36  ;;  %v205_v43 = vadd.f32 %v192_v18, %v155_v37  ;;  %v147_v44 = vpop.f32.mrb[3].mxu0  ;;  %v157_v45 = vpop.f32.mrb[3].mxu1 }
  0xe9   :  { %v220_v46 = vadd.f32 %v212_v26, %v200_v34  ;;  %v224_v47 = vadd.f32 %v216_v27, %v204_v35  ;;  %v202_v48 = vadd.f32 %v196_v19, %v147_v44  ;;  %v206_v49 = vadd.f32 %v196_v19, %v157_v45 }
  0xea   :  { %v227_v50 = vmax.f32 %v219_v40, 0.0  ;;  %v231_v51 = vmax.f32 %v223_v41, 0.0  ;;  %v221_v52 = vadd.f32 %v213_v32, %v201_v42  ;;  %v225_v53 = vadd.f32 %v217_v33, %v205_v43 }
  0xeb   :  { %v228_v54 = vmax.f32 %v220_v46, 0.0  ;;  %v232_v55 = vmax.f32 %v224_v47, 0.0  ;;  %v222_v56 = vadd.f32 %v214_v38, %v202_v48  ;;  %v226_v57 = vadd.f32 %v218_v39, %v206_v49 }
  0xec   :  { %v229_v58 = vmax.f32 %v221_v52, 0.0  ;;  %v233_v59 = vmax.f32 %v225_v53, 0.0 }
  0xed   :  { %v283_v60 = vpack.c.bf16 %v228_v54, %v227_v50  ;;  %v285_v61 = vpack.c.bf16 %v232_v55, %v231_v51  ;;  %v230_v62 = vmax.f32 %v222_v56, 0.0  ;;  %v234_v63 = vmax.f32 %v226_v57, 0.0 }
  0xef   :  { %259 = vst [vmem:[%s397_s4] sm:$0xff] %v283_v60  ;;  %261 = vst [vmem:[%s397_s4 + $0x10] sm:$0xff] %v285_v61  ;;  %v284_v0 = vpack.c.bf16 %v230_v62, %v229_v58  ;;  %v286_v1 = vpack.c.bf16 %v234_v63, %v233_v59 }
  0xf1   :  { %260 = vst [vmem:[%s397_s4 + $0x8] sm:$0xff] %v284_v0  ;;  %262 = vst [vmem:[%s397_s4 + $0x18] sm:$0xff] %v286_v1 }

// kernel: _lambda_.103
= control target key start
LH: loop header
LB: loop body
LE: loop exit
PB: predicated region body
PF: predicated region fallthrough
CT: control target
= control target key end

     0   :  { %vm19_vm0 = vcmask 523264   ;;  %v381_v20 = vmov 0.0   ;;  %vm276_vm1 = vcmask 519168   ;;  %s485_s1 = inlined_call_operand.vmem [shape: bf16[256,64], index: 1, kind: input, shape index: {}]   ;;  %s486_s0 = inlined_call_operand.vmem [shape: bf16[32,256], index: 0, kind: input, shape index: {}]   ;;  %s487_s2 = inlined_call_operand.vmem [shape: f32[1,64], index: 2, kind: input, shape index: {}]   ;;  %s488_s3 = inlined_call_operand.vmem [shape: bf16[32,64], index: 3, kind: output, shape index: {}]  }
   0x1   :  { %v359_v0 = vld [vmem:[%s485_s1 + $0x40] sm:$0xff]   ;;  %v361_v2 = vld [vmem:[%s485_s1 + $0x48] sm:$0xff]   ;;  %v363_v4 = vld [vmem:[%s485_s1 + $0x50] sm:$0xff]   ;;  %20 = vst.msk [vmem:[#allocation2] sm:$0xff] %vm19_vm0, %v381_v20 }
   0x2   :  { %v360_v1 = vld [vmem:[%s485_s1] sm:$0xff]   ;;  %314 = vmatprep.subr.bf16.mxu0 %v359_v0  ;;  %342 = vmatprep.subr.bf16.mxu1 %v359_v0  ;;  %v362_v3 = vld [vmem:[%s485_s1 + $0x8] sm:$0xff]   ;;  %v364_v5 = vld [vmem:[%s485_s1 + $0x10] sm:$0xff]   ;;  %21 = vst.msk [vmem:[#allocation2 + $0x8] sm:$0xff] %vm19_vm0, %v381_v20 }
   0x3   :  { %315 = vmatpush3.bf16.msra.mxu0 %v360_v1  ;;  %350 = vmatpush3.bf16.msra.mxu1 %v360_v1  ;;  %v365_v6 = vld [vmem:[%s485_s1 + $0x58] sm:$0xff]   ;;  %v367_v8 = vld [vmem:[%s485_s1 + $0x60] sm:$0xff]   ;;  %v369_v10 = vld [vmem:[%s485_s1 + $0x68] sm:$0xff]   ;;  %22 = vst.msk [vmem:[#allocation2 + $0x10] sm:$0xff] %vm19_vm0, %v381_v20 }
   0x4   :  { %316 = vmatprep.subr.bf16.mxu0 %v361_v2  ;;  %343 = vmatprep.subr.bf16.mxu1 %v361_v2  ;;  %v366_v7 = vld [vmem:[%s485_s1 + $0x18] sm:$0xff]   ;;  %v368_v9 = vld [vmem:[%s485_s1 + $0x20] sm:$0xff]   ;;  %v370_v13 = vld [vmem:[%s485_s1 + $0x28] sm:$0xff]   ;;  %23 = vst.msk [vmem:[#allocation2 + $0x18] sm:$0xff] %vm19_vm0, %v381_v20 }
   0x5   :  { %v377_v11 = vld [vmem:[%s486_s0 + $0x4] ss:$8 sps:$4 sm:$0xff]   ;;  %v380_v12 = vld [vmem:[%s486_s0 + $0x14] ss:$8 sps:$4 sm:$0xff]   ;;  %v375_v18 = vld [vmem:[%s486_s0] ss:$8 sps:$4 sm:$0xff]  }
   0x6   :  { %v371_v14 = vld [vmem:[%s485_s1 + $0x70] sm:$0xff]   ;;  %212 = vmatprep.mubr.bf16.mxu0 %v377_v11  ;;  %220 = vmatprep.mubr.bf16.mxu1 %v380_v12  ;;  %v373_v16 = vld [vmem:[%s485_s1 + $0x78] sm:$0xff]   ;;  %v305_v41 = vld [vmem:[%s487_s2] ss:$0 sm:$0xff] }
   0x7   :  { %317 = vmatpush3.bf16.msra.mxu0 %v362_v3  ;;  %351 = vmatpush3.bf16.msra.mxu1 %v362_v3  ;;  %v372_v15 = vld [vmem:[%s485_s1 + $0x30] sm:$0xff]   ;;  %v374_v17 = vld [vmem:[%s485_s1 + $0x38] sm:$0xff]  }
   0x8   :  { %318 = vmatprep.subr.bf16.mxu0 %v363_v4  ;;  %344 = vmatprep.subr.bf16.mxu1 %v363_v4  ;;  %v378_v19 = vld [vmem:[%s486_s0 + $0x10] ss:$8 sps:$4 sm:$0xff]   ;;  %v24_v23 = vld [vmem:[#allocation2] sm:$0xff] }
   0x9   :  { %v25_v31 = vld [vmem:[#allocation2 + $0x8] sm:$0xff] }
   0xa   :  { %v26_v25 = vld [vmem:[#allocation2 + $0x10] sm:$0xff] }
   0xb   :  { %319 = vmatpush3.bf16.msra.mxu0 %v364_v5  ;;  %352 = vmatpush3.bf16.msra.mxu1 %v364_v5  ;;  %v27_v33 = vld [vmem:[#allocation2 + $0x18] sm:$0xff] }
   0xc   :  { %320 = vmatprep.subr.bf16.mxu0 %v365_v6  ;;  %345 = vmatprep.subr.bf16.mxu1 %v365_v6 }
   0xf   :  { %321 = vmatpush3.bf16.msra.mxu0 %v366_v7  ;;  %353 = vmatpush3.bf16.msra.mxu1 %v366_v7 }
  0x10   :  { %322 = vmatprep.subr.bf16.mxu0 %v367_v8  ;;  %346 = vmatprep.subr.bf16.mxu1 %v367_v8 }
  0x13   :  { %323 = vmatpush3.bf16.msra.mxu0 %v368_v9  ;;  %354 = vmatpush3.bf16.msra.mxu1 %v368_v9 }
  0x14   :  { %324 = vmatprep.subr.bf16.mxu0 %v369_v10  ;;  %347 = vmatprep.subr.bf16.mxu1 %v369_v10 }
  0x17   :  { %325 = vmatpush3.bf16.msra.mxu0 %v370_v13  ;;  %355 = vmatpush3.bf16.msra.mxu1 %v370_v13 }
  0x18   :  { %326 = vmatprep.subr.bf16.mxu0 %v371_v14  ;;  %348 = vmatprep.subr.bf16.mxu1 %v371_v14 }
  0x1b   :  { %327 = vmatpush3.bf16.msra.mxu0 %v372_v15  ;;  %356 = vmatpush3.bf16.msra.mxu1 %v372_v15 }
  0x1c   :  { %328 = vmatprep.subr.bf16.mxu0 %v373_v16  ;;  %349 = vmatprep.subr.bf16.mxu1 %v373_v16 }
  0x1f   :  { %329 = vmatpush3.bf16.msra.mxu0 %v374_v17  ;;  %357 = vmatpush3.bf16.msra.mxu1 %v374_v17 }
  0x22   :  { %213 = vmatmul.mubr.bf16.vlgmr.msra.gmra.mrb[0].mxu0 %v375_v18  ;;  %221 = vmatmul.mubr.bf16.vlgmr.msra.gmra.mrb[0].mxu1 %v378_v19 }
  0xf5   :  { %v330_v21 = vpop.f32.mrb[0].mxu0  ;;  %v336_v22 = vpop.f32.mrb[0].mxu1 }
  0xf6   :  { %v331_v24 = vpop.f32.mrb[1].mxu0  ;;  %v337_v26 = vpop.f32.mrb[1].mxu1 }
  0xf7   :  { %v332_v27 = vadd.f32 %v331_v24, %v330_v21  ;;  %v338_v28 = vadd.f32 %v337_v26, %v336_v22  ;;  %v333_v29 = vpop.f32.mrb[2].mxu0  ;;  %v339_v30 = vpop.f32.mrb[2].mxu1 }
  0xf8   :  { %v334_v32 = vpop.f32.mrb[3].mxu0  ;;  %v340_v34 = vpop.f32.mrb[3].mxu1 }
  0xf9   :  { %v229_v35 = vadd.f32 %v332_v27, %v24_v23  ;;  %v231_v36 = vadd.f32 %v338_v28, %v26_v25  ;;  %v335_v37 = vadd.f32 %v334_v32, %v333_v29  ;;  %v341_v38 = vadd.f32 %v340_v34, %v339_v30 }
  0xfb   :  { %234 = vst.msk [vmem:[#allocation2] sm:$0xff] %vm19_vm0, %v229_v35  ;;  %236 = vst.msk [vmem:[#allocation2 + $0x10] sm:$0xff] %vm19_vm0, %v231_v36  ;;  %v230_v39 = vadd.f32 %v335_v37, %v25_v31  ;;  %v232_v40 = vadd.f32 %v341_v38, %v27_v33 }
  0xfd   :  { %235 = vst.msk [vmem:[#allocation2 + $0x8] sm:$0xff] %vm19_vm0, %v230_v39  ;;  %237 = vst.msk [vmem:[#allocation2 + $0x18] sm:$0xff] %vm19_vm0, %v232_v40 }
 0x102   :  { %v241_v42 = vld [vmem:[#allocation2] sm:$0xff]  ;;  %v243_v43 = vld [vmem:[#allocation2 + $0x10] sm:$0xff] }
 0x103   :  { %v252_v44 = vadd.f32 %v305_v41, %v241_v42  ;;  %v254_v45 = vadd.f32 %v305_v41, %v243_v43 }
 0x104   :  { %v242_v46 = vld [vmem:[#allocation2 + $0x8] sm:$0xff]  ;;  %v244_v47 = vld [vmem:[#allocation2 + $0x18] sm:$0xff] }
 0x105   :  { %v256_v48 = vmax.f32 %v252_v44, 0.0  ;;  %v258_v49 = vmax.f32 %v254_v45, 0.0  ;;  %v253_v50 = vadd.f32 %v305_v41, %v242_v46  ;;  %v255_v51 = vadd.f32 %v305_v41, %v244_v47 }
 0x107   :  { %v310_v52 = vpack.c.bf16 %v256_v48, %v256_v48  ;;  %v312_v53 = vpack.c.bf16 %v258_v49, %v258_v49  ;;  %v257_v54 = vmax.f32 %v253_v50, 0.0  ;;  %v259_v55 = vmax.f32 %v255_v51, 0.0 }
 0x109   :  { %277 = vst.msk [vmem:[%s488_s3] sm:$0xf] %vm276_vm1, %v310_v52  ;;  %279 = vst.msk [vmem:[%s488_s3 + $0x8] sm:$0xf] %vm276_vm1, %v312_v53  ;;  %v311_v56 = vpack.c.bf16 %v257_v54, %v257_v54  ;;  %v313_v57 = vpack.c.bf16 %v259_v55, %v259_v55 }
 0x10b   :  { %278 = vst.msk [vmem:[%s488_s3 + $0x4] sm:$0xf] %vm276_vm1, %v311_v56  ;;  %280 = vst.msk [vmem:[%s488_s3 + $0xc] sm:$0xf] %vm276_vm1, %v313_v57 }

// kernel: _lambda_.110
= control target key start
LH: loop header
LB: loop body
LE: loop exit
PB: predicated region body
PF: predicated region fallthrough
CT: control target
= control target key end

     0   :  { %v332_v36 = vlaneseq  ;;  %s663_s1 = inlined_call_operand.vmem [shape: bf16[256,256], index: 1, kind: input, shape index: {}]   ;;  %s664_s0 = inlined_call_operand.vmem [shape: bf16[32,256], index: 0, kind: input, shape index: {}]   ;;  %s665_s2 = inlined_call_operand.vmem [shape: f32[1,256], index: 2, kind: input, shape index: {}]   ;;  %s666_s3 = inlined_call_operand.vmem [shape: bf16[32,256], index: 3, kind: output, shape index: {}]  }
   0x1   :  { %v466_v0 = vld [vmem:[%s663_s1 + $0x4] ss:$8 sps:$4 sm:$0xff]   ;;  %v468_v1 = vld [vmem:[%s663_s1] ss:$8 sps:$4 sm:$0xff]   ;;  %v469_v2 = vld [vmem:[%s663_s1 + $0x14] ss:$8 sps:$4 sm:$0xff]  }
   0x2   :  { %250 = vmatprep.subr.bf16.mxu0 %v466_v0  ;;  %434 = vmatprep.subr.bf16.mxu1 %v466_v0  ;;  %v471_v3 = vld [vmem:[%s663_s1 + $0x10] ss:$8 sps:$4 sm:$0xff]   ;;  %v472_v4 = vld [vmem:[%s663_s1 + $0x24] ss:$8 sps:$4 sm:$0xff]   ;;  %v474_v5 = vld [vmem:[%s663_s1 + $0x20] ss:$8 sps:$4 sm:$0xff]  }
   0x3   :  { %251 = vmatpush1.bf16.msra.mxu0 %v468_v1  ;;  %450 = vmatpush1.bf16.msra.mxu1 %v468_v1  ;;  %v475_v6 = vld [vmem:[%s663_s1 + $0x34] ss:$8 sps:$4 sm:$0xff]   ;;  %v477_v7 = vld [vmem:[%s663_s1 + $0x30] ss:$8 sps:$4 sm:$0xff]   ;;  %v478_v8 = vld [vmem:[%s663_s1 + $0x44] ss:$8 sps:$4 sm:$0xff]  }
   0x4   :  { %252 = vmatprep.subr.bf16.mxu0 %v469_v2  ;;  %435 = vmatprep.subr.bf16.mxu1 %v469_v2  ;;  %v480_v9 = vld [vmem:[%s663_s1 + $0x40] ss:$8 sps:$4 sm:$0xff]   ;;  %v481_v10 = vld [vmem:[%s663_s1 + $0x54] ss:$8 sps:$4 sm:$0xff]   ;;  %v483_v11 = vld [vmem:[%s663_s1 + $0x50] ss:$8 sps:$4 sm:$0xff]  }
   0x5   :  { %v484_v12 = vld [vmem:[%s663_s1 + $0x64] ss:$8 sps:$4 sm:$0xff]   ;;  %v486_v14 = vld [vmem:[%s663_s1 + $0x60] ss:$8 sps:$4 sm:$0xff]   ;;  %v519_v15 = vld [vmem:[%s664_s0 + $0x14] ss:$8 sps:$4 sm:$0xff]  }
   0x6   :  { %v516_v13 = vld [vmem:[%s664_s0 + $0x4] ss:$8 sps:$4 sm:$0xff]   ;;  %v487_v16 = vld [vmem:[%s663_s1 + $0x74] ss:$8 sps:$4 sm:$0xff]   ;;  %292 = vmatprep.mubr.bf16.mxu1 %v519_v15  ;;  %v489_v17 = vld [vmem:[%s663_s1 + $0x70] ss:$8 sps:$4 sm:$0xff]  }
   0x7   :  { %253 = vmatpush1.bf16.msra.mxu0 %v471_v3  ;;  %451 = vmatpush1.bf16.msra.mxu1 %v471_v3  ;;  %v490_v18 = vld [vmem:[%s663_s1 + $0x84] ss:$8 sps:$4 sm:$0xff]   ;;  %v492_v19 = vld [vmem:[%s663_s1 + $0x80] ss:$8 sps:$4 sm:$0xff]   ;;  %v493_v20 = vld [vmem:[%s663_s1 + $0x94] ss:$8 sps:$4 sm:$0xff]  }
   0x8   :  { %254 = vmatprep.subr.bf16.mxu0 %v472_v4  ;;  %436 = vmatprep.subr.bf16.mxu1 %v472_v4  ;;  %v495_v21 = vld [vmem:[%s663_s1 + $0x90] ss:$8 sps:$4 sm:$0xff]   ;;  %v496_v22 = vld [vmem:[%s663_s1 + $0xa4] ss:$8 sps:$4 sm:$0xff]   ;;  %v498_v23 = vld [vmem:[%s663_s1 + $0xa0] ss:$8 sps:$4 sm:$0xff]  }
   0x9   :  { %282 = vmatprep.mubr.bf16.mxu0 %v516_v13  ;;  %v499_v24 = vld [vmem:[%s663_s1 + $0xb4] ss:$8 sps:$4 sm:$0xff]   ;;  %v501_v25 = vld [vmem:[%s663_s1 + $0xb0] ss:$8 sps:$4 sm:$0xff]   ;;  %v502_v26 = vld [vmem:[%s663_s1 + $0xc4] ss:$8 sps:$4 sm:$0xff]  }
   0xa   :  { %v504_v27 = vld [vmem:[%s663_s1 + $0xc0] ss:$8 sps:$4 sm:$0xff]   ;;  %v505_v28 = vld [vmem:[%s663_s1 + $0xd4] ss:$8 sps:$4 sm:$0xff]   ;;  %v507_v29 = vld [vmem:[%s663_s1 + $0xd0] ss:$8 sps:$4 sm:$0xff]  }
   0xb   :  { %255 = vmatpush1.bf16.msra.mxu0 %v474_v5  ;;  %452 = vmatpush1.bf16.msra.mxu1 %v474_v5  ;;  %v508_v30 = vld [vmem:[%s663_s1 + $0xe4] ss:$8 sps:$4 sm:$0xff]   ;;  %v510_v31 = vld [vmem:[%s663_s1 + $0xe0] ss:$8 sps:$4 sm:$0xff]   ;;  %v511_v32 = vld [vmem:[%s663_s1 + $0xf4] ss:$8 sps:$4 sm:$0xff]  }
   0xc   :  { %256 = vmatprep.subr.bf16.mxu0 %v475_v6  ;;  %437 = vmatprep.subr.bf16.mxu1 %v475_v6  ;;  %v513_v33 = vld [vmem:[%s663_s1 + $0xf0] ss:$8 sps:$4 sm:$0xff]   ;;  %v514_v34 = vld [vmem:[%s664_s0] ss:$8 sps:$4 sm:$0xff]   ;;  %v333_v37 = vshrl.u32 %v332_v36, 7 }
   0xd   :  { %v517_v35 = vld [vmem:[%s664_s0 + $0x10] ss:$8 sps:$4 sm:$0xff]   ;;  %v330_v39 = vld [vmem:[%s665_s2] sm:$0x3] }
   0xe   :  { %v334_v38 = vsub.s32 0, %v333_v37  ;;  %v338_v40 = vsub.s32 1, %v333_v37 }
   0xf   :  { %257 = vmatpush1.bf16.msra.mxu0 %v477_v7  ;;  %453 = vmatpush1.bf16.msra.mxu1 %v477_v7 }
  0x10   :  { %258 = vmatprep.subr.bf16.mxu0 %v478_v8  ;;  %438 = vmatprep.subr.bf16.mxu1 %v478_v8  ;;  %v335_v41 = vrot.slane %v330_v39, %v334_v38  ;;  %v339_v42 = vrot.slane %v330_v39, %v338_v40 }
  0x13   :  { %259 = vmatpush1.bf16.msra.mxu0 %v480_v9  ;;  %454 = vmatpush1.bf16.msra.mxu1 %v480_v9 }
  0x14   :  { %260 = vmatprep.subr.bf16.mxu0 %v481_v10  ;;  %439 = vmatprep.subr.bf16.mxu1 %v481_v10 }
  0x17   :  { %261 = vmatpush1.bf16.msra.mxu0 %v483_v11  ;;  %455 = vmatpush1.bf16.msra.mxu1 %v483_v11 }
  0x18   :  { %262 = vmatprep.subr.bf16.mxu0 %v484_v12  ;;  %440 = vmatprep.subr.bf16.mxu1 %v484_v12 }
  0x1b   :  { %263 = vmatpush1.bf16.msra.mxu0 %v486_v14  ;;  %456 = vmatpush1.bf16.msra.mxu1 %v486_v14 }
  0x1c   :  { %264 = vmatprep.subr.bf16.mxu0 %v487_v16  ;;  %441 = vmatprep.subr.bf16.mxu1 %v487_v16 }
  0x1f   :  { %265 = vmatpush1.bf16.msra.mxu0 %v489_v17  ;;  %457 = vmatpush1.bf16.msra.mxu1 %v489_v17 }
  0x20   :  { %266 = vmatprep.subr.bf16.mxu0 %v490_v18  ;;  %442 = vmatprep.subr.bf16.mxu1 %v490_v18 }
  0x23   :  { %267 = vmatpush1.bf16.msra.mxu0 %v492_v19  ;;  %458 = vmatpush1.bf16.msra.mxu1 %v492_v19 }
  0x24   :  { %268 = vmatprep.subr.bf16.mxu0 %v493_v20  ;;  %443 = vmatprep.subr.bf16.mxu1 %v493_v20 }
  0x27   :  { %269 = vmatpush1.bf16.msra.mxu0 %v495_v21  ;;  %459 = vmatpush1.bf16.msra.mxu1 %v495_v21 }
  0x28   :  { %270 = vmatprep.subr.bf16.mxu0 %v496_v22  ;;  %444 = vmatprep.subr.bf16.mxu1 %v496_v22 }
  0x2b   :  { %271 = vmatpush1.bf16.msra.mxu0 %v498_v23  ;;  %460 = vmatpush1.bf16.msra.mxu1 %v498_v23 }
  0x2c   :  { %272 = vmatprep.subr.bf16.mxu0 %v499_v24  ;;  %445 = vmatprep.subr.bf16.mxu1 %v499_v24 }
  0x2f   :  { %273 = vmatpush1.bf16.msra.mxu0 %v501_v25  ;;  %461 = vmatpush1.bf16.msra.mxu1 %v501_v25 }
  0x30   :  { %274 = vmatprep.subr.bf16.mxu0 %v502_v26  ;;  %446 = vmatprep.subr.bf16.mxu1 %v502_v26 }
  0x33   :  { %275 = vmatpush1.bf16.msra.mxu0 %v504_v27  ;;  %462 = vmatpush1.bf16.msra.mxu1 %v504_v27 }
  0x34   :  { %276 = vmatprep.subr.bf16.mxu0 %v505_v28  ;;  %447 = vmatprep.subr.bf16.mxu1 %v505_v28 }
  0x37   :  { %277 = vmatpush1.bf16.msra.mxu0 %v507_v29  ;;  %463 = vmatpush1.bf16.msra.mxu1 %v507_v29 }
  0x38   :  { %278 = vmatprep.subr.bf16.mxu0 %v508_v30  ;;  %448 = vmatprep.subr.bf16.mxu1 %v508_v30 }
  0x3b   :  { %279 = vmatpush1.bf16.msra.mxu0 %v510_v31  ;;  %464 = vmatpush1.bf16.msra.mxu1 %v510_v31 }
  0x3c   :  { %280 = vmatprep.subr.bf16.mxu0 %v511_v32  ;;  %449 = vmatprep.subr.bf16.mxu1 %v511_v32 }
  0x3f   :  { %281 = vmatpush1.bf16.msra.mxu0 %v513_v33  ;;  %465 = vmatpush1.bf16.msra.mxu1 %v513_v33 }
  0x42   :  { %283 = vmatmul.mubr.bf16.vlgmr.msra.gmra.mrb[0].mxu0 %v514_v34  ;;  %293 = vmatmul.mubr.bf16.vlgmr.msra.gmra.mrb[0].mxu1 %v517_v35 }
 0x115   :  { %v284_v43 = vpop.f32.mrb[0].mxu0  ;;  %v294_v44 = vpop.f32.mrb[0].mxu1 }
 0x116   :  { %v342_v45 = vadd.f32 %v335_v41, %v284_v43  ;;  %v346_v46 = vadd.f32 %v335_v41, %v294_v44  ;;  %v286_v47 = vpop.f32.mrb[1].mxu0  ;;  %v296_v48 = vpop.f32.mrb[1].mxu1 }
 0x117   :  { %v343_v49 = vadd.f32 %v339_v42, %v286_v47  ;;  %v347_v50 = vadd.f32 %v339_v42, %v296_v48  ;;  %v288_v51 = vpop.f32.mrb[2].mxu0  ;;  %v298_v52 = vpop.f32.mrb[2].mxu1 }
 0x118   :  { %v350_v53 = vmax.f32 %v342_v45, 0.0  ;;  %v354_v54 = vmax.f32 %v346_v46, 0.0  ;;  %v344_v55 = vadd.f32 %v335_v41, %v288_v51  ;;  %v348_v56 = vadd.f32 %v335_v41, %v298_v52  ;;  %v290_v57 = vpop.f32.mrb[3].mxu0  ;;  %v300_v58 = vpop.f32.mrb[3].mxu1 }
 0x119   :  { %v351_v59 = vmax.f32 %v343_v49, 0.0  ;;  %v355_v60 = vmax.f32 %v347_v50, 0.0  ;;  %v345_v61 = vadd.f32 %v339_v42, %v290_v57  ;;  %v349_v62 = vadd.f32 %v339_v42, %v300_v58 }
 0x11a   :  { %v352_v63 = vmax.f32 %v344_v55, 0.0  ;;  %v356_v0 = vmax.f32 %v348_v56, 0.0 }
 0x11b   :  { %v430_v1 = vpack.c.bf16 %v351_v59, %v350_v53  ;;  %v432_v2 = vpack.c.bf16 %v355_v60, %v354_v54  ;;  %v353_v3 = vmax.f32 %v345_v61, 0.0  ;;  %v357_v4 = vmax.f32 %v349_v62, 0.0 }
 0x11d   :  { %382 = vst [vmem:[%s666_s3] sm:$0xff] %v430_v1  ;;  %384 = vst [vmem:[%s666_s3 + $0x10] sm:$0xff] %v432_v2  ;;  %v431_v5 = vpack.c.bf16 %v353_v3, %v352_v63  ;;  %v433_v6 = vpack.c.bf16 %v357_v4, %v356_v0 }
 0x11f   :  { %383 = vst [vmem:[%s666_s3 + $0x8] sm:$0xff] %v431_v5  ;;  %385 = vst [vmem:[%s666_s3 + $0x18] sm:$0xff] %v433_v6 }

// kernel: _lambda_.111
= control target key start
LH: loop header
LB: loop body
LE: loop exit
PB: predicated region body
PF: predicated region fallthrough
CT: control target
= control target key end

     0   :  { %s503_s0 = inlined_call_operand.vmem [shape: bf16[32,256], index: 0, kind: input, shape index: {}]   ;;  %s504_s1 = inlined_call_operand.vmem [shape: bf16[256,32], index: 1, kind: input, shape index: {}]   ;;  %s505_s2 = inlined_call_operand.vmem [shape: f32[1,32], index: 2, kind: input, shape index: {}]   ;;  %s506_s3 = inlined_call_operand.hbm [shape: f32[32,32], index: 3, kind: output, shape index: {}]  }
   0x1   :  { %v346_v0 = vld [vmem:[%s504_s1 + $0x40] sm:$0xff]   ;;  %v348_v2 = vld [vmem:[%s504_s1 + $0x48] sm:$0xff]   ;;  %v350_v4 = vld [vmem:[%s504_s1 + $0x50] sm:$0xff]  }
   0x2   :  { %v347_v1 = vld [vmem:[%s504_s1] sm:$0xff]   ;;  %298 = vmatprep.subr.bf16.mxu0 %v346_v0  ;;  %326 = vmatprep.subr.bf16.mxu1 %v346_v0  ;;  %v349_v3 = vld [vmem:[%s504_s1 + $0x8] sm:$0xff]   ;;  %v351_v5 = vld [vmem:[%s504_s1 + $0x10] sm:$0xff]  }
   0x3   :  { %299 = vmatpush3.bf16.msra.mxu0 %v347_v1  ;;  %334 = vmatpush3.bf16.msra.mxu1 %v347_v1  ;;  %v352_v6 = vld [vmem:[%s504_s1 + $0x58] sm:$0xff]   ;;  %v354_v8 = vld [vmem:[%s504_s1 + $0x60] sm:$0xff]   ;;  %v356_v10 = vld [vmem:[%s504_s1 + $0x68] sm:$0xff]  }
   0x4   :  { %300 = vmatprep.subr.bf16.mxu0 %v348_v2  ;;  %327 = vmatprep.subr.bf16.mxu1 %v348_v2  ;;  %v353_v7 = vld [vmem:[%s504_s1 + $0x18] sm:$0xff]   ;;  %v355_v9 = vld [vmem:[%s504_s1 + $0x20] sm:$0xff]  }
   0x5   :  { %v364_v11 = vld [vmem:[%s503_s0 + $0x4] ss:$8 sps:$4 sm:$0xff]   ;;  %v367_v12 = vld [vmem:[%s503_s0 + $0x14] ss:$8 sps:$4 sm:$0xff]  }
   0x7   :  { %301 = vmatpush3.bf16.msra.mxu0 %v349_v3  ;;  %335 = vmatpush3.bf16.msra.mxu1 %v349_v3 }
   0x8   :  { %302 = vmatprep.subr.bf16.mxu0 %v350_v4  ;;  %328 = vmatprep.subr.bf16.mxu1 %v350_v4 }
   0xb   :  { %303 = vmatpush3.bf16.msra.mxu0 %v351_v5  ;;  %336 = vmatpush3.bf16.msra.mxu1 %v351_v5 }
   0xc   :  { %304 = vmatprep.subr.bf16.mxu0 %v352_v6  ;;  %329 = vmatprep.subr.bf16.mxu1 %v352_v6 }
   0xf   :  { %305 = vmatpush3.bf16.msra.mxu0 %v353_v7  ;;  %337 = vmatpush3.bf16.msra.mxu1 %v353_v7 }
  0x10   :  { %306 = vmatprep.subr.bf16.mxu0 %v354_v8  ;;  %330 = vmatprep.subr.bf16.mxu1 %v354_v8 }
  0x11   :  { %8 = vsyncpa [#allocation4], 0  ;;  %v357_v13 = vld [vmem:[%s504_s1 + $0x28] sm:$0xff]   ;;  %v358_v14 = vld [vmem:[%s504_s1 + $0x70] sm:$0xff]   ;;  %213 = vmatprep.mubr.bf16.mxu0 %v364_v11  ;;  %221 = vmatprep.mubr.bf16.mxu1 %v367_v12  ;;  %vm20_vm0 = vcmask 261120   ;;  %v392_v20 = vmov 0.0  }
  0x12   :  { %v359_v15 = vld [vmem:[%s504_s1 + $0x30] sm:$0xff]   ;;  %v360_v16 = vld [vmem:[%s504_s1 + $0x78] sm:$0xff]   ;;  %v362_v18 = vld [vmem:[%s503_s0] ss:$8 sps:$4 sm:$0xff]   ;;  %21 = vst.msk [vmem:[#allocation2] sm:$0xff] %vm20_vm0, %v392_v20  ;;  %s393_s25 = smov [#allocation3]  }
  0x13   :  { %307 = vmatpush3.bf16.msra.mxu0 %v355_v9  ;;  %338 = vmatpush3.bf16.msra.mxu1 %v355_v9  ;;  %v361_v17 = vld [vmem:[%s504_s1 + $0x38] sm:$0xff]   ;;  %22 = vst.msk [vmem:[#allocation2 + $0x8] sm:$0xff] %vm20_vm0, %v392_v20  ;;  %23 = vst.msk [vmem:[#allocation2 + $0x10] sm:$0xff] %vm20_vm0, %v392_v20  ;;  %v297_v41 = vld [vmem:[%s505_s2] ss:$0 sm:$0xff]  ;;  %s266_s26 = sshll.u32 %s393_s25, 4  ;;  %s267_s26 = int_to_ptr.vmem [resolvable:$true] %s266_s26 }
  0x14   :  { %308 = vmatprep.subr.bf16.mxu0 %v356_v10  ;;  %331 = vmatprep.subr.bf16.mxu1 %v356_v10  ;;  %v365_v19 = vld [vmem:[%s503_s0 + $0x10] ss:$8 sps:$4 sm:$0xff]   ;;  %24 = vst.msk [vmem:[#allocation2 + $0x18] sm:$0xff] %vm20_vm0, %v392_v20  ;;  %s368_s2 = scalar_lea.vmem %s267_s26, 512  ;;  %p373_p1 = scmp.lt.s32.totalorder %s267_s26, %s267_s26 }
  0x15   :  { %p369_p0 = scmp.ne.s32.totalorder %s267_s26, %s368_s2  ;;  %p374_p2 = scmp.lt.s32.totalorder %s368_s2, %s368_s2 }
  0x17   :  { %309 = vmatpush3.bf16.msra.mxu0 %v357_v13  ;;  %339 = vmatpush3.bf16.msra.mxu1 %v357_v13  ;;  %p375_p3 = por %p374_p2, %p373_p1 }
  0x18   :  { %310 = vmatprep.subr.bf16.mxu0 %v358_v14  ;;  %332 = vmatprep.subr.bf16.mxu1 %v358_v14 }
  0x19   :  { %v25_v23 = vld [vmem:[#allocation2] sm:$0xff]  ;;  %p376_p4 = pnand %p375_p3, %p369_p0 }
  0x1a   :  { %v27_v25 = vld [vmem:[#allocation2 + $0x10] sm:$0xff]  ;;  %v26_v31 = vld [vmem:[#allocation2 + $0x8] sm:$0xff] }
  0x1b   :  { %311 = vmatpush3.bf16.msra.mxu0 %v359_v15  ;;  %340 = vmatpush3.bf16.msra.mxu1 %v359_v15  ;;  %v28_v33 = vld [vmem:[#allocation2 + $0x18] sm:$0xff] }
  0x1c   :  { %312 = vmatprep.subr.bf16.mxu0 %v360_v16  ;;  %333 = vmatprep.subr.bf16.mxu1 %v360_v16 }
  0x1f   :  { %313 = vmatpush3.bf16.msra.mxu0 %v361_v17  ;;  %341 = vmatpush3.bf16.msra.mxu1 %v361_v17 }
  0x22   :  { %214 = vmatmul.mubr.bf16.vlgmr.msra.gmra.mrb[0].mxu0 %v362_v18  ;;  %222 = vmatmul.mubr.bf16.vlgmr.msra.gmra.mrb[0].mxu1 %v365_v19 }
  0xf5   :  { %v314_v21 = vpop.f32.mrb[0].mxu0  ;;  %v320_v22 = vpop.f32.mrb[0].mxu1 }
  0xf6   :  { %v315_v24 = vpop.f32.mrb[1].mxu0  ;;  %v321_v26 = vpop.f32.mrb[1].mxu1 }
  0xf7   :  { %v316_v27 = vadd.f32 %v315_v24, %v314_v21  ;;  %v322_v28 = vadd.f32 %v321_v26, %v320_v22  ;;  %v317_v29 = vpop.f32.mrb[2].mxu0  ;;  %v323_v30 = vpop.f32.mrb[2].mxu1 }
  0xf8   :  { %v318_v32 = vpop.f32.mrb[3].mxu0  ;;  %v324_v34 = vpop.f32.mrb[3].mxu1 }
  0xf9   :  { %v230_v35 = vadd.f32 %v316_v27, %v25_v23  ;;  %v232_v36 = vadd.f32 %v322_v28, %v27_v25  ;;  %v319_v37 = vadd.f32 %v318_v32, %v317_v29  ;;  %v325_v38 = vadd.f32 %v324_v34, %v323_v30 }
  0xfb   :  { %235 = vst.msk [vmem:[#allocation2] sm:$0xff] %vm20_vm0, %v230_v35  ;;  %237 = vst.msk [vmem:[#allocation2 + $0x10] sm:$0xff] %vm20_vm0, %v232_v36  ;;  %v231_v39 = vadd.f32 %v319_v37, %v26_v31  ;;  %v233_v40 = vadd.f32 %v325_v38, %v28_v33 }
  0xfd   :  { %236 = vst.msk [vmem:[#allocation2 + $0x8] sm:$0xff] %vm20_vm0, %v231_v39  ;;  %238 = vst.msk [vmem:[#allocation2 + $0x18] sm:$0xff] %vm20_vm0, %v233_v40 }
 0x102   :  { %v242_v42 = vld [vmem:[#allocation2] sm:$0xff]  ;;  %v244_v43 = vld [vmem:[#allocation2 + $0x10] sm:$0xff] }
 0x103   :  { %v253_v44 = vadd.f32 %v297_v41, %v242_v42  ;;  %v255_v45 = vadd.f32 %v297_v41, %v244_v43 }
 0x104   :  { %v243_v46 = vld [vmem:[#allocation2 + $0x8] sm:$0xff]  ;;  %v245_v47 = vld [vmem:[#allocation2 + $0x18] sm:$0xff] }
 0x105   :  { %v254_v48 = vadd.f32 %v297_v41, %v243_v46  ;;  %v256_v49 = vadd.f32 %v297_v41, %v245_v47  ;;  %257 = vst.msk [vmem:[#allocation3] sm:$0xff] %vm20_vm0, %v253_v44  ;;  %259 = vst.msk [vmem:[#allocation3 + $0x10] sm:$0xff] %vm20_vm0, %v255_v45 }
 0x107   :  { %258 = vst.msk [vmem:[#allocation3 + $0x8] sm:$0xff] %vm20_vm0, %v254_v48  ;;  %260 = vst.msk [vmem:[#allocation3 + $0x18] sm:$0xff] %vm20_vm0, %v256_v49 }
 0x108   :  { %379 = shalt.err (!%p376_p4)
}
 0x109   :  { %s380_s29 = scalar_lea.hbm %s506_s3, 512 }
 0x10a   :  { %p381_p5 = scmp.ne.s32.totalorder %s506_s3, %s380_s29  ;;  %p384_p6 = scmp.lt.u32.totalorder %s380_s29, %s506_s3 }
 0x10c   :  { %p386_p7 = pnand %p384_p6, %p381_p5 }
 0x10e   :  { %389 = shalt.err (!%p386_p7)
}
 0x10f   :  { %s394_s7 = smov 128   ;;  %s395_s8 = smov 8  }
 0x110   :  { %272 = dma.vmem_to_hbm [thread:$0]  %s267_s26, 512, %s506_s3, [#allocation4], %s394_s7, %s394_s7, %s395_s8  }
 0x111   :  { %390 = dma.done.wait [#allocation4], 512  }
 0x112   :  { %391 = vsyncadd [#allocation4], 4294966784 }
 0x113   :  { %276 = vsyncpa [#allocation4], 1 }

// kernel: _lambda_.109
= control target key start
LH: loop header
LB: loop body
LE: loop exit
PB: predicated region body
PF: predicated region fallthrough
CT: control target
= control target key end

     0   :  { %s4463_s1 = inlined_call_operand.vmem [shape: bf16[2304,256], index: 1, kind: input, shape index: {}]   ;;  %s4464_s0 = inlined_call_operand.vmem [shape: bf16[32,2304], index: 0, kind: input, shape index: {}]   ;;  %s4465_s2 = inlined_call_operand.vmem [shape: f32[1,256], index: 2, kind: input, shape index: {}]   ;;  %s4466_s3 = inlined_call_operand.vmem [shape: bf16[32,256], index: 3, kind: output, shape index: {}]  }
   0x1   :  { %v2970_v0 = vld [vmem:[%s4463_s1 + $0x4] ss:$8 sps:$4 sm:$0xff]   ;;  %v2974_v2 = vld [vmem:[%s4463_s1] ss:$8 sps:$4 sm:$0xff]   ;;  %v2976_v4 = vld [vmem:[%s4463_s1 + $0x14] ss:$8 sps:$4 sm:$0xff]  }
   0x2   :  { %v2972_v1 = vld [vmem:[%s4463_s1 + $0x404] ss:$8 sps:$4 sm:$0xff]   ;;  %1978 = vmatprep.subr.bf16.mxu1 %v2970_v0  ;;  %v2975_v3 = vld [vmem:[%s4463_s1 + $0x400] ss:$8 sps:$4 sm:$0xff]   ;;  %v2978_v5 = vld [vmem:[%s4463_s1 + $0x414] ss:$8 sps:$4 sm:$0xff]  }
   0x3   :  { %2190 = vmatprep.subr.bf16.mxu0 %v2972_v1  ;;  %1979 = vmatpush1.bf16.msra.mxu1 %v2974_v2  ;;  %v2980_v6 = vld [vmem:[%s4463_s1 + $0x10] ss:$8 sps:$4 sm:$0xff]   ;;  %v2982_v8 = vld [vmem:[%s4463_s1 + $0x24] ss:$8 sps:$4 sm:$0xff]   ;;  %v2986_v10 = vld [vmem:[%s4463_s1 + $0x20] ss:$8 sps:$4 sm:$0xff]  }
   0x4   :  { %2191 = vmatpush1.bf16.msra.mxu0 %v2975_v3  ;;  %1980 = vmatprep.subr.bf16.mxu1 %v2976_v4  ;;  %v2981_v7 = vld [vmem:[%s4463_s1 + $0x410] ss:$8 sps:$4 sm:$0xff]   ;;  %v2984_v9 = vld [vmem:[%s4463_s1 + $0x424] ss:$8 sps:$4 sm:$0xff]   ;;  %v2987_v11 = vld [vmem:[%s4463_s1 + $0x420] ss:$8 sps:$4 sm:$0xff]  }
   0x5   :  { %2192 = vmatprep.subr.bf16.mxu0 %v2978_v5  ;;  %v2988_v12 = vld [vmem:[%s4463_s1 + $0x34] ss:$8 sps:$4 sm:$0xff]   ;;  %v2992_v14 = vld [vmem:[%s4463_s1 + $0x30] ss:$8 sps:$4 sm:$0xff]   ;;  %v2994_v16 = vld [vmem:[%s4463_s1 + $0x44] ss:$8 sps:$4 sm:$0xff]  }
   0x6   :  { %v2990_v13 = vld [vmem:[%s4463_s1 + $0x434] ss:$8 sps:$4 sm:$0xff]   ;;  %v2993_v15 = vld [vmem:[%s4463_s1 + $0x430] ss:$8 sps:$4 sm:$0xff]   ;;  %v2996_v17 = vld [vmem:[%s4463_s1 + $0x444] ss:$8 sps:$4 sm:$0xff]  }
   0x7   :  { %1981 = vmatpush1.bf16.msra.mxu1 %v2980_v6  ;;  %v2998_v18 = vld [vmem:[%s4463_s1 + $0x40] ss:$8 sps:$4 sm:$0xff]   ;;  %v3000_v20 = vld [vmem:[%s4463_s1 + $0x54] ss:$8 sps:$4 sm:$0xff]   ;;  %v3004_v22 = vld [vmem:[%s4463_s1 + $0x50] ss:$8 sps:$4 sm:$0xff]  }
   0x8   :  { %2193 = vmatpush1.bf16.msra.mxu0 %v2981_v7  ;;  %1982 = vmatprep.subr.bf16.mxu1 %v2982_v8  ;;  %v2999_v19 = vld [vmem:[%s4463_s1 + $0x440] ss:$8 sps:$4 sm:$0xff]   ;;  %v3002_v21 = vld [vmem:[%s4463_s1 + $0x454] ss:$8 sps:$4 sm:$0xff]   ;;  %v3005_v23 = vld [vmem:[%s4463_s1 + $0x450] ss:$8 sps:$4 sm:$0xff]  }
   0x9   :  { %2194 = vmatprep.subr.bf16.mxu0 %v2984_v9  ;;  %v3006_v24 = vld [vmem:[%s4463_s1 + $0x64] ss:$8 sps:$4 sm:$0xff]   ;;  %v3010_v26 = vld [vmem:[%s4463_s1 + $0x60] ss:$8 sps:$4 sm:$0xff]   ;;  %v3012_v28 = vld [vmem:[%s4463_s1 + $0x74] ss:$8 sps:$4 sm:$0xff]  }
   0xa   :  { %v3008_v25 = vld [vmem:[%s4463_s1 + $0x464] ss:$8 sps:$4 sm:$0xff]   ;;  %v3011_v27 = vld [vmem:[%s4463_s1 + $0x460] ss:$8 sps:$4 sm:$0xff]   ;;  %v3014_v29 = vld [vmem:[%s4463_s1 + $0x474] ss:$8 sps:$4 sm:$0xff]  }
   0xb   :  { %1983 = vmatpush1.bf16.msra.mxu1 %v2986_v10  ;;  %v3016_v30 = vld [vmem:[%s4463_s1 + $0x70] ss:$8 sps:$4 sm:$0xff]   ;;  %v3018_v32 = vld [vmem:[%s4463_s1 + $0x84] ss:$8 sps:$4 sm:$0xff]   ;;  %v3022_v34 = vld [vmem:[%s4463_s1 + $0x80] ss:$8 sps:$4 sm:$0xff]  }
   0xc   :  { %2195 = vmatpush1.bf16.msra.mxu0 %v2987_v11  ;;  %1984 = vmatprep.subr.bf16.mxu1 %v2988_v12  ;;  %v3017_v31 = vld [vmem:[%s4463_s1 + $0x470] ss:$8 sps:$4 sm:$0xff]   ;;  %v3020_v33 = vld [vmem:[%s4463_s1 + $0x484] ss:$8 sps:$4 sm:$0xff]   ;;  %v3023_v35 = vld [vmem:[%s4463_s1 + $0x480] ss:$8 sps:$4 sm:$0xff]  }
   0xd   :  { %2196 = vmatprep.subr.bf16.mxu0 %v2990_v13  ;;  %v3024_v36 = vld [vmem:[%s4463_s1 + $0x94] ss:$8 sps:$4 sm:$0xff]   ;;  %v3028_v38 = vld [vmem:[%s4463_s1 + $0x90] ss:$8 sps:$4 sm:$0xff]   ;;  %v3030_v40 = vld [vmem:[%s4463_s1 + $0xa4] ss:$8 sps:$4 sm:$0xff]  }
   0xe   :  { %v3026_v37 = vld [vmem:[%s4463_s1 + $0x494] ss:$8 sps:$4 sm:$0xff]   ;;  %v3029_v39 = vld [vmem:[%s4463_s1 + $0x490] ss:$8 sps:$4 sm:$0xff]   ;;  %v3032_v41 = vld [vmem:[%s4463_s1 + $0x4a4] ss:$8 sps:$4 sm:$0xff]  }
   0xf   :  { %1985 = vmatpush1.bf16.msra.mxu1 %v2992_v14  ;;  %v3034_v42 = vld [vmem:[%s4463_s1 + $0xa0] ss:$8 sps:$4 sm:$0xff]   ;;  %v3036_v44 = vld [vmem:[%s4463_s1 + $0xb4] ss:$8 sps:$4 sm:$0xff]   ;;  %v3040_v46 = vld [vmem:[%s4463_s1 + $0xb0] ss:$8 sps:$4 sm:$0xff]  }
  0x10   :  { %2197 = vmatpush1.bf16.msra.mxu0 %v2993_v15  ;;  %1986 = vmatprep.subr.bf16.mxu1 %v2994_v16  ;;  %v3035_v43 = vld [vmem:[%s4463_s1 + $0x4a0] ss:$8 sps:$4 sm:$0xff]   ;;  %v3038_v45 = vld [vmem:[%s4463_s1 + $0x4b4] ss:$8 sps:$4 sm:$0xff]   ;;  %v3041_v47 = vld [vmem:[%s4463_s1 + $0x4b0] ss:$8 sps:$4 sm:$0xff]  }
  0x11   :  { %2198 = vmatprep.subr.bf16.mxu0 %v2996_v17  ;;  %v3068_v48 = vld [vmem:[%s4464_s0 + $0x4] ss:$72 sps:$4 sm:$0xff]   ;;  %v3046_v52 = vld [vmem:[%s4463_s1 + $0xc0] ss:$8 sps:$4 sm:$0xff]   ;;  %v3048_v54 = vld [vmem:[%s4463_s1 + $0xd4] ss:$8 sps:$4 sm:$0xff]  }
  0x12   :  { %v3042_v49 = vld [vmem:[%s4463_s1 + $0xc4] ss:$8 sps:$4 sm:$0xff]   ;;  %2010 = vmatprep.mubr.bf16.mxu1 %v3068_v48  ;;  %v3047_v53 = vld [vmem:[%s4463_s1 + $0x4c0] ss:$8 sps:$4 sm:$0xff]   ;;  %v3050_v55 = vld [vmem:[%s4463_s1 + $0x4d4] ss:$8 sps:$4 sm:$0xff]  }
  0x13   :  { %1987 = vmatpush1.bf16.msra.mxu1 %v2998_v18  ;;  %v3044_v50 = vld [vmem:[%s4463_s1 + $0x4c4] ss:$8 sps:$4 sm:$0xff]   ;;  %v3052_v56 = vld [vmem:[%s4463_s1 + $0xd0] ss:$8 sps:$4 sm:$0xff]   ;;  %v3058_v60 = vld [vmem:[%s4463_s1 + $0xe0] ss:$8 sps:$4 sm:$0xff]  }
  0x14   :  { %2199 = vmatpush1.bf16.msra.mxu0 %v2999_v19  ;;  %1988 = vmatprep.subr.bf16.mxu1 %v3000_v20  ;;  %v3074_v51 = vld [vmem:[%s4464_s0 + $0x24] ss:$72 sps:$4 sm:$0xff]   ;;  %v3053_v57 = vld [vmem:[%s4463_s1 + $0x4d0] ss:$8 sps:$4 sm:$0xff]   ;;  %v3059_v61 = vld [vmem:[%s4463_s1 + $0x4e0] ss:$8 sps:$4 sm:$0xff]  }
  0x15   :  { %2200 = vmatprep.subr.bf16.mxu0 %v3002_v21  ;;  %2222 = vmatprep.mubr.bf16.mxu0 %v3074_v51  ;;  %v3054_v58 = vld [vmem:[%s4463_s1 + $0xe4] ss:$8 sps:$4 sm:$0xff]   ;;  %v3060_v62 = vld [vmem:[%s4463_s1 + $0xf4] ss:$8 sps:$4 sm:$0xff]   ;;  %v3064_v0 = vld [vmem:[%s4463_s1 + $0xf0] ss:$8 sps:$4 sm:$0xff]  }
  0x16   :  { %v3056_v59 = vld [vmem:[%s4463_s1 + $0x4e4] ss:$8 sps:$4 sm:$0xff]   ;;  %v3062_v63 = vld [vmem:[%s4463_s1 + $0x4f4] ss:$8 sps:$4 sm:$0xff]   ;;  %v3065_v1 = vld [vmem:[%s4463_s1 + $0x4f0] ss:$8 sps:$4 sm:$0xff]  }
  0x17   :  { %1989 = vmatpush1.bf16.msra.mxu1 %v3004_v22  ;;  %v3071_v2 = vld [vmem:[%s4463_s1 + $0x104] ss:$8 sps:$4 sm:$0xff]   ;;  %v3066_v4 = vld [vmem:[%s4464_s0] ss:$72 sps:$4 sm:$0xff]   ;;  %v3080_v8 = vld [vmem:[%s4463_s1 + $0x114] ss:$8 sps:$4 sm:$0xff]  }
  0x18   :  { %2201 = vmatpush1.bf16.msra.mxu0 %v3005_v23  ;;  %1990 = vmatprep.subr.bf16.mxu1 %v3006_v24  ;;  %v3077_v3 = vld [vmem:[%s4463_s1 + $0x504] ss:$8 sps:$4 sm:$0xff]   ;;  %v3069_v5 = vld [vmem:[%s4463_s1 + $0x100] ss:$8 sps:$4 sm:$0xff]   ;;  %v3083_v9 = vld [vmem:[%s4463_s1 + $0x514] ss:$8 sps:$4 sm:$0xff]  }
  0x19   :  { %2202 = vmatprep.subr.bf16.mxu0 %v3008_v25  ;;  %v3072_v6 = vld [vmem:[%s4464_s0 + $0x20] ss:$72 sps:$4 sm:$0xff]   ;;  %v3078_v10 = vld [vmem:[%s4463_s1 + $0x110] ss:$8 sps:$4 sm:$0xff]   ;;  %v3086_v12 = vld [vmem:[%s4463_s1 + $0x124] ss:$8 sps:$4 sm:$0xff]  }
  0x1a   :  { %v3075_v7 = vld [vmem:[%s4463_s1 + $0x500] ss:$8 sps:$4 sm:$0xff]   ;;  %v3081_v11 = vld [vmem:[%s4463_s1 + $0x510] ss:$8 sps:$4 sm:$0xff]   ;;  %v3089_v13 = vld [vmem:[%s4463_s1 + $0x524] ss:$8 sps:$4 sm:$0xff]  }
  0x1b   :  { %1991 = vmatpush1.bf16.msra.mxu1 %v3010_v26  ;;  %v3084_v14 = vld [vmem:[%s4463_s1 + $0x120] ss:$8 sps:$4 sm:$0xff]   ;;  %v3092_v16 = vld [vmem:[%s4463_s1 + $0x134] ss:$8 sps:$4 sm:$0xff]   ;;  %v3090_v18 = vld [vmem:[%s4463_s1 + $0x130] ss:$8 sps:$4 sm:$0xff]  }
  0x1c   :  { %2203 = vmatpush1.bf16.msra.mxu0 %v3011_v27  ;;  %1992 = vmatprep.subr.bf16.mxu1 %v3012_v28  ;;  %v3087_v15 = vld [vmem:[%s4463_s1 + $0x520] ss:$8 sps:$4 sm:$0xff]   ;;  %v3095_v17 = vld [vmem:[%s4463_s1 + $0x534] ss:$8 sps:$4 sm:$0xff]   ;;  %v3093_v19 = vld [vmem:[%s4463_s1 + $0x530] ss:$8 sps:$4 sm:$0xff]  }
  0x1d   :  { %2204 = vmatprep.subr.bf16.mxu0 %v3014_v29  ;;  %v3098_v20 = vld [vmem:[%s4463_s1 + $0x144] ss:$8 sps:$4 sm:$0xff]   ;;  %v3096_v22 = vld [vmem:[%s4463_s1 + $0x140] ss:$8 sps:$4 sm:$0xff]   ;;  %v3104_v24 = vld [vmem:[%s4463_s1 + $0x154] ss:$8 sps:$4 sm:$0xff]  }
  0x1e   :  { %v3101_v21 = vld [vmem:[%s4463_s1 + $0x544] ss:$8 sps:$4 sm:$0xff]   ;;  %v3099_v23 = vld [vmem:[%s4463_s1 + $0x540] ss:$8 sps:$4 sm:$0xff]   ;;  %v3107_v25 = vld [vmem:[%s4463_s1 + $0x554] ss:$8 sps:$4 sm:$0xff]  }
  0x1f   :  { %1993 = vmatpush1.bf16.msra.mxu1 %v3016_v30  ;;  %v3102_v26 = vld [vmem:[%s4463_s1 + $0x150] ss:$8 sps:$4 sm:$0xff]   ;;  %v3156_v28 = vld [vmem:[%s4464_s0 + $0x94] ss:$72 sps:$4 sm:$0xff]   ;;  %v3110_v29 = vld [vmem:[%s4463_s1 + $0x164] ss:$8 sps:$4 sm:$0xff]  }
  0x20   :  { %2205 = vmatpush1.bf16.msra.mxu0 %v3017_v31  ;;  %1994 = vmatprep.subr.bf16.mxu1 %v3018_v32  ;;  %v3105_v27 = vld [vmem:[%s4463_s1 + $0x550] ss:$8 sps:$4 sm:$0xff]   ;;  %v3113_v30 = vld [vmem:[%s4463_s1 + $0x564] ss:$8 sps:$4 sm:$0xff]   ;;  %v3161_v31 = vld [vmem:[%s4464_s0 + $0xb4] ss:$72 sps:$4 sm:$0xff]  }
  0x21   :  { %2206 = vmatprep.subr.bf16.mxu0 %v3020_v33  ;;  %v3108_v32 = vld [vmem:[%s4463_s1 + $0x160] ss:$8 sps:$4 sm:$0xff]   ;;  %v3126_v48 = vld [vmem:[%s4463_s1 + $0x190] ss:$8 sps:$4 sm:$0xff]   ;;  %v3137_v51 = vld [vmem:[%s4463_s1 + $0x5a4] ss:$8 sps:$4 sm:$0xff]  }
  0x22   :  { %v3111_v33 = vld [vmem:[%s4463_s1 + $0x560] ss:$8 sps:$4 sm:$0xff]  }
  0x23   :  { %1995 = vmatpush1.bf16.msra.mxu1 %v3022_v34  ;;  %v3166_v34 = vld [vmem:[%s4464_s0 + $0x90] ss:$72 sps:$4 sm:$0xff]  }
  0x24   :  { %2207 = vmatpush1.bf16.msra.mxu0 %v3023_v35  ;;  %1996 = vmatprep.subr.bf16.mxu1 %v3024_v36  ;;  %v3167_v35 = vld [vmem:[%s4464_s0 + $0xb0] ss:$72 sps:$4 sm:$0xff]   ;;  %v3116_v36 = vld [vmem:[%s4463_s1 + $0x174] ss:$8 sps:$4 sm:$0xff]  }
  0x25   :  { %2208 = vmatprep.subr.bf16.mxu0 %v3026_v37  ;;  %v3119_v37 = vld [vmem:[%s4463_s1 + $0x574] ss:$8 sps:$4 sm:$0xff]  }
  0x27   :  { %1997 = vmatpush1.bf16.msra.mxu1 %v3028_v38  ;;  %v3114_v38 = vld [vmem:[%s4463_s1 + $0x170] ss:$8 sps:$4 sm:$0xff]  }
  0x28   :  { %2209 = vmatpush1.bf16.msra.mxu0 %v3029_v39  ;;  %1998 = vmatprep.subr.bf16.mxu1 %v3030_v40  ;;  %v3117_v39 = vld [vmem:[%s4463_s1 + $0x570] ss:$8 sps:$4 sm:$0xff]   ;;  %v3176_v40 = vld [vmem:[%s4464_s0 + $0xc] ss:$72 sps:$4 sm:$0xff]  }
  0x29   :  { %2210 = vmatprep.subr.bf16.mxu0 %v3032_v41  ;;  %v3122_v41 = vld [vmem:[%s4463_s1 + $0x184] ss:$8 sps:$4 sm:$0xff]  }
  0x2b   :  { %1999 = vmatpush1.bf16.msra.mxu1 %v3034_v42  ;;  %v3125_v42 = vld [vmem:[%s4463_s1 + $0x584] ss:$8 sps:$4 sm:$0xff]  }
  0x2c   :  { %2211 = vmatpush1.bf16.msra.mxu0 %v3035_v43  ;;  %2000 = vmatprep.subr.bf16.mxu1 %v3036_v44  ;;  %v3182_v43 = vld [vmem:[%s4464_s0 + $0x2c] ss:$72 sps:$4 sm:$0xff]   ;;  %v3120_v44 = vld [vmem:[%s4463_s1 + $0x180] ss:$8 sps:$4 sm:$0xff]  }
  0x2d   :  { %2212 = vmatprep.subr.bf16.mxu0 %v3038_v45  ;;  %v3123_v45 = vld [vmem:[%s4463_s1 + $0x580] ss:$8 sps:$4 sm:$0xff]  }
  0x2f   :  { %2001 = vmatpush1.bf16.msra.mxu1 %v3040_v46  ;;  %v3128_v46 = vld [vmem:[%s4463_s1 + $0x194] ss:$8 sps:$4 sm:$0xff]  }
  0x30   :  { %2213 = vmatpush1.bf16.msra.mxu0 %v3041_v47  ;;  %2002 = vmatprep.subr.bf16.mxu1 %v3042_v49  ;;  %v3131_v47 = vld [vmem:[%s4463_s1 + $0x594] ss:$8 sps:$4 sm:$0xff]   ;;  %v3129_v49 = vld [vmem:[%s4463_s1 + $0x590] ss:$8 sps:$4 sm:$0xff]  }
  0x31   :  { %2214 = vmatprep.subr.bf16.mxu0 %v3044_v50  ;;  %v3134_v50 = vld [vmem:[%s4463_s1 + $0x1a4] ss:$8 sps:$4 sm:$0xff]  }
  0x33   :  { %2003 = vmatpush1.bf16.msra.mxu1 %v3046_v52  ;;  %v3132_v52 = vld [vmem:[%s4463_s1 + $0x1a0] ss:$8 sps:$4 sm:$0xff]  }
  0x34   :  { %2215 = vmatpush1.bf16.msra.mxu0 %v3047_v53  ;;  %2004 = vmatprep.subr.bf16.mxu1 %v3048_v54  ;;  %v3135_v53 = vld [vmem:[%s4463_s1 + $0x5a0] ss:$8 sps:$4 sm:$0xff]   ;;  %v3140_v54 = vld [vmem:[%s4463_s1 + $0x1b4] ss:$8 sps:$4 sm:$0xff]  }
  0x35   :  { %2216 = vmatprep.subr.bf16.mxu0 %v3050_v55  ;;  %v3143_v55 = vld [vmem:[%s4463_s1 + $0x5b4] ss:$8 sps:$4 sm:$0xff]  }
  0x37   :  { %2005 = vmatpush1.bf16.msra.mxu1 %v3052_v56  ;;  %v3138_v56 = vld [vmem:[%s4463_s1 + $0x1b0] ss:$8 sps:$4 sm:$0xff]  }
  0x38   :  { %2217 = vmatpush1.bf16.msra.mxu0 %v3053_v57  ;;  %2006 = vmatprep.subr.bf16.mxu1 %v3054_v58  ;;  %v3141_v57 = vld [vmem:[%s4463_s1 + $0x5b0] ss:$8 sps:$4 sm:$0xff]   ;;  %v3146_v58 = vld [vmem:[%s4463_s1 + $0x1c4] ss:$8 sps:$4 sm:$0xff]  }
  0x39   :  { %2218 = vmatprep.subr.bf16.mxu0 %v3056_v59  ;;  %v3149_v59 = vld [vmem:[%s4463_s1 + $0x5c4] ss:$8 sps:$4 sm:$0xff]  }
  0x3b   :  { %2007 = vmatpush1.bf16.msra.mxu1 %v3058_v60  ;;  %v3144_v60 = vld [vmem:[%s4463_s1 + $0x1c0] ss:$8 sps:$4 sm:$0xff]  }
  0x3c   :  { %2219 = vmatpush1.bf16.msra.mxu0 %v3059_v61  ;;  %2008 = vmatprep.subr.bf16.mxu1 %v3060_v62  ;;  %v3147_v61 = vld [vmem:[%s4463_s1 + $0x5c0] ss:$8 sps:$4 sm:$0xff]   ;;  %v3152_v62 = vld [vmem:[%s4463_s1 + $0x1d4] ss:$8 sps:$4 sm:$0xff]  }
  0x3d   :  { %2220 = vmatprep.subr.bf16.mxu0 %v3062_v63  ;;  %v3155_v63 = vld [vmem:[%s4463_s1 + $0x5d4] ss:$8 sps:$4 sm:$0xff]  }
  0x3f   :  { %2009 = vmatpush1.bf16.msra.mxu1 %v3064_v0  ;;  %v3150_v0 = vld [vmem:[%s4463_s1 + $0x1d0] ss:$8 sps:$4 sm:$0xff]  }
  0x40   :  { %2221 = vmatpush1.bf16.msra.mxu0 %v3065_v1  ;;  %2031 = vmatprep.subr.bf16.mxu1 %v3071_v2  ;;  %v3153_v1 = vld [vmem:[%s4463_s1 + $0x5d0] ss:$8 sps:$4 sm:$0xff]   ;;  %v3160_v2 = vld [vmem:[%s4463_s1 + $0x1e4] ss:$8 sps:$4 sm:$0xff]  }
  0x41   :  { %2243 = vmatprep.subr.bf16.mxu0 %v3077_v3  ;;  %v3165_v3 = vld [vmem:[%s4463_s1 + $0x5e4] ss:$8 sps:$4 sm:$0xff]  }
  0x42   :  { %2011 = vmatmul.mubr.bf16.vlgmr.msra.gmra.mrb[0].mxu1 %v3066_v4  ;;  %v3158_v4 = vld [vmem:[%s4463_s1 + $0x1e0] ss:$8 sps:$4 sm:$0xff]  }
  0x43   :  { %2223 = vmatmul.mubr.bf16.vlgmr.msra.gmra.mrb[0].mxu0 %v3072_v6  ;;  %2032 = vmatpush1.bf16.msra.mxu1 %v3069_v5  ;;  %v3163_v5 = vld [vmem:[%s4463_s1 + $0x5e0] ss:$8 sps:$4 sm:$0xff]   ;;  %v3170_v6 = vld [vmem:[%s4463_s1 + $0x1f4] ss:$8 sps:$4 sm:$0xff]  }
  0x44   :  { %2244 = vmatpush1.bf16.msra.mxu0 %v3075_v7  ;;  %2033 = vmatprep.subr.bf16.mxu1 %v3080_v8  ;;  %v3173_v7 = vld [vmem:[%s4463_s1 + $0x5f4] ss:$8 sps:$4 sm:$0xff]   ;;  %v3168_v8 = vld [vmem:[%s4463_s1 + $0x1f0] ss:$8 sps:$4 sm:$0xff]  }
  0x45   :  { %2245 = vmatprep.subr.bf16.mxu0 %v3083_v9  ;;  %2020 = vmatprep.mubr.bf16.mxu1 %v3156_v28  ;;  %v3171_v9 = vld [vmem:[%s4463_s1 + $0x5f0] ss:$8 sps:$4 sm:$0xff]   ;;  %v3200_v28 = vld [vmem:[%s4463_s1 + $0x234] ss:$8 sps:$4 sm:$0xff]  }
  0x46   :  { %2232 = vmatprep.mubr.bf16.mxu0 %v3161_v31  ;;  %v3201_v31 = vld [vmem:[%s4463_s1 + $0x630] ss:$8 sps:$4 sm:$0xff]  }
  0x47   :  { %2034 = vmatpush1.bf16.msra.mxu1 %v3078_v10  ;;  %v3179_v10 = vld [vmem:[%s4463_s1 + $0x204] ss:$8 sps:$4 sm:$0xff]  }
  0x48   :  { %2246 = vmatpush1.bf16.msra.mxu0 %v3081_v11  ;;  %2035 = vmatprep.subr.bf16.mxu1 %v3086_v12  ;;  %v3185_v11 = vld [vmem:[%s4463_s1 + $0x604] ss:$8 sps:$4 sm:$0xff]   ;;  %v3174_v12 = vld [vmem:[%s4464_s0 + $0x8] ss:$72 sps:$4 sm:$0xff]  }
  0x49   :  { %2247 = vmatprep.subr.bf16.mxu0 %v3089_v13  ;;  %v3177_v13 = vld [vmem:[%s4463_s1 + $0x200] ss:$8 sps:$4 sm:$0xff]  }
  0x4a   :  { %2021 = vmatmul.mubr.bf16.gmra.mrb[4].mxu1 %v3166_v34  ;;  %v3209_v34 = vld [vmem:[%s4463_s1 + $0x644] ss:$8 sps:$4 sm:$0xff]  }
  0x4b   :  { %2036 = vmatpush1.bf16.msra.mxu1 %v3084_v14  ;;  %2233 = vmatmul.mubr.bf16.gmra.mrb[4].mxu0 %v3167_v35  ;;  %v3180_v14 = vld [vmem:[%s4464_s0 + $0x28] ss:$72 sps:$4 sm:$0xff]   ;;  %v3290_v35 = vld [vmem:[%s4464_s0 + $0x34] ss:$72 sps:$4 sm:$0xff]  }
  0x4c   :  { %2248 = vmatpush1.bf16.msra.mxu0 %v3087_v15  ;;  %2037 = vmatprep.subr.bf16.mxu1 %v3092_v16  ;;  %v3183_v15 = vld [vmem:[%s4463_s1 + $0x600] ss:$8 sps:$4 sm:$0xff]   ;;  %v3188_v16 = vld [vmem:[%s4463_s1 + $0x214] ss:$8 sps:$4 sm:$0xff]  }
  0x4d   :  { %2249 = vmatprep.subr.bf16.mxu0 %v3095_v17  ;;  %2063 = vmatprep.mubr.bf16.mxu1 %v3176_v40  ;;  %v3191_v17 = vld [vmem:[%s4463_s1 + $0x614] ss:$8 sps:$4 sm:$0xff]   ;;  %v3210_v40 = vld [vmem:[%s4463_s1 + $0x250] ss:$8 sps:$4 sm:$0xff]  }
  0x4e   :  { %2275 = vmatprep.mubr.bf16.mxu0 %v3182_v43  ;;  %v3221_v43 = vld [vmem:[%s4463_s1 + $0x664] ss:$8 sps:$4 sm:$0xff]  }
  0x4f   :  { %2038 = vmatpush1.bf16.msra.mxu1 %v3090_v18  ;;  %v3186_v18 = vld [vmem:[%s4463_s1 + $0x210] ss:$8 sps:$4 sm:$0xff]  }
  0x50   :  { %2250 = vmatpush1.bf16.msra.mxu0 %v3093_v19  ;;  %2039 = vmatprep.subr.bf16.mxu1 %v3098_v20  ;;  %v3189_v19 = vld [vmem:[%s4463_s1 + $0x610] ss:$8 sps:$4 sm:$0xff]   ;;  %v3264_v20 = vld [vmem:[%s4464_s0 + $0x9c] ss:$72 sps:$4 sm:$0xff]  }
  0x51   :  { %2251 = vmatprep.subr.bf16.mxu0 %v3101_v21  ;;  %v3194_v21 = vld [vmem:[%s4463_s1 + $0x224] ss:$8 sps:$4 sm:$0xff]  }
  0x53   :  { %2040 = vmatpush1.bf16.msra.mxu1 %v3096_v22  ;;  %v3197_v22 = vld [vmem:[%s4463_s1 + $0x624] ss:$8 sps:$4 sm:$0xff]  }
  0x54   :  { %2252 = vmatpush1.bf16.msra.mxu0 %v3099_v23  ;;  %2041 = vmatprep.subr.bf16.mxu1 %v3104_v24  ;;  %v3269_v23 = vld [vmem:[%s4464_s0 + $0xbc] ss:$72 sps:$4 sm:$0xff]   ;;  %v3192_v24 = vld [vmem:[%s4463_s1 + $0x220] ss:$8 sps:$4 sm:$0xff]  }
  0x55   :  { %2253 = vmatprep.subr.bf16.mxu0 %v3107_v25  ;;  %v3195_v25 = vld [vmem:[%s4463_s1 + $0x620] ss:$8 sps:$4 sm:$0xff]  }
  0x57   :  { %2042 = vmatpush1.bf16.msra.mxu1 %v3102_v26  ;;  %v3274_v26 = vld [vmem:[%s4464_s0 + $0x98] ss:$72 sps:$4 sm:$0xff]  }
  0x58   :  { %2254 = vmatpush1.bf16.msra.mxu0 %v3105_v27  ;;  %2043 = vmatprep.subr.bf16.mxu1 %v3110_v29  ;;  %v3275_v27 = vld [vmem:[%s4464_s0 + $0xb8] ss:$72 sps:$4 sm:$0xff]   ;;  %v3203_v29 = vld [vmem:[%s4463_s1 + $0x634] ss:$8 sps:$4 sm:$0xff]  }
  0x59   :  { %2255 = vmatprep.subr.bf16.mxu0 %v3113_v30  ;;  %v3198_v30 = vld [vmem:[%s4463_s1 + $0x230] ss:$8 sps:$4 sm:$0xff]  }
  0x5b   :  { %2044 = vmatpush1.bf16.msra.mxu1 %v3108_v32  ;;  %v3284_v32 = vld [vmem:[%s4464_s0 + $0x14] ss:$72 sps:$4 sm:$0xff]  }
  0x5c   :  { %2256 = vmatpush1.bf16.msra.mxu0 %v3111_v33  ;;  %2045 = vmatprep.subr.bf16.mxu1 %v3116_v36  ;;  %v3206_v33 = vld [vmem:[%s4463_s1 + $0x244] ss:$8 sps:$4 sm:$0xff]   ;;  %v3204_v36 = vld [vmem:[%s4463_s1 + $0x240] ss:$8 sps:$4 sm:$0xff]  }
  0x5d   :  { %2257 = vmatprep.subr.bf16.mxu0 %v3119_v37  ;;  %v3207_v37 = vld [vmem:[%s4463_s1 + $0x640] ss:$8 sps:$4 sm:$0xff]  }
  0x5f   :  { %2046 = vmatpush1.bf16.msra.mxu1 %v3114_v38  ;;  %v3212_v38 = vld [vmem:[%s4463_s1 + $0x254] ss:$8 sps:$4 sm:$0xff]  }
  0x60   :  { %2258 = vmatpush1.bf16.msra.mxu0 %v3117_v39  ;;  %2047 = vmatprep.subr.bf16.mxu1 %v3122_v41  ;;  %v3215_v39 = vld [vmem:[%s4463_s1 + $0x654] ss:$8 sps:$4 sm:$0xff]   ;;  %v3213_v41 = vld [vmem:[%s4463_s1 + $0x650] ss:$8 sps:$4 sm:$0xff]  }
  0x61   :  { %2259 = vmatprep.subr.bf16.mxu0 %v3125_v42  ;;  %v3218_v42 = vld [vmem:[%s4463_s1 + $0x264] ss:$8 sps:$4 sm:$0xff]  }
  0x63   :  { %2048 = vmatpush1.bf16.msra.mxu1 %v3120_v44  ;;  %v3216_v44 = vld [vmem:[%s4463_s1 + $0x260] ss:$8 sps:$4 sm:$0xff]  }
  0x64   :  { %2260 = vmatpush1.bf16.msra.mxu0 %v3123_v45  ;;  %2049 = vmatprep.subr.bf16.mxu1 %v3128_v46  ;;  %v3219_v45 = vld [vmem:[%s4463_s1 + $0x660] ss:$8 sps:$4 sm:$0xff]   ;;  %v3224_v46 = vld [vmem:[%s4463_s1 + $0x274] ss:$8 sps:$4 sm:$0xff]  }
  0x65   :  { %2261 = vmatprep.subr.bf16.mxu0 %v3131_v47  ;;  %v3227_v47 = vld [vmem:[%s4463_s1 + $0x674] ss:$8 sps:$4 sm:$0xff]  }
  0x67   :  { %2050 = vmatpush1.bf16.msra.mxu1 %v3126_v48  ;;  %v3222_v48 = vld [vmem:[%s4463_s1 + $0x270] ss:$8 sps:$4 sm:$0xff]  }
  0x68   :  { %2262 = vmatpush1.bf16.msra.mxu0 %v3129_v49  ;;  %2051 = vmatprep.subr.bf16.mxu1 %v3134_v50  ;;  %v3225_v49 = vld [vmem:[%s4463_s1 + $0x670] ss:$8 sps:$4 sm:$0xff]   ;;  %v3230_v50 = vld [vmem:[%s4463_s1 + $0x284] ss:$8 sps:$4 sm:$0xff]  }
  0x69   :  { %2263 = vmatprep.subr.bf16.mxu0 %v3137_v51  ;;  %v3233_v51 = vld [vmem:[%s4463_s1 + $0x684] ss:$8 sps:$4 sm:$0xff]  }
  0x6b   :  { %2052 = vmatpush1.bf16.msra.mxu1 %v3132_v52  ;;  %v3228_v52 = vld [vmem:[%s4463_s1 + $0x280] ss:$8 sps:$4 sm:$0xff]  }
  0x6c   :  { %2264 = vmatpush1.bf16.msra.mxu0 %v3135_v53  ;;  %2053 = vmatprep.subr.bf16.mxu1 %v3140_v54  ;;  %v3231_v53 = vld [vmem:[%s4463_s1 + $0x680] ss:$8 sps:$4 sm:$0xff]   ;;  %v3236_v54 = vld [vmem:[%s4463_s1 + $0x294] ss:$8 sps:$4 sm:$0xff]  }
  0x6d   :  { %2265 = vmatprep.subr.bf16.mxu0 %v3143_v55  ;;  %v3239_v55 = vld [vmem:[%s4463_s1 + $0x694] ss:$8 sps:$4 sm:$0xff]  }
  0x6f   :  { %2054 = vmatpush1.bf16.msra.mxu1 %v3138_v56  ;;  %v3234_v56 = vld [vmem:[%s4463_s1 + $0x290] ss:$8 sps:$4 sm:$0xff]  }
  0x70   :  { %2266 = vmatpush1.bf16.msra.mxu0 %v3141_v57  ;;  %2055 = vmatprep.subr.bf16.mxu1 %v3146_v58  ;;  %v3237_v57 = vld [vmem:[%s4463_s1 + $0x690] ss:$8 sps:$4 sm:$0xff]   ;;  %v3242_v58 = vld [vmem:[%s4463_s1 + $0x2a4] ss:$8 sps:$4 sm:$0xff]  }
  0x71   :  { %2267 = vmatprep.subr.bf16.mxu0 %v3149_v59  ;;  %v3245_v59 = vld [vmem:[%s4463_s1 + $0x6a4] ss:$8 sps:$4 sm:$0xff]  }
  0x73   :  { %2056 = vmatpush1.bf16.msra.mxu1 %v3144_v60  ;;  %v3240_v60 = vld [vmem:[%s4463_s1 + $0x2a0] ss:$8 sps:$4 sm:$0xff]  }
  0x74   :  { %2268 = vmatpush1.bf16.msra.mxu0 %v3147_v61  ;;  %2057 = vmatprep.subr.bf16.mxu1 %v3152_v62  ;;  %v3243_v61 = vld [vmem:[%s4463_s1 + $0x6a0] ss:$8 sps:$4 sm:$0xff]   ;;  %v3248_v62 = vld [vmem:[%s4463_s1 + $0x2b4] ss:$8 sps:$4 sm:$0xff]  }
  0x75   :  { %2269 = vmatprep.subr.bf16.mxu0 %v3155_v63  ;;  %v3251_v63 = vld [vmem:[%s4463_s1 + $0x6b4] ss:$8 sps:$4 sm:$0xff]  }
  0x77   :  { %2058 = vmatpush1.bf16.msra.mxu1 %v3150_v0  ;;  %v3246_v0 = vld [vmem:[%s4463_s1 + $0x2b0] ss:$8 sps:$4 sm:$0xff]  }
  0x78   :  { %2270 = vmatpush1.bf16.msra.mxu0 %v3153_v1  ;;  %2059 = vmatprep.subr.bf16.mxu1 %v3160_v2  ;;  %v3249_v1 = vld [vmem:[%s4463_s1 + $0x6b0] ss:$8 sps:$4 sm:$0xff]   ;;  %v3254_v2 = vld [vmem:[%s4463_s1 + $0x2c4] ss:$8 sps:$4 sm:$0xff]  }
  0x79   :  { %2271 = vmatprep.subr.bf16.mxu0 %v3165_v3  ;;  %v3257_v3 = vld [vmem:[%s4463_s1 + $0x6c4] ss:$8 sps:$4 sm:$0xff]  }
  0x7b   :  { %2060 = vmatpush1.bf16.msra.mxu1 %v3158_v4  ;;  %v3252_v4 = vld [vmem:[%s4463_s1 + $0x2c0] ss:$8 sps:$4 sm:$0xff]  }
  0x7c   :  { %2272 = vmatpush1.bf16.msra.mxu0 %v3163_v5  ;;  %2061 = vmatprep.subr.bf16.mxu1 %v3170_v6  ;;  %v3255_v5 = vld [vmem:[%s4463_s1 + $0x6c0] ss:$8 sps:$4 sm:$0xff]   ;;  %v3260_v6 = vld [vmem:[%s4463_s1 + $0x2d4] ss:$8 sps:$4 sm:$0xff]  }
  0x7d   :  { %2273 = vmatprep.subr.bf16.mxu0 %v3173_v7  ;;  %v3263_v7 = vld [vmem:[%s4463_s1 + $0x6d4] ss:$8 sps:$4 sm:$0xff]  }
  0x7f   :  { %2062 = vmatpush1.bf16.msra.mxu1 %v3168_v8  ;;  %v3258_v8 = vld [vmem:[%s4463_s1 + $0x2d0] ss:$8 sps:$4 sm:$0xff]  }
  0x80   :  { %2274 = vmatpush1.bf16.msra.mxu0 %v3171_v9  ;;  %2084 = vmatprep.subr.bf16.mxu1 %v3179_v10  ;;  %v3261_v9 = vld [vmem:[%s4463_s1 + $0x6d0] ss:$8 sps:$4 sm:$0xff]   ;;  %v3268_v10 = vld [vmem:[%s4463_s1 + $0x2e4] ss:$8 sps:$4 sm:$0xff]  }
  0x81   :  { %2296 = vmatprep.subr.bf16.mxu0 %v3185_v11  ;;  %v3273_v11 = vld [vmem:[%s4463_s1 + $0x6e4] ss:$8 sps:$4 sm:$0xff]  }
  0x82   :  { %2064 = vmatmul.mubr.bf16.vlgmr.msra.gmra.mrb[0].mxu1 %v3174_v12  ;;  %v3266_v12 = vld [vmem:[%s4463_s1 + $0x2e0] ss:$8 sps:$4 sm:$0xff]  }
  0x83   :  { %2276 = vmatmul.mubr.bf16.vlgmr.msra.gmra.mrb[0].mxu0 %v3180_v14  ;;  %2085 = vmatpush1.bf16.msra.mxu1 %v3177_v13  ;;  %v3271_v13 = vld [vmem:[%s4463_s1 + $0x6e0] ss:$8 sps:$4 sm:$0xff]   ;;  %v3278_v14 = vld [vmem:[%s4463_s1 + $0x2f4] ss:$8 sps:$4 sm:$0xff]  }
  0x84   :  { %2297 = vmatpush1.bf16.msra.mxu0 %v3183_v15  ;;  %2086 = vmatprep.subr.bf16.mxu1 %v3188_v16  ;;  %v3281_v15 = vld [vmem:[%s4463_s1 + $0x6f4] ss:$8 sps:$4 sm:$0xff]   ;;  %v3276_v16 = vld [vmem:[%s4463_s1 + $0x2f0] ss:$8 sps:$4 sm:$0xff]  }
  0x85   :  { %2298 = vmatprep.subr.bf16.mxu0 %v3191_v17  ;;  %2073 = vmatprep.mubr.bf16.mxu1 %v3264_v20  ;;  %v3279_v17 = vld [vmem:[%s4463_s1 + $0x6f0] ss:$8 sps:$4 sm:$0xff]  }
  0x86   :  { %2285 = vmatprep.mubr.bf16.mxu0 %v3269_v23  ;;  %v3282_v20 = vld [vmem:[%s4464_s0 + $0x10] ss:$72 sps:$4 sm:$0xff]   ;;  %v3291_v23 = vld [vmem:[%s4463_s1 + $0x700] ss:$8 sps:$4 sm:$0xff]  }
  0x87   :  { %2087 = vmatpush1.bf16.msra.mxu1 %v3186_v18  ;;  %v3287_v18 = vld [vmem:[%s4463_s1 + $0x304] ss:$8 sps:$4 sm:$0xff]  }
  0x88   :  { %2299 = vmatpush1.bf16.msra.mxu0 %v3189_v19  ;;  %2088 = vmatprep.subr.bf16.mxu1 %v3194_v21  ;;  %v3293_v19 = vld [vmem:[%s4463_s1 + $0x704] ss:$8 sps:$4 sm:$0xff]   ;;  %v3285_v21 = vld [vmem:[%s4463_s1 + $0x300] ss:$8 sps:$4 sm:$0xff]  }
  0x89   :  { %2300 = vmatprep.subr.bf16.mxu0 %v3197_v22  ;;  %v3288_v22 = vld [vmem:[%s4464_s0 + $0x30] ss:$72 sps:$4 sm:$0xff]  }
  0x8a   :  { %2074 = vmatmul.mubr.bf16.gmra.mrb[4].mxu1 %v3274_v26  ;;  %v3372_v26 = vld [vmem:[%s4464_s0 + $0xa4] ss:$72 sps:$4 sm:$0xff]  }
  0x8b   :  { %2286 = vmatmul.mubr.bf16.gmra.mrb[4].mxu0 %v3275_v27  ;;  %2089 = vmatpush1.bf16.msra.mxu1 %v3192_v24  ;;  %v3296_v24 = vld [vmem:[%s4463_s1 + $0x314] ss:$8 sps:$4 sm:$0xff]   ;;  %v3374_v27 = vld [vmem:[%s4464_s0 + $0xc4] ss:$72 sps:$4 sm:$0xff]  }
  0x8c   :  { %2301 = vmatpush1.bf16.msra.mxu0 %v3195_v25  ;;  %2090 = vmatprep.subr.bf16.mxu1 %v3200_v28  ;;  %v3299_v25 = vld [vmem:[%s4463_s1 + $0x714] ss:$8 sps:$4 sm:$0xff]   ;;  %v3294_v28 = vld [vmem:[%s4463_s1 + $0x310] ss:$8 sps:$4 sm:$0xff]  }
  0x8d   :  { %2302 = vmatprep.subr.bf16.mxu0 %v3203_v29  ;;  %2116 = vmatprep.mubr.bf16.mxu1 %v3284_v32  ;;  %v3297_v29 = vld [vmem:[%s4463_s1 + $0x710] ss:$8 sps:$4 sm:$0xff]   ;;  %v3300_v32 = vld [vmem:[%s4463_s1 + $0x320] ss:$8 sps:$4 sm:$0xff]  }
  0x8e   :  { %2328 = vmatprep.mubr.bf16.mxu0 %v3290_v35  ;;  %v3380_v35 = vld [vmem:[%s4464_s0 + $0xc0] ss:$72 sps:$4 sm:$0xff]  }
  0x8f   :  { %2091 = vmatpush1.bf16.msra.mxu1 %v3198_v30  ;;  %v3302_v30 = vld [vmem:[%s4463_s1 + $0x324] ss:$8 sps:$4 sm:$0xff]  }
  0x90   :  { %2303 = vmatpush1.bf16.msra.mxu0 %v3201_v31  ;;  %2092 = vmatprep.subr.bf16.mxu1 %v3206_v33  ;;  %v3305_v31 = vld [vmem:[%s4463_s1 + $0x724] ss:$8 sps:$4 sm:$0xff]   ;;  %v3303_v33 = vld [vmem:[%s4463_s1 + $0x720] ss:$8 sps:$4 sm:$0xff]  }
  0x91   :  { %2304 = vmatprep.subr.bf16.mxu0 %v3209_v34  ;;  %v3376_v34 = vld [vmem:[%s4464_s0 + $0xa0] ss:$72 sps:$4 sm:$0xff]  }
  0x93   :  { %2093 = vmatpush1.bf16.msra.mxu1 %v3204_v36  ;;  %v3308_v36 = vld [vmem:[%s4463_s1 + $0x334] ss:$8 sps:$4 sm:$0xff]  }
  0x94   :  { %2305 = vmatpush1.bf16.msra.mxu0 %v3207_v37  ;;  %2094 = vmatprep.subr.bf16.mxu1 %v3212_v38  ;;  %v3311_v37 = vld [vmem:[%s4463_s1 + $0x734] ss:$8 sps:$4 sm:$0xff]  }
  0x95   :  { %2306 = vmatprep.subr.bf16.mxu0 %v3215_v39  ;;  %v3392_v38 = vld [vmem:[%s4464_s0 + $0x1c] ss:$72 sps:$4 sm:$0xff]  }
  0x96   :  { %v3395_v39 = vld [vmem:[%s4464_s0 + $0x3c] ss:$72 sps:$4 sm:$0xff]  }
  0x97   :  { %2095 = vmatpush1.bf16.msra.mxu1 %v3210_v40  ;;  %v3306_v40 = vld [vmem:[%s4463_s1 + $0x330] ss:$8 sps:$4 sm:$0xff]  }
  0x98   :  { %2307 = vmatpush1.bf16.msra.mxu0 %v3213_v41  ;;  %2096 = vmatprep.subr.bf16.mxu1 %v3218_v42  ;;  %v3309_v41 = vld [vmem:[%s4463_s1 + $0x730] ss:$8 sps:$4 sm:$0xff]   ;;  %v3314_v42 = vld [vmem:[%s4463_s1 + $0x344] ss:$8 sps:$4 sm:$0xff]  }
  0x99   :  { %2308 = vmatprep.subr.bf16.mxu0 %v3221_v43  ;;  %v3317_v43 = vld [vmem:[%s4463_s1 + $0x744] ss:$8 sps:$4 sm:$0xff]  }
  0x9b   :  { %2097 = vmatpush1.bf16.msra.mxu1 %v3216_v44  ;;  %v3312_v44 = vld [vmem:[%s4463_s1 + $0x340] ss:$8 sps:$4 sm:$0xff]  }
  0x9c   :  { %2309 = vmatpush1.bf16.msra.mxu0 %v3219_v45  ;;  %2098 = vmatprep.subr.bf16.mxu1 %v3224_v46  ;;  %v3315_v45 = vld [vmem:[%s4463_s1 + $0x740] ss:$8 sps:$4 sm:$0xff]   ;;  %v3320_v46 = vld [vmem:[%s4463_s1 + $0x354] ss:$8 sps:$4 sm:$0xff]  }
  0x9d   :  { %2310 = vmatprep.subr.bf16.mxu0 %v3227_v47  ;;  %v3323_v47 = vld [vmem:[%s4463_s1 + $0x754] ss:$8 sps:$4 sm:$0xff]  }
  0x9f   :  { %2099 = vmatpush1.bf16.msra.mxu1 %v3222_v48  ;;  %v3318_v48 = vld [vmem:[%s4463_s1 + $0x350] ss:$8 sps:$4 sm:$0xff]  }
  0xa0   :  { %2311 = vmatpush1.bf16.msra.mxu0 %v3225_v49  ;;  %2100 = vmatprep.subr.bf16.mxu1 %v3230_v50  ;;  %v3321_v49 = vld [vmem:[%s4463_s1 + $0x750] ss:$8 sps:$4 sm:$0xff]   ;;  %v3326_v50 = vld [vmem:[%s4463_s1 + $0x364] ss:$8 sps:$4 sm:$0xff]  }
  0xa1   :  { %2312 = vmatprep.subr.bf16.mxu0 %v3233_v51  ;;  %v3329_v51 = vld [vmem:[%s4463_s1 + $0x764] ss:$8 sps:$4 sm:$0xff]  }
  0xa3   :  { %2101 = vmatpush1.bf16.msra.mxu1 %v3228_v52  ;;  %v3324_v52 = vld [vmem:[%s4463_s1 + $0x360] ss:$8 sps:$4 sm:$0xff]  }
  0xa4   :  { %2313 = vmatpush1.bf16.msra.mxu0 %v3231_v53  ;;  %2102 = vmatprep.subr.bf16.mxu1 %v3236_v54  ;;  %v3327_v53 = vld [vmem:[%s4463_s1 + $0x760] ss:$8 sps:$4 sm:$0xff]   ;;  %v3332_v54 = vld [vmem:[%s4463_s1 + $0x374] ss:$8 sps:$4 sm:$0xff]  }
  0xa5   :  { %2314 = vmatprep.subr.bf16.mxu0 %v3239_v55  ;;  %v3335_v55 = vld [vmem:[%s4463_s1 + $0x774] ss:$8 sps:$4 sm:$0xff]  }
  0xa7   :  { %2103 = vmatpush1.bf16.msra.mxu1 %v3234_v56  ;;  %v3330_v56 = vld [vmem:[%s4463_s1 + $0x370] ss:$8 sps:$4 sm:$0xff]  }
  0xa8   :  { %2315 = vmatpush1.bf16.msra.mxu0 %v3237_v57  ;;  %2104 = vmatprep.subr.bf16.mxu1 %v3242_v58  ;;  %v3333_v57 = vld [vmem:[%s4463_s1 + $0x770] ss:$8 sps:$4 sm:$0xff]   ;;  %v3338_v58 = vld [vmem:[%s4463_s1 + $0x384] ss:$8 sps:$4 sm:$0xff]  }
  0xa9   :  { %2316 = vmatprep.subr.bf16.mxu0 %v3245_v59  ;;  %v3341_v59 = vld [vmem:[%s4463_s1 + $0x784] ss:$8 sps:$4 sm:$0xff]  }
  0xab   :  { %2105 = vmatpush1.bf16.msra.mxu1 %v3240_v60  ;;  %v3336_v60 = vld [vmem:[%s4463_s1 + $0x380] ss:$8 sps:$4 sm:$0xff]  }
  0xac   :  { %2317 = vmatpush1.bf16.msra.mxu0 %v3243_v61  ;;  %2106 = vmatprep.subr.bf16.mxu1 %v3248_v62  ;;  %v3339_v61 = vld [vmem:[%s4463_s1 + $0x780] ss:$8 sps:$4 sm:$0xff]   ;;  %v3344_v62 = vld [vmem:[%s4463_s1 + $0x394] ss:$8 sps:$4 sm:$0xff]  }
  0xad   :  { %2318 = vmatprep.subr.bf16.mxu0 %v3251_v63  ;;  %v3347_v63 = vld [vmem:[%s4463_s1 + $0x794] ss:$8 sps:$4 sm:$0xff]  }
  0xaf   :  { %2107 = vmatpush1.bf16.msra.mxu1 %v3246_v0  ;;  %v3342_v0 = vld [vmem:[%s4463_s1 + $0x390] ss:$8 sps:$4 sm:$0xff]  }
  0xb0   :  { %2319 = vmatpush1.bf16.msra.mxu0 %v3249_v1  ;;  %2108 = vmatprep.subr.bf16.mxu1 %v3254_v2  ;;  %v3345_v1 = vld [vmem:[%s4463_s1 + $0x790] ss:$8 sps:$4 sm:$0xff]   ;;  %v3350_v2 = vld [vmem:[%s4463_s1 + $0x3a4] ss:$8 sps:$4 sm:$0xff]  }
  0xb1   :  { %2320 = vmatprep.subr.bf16.mxu0 %v3257_v3  ;;  %v3353_v3 = vld [vmem:[%s4463_s1 + $0x7a4] ss:$8 sps:$4 sm:$0xff]  }
  0xb3   :  { %2109 = vmatpush1.bf16.msra.mxu1 %v3252_v4  ;;  %v3348_v4 = vld [vmem:[%s4463_s1 + $0x3a0] ss:$8 sps:$4 sm:$0xff]  }
  0xb4   :  { %2321 = vmatpush1.bf16.msra.mxu0 %v3255_v5  ;;  %2110 = vmatprep.subr.bf16.mxu1 %v3260_v6  ;;  %v3351_v5 = vld [vmem:[%s4463_s1 + $0x7a0] ss:$8 sps:$4 sm:$0xff]   ;;  %v3356_v6 = vld [vmem:[%s4463_s1 + $0x3b4] ss:$8 sps:$4 sm:$0xff]  }
  0xb5   :  { %2322 = vmatprep.subr.bf16.mxu0 %v3263_v7  ;;  %v3359_v7 = vld [vmem:[%s4463_s1 + $0x7b4] ss:$8 sps:$4 sm:$0xff]  }
  0xb7   :  { %2111 = vmatpush1.bf16.msra.mxu1 %v3258_v8  ;;  %v3354_v8 = vld [vmem:[%s4463_s1 + $0x3b0] ss:$8 sps:$4 sm:$0xff]  }
  0xb8   :  { %2323 = vmatpush1.bf16.msra.mxu0 %v3261_v9  ;;  %2112 = vmatprep.subr.bf16.mxu1 %v3268_v10  ;;  %v3357_v9 = vld [vmem:[%s4463_s1 + $0x7b0] ss:$8 sps:$4 sm:$0xff]   ;;  %v3362_v10 = vld [vmem:[%s4463_s1 + $0x3c4] ss:$8 sps:$4 sm:$0xff]  }
  0xb9   :  { %2324 = vmatprep.subr.bf16.mxu0 %v3273_v11  ;;  %v3365_v11 = vld [vmem:[%s4463_s1 + $0x7c4] ss:$8 sps:$4 sm:$0xff]  }
  0xbb   :  { %2113 = vmatpush1.bf16.msra.mxu1 %v3266_v12  ;;  %v3360_v12 = vld [vmem:[%s4463_s1 + $0x3c0] ss:$8 sps:$4 sm:$0xff]  }
  0xbc   :  { %2325 = vmatpush1.bf16.msra.mxu0 %v3271_v13  ;;  %2114 = vmatprep.subr.bf16.mxu1 %v3278_v14  ;;  %v3363_v13 = vld [vmem:[%s4463_s1 + $0x7c0] ss:$8 sps:$4 sm:$0xff]   ;;  %v3368_v14 = vld [vmem:[%s4463_s1 + $0x3d4] ss:$8 sps:$4 sm:$0xff]  }
  0xbd   :  { %2326 = vmatprep.subr.bf16.mxu0 %v3281_v15  ;;  %v3371_v15 = vld [vmem:[%s4463_s1 + $0x7d4] ss:$8 sps:$4 sm:$0xff]  }
  0xbf   :  { %2115 = vmatpush1.bf16.msra.mxu1 %v3276_v16  ;;  %v3366_v16 = vld [vmem:[%s4463_s1 + $0x3d0] ss:$8 sps:$4 sm:$0xff]  }
  0xc0   :  { %2327 = vmatpush1.bf16.msra.mxu0 %v3279_v17  ;;  %2137 = vmatprep.subr.bf16.mxu1 %v3287_v18  ;;  %v3369_v17 = vld [vmem:[%s4463_s1 + $0x7d0] ss:$8 sps:$4 sm:$0xff]   ;;  %v3379_v18 = vld [vmem:[%s4463_s1 + $0x3e4] ss:$8 sps:$4 sm:$0xff]  }
  0xc1   :  { %2349 = vmatprep.subr.bf16.mxu0 %v3293_v19  ;;  %v3383_v19 = vld [vmem:[%s4463_s1 + $0x7e4] ss:$8 sps:$4 sm:$0xff]  }
  0xc2   :  { %2117 = vmatmul.mubr.bf16.vlgmr.msra.gmra.mrb[0].mxu1 %v3282_v20  ;;  %v3377_v20 = vld [vmem:[%s4463_s1 + $0x3e0] ss:$8 sps:$4 sm:$0xff]  }
  0xc3   :  { %2329 = vmatmul.mubr.bf16.vlgmr.msra.gmra.mrb[0].mxu0 %v3288_v22  ;;  %2138 = vmatpush1.bf16.msra.mxu1 %v3285_v21  ;;  %v3381_v21 = vld [vmem:[%s4463_s1 + $0x7e0] ss:$8 sps:$4 sm:$0xff]   ;;  %v3386_v22 = vld [vmem:[%s4463_s1 + $0x3f4] ss:$8 sps:$4 sm:$0xff]  }
  0xc4   :  { %2350 = vmatpush1.bf16.msra.mxu0 %v3291_v23  ;;  %2139 = vmatprep.subr.bf16.mxu1 %v3296_v24  ;;  %v3389_v23 = vld [vmem:[%s4463_s1 + $0x7f4] ss:$8 sps:$4 sm:$0xff]   ;;  %v3384_v24 = vld [vmem:[%s4463_s1 + $0x3f0] ss:$8 sps:$4 sm:$0xff]  }
  0xc5   :  { %2351 = vmatprep.subr.bf16.mxu0 %v3299_v25  ;;  %2126 = vmatprep.mubr.bf16.mxu1 %v3372_v26  ;;  %v3387_v25 = vld [vmem:[%s4463_s1 + $0x7f0] ss:$8 sps:$4 sm:$0xff]   ;;  %v3398_v26 = vld [vmem:[%s4463_s1 + $0x804] ss:$8 sps:$4 sm:$0xff]  }
  0xc6   :  { %2338 = vmatprep.mubr.bf16.mxu0 %v3374_v27  ;;  %v3390_v27 = vld [vmem:[%s4464_s0 + $0x18] ss:$72 sps:$4 sm:$0xff]  }
  0xc7   :  { %2140 = vmatpush1.bf16.msra.mxu1 %v3294_v28  ;;  %v3393_v28 = vld [vmem:[%s4464_s0 + $0x38] ss:$72 sps:$4 sm:$0xff]  }
  0xc8   :  { %2352 = vmatpush1.bf16.msra.mxu0 %v3297_v29  ;;  %2141 = vmatprep.subr.bf16.mxu1 %v3302_v30  ;;  %v3396_v29 = vld [vmem:[%s4463_s1 + $0x800] ss:$8 sps:$4 sm:$0xff]   ;;  %v3401_v30 = vld [vmem:[%s4463_s1 + $0x814] ss:$8 sps:$4 sm:$0xff]  }
  0xc9   :  { %2353 = vmatprep.subr.bf16.mxu0 %v3305_v31  ;;  %v3402_v31 = vld [vmem:[%s4464_s0 + $0xac] ss:$72 sps:$4 sm:$0xff]  }
  0xca   :  { %2127 = vmatmul.mubr.bf16.gmra.mrb[4].mxu1 %v3376_v34  ;;  %v3410_v34 = vld [vmem:[%s4463_s1 + $0x824] ss:$8 sps:$4 sm:$0xff]  }
  0xcb   :  { %2339 = vmatmul.mubr.bf16.gmra.mrb[4].mxu0 %v3380_v35  ;;  %2142 = vmatpush1.bf16.msra.mxu1 %v3300_v32  ;;  %v3404_v32 = vld [vmem:[%s4464_s0 + $0xcc] ss:$72 sps:$4 sm:$0xff]   ;;  %v3406_v35 = vld [vmem:[%s4464_s0 + $0xa8] ss:$72 sps:$4 sm:$0xff]  }
  0xcc   :  { %2354 = vmatpush1.bf16.msra.mxu0 %v3303_v33  ;;  %2143 = vmatprep.subr.bf16.mxu1 %v3308_v36  ;;  %v3399_v33 = vld [vmem:[%s4463_s1 + $0x810] ss:$8 sps:$4 sm:$0xff]  }
  0xcd   :  { %2355 = vmatprep.subr.bf16.mxu0 %v3311_v37  ;;  %2169 = vmatprep.mubr.bf16.mxu1 %v3392_v38  ;;  %v3407_v36 = vld [vmem:[%s4464_s0 + $0xc8] ss:$72 sps:$4 sm:$0xff]   ;;  %v3413_v38 = vld [vmem:[%s4463_s1 + $0x834] ss:$8 sps:$4 sm:$0xff]  }
  0xce   :  { %2381 = vmatprep.mubr.bf16.mxu0 %v3395_v39  ;;  %v3408_v37 = vld [vmem:[%s4463_s1 + $0x820] ss:$8 sps:$4 sm:$0xff]   ;;  %v3452_v39 = vld [vmem:[%s4464_s0 + $0x44] ss:$72 sps:$4 sm:$0xff]  }
  0xcf   :  { %2144 = vmatpush1.bf16.msra.mxu1 %v3306_v40  ;;  %v3455_v40 = vld [vmem:[%s4464_s0 + $0xd4] ss:$72 sps:$4 sm:$0xff]  }
  0xd0   :  { %2356 = vmatpush1.bf16.msra.mxu0 %v3309_v41  ;;  %2145 = vmatprep.subr.bf16.mxu1 %v3314_v42  ;;  %v3411_v41 = vld [vmem:[%s4463_s1 + $0x830] ss:$8 sps:$4 sm:$0xff]   ;;  %v3416_v42 = vld [vmem:[%s4463_s1 + $0x844] ss:$8 sps:$4 sm:$0xff]  }
  0xd1   :  { %2357 = vmatprep.subr.bf16.mxu0 %v3317_v43  ;;  %v3414_v43 = vld [vmem:[%s4463_s1 + $0x840] ss:$8 sps:$4 sm:$0xff]  }
  0xd3   :  { %2146 = vmatpush1.bf16.msra.mxu1 %v3312_v44  ;;  %v3419_v44 = vld [vmem:[%s4463_s1 + $0x854] ss:$8 sps:$4 sm:$0xff]  }
  0xd4   :  { %2358 = vmatpush1.bf16.msra.mxu0 %v3315_v45  ;;  %2147 = vmatprep.subr.bf16.mxu1 %v3320_v46  ;;  %v3417_v45 = vld [vmem:[%s4463_s1 + $0x850] ss:$8 sps:$4 sm:$0xff]   ;;  %v3422_v46 = vld [vmem:[%s4463_s1 + $0x864] ss:$8 sps:$4 sm:$0xff]  }
  0xd5   :  { %2359 = vmatprep.subr.bf16.mxu0 %v3323_v47  ;;  %v3420_v47 = vld [vmem:[%s4463_s1 + $0x860] ss:$8 sps:$4 sm:$0xff]  }
  0xd7   :  { %2148 = vmatpush1.bf16.msra.mxu1 %v3318_v48  ;;  %v3425_v48 = vld [vmem:[%s4463_s1 + $0x874] ss:$8 sps:$4 sm:$0xff]  }
  0xd8   :  { %2360 = vmatpush1.bf16.msra.mxu0 %v3321_v49  ;;  %2149 = vmatprep.subr.bf16.mxu1 %v3326_v50  ;;  %v3423_v49 = vld [vmem:[%s4463_s1 + $0x870] ss:$8 sps:$4 sm:$0xff]   ;;  %v3428_v50 = vld [vmem:[%s4463_s1 + $0x884] ss:$8 sps:$4 sm:$0xff]  }
  0xd9   :  { %2361 = vmatprep.subr.bf16.mxu0 %v3329_v51  ;;  %v3426_v51 = vld [vmem:[%s4463_s1 + $0x880] ss:$8 sps:$4 sm:$0xff]  }
  0xdb   :  { %2150 = vmatpush1.bf16.msra.mxu1 %v3324_v52  ;;  %v3431_v52 = vld [vmem:[%s4463_s1 + $0x894] ss:$8 sps:$4 sm:$0xff]  }
  0xdc   :  { %2362 = vmatpush1.bf16.msra.mxu0 %v3327_v53  ;;  %2151 = vmatprep.subr.bf16.mxu1 %v3332_v54  ;;  %v3429_v53 = vld [vmem:[%s4463_s1 + $0x890] ss:$8 sps:$4 sm:$0xff]   ;;  %v3434_v54 = vld [vmem:[%s4463_s1 + $0x8a4] ss:$8 sps:$4 sm:$0xff]  }
  0xdd   :  { %2363 = vmatprep.subr.bf16.mxu0 %v3335_v55  ;;  %v3432_v55 = vld [vmem:[%s4463_s1 + $0x8a0] ss:$8 sps:$4 sm:$0xff]  }
  0xdf   :  { %2152 = vmatpush1.bf16.msra.mxu1 %v3330_v56  ;;  %v3437_v56 = vld [vmem:[%s4463_s1 + $0x8b4] ss:$8 sps:$4 sm:$0xff]  }
  0xe0   :  { %2364 = vmatpush1.bf16.msra.mxu0 %v3333_v57  ;;  %2153 = vmatprep.subr.bf16.mxu1 %v3338_v58  ;;  %v3435_v57 = vld [vmem:[%s4463_s1 + $0x8b0] ss:$8 sps:$4 sm:$0xff]   ;;  %v3440_v58 = vld [vmem:[%s4463_s1 + $0x8c4] ss:$8 sps:$4 sm:$0xff]  }
  0xe1   :  { %2365 = vmatprep.subr.bf16.mxu0 %v3341_v59  ;;  %v3438_v59 = vld [vmem:[%s4463_s1 + $0x8c0] ss:$8 sps:$4 sm:$0xff]  }
  0xe3   :  { %2154 = vmatpush1.bf16.msra.mxu1 %v3336_v60  ;;  %v3443_v60 = vld [vmem:[%s4463_s1 + $0x8d4] ss:$8 sps:$4 sm:$0xff]  }
  0xe4   :  { %2366 = vmatpush1.bf16.msra.mxu0 %v3339_v61  ;;  %2155 = vmatprep.subr.bf16.mxu1 %v3344_v62  ;;  %v3441_v61 = vld [vmem:[%s4463_s1 + $0x8d0] ss:$8 sps:$4 sm:$0xff]   ;;  %v3446_v62 = vld [vmem:[%s4463_s1 + $0x8e4] ss:$8 sps:$4 sm:$0xff]  }
  0xe5   :  { %2367 = vmatprep.subr.bf16.mxu0 %v3347_v63  ;;  %v3444_v63 = vld [vmem:[%s4463_s1 + $0x8e0] ss:$8 sps:$4 sm:$0xff]  }
  0xe7   :  { %2156 = vmatpush1.bf16.msra.mxu1 %v3342_v0  ;;  %v3449_v0 = vld [vmem:[%s4463_s1 + $0x8f4] ss:$8 sps:$4 sm:$0xff]  }
  0xe8   :  { %2368 = vmatpush1.bf16.msra.mxu0 %v3345_v1  ;;  %2157 = vmatprep.subr.bf16.mxu1 %v3350_v2  ;;  %v3447_v1 = vld [vmem:[%s4463_s1 + $0x8f0] ss:$8 sps:$4 sm:$0xff]   ;;  %v3450_v2 = vld [vmem:[%s4464_s0 + $0x40] ss:$72 sps:$4 sm:$0xff]  }
  0xe9   :  { %2369 = vmatprep.subr.bf16.mxu0 %v3353_v3  ;;  %v3453_v3 = vld [vmem:[%s4464_s0 + $0xd0] ss:$72 sps:$4 sm:$0xff]  }
  0xeb   :  { %2158 = vmatpush1.bf16.msra.mxu1 %v3348_v4 }
  0xec   :  { %2370 = vmatpush1.bf16.msra.mxu0 %v3351_v5  ;;  %2159 = vmatprep.subr.bf16.mxu1 %v3356_v6 }
  0xed   :  { %2371 = vmatprep.subr.bf16.mxu0 %v3359_v7 }
  0xef   :  { %2160 = vmatpush1.bf16.msra.mxu1 %v3354_v8 }
  0xf0   :  { %2372 = vmatpush1.bf16.msra.mxu0 %v3357_v9  ;;  %2161 = vmatprep.subr.bf16.mxu1 %v3362_v10 }
  0xf1   :  { %2373 = vmatprep.subr.bf16.mxu0 %v3365_v11 }
  0xf3   :  { %2162 = vmatpush1.bf16.msra.mxu1 %v3360_v12 }
  0xf4   :  { %2374 = vmatpush1.bf16.msra.mxu0 %v3363_v13  ;;  %2163 = vmatprep.subr.bf16.mxu1 %v3368_v14 }
  0xf5   :  { %2375 = vmatprep.subr.bf16.mxu0 %v3371_v15 }
  0xf7   :  { %2164 = vmatpush1.bf16.msra.mxu1 %v3366_v16 }
  0xf8   :  { %2376 = vmatpush1.bf16.msra.mxu0 %v3369_v17  ;;  %2165 = vmatprep.subr.bf16.mxu1 %v3379_v18 }
  0xf9   :  { %2377 = vmatprep.subr.bf16.mxu0 %v3383_v19 }
  0xfb   :  { %2166 = vmatpush1.bf16.msra.mxu1 %v3377_v20  ;;  %v2484_v20 = vlaneseq }
  0xfc   :  { %2378 = vmatpush1.bf16.msra.mxu0 %v3381_v21  ;;  %2167 = vmatprep.subr.bf16.mxu1 %v3386_v22 }
  0xfd   :  { %2379 = vmatprep.subr.bf16.mxu0 %v3389_v23  ;;  %v2485_v21 = vshrl.u32 %v2484_v20, 7  ;;  %v2482_v23 = vld [vmem:[%s4465_s2] sm:$0x3] }
  0xff   :  { %2168 = vmatpush1.bf16.msra.mxu1 %v3384_v24  ;;  %v2486_v22 = vsub.s32 0, %v2485_v21  ;;  %v2490_v24 = vsub.s32 1, %v2485_v21 }
 0x100   :  { %2380 = vmatpush1.bf16.msra.mxu0 %v3387_v25  ;;  %2874 = vmatprep.subr.bf16.mxu1 %v3398_v26 }
 0x101   :  { %2402 = vmatprep.subr.bf16.mxu0 %v3398_v26  ;;  %v2487_v25 = vrot.slane %v2482_v23, %v2486_v22 }
 0x102   :  { %2170 = vmatmul.mubr.bf16.vlgmr.msra.gmra.mrb[0].mxu1 %v3390_v27 }
 0x103   :  { %2382 = vmatmul.mubr.bf16.vlgmr.msra.gmra.mrb[0].mxu0 %v3393_v28  ;;  %2890 = vmatpush1.bf16.msra.mxu1 %v3396_v29  ;;  %v2491_v28 = vrot.slane %v2482_v23, %v2490_v24 }
 0x104   :  { %2403 = vmatpush1.bf16.msra.mxu0 %v3396_v29  ;;  %2875 = vmatprep.subr.bf16.mxu1 %v3401_v30 }
 0x105   :  { %2404 = vmatprep.subr.bf16.mxu0 %v3401_v30  ;;  %2179 = vmatprep.mubr.bf16.mxu1 %v3402_v31 }
 0x106   :  { %2391 = vmatprep.mubr.bf16.mxu0 %v3404_v32 }
 0x107   :  { %2891 = vmatpush1.bf16.msra.mxu1 %v3399_v33 }
 0x108   :  { %2405 = vmatpush1.bf16.msra.mxu0 %v3399_v33  ;;  %2876 = vmatprep.subr.bf16.mxu1 %v3410_v34 }
 0x109   :  { %2406 = vmatprep.subr.bf16.mxu0 %v3410_v34 }
 0x10a   :  { %2180 = vmatmul.mubr.bf16.gmra.mrb[4].mxu1 %v3406_v35 }
 0x10b   :  { %2392 = vmatmul.mubr.bf16.gmra.mrb[4].mxu0 %v3407_v36  ;;  %2892 = vmatpush1.bf16.msra.mxu1 %v3408_v37 }
 0x10c   :  { %2407 = vmatpush1.bf16.msra.mxu0 %v3408_v37  ;;  %2877 = vmatprep.subr.bf16.mxu1 %v3413_v38 }
 0x10d   :  { %2408 = vmatprep.subr.bf16.mxu0 %v3413_v38  ;;  %2434 = vmatprep.mubr.bf16.mxu0 %v3452_v39 }
 0x10e   :  { %2444 = vmatprep.mubr.bf16.mxu1 %v3455_v40 }
 0x10f   :  { %2893 = vmatpush1.bf16.msra.mxu1 %v3411_v41 }
 0x110   :  { %2409 = vmatpush1.bf16.msra.mxu0 %v3411_v41  ;;  %2878 = vmatprep.subr.bf16.mxu1 %v3416_v42 }
 0x111   :  { %2410 = vmatprep.subr.bf16.mxu0 %v3416_v42 }
 0x113   :  { %2894 = vmatpush1.bf16.msra.mxu1 %v3414_v43 }
 0x114   :  { %2411 = vmatpush1.bf16.msra.mxu0 %v3414_v43  ;;  %2879 = vmatprep.subr.bf16.mxu1 %v3419_v44 }
 0x115   :  { %2412 = vmatprep.subr.bf16.mxu0 %v3419_v44 }
 0x117   :  { %2895 = vmatpush1.bf16.msra.mxu1 %v3417_v45 }
 0x118   :  { %2413 = vmatpush1.bf16.msra.mxu0 %v3417_v45  ;;  %2880 = vmatprep.subr.bf16.mxu1 %v3422_v46 }
 0x119   :  { %2414 = vmatprep.subr.bf16.mxu0 %v3422_v46 }
 0x11b   :  { %2896 = vmatpush1.bf16.msra.mxu1 %v3420_v47 }
 0x11c   :  { %2415 = vmatpush1.bf16.msra.mxu0 %v3420_v47  ;;  %2881 = vmatprep.subr.bf16.mxu1 %v3425_v48 }
 0x11d   :  { %2416 = vmatprep.subr.bf16.mxu0 %v3425_v48 }
 0x11f   :  { %2897 = vmatpush1.bf16.msra.mxu1 %v3423_v49 }
 0x120   :  { %2417 = vmatpush1.bf16.msra.mxu0 %v3423_v49  ;;  %2882 = vmatprep.subr.bf16.mxu1 %v3428_v50 }
 0x121   :  { %2418 = vmatprep.subr.bf16.mxu0 %v3428_v50 }
 0x123   :  { %2898 = vmatpush1.bf16.msra.mxu1 %v3426_v51 }
 0x124   :  { %2419 = vmatpush1.bf16.msra.mxu0 %v3426_v51  ;;  %2883 = vmatprep.subr.bf16.mxu1 %v3431_v52 }
 0x125   :  { %2420 = vmatprep.subr.bf16.mxu0 %v3431_v52 }
 0x127   :  { %2899 = vmatpush1.bf16.msra.mxu1 %v3429_v53 }
 0x128   :  { %2421 = vmatpush1.bf16.msra.mxu0 %v3429_v53  ;;  %2884 = vmatprep.subr.bf16.mxu1 %v3434_v54 }
 0x129   :  { %2422 = vmatprep.subr.bf16.mxu0 %v3434_v54 }
 0x12b   :  { %2900 = vmatpush1.bf16.msra.mxu1 %v3432_v55 }
 0x12c   :  { %2423 = vmatpush1.bf16.msra.mxu0 %v3432_v55  ;;  %2885 = vmatprep.subr.bf16.mxu1 %v3437_v56 }
 0x12d   :  { %2424 = vmatprep.subr.bf16.mxu0 %v3437_v56 }
 0x12f   :  { %2901 = vmatpush1.bf16.msra.mxu1 %v3435_v57 }
 0x130   :  { %2425 = vmatpush1.bf16.msra.mxu0 %v3435_v57  ;;  %2886 = vmatprep.subr.bf16.mxu1 %v3440_v58 }
 0x131   :  { %2426 = vmatprep.subr.bf16.mxu0 %v3440_v58 }
 0x133   :  { %2902 = vmatpush1.bf16.msra.mxu1 %v3438_v59 }
 0x134   :  { %2427 = vmatpush1.bf16.msra.mxu0 %v3438_v59  ;;  %2887 = vmatprep.subr.bf16.mxu1 %v3443_v60 }
 0x135   :  { %2428 = vmatprep.subr.bf16.mxu0 %v3443_v60 }
 0x137   :  { %2903 = vmatpush1.bf16.msra.mxu1 %v3441_v61 }
 0x138   :  { %2429 = vmatpush1.bf16.msra.mxu0 %v3441_v61  ;;  %2888 = vmatprep.subr.bf16.mxu1 %v3446_v62 }
 0x139   :  { %2430 = vmatprep.subr.bf16.mxu0 %v3446_v62 }
 0x13b   :  { %2904 = vmatpush1.bf16.msra.mxu1 %v3444_v63 }
 0x13c   :  { %2431 = vmatpush1.bf16.msra.mxu0 %v3444_v63  ;;  %2889 = vmatprep.subr.bf16.mxu1 %v3449_v0 }
 0x13d   :  { %2432 = vmatprep.subr.bf16.mxu0 %v3449_v0 }
 0x13f   :  { %2905 = vmatpush1.bf16.msra.mxu1 %v3447_v1 }
 0x140   :  { %2433 = vmatpush1.bf16.msra.mxu0 %v3447_v1 }
 0x142   :  { %2445 = vmatmul.mubr.bf16.vlgmr.msra.gmra.mrb[8].mxu1 %v3453_v3 }
 0x143   :  { %2435 = vmatmul.mubr.bf16.vlgmr.msra.gmra.mrb[0].mxu0 %v3450_v2 }
 0x1d5   :  { %v2171_v4 = vpop.f32.mrb[0].mxu1 }
 0x1d6   :  { %v2173_v5 = vpop.f32.mrb[1].mxu1 }
 0x1d7   :  { %v2175_v6 = vpop.f32.mrb[2].mxu1 }
 0x1d8   :  { %v2177_v7 = vpop.f32.mrb[3].mxu1 }
 0x1dd   :  { %v2181_v8 = vpop.f32.mrb[4].mxu1 }
 0x1de   :  { %v2393_v9 = vpop.f32.mrb[4].mxu0  ;;  %v2183_v11 = vpop.f32.mrb[5].mxu1 }
 0x1df   :  { %v2910_v10 = vadd.f32 %v2393_v9, %v2181_v8  ;;  %v2395_v12 = vpop.f32.mrb[5].mxu0  ;;  %v2185_v14 = vpop.f32.mrb[6].mxu1 }
 0x1e0   :  { %v2912_v13 = vadd.f32 %v2395_v12, %v2183_v11  ;;  %v2397_v15 = vpop.f32.mrb[6].mxu0  ;;  %v2187_v17 = vpop.f32.mrb[7].mxu1 }
 0x1e1   :  { %v2914_v16 = vadd.f32 %v2397_v15, %v2185_v14  ;;  %v2399_v18 = vpop.f32.mrb[7].mxu0 }
 0x1e2   :  { %v2916_v19 = vadd.f32 %v2399_v18, %v2187_v17 }
 0x215   :  { %v2446_v27 = vpop.f32.mrb[8].mxu1 }
 0x216   :  { %v2436_v26 = vpop.f32.mrb[0].mxu0  ;;  %v2911_v30 = vadd.f32 %v2910_v10, %v2446_v27  ;;  %v2448_v32 = vpop.f32.mrb[9].mxu1 }
 0x217   :  { %v2906_v29 = vadd.f32 %v2436_v26, %v2171_v4  ;;  %v2438_v31 = vpop.f32.mrb[1].mxu0  ;;  %v2913_v34 = vadd.f32 %v2912_v13, %v2448_v32  ;;  %v2450_v36 = vpop.f32.mrb[10].mxu1 }
 0x218   :  { %v2907_v33 = vadd.f32 %v2438_v31, %v2173_v5  ;;  %v2440_v35 = vpop.f32.mrb[2].mxu0  ;;  %v2498_v38 = vadd.f32 %v2911_v30, %v2487_v25  ;;  %v2915_v40 = vadd.f32 %v2914_v16, %v2450_v36  ;;  %v2452_v42 = vpop.f32.mrb[11].mxu1 }
 0x219   :  { %v2494_v37 = vadd.f32 %v2906_v29, %v2487_v25  ;;  %v2908_v39 = vadd.f32 %v2440_v35, %v2175_v6  ;;  %v2442_v41 = vpop.f32.mrb[3].mxu0  ;;  %v2499_v44 = vadd.f32 %v2913_v34, %v2491_v28  ;;  %v2917_v46 = vadd.f32 %v2916_v19, %v2452_v42 }
 0x21a   :  { %v2495_v43 = vadd.f32 %v2907_v33, %v2491_v28  ;;  %v2909_v45 = vadd.f32 %v2442_v41, %v2177_v7  ;;  %v2506_v48 = vmax.f32 %v2498_v38, 0.0  ;;  %v2500_v50 = vadd.f32 %v2915_v40, %v2487_v25 }
 0x21b   :  { %v2502_v47 = vmax.f32 %v2494_v37, 0.0  ;;  %v2496_v49 = vadd.f32 %v2908_v39, %v2487_v25  ;;  %v2507_v52 = vmax.f32 %v2499_v44, 0.0  ;;  %v2501_v54 = vadd.f32 %v2917_v46, %v2491_v28 }
 0x21c   :  { %v2503_v51 = vmax.f32 %v2495_v43, 0.0  ;;  %v2497_v53 = vadd.f32 %v2909_v45, %v2491_v28  ;;  %v2508_v56 = vmax.f32 %v2500_v50, 0.0 }
 0x21d   :  { %v2504_v55 = vmax.f32 %v2496_v49, 0.0  ;;  %v2872_v58 = vpack.c.bf16 %v2507_v52, %v2506_v48  ;;  %v2509_v60 = vmax.f32 %v2501_v54, 0.0 }
 0x21e   :  { %v2870_v57 = vpack.c.bf16 %v2503_v51, %v2502_v47  ;;  %v2505_v59 = vmax.f32 %v2497_v53, 0.0 }
 0x21f   :  { %2536 = vst [vmem:[%s4466_s3 + $0x10] sm:$0xff] %v2872_v58  ;;  %v2873_v62 = vpack.c.bf16 %v2509_v60, %v2508_v56 }
 0x220   :  { %2534 = vst [vmem:[%s4466_s3] sm:$0xff] %v2870_v57  ;;  %v2871_v61 = vpack.c.bf16 %v2505_v59, %v2504_v55 }
 0x221   :  { %2537 = vst [vmem:[%s4466_s3 + $0x18] sm:$0xff] %v2873_v62 }
 0x222   :  { %2535 = vst [vmem:[%s4466_s3 + $0x8] sm:$0xff] %v2871_v61 }

</bundles_post_ra>
